<compile_context>
chip_gen: v5e
topology: v5e:2x2
jax: 0.10.0
libtpu: 0.0.40
codegen_flags: <defaults>
</compile_context>

<pallas_src>
import jax
import jax.numpy as jnp
import numpy as np
from jax.experimental import pallas as pl
from jax.experimental.pallas import tpu as pltpu

IGNORED_CLASS_LOGIT = -999.0


def _pick_row_tile(m_total: int, cap: int = 512) -> int:
    """Largest multiple of 8 that divides m_total and is <= cap."""
    best = 8
    d = 8
    while d <= min(m_total, cap):
        if m_total % d == 0:
            best = d
        d += 8
    return best


def _diffusion_sumsq_kernel(x_ref, noise_ref, coef_ref, bias_ref, onehot_ref,
                            w1_ref, w2_ref, out_ref):
    # x_ref      : (1, 1, D_in)       sample image, already transformed to [-1, 1], f32
    # noise_ref  : (1, M_tile, D_in)  gaussian noise rows (class-major, time-minor), bf16
    # coef_ref   : (M_tile, 2)        [sqrt(alpha_bar[t]), sqrt(1 - alpha_bar[t])], f32
    # bias_ref   : (M_tile, hidden)   t_emb[t] + y_emb[class] per row, bf16
    # onehot_ref : (M_tile, NC)       one-hot class membership of each row, f32
    # w1_ref     : (D_in, hidden)     synthetic-UNet layer 1, bf16
    # w2_ref     : (hidden, D_in)     synthetic-UNet layer 2 (pre-sliced to 3 chans), bf16
    # out_ref    : (1, 1, NC)         per-class sum of squared errors (accumulated over mb)
    mb = pl.program_id(1)

    @pl.when(mb == 0)
    def _init():
        out_ref[...] = jnp.zeros_like(out_ref)

    x = x_ref[0]                                       # (1, D_in) f32, in [-1, 1]
    noise = noise_ref[0].astype(jnp.float32)           # (M_tile, D_in)
    sab = coef_ref[:, 0:1]                             # (M_tile, 1)
    s1mab = coef_ref[:, 1:2]                           # (M_tile, 1)
    noised = sab * x + s1mab * noise                   # (M_tile, D_in) == repeat() + noise

    h = jnp.dot(noised.astype(jnp.bfloat16), w1_ref[...],
                preferred_element_type=jnp.float32)    # (M_tile, hidden)
    h = jnp.maximum(h + bias_ref[...].astype(jnp.float32), 0.0)
    pre = jnp.dot(h.astype(jnp.bfloat16), w2_ref[...],
                  preferred_element_type=jnp.float32)  # (M_tile, D_in) == pre[:, :3, :, :]

    diff = pre - noise
    rowsum = jnp.sum(diff * diff, axis=1, keepdims=True)                 # (M_tile, 1)
    partial = jnp.sum(onehot_ref[...] * rowsum, axis=0, keepdims=True)   # (1, NC)
    out_ref[0] = out_ref[0] + partial


def diffusion_classifier_forward(x, params, noise, ts, alpha_bar, target_class,
                                 *, batchsize=32, num_classes=1000,
                                 remain_ignored_class_logit=False):
    N, C, H, W = x.shape
    D_in = C * H * W
    hidden = params["w1"].shape[1]
    T_total = ts.shape[0]
    assert T_total % batchsize == 0
    S = batchsize
    K = T_total // S
    NC = len(target_class)
    M_total = NC * T_total                     # rows per sample: (class, chunk, step)
    assert M_total % 8 == 0
    M_tile = _pick_row_tile(M_total, cap=512)
    MB = M_total // M_tile

    tc = jnp.asarray(target_class, dtype=jnp.int32)

    # Hoisted image transform (review item: do (x - 0.5) * 2 once, not per grid step).
    x_tr = ((x.reshape(N, 1, D_in).astype(jnp.float32)) - 0.5) * 2.0

    # Per-row noising coefficients, packed into one lane-dense (M_total, 2) array.
    ab_ts = alpha_bar[ts].astype(jnp.float32)                            # (T,)
    coef_t = jnp.stack([jnp.sqrt(ab_ts), jnp.sqrt(1.0 - ab_ts)], axis=-1)  # (T, 2)
    coef = jnp.tile(coef_t, (NC, 1)).astype(jnp.float32)                 # (M_total, 2)

    # Per-row conditioning bias: t_emb[t] + y_emb[class]  (class fusion => bias only).
    temb = params["t_emb"][ts]                                           # (T, hidden)
    yemb = params["y_emb"][tc]                                           # (NC, hidden)
    bias = (yemb[:, None, :] + temb[None, :, :]).reshape(M_total, hidden)
    bias = bias.astype(jnp.bfloat16)

    # One-hot class membership per row (rows are class-major).
    onehot = jnp.repeat(jnp.eye(NC, dtype=jnp.float32), T_total, axis=0)  # (M_total, NC)

    # bf16 matmul operands; w2 pre-sliced to the 3 used output channels.
    w1b = params["w1"].astype(jnp.bfloat16)                              # (D_in, hidden)
    w2b = params["w2"][:, :D_in].astype(jnp.bfloat16)                    # (hidden, D_in)

    # Noise rows, class-major then time: row r = c*T + k*S + s.
    noise_rows = noise.reshape(N, M_total, D_in).astype(jnp.bfloat16)

    out = pl.pallas_call(
        _diffusion_sumsq_kernel,
        out_shape=jax.ShapeDtypeStruct((N, 1, NC), jnp.float32),
        grid_spec=pltpu.PrefetchScalarGridSpec(
            num_scalar_prefetch=0,
            grid=(N, MB),
            in_specs=[
                pl.BlockSpec((1, 1, D_in), lambda i, m: (i, 0, 0)),       # x
                pl.BlockSpec((1, M_tile, D_in), lambda i, m: (i, m, 0)),  # noise rows
                pl.BlockSpec((M_tile, 2), lambda i, m: (m, 0)),           # coef
                pl.BlockSpec((M_tile, hidden), lambda i, m: (m, 0)),      # bias
                pl.BlockSpec((M_tile, NC), lambda i, m: (m, 0)),          # onehot
                pl.BlockSpec((D_in, hidden), lambda i, m: (0, 0)),        # w1
                pl.BlockSpec((hidden, D_in), lambda i, m: (0, 0)),        # w2 (sliced)
            ],
            out_specs=pl.BlockSpec((1, 1, NC), lambda i, m: (i, 0, 0)),
        ),
        compiler_params=pltpu.CompilerParams(
            dimension_semantics=("parallel", "arbitrary")),
    )(x_tr, noise_rows, coef, bias, onehot, w1b, w2b)

    # sum_k MSE_k * S/batchsize / (1000/batchsize)  ==  sum_sq_c / (1000 * D_in)
    sumsq = out[:, 0, :]                                                 # (N, NC)
    y = -sumsq / (1000.0 * D_in)

    result = jnp.full((N, num_classes), -IGNORED_CLASS_LOGIT, dtype=jnp.float32)
    result = result.at[:, tc].set(y)
    if not remain_ignored_class_logit:
        result = result[:, tc]
    return result


def reference_forward(x, params, noise, ts, alpha_bar, target_class,
                      *, batchsize=32, num_classes=1000,
                      remain_ignored_class_logit=False):
    """Pure-JAX (f32) reference mirroring the torch module's loop structure."""
    N, C, H, W = x.shape
    D_in = C * H * W
    K = ts.shape[0] // batchsize
    S = batchsize
    ts_chunks = ts.reshape(K, S)
    ab = alpha_bar[ts_chunks]
    x_flat = (x.reshape(N, D_in) - 0.5) * 2.0
    logits = []
    for i in range(N):
        row = []
        for ci, cls in enumerate(target_class):
            total = 0.0
            for k in range(K):
                sab = jnp.sqrt(ab[k])[:, None]
                s1 = jnp.sqrt(1.0 - ab[k])[:, None]
                nz = noise[i, ci, k]
                nx = sab * x_flat[i][None, :] + s1 * nz
                h = jnp.maximum(nx @ params["w1"]
                                + params["t_emb"][ts_chunks[k]]
                                + params["y_emb"][cls][None, :], 0.0)
                pre = h @ params["w2"]
                diff = pre[:, :D_in] - nz
                total = total + jnp.mean(diff * diff) * S / batchsize
            row.append(-(total / (1000.0 / batchsize)))
        logits.append(jnp.stack(row))
    y = jnp.stack(logits)
    result = jnp.full((N, num_classes), -IGNORED_CLASS_LOGIT, dtype=jnp.float32)
    result = result.at[:, jnp.asarray(target_class)].set(y)
    if not remain_ignored_class_logit:
        result = result[:, jnp.asarray(target_class)]
    return result


if __name__ == "__main__":
    # Small, module-consistent shapes.
    N, C, H, W = 2, 3, 16, 16
    hidden = 256
    D_in = C * H * W           # 768
    D_out = 2 * D_in           # UNet emits 6 channels (eps + var); module slices [:, :3]
    target_class = (0, 100, 200, 300, 400, 500, 600, 700, 800, 900)
    batchsize = 32
    T_small = 64               # reduced ts (module default ts = arange(1000))

    key = jax.random.PRNGKey(0)
    kx, kw1, kw2, kt, ky, kn = jax.random.split(key, 6)

    x = jax.random.uniform(kx, (N, C, H, W), dtype=jnp.float32)   # images in [0, 1]
    params = dict(
        w1=jax.random.normal(kw1, (D_in, hidden), jnp.float32) / jnp.sqrt(D_in),
        w2=jax.random.normal(kw2, (hidden, D_out), jnp.float32) / jnp.sqrt(hidden),
        t_emb=0.1 * jax.random.normal(kt, (1000, hidden), jnp.float32),
        y_emb=0.1 * jax.random.normal(ky, (1000, hidden), jnp.float32),
    )

    # beta / alpha_bar schedule exactly as in the module.
    beta = jnp.linspace(0.1 / 1000, 20 / 1000, 1000, dtype=jnp.float32)
    alpha_bar = jnp.cumprod(1.0 - beta)
    ts = jnp.arange(T_small, dtype=jnp.int32)

    # Fresh gaussian noise per (sample, class, t-chunk) call, like randn_like().
    K = T_small // batchsize
    noise = jax.random.normal(
        kn, (N, len(target_class), K, batchsize, D_in), dtype=jnp.float32)

    logits = diffusion_classifier_forward(
        x, params, noise, ts, alpha_bar, target_class,
        batchsize=batchsize, num_classes=1000, remain_ignored_class_logit=False)
    jax.block_until_ready(logits)
    assert logits.shape == (N, len(target_class))

    ref = reference_forward(
        x, params, noise, ts, alpha_bar, target_class,
        batchsize=batchsize, num_classes=1000, remain_ignored_class_logit=False)
    np.testing.assert_allclose(np.asarray(logits), np.asarray(ref),
                               rtol=1e-2, atol=1e-2)
    print("KERNEL_OK")
</pallas_src>

<mosaic_0001>
module attributes {stable_mosaic.version = 11 : i64} {
  func.func @_diffusion_sumsq_kernel(%arg0: i32, %arg1: i32, %arg2: memref<1x1x768xf32, #tpu.memory_space<vmem>>, %arg3: memref<1x320x768xbf16, #tpu.memory_space<vmem>>, %arg4: memref<320x2xf32, #tpu.memory_space<vmem>>, %arg5: memref<320x256xbf16, #tpu.memory_space<vmem>>, %arg6: memref<320x10xf32, #tpu.memory_space<vmem>>, %arg7: memref<768x256xbf16, #tpu.memory_space<vmem>>, %arg8: memref<256x768xbf16, #tpu.memory_space<vmem>>, %arg9: memref<1x1x10xf32, #tpu.memory_space<vmem>>) attributes {dimension_semantics = [#tpu.dimension_semantics<parallel>, #tpu.dimension_semantics<arbitrary>], iteration_bounds = array<i64: 2, 2>, scalar_prefetch = 0 : i64, scratch_operands = 0 : i64, tpu.core_type = #tpu.core_type<tc>, window_params = [{transform_indices = @transform_0, window_bounds = array<i64: 1, 1, 768>}, {transform_indices = @transform_1, window_bounds = array<i64: 1, 320, 768>}, {transform_indices = @transform_2, window_bounds = array<i64: 320, 2>}, {transform_indices = @transform_3, window_bounds = array<i64: 320, 256>}, {transform_indices = @transform_4, window_bounds = array<i64: 320, 10>}, {pipeline_mode = #tpu.pipeline_mode<synchronous>, transform_indices = @transform_5, window_bounds = array<i64: 768, 256>}, {pipeline_mode = #tpu.pipeline_mode<synchronous>, transform_indices = @transform_6, window_bounds = array<i64: 256, 768>}, {transform_indices = @transform_7, window_bounds = array<i64: 1, 1, 10>}]} {
    %c0_i32 = arith.constant 0 : i32
    %0 = arith.cmpi eq, %arg1, %c0_i32 : i32
    %1 = arith.extui %0 : i1 to i32
    %c0_i32_0 = arith.constant 0 : i32
    %2 = arith.cmpi ne, %1, %c0_i32_0 : i32
    scf.if %2 {
      %cst_27 = arith.constant 0.000000e+00 : f32
      %42 = vector.broadcast %cst_27 : f32 to vector<1x1x10xf32>
      %c0_28 = arith.constant 0 : index
      %c0_29 = arith.constant 0 : index
      %c0_30 = arith.constant 0 : index
      %43 = vector.load %arg9[%c0_28, %c0_29, %c0_30] : memref<1x1x10xf32, #tpu.memory_space<vmem>>, vector<1x1x10xf32>
      tpu.vector_store %arg9[%c0_28, %c0_29, %c0_30], %42 {strides = array<i32>} : memref<1x1x10xf32, #tpu.memory_space<vmem>>, vector<1x1x10xf32>,
    } else {
    }
    %c0 = arith.constant 0 : index
    %c0_1 = arith.constant 0 : index
    %c0_2 = arith.constant 0 : index
    %3 = vector.load %arg2[%c0, %c0_1, %c0_2] : memref<1x1x768xf32, #tpu.memory_space<vmem>>, vector<1x1x768xf32>
    %4 = vector.shape_cast %3 : vector<1x1x768xf32> to vector<1x768xf32>
    %c0_3 = arith.constant 0 : index
    %c0_4 = arith.constant 0 : index
    %c0_5 = arith.constant 0 : index
    %5 = vector.load %arg3[%c0_3, %c0_4, %c0_5] : memref<1x320x768xbf16, #tpu.memory_space<vmem>>, vector<1x320x768xbf16>
    %6 = vector.shape_cast %5 : vector<1x320x768xbf16> to vector<320x768xbf16>
    %7 = arith.extf %6 : vector<320x768xbf16> to vector<320x768xf32>
    %c0_6 = arith.constant 0 : index
    %c0_7 = arith.constant 0 : index
    %8 = vector.load %arg4[%c0_6, %c0_7] : memref<320x2xf32, #tpu.memory_space<vmem>>, vector<320x1xf32>
    %c0_8 = arith.constant 0 : index
    %c1 = arith.constant 1 : index
    %9 = vector.load %arg4[%c0_8, %c1] : memref<320x2xf32, #tpu.memory_space<vmem>>, vector<320x1xf32>
    %10 = vector.broadcast %8 : vector<320x1xf32> to vector<320x768xf32>
    %11 = vector.broadcast %4 : vector<1x768xf32> to vector<320x768xf32>
    %12 = arith.mulf %10, %11 : vector<320x768xf32>
    %13 = vector.broadcast %9 : vector<320x1xf32> to vector<320x768xf32>
    %14 = arith.mulf %13, %7 : vector<320x768xf32>
    %15 = arith.addf %12, %14 : vector<320x768xf32>
    %16 = arith.truncf %15 : vector<320x768xf32> to vector<320x768xbf16>
    %c0_9 = arith.constant 0 : index
    %c0_10 = arith.constant 0 : index
    %17 = vector.load %arg7[%c0_9, %c0_10] : memref<768x256xbf16, #tpu.memory_space<vmem>>, vector<768x256xbf16>
    %cst = arith.constant dense<0.000000e+00> : vector<320x256xf32>
    %18 = tpu.matmul %16, %17, %cst {dimension_numbers = #tpu.dot_dimension_numbers<[1], [0], [0], [1], [0, 0, 1, 1], [], []>} : vector<320x768xbf16>, vector<768x256xbf16>, vector<320x256xf32> -> vector<320x256xf32>
    %c0_11 = arith.constant 0 : index
    %c0_12 = arith.constant 0 : index
    %19 = vector.load %arg5[%c0_11, %c0_12] : memref<320x256xbf16, #tpu.memory_space<vmem>>, vector<320x256xbf16>
    %20 = arith.extf %19 : vector<320x256xbf16> to vector<320x256xf32>
    %21 = arith.addf %18, %20 : vector<320x256xf32>
    %cst_13 = arith.constant 0.000000e+00 : f32
    %22 = vector.broadcast %cst_13 : f32 to vector<320x256xf32>
    %23 = arith.maximumf %21, %22 : vector<320x256xf32>
    %24 = arith.truncf %23 : vector<320x256xf32> to vector<320x256xbf16>
    %c0_14 = arith.constant 0 : index
    %c0_15 = arith.constant 0 : index
    %25 = vector.load %arg8[%c0_14, %c0_15] : memref<256x768xbf16, #tpu.memory_space<vmem>>, vector<256x768xbf16>
    %cst_16 = arith.constant dense<0.000000e+00> : vector<320x768xf32>
    %26 = tpu.matmul %24, %25, %cst_16 {dimension_numbers = #tpu.dot_dimension_numbers<[1], [0], [0], [1], [0, 0, 1, 1], [], []>} : vector<320x256xbf16>, vector<256x768xbf16>, vector<320x768xf32> -> vector<320x768xf32>
    %27 = arith.subf %26, %7 : vector<320x768xf32>
    %28 = arith.mulf %27, %27 : vector<320x768xf32>
    %cst_17 = arith.constant dense<0.000000e+00> : vector<320xf32>
    %29 = vector.multi_reduction <add>, %28, %cst_17 [1] : vector<320x768xf32> to vector<320xf32>
    %30 = vector.shape_cast %29 : vector<320xf32> to vector<320x1xf32>
    %c0_18 = arith.constant 0 : index
    %c0_19 = arith.constant 0 : index
    %31 = vector.load %arg6[%c0_18, %c0_19] : memref<320x10xf32, #tpu.memory_space<vmem>>, vector<320x10xf32>
    %32 = vector.broadcast %30 : vector<320x1xf32> to vector<320x10xf32>
    %33 = arith.mulf %31, %32 : vector<320x10xf32>
    %cst_20 = arith.constant dense<0.000000e+00> : vector<10xf32>
    %34 = vector.multi_reduction <add>, %33, %cst_20 [0] : vector<320x10xf32> to vector<10xf32>
    %35 = vector.shape_cast %34 : vector<10xf32> to vector<1x10xf32>
    %c0_21 = arith.constant 0 : index
    %c0_22 = arith.constant 0 : index
    %c0_23 = arith.constant 0 : index
    %36 = vector.load %arg9[%c0_21, %c0_22, %c0_23] : memref<1x1x10xf32, #tpu.memory_space<vmem>>, vector<1x1x10xf32>
    %37 = vector.shape_cast %36 : vector<1x1x10xf32> to vector<1x10xf32>
    %38 = arith.addf %37, %35 : vector<1x10xf32>
    %c0_24 = arith.constant 0 : index
    %c0_25 = arith.constant 0 : index
    %c0_26 = arith.constant 0 : index
    %39 = vector.load %arg9[%c0_24, %c0_25, %c0_26] : memref<1x1x10xf32, #tpu.memory_space<vmem>>, vector<1x1x10xf32>
    %40 = vector.shape_cast %39 : vector<1x1x10xf32> to vector<1x10xf32>
    %41 = vector.shape_cast %38 : vector<1x10xf32> to vector<1x1x10xf32>
    tpu.vector_store %arg9[%c0_24, %c0_25, %c0_26], %41 {strides = array<i32>} : memref<1x1x10xf32, #tpu.memory_space<vmem>>, vector<1x1x10xf32>,
    return
  }
  func.func @transform_0(%arg0: i32, %arg1: i32) -> (i32, i32, i32) {
    %c0_i32 = arith.constant 0 : i32
    %c0_i32_0 = arith.constant 0 : i32
    %c0_i32_1 = arith.constant 0 : i32
    return %arg0, %c0_i32, %c0_i32_0 : i32, i32, i32
  }
  func.func @transform_1(%arg0: i32, %arg1: i32) -> (i32, i32, i32) {
    %c0_i32 = arith.constant 0 : i32
    %c0_i32_0 = arith.constant 0 : i32
    return %arg0, %arg1, %c0_i32 : i32, i32, i32
  }
  func.func @transform_2(%arg0: i32, %arg1: i32) -> (i32, i32) {
    %c0_i32 = arith.constant 0 : i32
    %c0_i32_0 = arith.constant 0 : i32
    return %arg1, %c0_i32 : i32, i32
  }
  func.func @transform_3(%arg0: i32, %arg1: i32) -> (i32, i32) {
    %c0_i32 = arith.constant 0 : i32
    %c0_i32_0 = arith.constant 0 : i32
    return %arg1, %c0_i32 : i32, i32
  }
  func.func @transform_4(%arg0: i32, %arg1: i32) -> (i32, i32) {
    %c0_i32 = arith.constant 0 : i32
    %c0_i32_0 = arith.constant 0 : i32
    return %arg1, %c0_i32 : i32, i32
  }
  func.func @transform_5(%arg0: i32, %arg1: i32) -> (i32, i32) {
    %c0_i32 = arith.constant 0 : i32
    %c0_i32_0 = arith.constant 0 : i32
    %c0_i32_1 = arith.constant 0 : i32
    return %c0_i32, %c0_i32_0 : i32, i32
  }
  func.func @transform_6(%arg0: i32, %arg1: i32) -> (i32, i32) {
    %c0_i32 = arith.constant 0 : i32
    %c0_i32_0 = arith.constant 0 : i32
    %c0_i32_1 = arith.constant 0 : i32
    return %c0_i32, %c0_i32_0 : i32, i32
  }
  func.func @transform_7(%arg0: i32, %arg1: i32) -> (i32, i32, i32) {
    %c0_i32 = arith.constant 0 : i32
    %c0_i32_0 = arith.constant 0 : i32
    %c0_i32_1 = arith.constant 0 : i32
    return %arg0, %c0_i32, %c0_i32_0 : i32, i32, i32
  }
}

</mosaic_0001>

<bundles_post_ra>
// kernel: tpu_custom_call.1
= control target key start
LH: loop header
LB: loop body
LE: loop exit
PB: predicated region body
PF: predicated region fallthrough
CT: control target
= control target key end

     0   :  { %s13306_s0 = inlined_call_operand.hbm [shape: f32[2,1,768], index: 0, kind: input, shape index: {}]   ;;  %s13307_s1 = inlined_call_operand.hbm [shape: bf16[2,640,768], index: 1, kind: input, shape index: {}]   ;;  %s13308_s2 = inlined_call_operand.vmem [shape: f32[640,2], index: 2, kind: input, shape index: {}]   ;;  %s13309_s3 = inlined_call_operand.hbm [shape: bf16[640,256], index: 3, kind: input, shape index: {}]   ;;  %s13310_s4 = inlined_call_operand.vmem [shape: f32[640,10], index: 4, kind: input, shape index: {}]   ;;  %s13311_s5 = inlined_call_operand.hbm [shape: bf16[768,256], index: 5, kind: input, shape index: {}]   ;;  %s13312_s6 = inlined_call_operand.hbm [shape: bf16[256,768], index: 6, kind: input, shape index: {}]   ;;  %s13313_s7 = inlined_call_operand.hbm [shape: f32[2,1,10], index: 7, kind: output, shape index: {}]  }
   0x1   :  { %13979 = sst [smem:[#allocation265_spill]] %s13306_s0 }
   0x2   :  { %13980 = sst [smem:[#allocation266_spill]] %s13307_s1 }
   0x3   :  { %13981 = sst [smem:[#allocation267_spill]] %s13308_s2 }
   0x4   :  { %13982 = sst [smem:[#allocation268_spill]] %s13310_s4 }
   0x5   :  { %13983 = sst [smem:[#allocation269_spill]] %s13311_s5 }
   0x6   :  { %13984 = sst [smem:[#allocation270_spill]] %s13313_s7 }
   0x7   :  { %12 = vsyncpa [#allocation3], 0 }
   0x8   :  { %14 = vsyncpa [#allocation3 + $0x1], 0 }
   0x9   :  { %15 = vsyncpa [#allocation6], 0 }
   0xa   :  { %17 = vsyncpa [#allocation6 + $0x1], 0 }
   0xb   :  { %18 = vsyncpa [#allocation9], 0 }
   0xc   :  { %19 = vsyncpa [#allocation4], 0 }
   0xd   :  { %21 = vsyncpa [#allocation4 + $0x1], 0  ;;  %s8811_s24 = smov 0   ;;  %s8813_s25 = smov 0  }
   0xe   :  { %s8815_s26 = smov 0   ;;  %s8817_s27 = smov 0  }
   0xf   :  { %s8819_s28 = smov 0   ;;  %s8821_s29 = smov 0  }
  0x10   :  { %s8823_s30 = smov 0   ;;  %s8825_s8 = smov 0  }
  0x11   :  { %s8827_s9 = smov 0   ;;  %s8829_s10 = smov 0  }
  0x12   :  { %s8831_s11 = smov 0   ;;  %s8833_s12 = smov 0  }
  0x13   :  { %s8835_s13 = smov 0   ;;  %s8837_s14 = smov 0  }
  0x14 LB: > { %13985 = sst [smem:[#allocation17_spill]] %s8724_s28  ;;  %s8882_s15 = sadd.s32 4294967295, %s8760_s14   ;;  %s8760_s14 = sphi %s8837_s14, %s27_s14   ;;  %s8756_s13 = sphi %s8835_s13, %s15073_s13   ;;  %s8752_s12 = sphi %s8833_s12, %s15072_s12   ;;  %s8748_s11 = sphi %s8831_s11, %s15071_s11   ;;  %s8744_s10 = sphi %s8829_s10, %s15070_s10   ;;  %s8740_s9 = sphi %s8827_s9, %s15069_s9   ;;  %s8736_s8 = sphi %s8825_s8, %s15068_s8   ;;  %s8732_s30 = sphi %s8823_s30, %s15067_s30   ;;  %s8728_s29 = sphi %s8821_s29, %s15059_s29   ;;  %s8724_s28 = sphi %s8819_s28, %s15058_s28   ;;  %s8720_s27 = sphi %s8817_s27, %s15066_s27   ;;  %s8716_s26 = sphi %s8815_s26, %s15065_s26   ;;  %s8712_s25 = sphi %s8813_s25, %s15064_s25   ;;  %s8708_s24 = sphi %s8811_s24, %s15063_s24  }
  0x15   : > { %13986 = sst [smem:[#allocation18_spill]] %s8728_s29  ;;  %p7212_p0 = scmp.ge.s32.totalorder %s8760_s14, 1 }
  0x16   : > { %13987 = sst [smem:[#allocation19_spill]] %s8744_s10  ;;  %p13325_p1 = scmp.eq.s32.totalorder %s8882_s15, 0 }
  0x17   : > { %13988 = sst [smem:[#allocation20_spill]] %s8748_s11  ;;  %p244_p2 = scmp.lt.s32.totalorder %s8760_s14, 5 }
  0x18   : > { %s13989_s5 = sld [smem:[#allocation269_spill]]  ;;  %s8762_s20 = smov [#allocation8]  }
  0x19   : > { %p8890_p3 = pnand %p7212_p0, %p244_p2  ;;  %s257_s21 = sshll.u32 %s8762_s20, 4  ;;  %s258_s21 = int_to_ptr.vmem [resolvable:$true] %s257_s21 }
  0x1a   : > { %s13315_s23 = smov 128   ;;  %s13316_s16 = smov 8  }
  0x1b   : > { %s13990_s19 = scalar_select %p8890_p3, 1, 0 }
  0x1c   : > { %p8215_p4 = pneg %p8890_p3  ;;  %s36_s17 = sadd.s32 1, %s8752_s12 }
  0x1d   : > { %13991 = sst [smem:[#allocation21_spill]] %s13990_s19  ;;  %p37_p6 = scmp.ge.s32.totalorder %s36_s17, 2 }
  0x1e   : > { %s255_s18 = sshll.u32 %s13989_s5, 4  ;;  %p8898_p5 = pnand %p8215_p4, %p13325_p1  ;;  %s256_s18 = int_to_ptr.hbm [resolvable:$true] %s255_s18 }
  0x1f   : > { %s39_s20 = sadd.s32 1, %s8756_s13  ;;  %p54_p7 = scmp.eq.s32.totalorder %s8760_s14, 0 }
  0x20   : > { %8218 = dma.hbm_to_vmem [thread:$0]  (!%p8898_p5), %s256_s18, 12288, %s258_s21, [#allocation9], %s13315_s23, %s13315_s23, %s13316_s16  }
  0x21   : > { %s74_s5 = sadd.s32 1, %s8728_s29  ;;  %s15075_s17 = smov (%p37_p6, %s36_s17), 0 }
  0x22   : > { %13993 = sst [smem:[#allocation22_spill]] %s15075_s17  ;;  %s15077_s20 = smov (!%p37_p6, %s39_s20), %s8756_s13 }
  0x23   : > { %s8916_s7 = ssub.s32 %s8752_s12, %s15075_s17  ;;  %p81_p8 = scmp.ne.s32.totalorder %s8728_s29, %s8724_s28 }
  0x24   : > { %p41_p9 = scmp.ge.s32.totalorder %s15077_s20, 2  ;;  %p87_p10 = scmp.ne.s32.totalorder %s8724_s28, %s8720_s27 }
  0x25   : > { %p83_p11 = por %p81_p8, %p54_p7  ;;  %p124_p12 = scmp.eq.s32.totalorder %s8916_s7, 0 }
  0x26   : > { %s15079_s20 = smov (%p41_p9, %s15077_s20), 0  ;;  %p8929_p13 = por %p87_p10, %p13325_p1 }
  0x27   : > { %13994 = sst [smem:[#allocation23_spill]] %s15079_s20  ;;  %s8935_s21 = ssub.s32 %s8756_s13, %s15079_s20 }
  0x28   : > { %s13995_s18 = scalar_select %p8929_p13, 1, 0 }
  0x29   : > { %s71_s23 = sor.u32 %s8916_s7, %s8935_s21  ;;  %p8238_p0 = scmp.lt.s32.totalorder %s8760_s14, 4 }
  0x2a   : > { %13996 = sst [smem:[#allocation24_spill]] %s13995_s18  ;;  %p72_p2 = scmp.eq.s32.totalorder %s71_s23, 0 }
  0x2b   : > { %s304_s16 = sand.u32 1, %s8760_s14   ;;  %s306_s27 = sand.u32 1, %s8728_s29  }
  0x2c   : > { %s8943_s17 = scalar_select %p72_p2, %s8728_s29, %s74_s5  }
  0x2d   : > { %s8192_s11 = smul.u32 960, %s306_s27  ;;  %p8947_p4 = pnand %p8238_p0, %p83_p11 }
  0x2e   : > { %13997 = sst [smem:[#allocation25_spill]] %s8943_s17  ;;  %s269_s18 = sshll.u32 %s13312_s6, 4  ;;  %s270_s18 = int_to_ptr.hbm [resolvable:$true] %s269_s18 }
  0x2f   : > { %s8239_s20 = smul.u32 240, %s8752_s12  ;;  %s308_s19 = scalar_lea.vmem [#allocation5], %s8192_s11 }
  0x30   : > { %s8194_s28 = smul.u32 480, %s8756_s13  ;;  %s319_s23 = sshll.u32 %s308_s19, 4  ;;  %s320_s23 = int_to_ptr.vmem [resolvable:$true] %s319_s23 }
  0x31   : > { %s13999_s1 = sld [smem:[#allocation266_spill]]  ;;  %s8765_s10 = smov [#allocation10]  }
  0x32   : > { %s314_s5 = sadd.s32 %s8239_s20, %s8194_s28  ;;  %s271_s11 = sshll.u32 %s8765_s10, 4  ;;  %s272_s11 = int_to_ptr.vmem [resolvable:$true] %s271_s11 }
  0x33   : > { %s7216_s27 = sshll.u32 %s314_s5, 2  ;;  %s8959_s28 = scalar_lea.sflag [#allocation6], %s304_s16 }
  0x34   : > { %s8766_s20 = smov 384   ;;  %s8767_s5 = smov 24  }
  0x35   : > { %8221 = dma.hbm_to_vmem [thread:$0]  (!%p8898_p5), %s270_s18, 12288, %s272_s11, [#allocation9], %s8766_s20, %s8766_s20, %s8767_s5  }
  0x36   : > { %s7211_s29 = sadd.s32 4294967294, %s8760_s14   ;;  %p44_p6 = scmp.eq.s32.totalorder %s8935_s21, 0 }
  0x37   : > { %s316_s2 = scalar_lea.hbm %s13999_s1, %s7216_s27  ;;  %s46_s17 = sadd.s32 1, %s8740_s9 }
  0x38   : > { %s317_s19 = sshll.u32 %s316_s2, 4  ;;  %p53_p8 = scmp.ne.s32.totalorder %s8740_s9, %s8736_s8  ;;  %s318_s19 = int_to_ptr.hbm [resolvable:$true] %s317_s19 }
  0x39   : > { %8228 = dma.hbm_to_vmem [thread:$0]  (!%p8947_p4), %s318_s19, 15360, %s320_s23, %s8959_s28, %s8766_s20, %s8766_s20, %s8767_s5  }
  0x3a   : > { %p59_p9 = scmp.ne.s32.totalorder %s8736_s8, %s8732_s30  ;;  %p55_p10 = por %p54_p7, %p53_p8 }
  0x3b   : > { %s8974_s27 = scalar_select %p44_p6, %s8740_s9, %s46_s17  }
  0x3c   : > { %p8980_p11 = por %p13325_p1, %p59_p9  ;;  %p231_p2 = scmp.eq.s32.totalorder %s8882_s15, 3 }
  0x3d   : > { %p237_p4 = scmp.eq.s32.totalorder %s7211_s29, 3  ;;  %s285_s4 = sand.u32 1, %s8740_s9  }
  0x3e   : > { %s8191_s22 = smul.u32 6, %s8756_s13  ;;  %p8987_p5 = por %p231_p2, %p53_p8 }
  0x3f   : > { %p8991_p6 = por %p237_p4, %p59_p9  ;;  %s8190_s23 = smul.u32 6, %s285_s4 }
  0x40   : > { %s14003_s0 = sld [smem:[#allocation265_spill]]  ;;  %p8223_p1 = pnand %p8238_p0, %p55_p10 }
  0x41   : > { %s289_s20 = scalar_lea.vmem [#allocation2], %s8190_s23  ;;  %s286_s29 = scalar_lea.sflag [#allocation3], %s285_s4 }
  0x42   : > { %s297_s5 = sshll.u32 %s289_s20, 4  ;;  %s126_s17 = sadd.s32 1, %s8716_s26  ;;  %s298_s5 = int_to_ptr.vmem [resolvable:$true] %s297_s5 }
  0x43   : > { %p133_p8 = scmp.ne.s32.totalorder %s8716_s26, %s8712_s25  ;;  %p139_p2 = scmp.ne.s32.totalorder %s8712_s25, %s8708_s24 }
  0x44   : > { %s9006_s1 = scalar_select %p124_p12, %s8716_s26, %s126_s17  }
  0x45   : > { %p135_p9 = por %p133_p8, %p54_p7  ;;  %s8189_s2 = smul.u32 320, %s8752_s12 }
  0x46   : > { %s293_s11 = scalar_lea.hbm %s14003_s0, %s8191_s22  ;;  %s340_s22 = sand.u32 1, %s8716_s26  }
  0x47   : > { %s295_s19 = sshll.u32 %s293_s11, 4  ;;  %p14004_p10 = scmp.eq.s32.totalorder %s8882_s15, 0  ;;  %s296_s19 = int_to_ptr.hbm [resolvable:$true] %s295_s19 }
  0x48   : > { %8225 = dma.hbm_to_vmem [thread:$0]  (!%p8223_p1), %s296_s19, 96, %s298_s5, %s286_s29  }
  0x49   : > { %p9016_p4 = por %p139_p2, %p14004_p10  ;;  %s8195_s23 = smul.u32 320, %s340_s22 }
  0x4a   : > { %s348_s19 = scalar_lea.hbm %s13309_s3, %s8189_s2  ;;  %p8229_p1 = pnand %p8238_p0, %p135_p9 }
  0x4b   : > { %s349_s7 = sshll.u32 %s348_s19, 4  ;;  %s342_s20 = scalar_lea.vmem [#allocation7], %s8195_s23  ;;  %s350_s7 = int_to_ptr.hbm [resolvable:$true] %s349_s7 }
  0x4c   : > { %s351_s5 = sshll.u32 %s342_s20, 4  ;;  %s14006_s24 = smov 8   ;;  %s352_s5 = int_to_ptr.vmem [resolvable:$true] %s351_s5 }
  0x4d   : > { %s14007_s29 = smov 128   ;;  %372 = sbr.rel (%p8890_p3) target bundleno = 2443 (0x98b), region = 48 }
  0x4e   : > { %8231 = dma.hbm_to_vmem [thread:$0]  (!%p8229_p1), %s350_s7, 5120, %s352_s5, %s8959_s28, %s14007_s29, %s14007_s29, %s14006_s24  }
  0x52   : > { %s9032_s22 = sand.u32 1, %s8736_s8  }
  0x53   : > { %s8196_s2 = smul.u32 6, %s9032_s22  ;;  %s375_s11 = scalar_lea.sflag [#allocation3], %s9032_s22 }
  0x55   : > { %s9036_s4 = scalar_lea.vmem [#allocation2], %s8196_s2 }
  0x56   : > { %8687 = dma.done.wait (%p8980_p11), %s375_s11, 96  }
  0x57   : > { %8689 = vsyncadd (%p8980_p11), %s375_s11, 4294967200  ;;  %s14009_s28 = sld [smem:[#allocation17_spill]]  ;;  %s384_s19 = sand.u32 1, %s8882_s15  }
  0x58   : > { %s385_s5 = scalar_lea.sflag [#allocation6], %s384_s19 }
  0x5d   : > { %s386_s7 = sand.u32 1, %s14009_s28  }
  0x5e   : > { %s8197_s20 = smul.u32 960, %s386_s7 }
  0x60   : > { %s9044_s24 = scalar_lea.vmem [#allocation5], %s8197_s20 }
  0x61   : > { %8691 = dma.done.wait (%p8929_p13), %s385_s5, 15360  }
  0x62   : > { %8693 = vsyncadd (%p8929_p13), %s385_s5, 4294951936  ;;  %s396_s29 = sand.u32 1, %s8712_s25  }
  0x63   : > { %s8198_s17 = smul.u32 320, %s396_s29 }
  0x65   : > { %s9051_s16 = scalar_lea.vmem [#allocation7], %s8198_s17 }
  0x66   : > { %8695 = dma.done.wait (%p9016_p4), %s385_s5, 5120  }
  0x67   : > { %8697 = vsyncadd (%p9016_p4), %s385_s5, 4294962176  ;;  %p14011_p3 = scmp.eq.s32.totalorder %s8882_s15, 0 }
  0x69   : > { %8699 = dma.done.wait (%p14011_p3), [#allocation9], 24576   ;;  %p14012_p7 = pmov %p14011_p3 }
  0x6a   : > { %s14013_s2 = sld [smem:[#allocation19_spill]]  ;;  %s9073_s0 = scalar_lea.vmem [#allocation11], %s9032_s22 }
  0x6b   : > { %8701 = vsyncadd (%p14012_p7), [#allocation9], 4294942720  ;;  %s14014_s7 = sld [smem:[#allocation267_spill]] }
  0x6c   : > { %s14015_s5 = sld [smem:[#allocation268_spill]] }
  0x70   : > { %s460_s11 = smul.u32 40, %s14013_s2  ;;  %p7224_p13 = scmp.ne.s32.totalorder %s14013_s2, 0 }
  0x72   : > { %p461_p12 = scmp.lt.s32.totalorder %s460_s11, 79  ;;  %476 = sbr.rel (%p7224_p13) target bundleno = 121 (0x79), region = 72 }
  0x74   : > { %s15081_s11 = smov (!%p461_p12, %s460_s11), 79 }
  0x75   : > { %s7222_s28 = sshll.u32 %s15081_s11, 3 }
  0x76   : > { %s9065_s20 = scalar_lea.vmem %s14014_s7, %s7222_s28  ;;  %s9070_s17 = scalar_lea.vmem %s14015_s5, %s7222_s28 }
  0x77   : > { %vm477_vm0 = vcmask 73728   ;;  %v8768_v0 = vmov 0.0  }
  0x78   : > { %478 = vst.msk [vmem:[%s9073_s0] sm:$0x1] %vm477_vm0, %v8768_v0 }
  0x79 PF: > { %v840_v1 = vld [vmem:[%s9065_s20] sm:$0xff]  ;;  %v13336_v2 = vmov 1   ;;  %v13339_v3 = vmov 0   ;;  %v842_v4 = vld [vmem:[%s9065_s20 + $0x10] sm:$0xff]  ;;  %v841_v5 = vld [vmem:[%s9065_s20 + $0x8] sm:$0xff]  ;;  %vm6941_vm1 = vcmask 80896  }
  0x7a   : > { %8365 = vset.pattern.permute.xlu1 %v13336_v2  ;;  %8364 = vset.pattern.permute.xlu0 %v13339_v3  ;;  %v843_v6 = vld [vmem:[%s9065_s20 + $0x18] sm:$0xff]  ;;  %v844_v7 = vld [vmem:[%s9065_s20 + $0x20] sm:$0xff]  ;;  %v845_v8 = vld [vmem:[%s9065_s20 + $0x28] sm:$0xff]  ;;  %s15054_s15 = sld [smem:[#allocation20_spill]]  ;;  %s7042_s11 = sshll.u32 %s9073_s0, 4  ;;  %vm7029_vm2 = vcmask 73728   ;;  %s7043_s11 = int_to_ptr.vmem [resolvable:$true] %s7042_s11 }
  0x7b   : > { %1334 = vperm.xlu1 %8365, %v840_v1   ;;  %882 = vperm.xlu0 %8364, %v840_v1   ;;  %v846_v9 = vld [vmem:[%s9065_s20 + $0x30] sm:$0xff]  ;;  %v847_v10 = vld [vmem:[%s9065_s20 + $0x38] sm:$0xff]  ;;  %v849_v11 = vld [vmem:[%s9065_s20 + $0x48] sm:$0xff]  ;;  %s7032_s23 = scalar_lea.sflag [#allocation4], %s9032_s22 }
  0x7c   : > { %8366 = vset.pattern.permute.xlu2 %v13339_v3  ;;  %v848_v12 = vld [vmem:[%s9065_s20 + $0x40] sm:$0xff]  ;;  %v850_v13 = vld [vmem:[%s9065_s20 + $0x50] sm:$0xff]  ;;  %v9101_v14 = vld [vmem:[%s9065_s20 + $0x68] sm:$0xff] }
  0x7d   : > { %892 = vperm.xlu2 %8366, %v842_v4   ;;  %v851_v15 = vld [vmem:[%s9065_s20 + $0x58] sm:$0xff]  ;;  %v8012_v17 = vld [vmem:[#allocation8 + $0x74] sm:$0xf0]  ;;  %v9107_v23 = vld [vmem:[%s9065_s20 + $0x70] sm:$0xff] }
  0x7e   : > { %v7283_v16 = vld [vmem:[#allocation8 + $0x70] sm:$0xf]  ;;  %v8028_v20 = vld [vmem:[#allocation8 + $0xf4] sm:$0xf0]  ;;  %v7275_v30 = vld [vmem:[#allocation8 + $0x60] sm:$0xf] }
  0x7f   : > { %v7347_v18 = vld [vmem:[#allocation8 + $0xf0] sm:$0xf]  ;;  %v7284_v19 = vor.u32 %v8012_v17, %v7283_v16  ;;  %v8044_v22 = vld [vmem:[#allocation8 + $0x174] sm:$0xf0]  ;;  %v8010_v31 = vld [vmem:[#allocation8 + $0x64] sm:$0xf0] }
  0x80   : > { %v7411_v21 = vld [vmem:[#allocation8 + $0x170] sm:$0xf]  ;;  %v7348_v24 = vor.u32 %v8028_v20, %v7347_v18  ;;  %v8060_v27 = vld [vmem:[#allocation8 + $0x1f4] sm:$0xf0]  ;;  %v7339_v32 = vld [vmem:[#allocation8 + $0xe0] sm:$0xf]  ;;  %v7276_v33 = vor.u32 %v8010_v31, %v7275_v30 }
  0x81   : > { %v7412_v25 = vor.u32 %v8044_v22, %v7411_v21  ;;  %v7475_v26 = vld [vmem:[#allocation8 + $0x1f0] sm:$0xf]  ;;  %2789 = vmatpush.bf16.msra.mxu0 %v7284_v19  ;;  %v9110_v29 = vld [vmem:[%s9065_s20 + $0x60] sm:$0xff]  ;;  %v8026_v34 = vld [vmem:[#allocation8 + $0xe4] sm:$0xf0] }
  0x82   : > { %v7476_v28 = vor.u32 %v8060_v27, %v7475_v26  ;;  %2898 = vmatpush.bf16.msra.mxu1 %v7348_v24  ;;  %v7403_v35 = vld [vmem:[#allocation8 + $0x160] sm:$0xf]  ;;  %v8042_v36 = vld [vmem:[#allocation8 + $0x164] sm:$0xf0]  ;;  %v7340_v37 = vor.u32 %v8026_v34, %v7339_v32  ;;  %v7267_v41 = vld [vmem:[#allocation8 + $0x50] sm:$0xf] }
  0x83   : > { %1338 = vperm.xlu1 %8365, %v841_v5   ;;  %887 = vperm.xlu0 %8364, %v841_v5   ;;  %v7404_v38 = vor.u32 %v8042_v36, %v7403_v35  ;;  %v7467_v39 = vld [vmem:[#allocation8 + $0x1e0] sm:$0xf]  ;;  %v8058_v40 = vld [vmem:[#allocation8 + $0x1e4] sm:$0xf0]  ;;  %v8008_v43 = vld [vmem:[#allocation8 + $0x54] sm:$0xf0] }
  0x84   : > { %3007 = vmatpush.bf16.msra.mxu2 %v7412_v25  ;;  %3116 = vmatpush.bf16.msra.mxu3 %v7476_v28  ;;  %v7468_v42 = vor.u32 %v8058_v40, %v7467_v39  ;;  %v7331_v44 = vld [vmem:[#allocation8 + $0xd0] sm:$0xf]  ;;  %v8024_v45 = vld [vmem:[#allocation8 + $0xd4] sm:$0xf0]  ;;  %v7268_v46 = vor.u32 %v8008_v43, %v7267_v41  ;;  %v7259_v52 = vld [vmem:[#allocation8 + $0x40] sm:$0xf] }
  0x85   : > { %897 = vperm.xlu2 %8366, %v843_v6   ;;  %2790 = vmatpush.bf16.msra.mxu0 %v7276_v33  ;;  %v7395_v47 = vld [vmem:[#allocation8 + $0x150] sm:$0xf]  ;;  %v8040_v48 = vld [vmem:[#allocation8 + $0x154] sm:$0xf0]  ;;  %v7332_v50 = vor.u32 %v8024_v45, %v7331_v44  ;;  %v8006_v54 = vld [vmem:[#allocation8 + $0x44] sm:$0xf0] }
  0x86   : > { %v7459_v49 = vld [vmem:[#allocation8 + $0x1d0] sm:$0xf]  ;;  %2899 = vmatpush.bf16.msra.mxu1 %v7340_v37  ;;  %v8056_v51 = vld [vmem:[#allocation8 + $0x1d4] sm:$0xf0]  ;;  %v7396_v53 = vor.u32 %v8040_v48, %v7395_v47  ;;  %v7323_v55 = vld [vmem:[#allocation8 + $0xc0] sm:$0xf]  ;;  %v7260_v60 = vor.u32 %v8006_v54, %v7259_v52 }
  0x87   : > { %v8022_v56 = vld [vmem:[#allocation8 + $0xc4] sm:$0xf0]  ;;  %v7460_v57 = vor.u32 %v8056_v51, %v7459_v49  ;;  %v7387_v58 = vld [vmem:[#allocation8 + $0x140] sm:$0xf]  ;;  %v7251_v0 = vld [vmem:[#allocation8 + $0x30] sm:$0xf] }
  0x88   : > { %3008 = vmatpush.bf16.msra.mxu2 %v7404_v38  ;;  %3117 = vmatpush.bf16.msra.mxu3 %v7468_v42  ;;  %v8038_v59 = vld [vmem:[#allocation8 + $0x144] sm:$0xf0]  ;;  %v7451_v61 = vld [vmem:[#allocation8 + $0x1c0] sm:$0xf]  ;;  %v7324_v63 = vor.u32 %v8022_v56, %v7323_v55  ;;  %v8004_v1 = vld [vmem:[#allocation8 + $0x34] sm:$0xf0] }
  0x89   : > { %2791 = vmatpush.bf16.msra.mxu0 %v7268_v46  ;;  %v8054_v62 = vld [vmem:[#allocation8 + $0x1c4] sm:$0xf0]  ;;  %v7315_v5 = vld [vmem:[#allocation8 + $0xb0] sm:$0xf]  ;;  %v7243_v17 = vld [vmem:[#allocation8 + $0x20] sm:$0xf] }
  0x8a   : > { %2900 = vmatpush.bf16.msra.mxu1 %v7332_v50  ;;  %v8002_v18 = vld [vmem:[#allocation8 + $0x24] sm:$0xf0]  ;;  %v7307_v19 = vld [vmem:[#allocation8 + $0xa0] sm:$0xf]  ;;  %v855_v27 = vld [vmem:[%s9065_s20 + $0x78] sm:$0xff] }
  0x8b   : > { %1346 = vperm.xlu1 %8365, %v843_v6   ;;  %8367 = vset.pattern.permute.xlu0 %v13336_v2  ;;  %v8020_v6 = vld [vmem:[#allocation8 + $0xb4] sm:$0xf0]  ;;  %v8018_v20 = vld [vmem:[#allocation8 + $0xa4] sm:$0xf0]  ;;  %v7371_v21 = vld [vmem:[#allocation8 + $0x120] sm:$0xf] }
  0x8c   : > { %1342 = vperm.xlu0 %8367, %v842_v4   ;;  %3009 = vmatpush.bf16.msra.mxu2 %v7396_v53  ;;  %v7388_v4 = vor.u32 %v8038_v59, %v7387_v58  ;;  %v7308_v22 = vor.u32 %v8018_v20, %v7307_v19  ;;  %v8034_v24 = vld [vmem:[#allocation8 + $0x124] sm:$0xf0]  ;;  %v7435_v25 = vld [vmem:[#allocation8 + $0x1a0] sm:$0xf]  ;;  %v7235_v31 = vld [vmem:[#allocation8 + $0x10] sm:$0xf] }
  0x8d   : > { %902 = vperm.xlu2 %8366, %v844_v7   ;;  %3118 = vmatpush.bf16.msra.mxu3 %v7460_v57  ;;  %v8050_v26 = vld [vmem:[#allocation8 + $0x1a4] sm:$0xf0]  ;;  %v7372_v28 = vor.u32 %v8034_v24, %v7371_v21  ;;  %v9123_v30 = vld [vmem:[%s9065_s20 + $0x88] sm:$0xff]  ;;  %v8000_v32 = vld [vmem:[#allocation8 + $0x14] sm:$0xf0] }
  0x8e   : > { %2792 = vmatpush.bf16.msra.mxu0 %v7260_v60  ;;  %2901 = vmatpush.bf16.msra.mxu1 %v7324_v63  ;;  %v7236_v33 = vor.u32 %v8000_v32, %v7235_v31  ;;  %v7299_v34 = vld [vmem:[#allocation8 + $0x90] sm:$0xf]  ;;  %v8016_v35 = vld [vmem:[#allocation8 + $0x94] sm:$0xf0]  ;;  %v7227_v42 = vld [vmem:[#allocation8] sm:$0xf] }
  0x8f   : > { %v7363_v36 = vld [vmem:[#allocation8 + $0x110] sm:$0xf]  ;;  %v7300_v37 = vor.u32 %v8016_v35, %v7299_v34  ;;  %v8048_v39 = vld [vmem:[#allocation8 + $0x194] sm:$0xf0]  ;;  %v7998_v43 = vld [vmem:[#allocation8 + $0x4] sm:$0xf0] }
  0x90   : > { %3010 = vmatpush.bf16.msra.mxu2 %v7388_v4  ;;  %v7427_v38 = vld [vmem:[#allocation8 + $0x190] sm:$0xf]  ;;  %v7291_v44 = vld [vmem:[#allocation8 + $0x80] sm:$0xf]  ;;  %v7228_v45 = vor.u32 %v7998_v43, %v7227_v42  ;;  %v8014_v46 = vld [vmem:[#allocation8 + $0x84] sm:$0xf0] }
  0x91   : > { %v7428_v41 = vor.u32 %v8048_v39, %v7427_v38  ;;  %v7355_v47 = vld [vmem:[#allocation8 + $0x100] sm:$0xf]  ;;  %v8030_v48 = vld [vmem:[#allocation8 + $0x104] sm:$0xf0]  ;;  %v7292_v49 = vor.u32 %v8014_v46, %v7291_v44  ;;  %v8011_v54 = vld [vmem:[#allocation8 + $0x74] sm:$0xf] }
  0x92   : > { %v7356_v50 = vor.u32 %v8030_v48, %v7355_v47  ;;  %v7419_v51 = vld [vmem:[#allocation8 + $0x180] sm:$0xf]  ;;  %v8046_v52 = vld [vmem:[#allocation8 + $0x184] sm:$0xf0]  ;;  %v7285_v55 = vld [vmem:[#allocation8 + $0x78] sm:$0xf0] }
  0x93   : > { %8368 = vset.pattern.permute.xlu1 %v13339_v3  ;;  %v7420_v53 = vor.u32 %v8046_v52, %v7419_v51  ;;  %v8027_v56 = vld [vmem:[#allocation8 + $0xf4] sm:$0xf]  ;;  %v7288_v57 = vor.u32 %v8011_v54, %v7285_v55  ;;  %v7349_v58 = vld [vmem:[#allocation8 + $0xf8] sm:$0xf0]  ;;  %v8076_v63 = vld [vmem:[#allocation8 + $0x274] sm:$0xf0] }
  0x94   : > { %907 = vperm.xlu1 %8368, %v845_v8   ;;  %1354 = vperm.xlu0 %8367, %v845_v8   ;;  %v7379_v8 = vld [vmem:[#allocation8 + $0x130] sm:$0xf]  ;;  %v7352_v59 = vor.u32 %v8027_v56, %v7349_v58  ;;  %v856_v60 = vld [vmem:[%s9065_s20 + $0x80] sm:$0xff]  ;;  %v9160_v19 = vld [vmem:[%s9044_s24 + $0x8] sm:$0xff] }
  0x95   : > { %8369 = vset.pattern.permute.xlu2 %v13336_v2  ;;  %v8092_v4 = vld [vmem:[#allocation8 + $0x2f4] sm:$0xf0]  ;;  %14018 = vst [vmem:[#allocation28_spill] sm:$0xff] %v9160_v19  ;;  %v9168_v21 = vld [vmem:[%s9044_s24 + $0x20] sm:$0xff] }
  0x96   : > { %1350 = vperm.xlu2 %8369, %v844_v7   ;;  %v7452_v7 = vor.u32 %v8054_v62, %v7451_v61  ;;  %v858_v61 = vld [vmem:[%s9065_s20 + $0x90] sm:$0xff]  ;;  %v7539_v62 = vld [vmem:[#allocation8 + $0x270] sm:$0xf]  ;;  %v9165_v20 = vld [vmem:[%s9044_s24 + $0x18] sm:$0xff]  ;;  %14020 = vst [vmem:[#allocation30_spill] sm:$0xff] %v9168_v21  ;;  %v13329_v35 = vunpack.c.l.bf16 %v9168_v21 }
  0x97   : > { %14019 = vst [vmem:[#allocation29_spill] sm:$0xff] %v9165_v20  ;;  %v13332_v34 = vunpack.c.h.bf16 %v9165_v20  ;;  %v860_v58 = vld [vmem:[%s9065_s20 + $0xa0] sm:$0xff] }
  0x98   : > { %3119 = vmatpush.bf16.msra.mxu3 %v7452_v7 }
  0x9c   : > { %912 = vperm.xlu1 %8368, %v846_v9   ;;  %1358 = vperm.xlu0 %8367, %v846_v9   ;;  %v8036_v9 = vld [vmem:[#allocation8 + $0x134] sm:$0xf0] }
  0x9e   : > { %8370 = vset.pattern.permute.xlu2 %v13339_v3 }
  0x9f   : > { %917 = vperm.xlu2 %8370, %v847_v10  }
  0xa4   : > { %8371 = vset.pattern.permute.xlu1 %v13336_v2  ;;  %8372 = vset.pattern.permute.xlu0 %v13339_v3 }
  0xa5   : > { %1362 = vperm.xlu1 %8371, %v847_v10   ;;  %927 = vperm.xlu0 %8372, %v849_v11   ;;  %v7252_v10 = vor.u32 %v8004_v1, %v7251_v0  ;;  %v7603_v0 = vld [vmem:[#allocation8 + $0x2f0] sm:$0xf]  ;;  %v7540_v1 = vor.u32 %v8076_v63, %v7539_v62 }
  0xa7   : > { %922 = vperm.xlu2 %8370, %v848_v12   ;;  %2793 = vmatpush.bf16.msra.mxu0 %v7252_v10  ;;  %v9145_v10 = vld [vmem:[%s9065_s20 + $0xb0] sm:$0xff] }
  0xad   : > { %1366 = vperm.xlu1 %8371, %v848_v12   ;;  %8376 = vset.pattern.permute.xlu0 %v13336_v2  ;;  %v8052_v12 = vld [vmem:[#allocation8 + $0x1b4] sm:$0xf0] }
  0xae   : > { %1374 = vperm.xlu0 %8376, %v850_v13  }
  0xaf   : > { %8373 = vset.pattern.permute.xlu2 %v13336_v2 }
  0xb0   : > { %1370 = vperm.xlu2 %8373, %v849_v11   ;;  %v7443_v11 = vld [vmem:[#allocation8 + $0x1b0] sm:$0xf] }
  0xb1   : > { %v7444_v16 = vor.u32 %v8052_v12, %v7443_v11  ;;  %v9148_v11 = vld [vmem:[%s9044_s24 + $0x10] sm:$0xff] }
  0xb2   : > { %14017 = vst [vmem:[#allocation27_spill] sm:$0xff] %v9148_v11  ;;  %v13326_v38 = vunpack.c.h.bf16 %v9148_v11 }
  0xb3   : > { %3120 = vmatpush.bf16.msra.mxu3 %v7444_v16 }
  0xb5   : > { %8374 = vset.pattern.permute.xlu1 %v13339_v3 }
  0xb6   : > { %932 = vperm.xlu1 %8374, %v850_v13   ;;  %1386 = vperm.xlu0 %8376, %v9101_v14   ;;  %v7316_v13 = vor.u32 %v8020_v6, %v7315_v5  ;;  %v7604_v5 = vor.u32 %v8092_v4, %v7603_v0  ;;  %v9132_v6 = vld [vmem:[%s9065_s20 + $0xa8] sm:$0xff] }
  0xb7   : > { %v9241_v4 = vld [vmem:[%s9044_s24 + $0x60] sm:$0xff] }
  0xb8   : > { %8375 = vset.pattern.permute.xlu2 %v13339_v3  ;;  %2902 = vmatpush.bf16.msra.mxu1 %v7316_v13  ;;  %14023 = vst [vmem:[#allocation33_spill] sm:$0xff] %v9241_v4 }
  0xb9   : > { %937 = vperm.xlu2 %8375, %v851_v15  }
  0xbc   : > { %2903 = vmatpush.bf16.msra.mxu1 %v7308_v22  ;;  %v13327_v22 = vunpack.c.l.bf16 %v9148_v11 }
  0xbe   : > { %8377 = vset.pattern.permute.xlu1 %v13336_v2  ;;  %1390 = vperm.xlu0 %8376, %v9107_v23  }
  0xbf   : > { %1378 = vperm.xlu1 %8377, %v851_v15   ;;  %v7380_v15 = vor.u32 %v8036_v9, %v7379_v8  ;;  %v479_v8 = vld [vmem:[%s9036_s4] sm:$0x3f]  ;;  %v9142_v9 = vld [vmem:[%s9044_s24] sm:$0xff] }
  0xc0   : > { %2904 = vmatpush.bf16.msra.mxu1 %v7300_v37  ;;  %14016 = vst [vmem:[#allocation26_spill] sm:$0xff] %v9142_v9  ;;  %v13335_v16 = vunpack.c.l.bf16 %v9142_v9  ;;  %v9171_v24 = vperm.slane %v479_v8, 4 }
  0xc1   : > { %942 = vperm.xlu2 %8375, %v9110_v29   ;;  %3011 = vmatpush.bf16.msra.mxu2 %v7380_v15  ;;  %v859_v15 = vld [vmem:[%s9065_s20 + $0x98] sm:$0xff] }
  0xc2   : > { %14021 = vst [vmem:[#allocation31_spill] sm:$0xff] %v9171_v24 }
  0xc4   : > { %2905 = vmatpush.bf16.msra.mxu1 %v7292_v49  ;;  %v9214_v49 = vperm.slane %v479_v8, 5 }
  0xc5   : > { %3012 = vmatpush.bf16.msra.mxu2 %v7372_v28  ;;  %v9177_v28 = vperm.slane %v479_v8, 3 }
  0xc6   : > { %8382 = vset.pattern.permute.xlu0 %v13339_v3 }
  0xc7   : > { %8378 = vset.pattern.permute.xlu1 %v13339_v3  ;;  %967 = vperm.xlu0 %8382, %v9123_v30  }
  0xc8   : > { %947 = vperm.xlu1 %8378, %v9101_v14   ;;  %v7244_v14 = vor.u32 %v8002_v18, %v7243_v17  ;;  %3334 = vmatpush.bf16.msrb.mxu1 %v7604_v5  ;;  %v9154_v17 = vperm.slane %v479_v8, 0  ;;  %v13334_v18 = vunpack.c.h.bf16 %v9142_v9  ;;  %v9244_v5 = vld [vmem:[%s9044_s24 + $0x28] sm:$0xff] }
  0xc9   : > { %8379 = vset.pattern.permute.xlu2 %v13336_v2  ;;  %14024 = vst [vmem:[#allocation34_spill] sm:$0xff] %v9244_v5 }
  0xca   : > { %1382 = vperm.xlu2 %8379, %v9110_v29   ;;  %2794 = vmatpush.bf16.msra.mxu0 %v7244_v14  ;;  %v7436_v29 = vor.u32 %v8050_v26, %v7435_v25  ;;  %v9157_v14 = vperm.slane %v479_v8, 1  ;;  %v13331_v25 = vunpack.c.l.bf16 %v9160_v19  ;;  %v9174_v26 = vperm.slane %v479_v8, 2 }
  0xcc   : > { %3121 = vmatpush.bf16.msra.mxu3 %v7436_v29 }
  0xce   : > { %2795 = vmatpush.bf16.msra.mxu0 %v7236_v33  ;;  %v13333_v33 = vunpack.c.l.bf16 %v9165_v20 }
  0xcf   : > { %8386 = vset.pattern.permute.xlu0 %v13336_v2 }
  0xd0   : > { %952 = vperm.xlu1 %8378, %v9107_v23   ;;  %v8032_v23 = vld [vmem:[#allocation8 + $0x114] sm:$0xf0]  ;;  %3122 = vmatpush.bf16.msra.mxu3 %v7428_v41 }
  0xd1   : > { %v7364_v40 = vor.u32 %v8032_v23, %v7363_v36  ;;  %1406 = vperm.xlu0 %8386, %v858_v61   ;;  %v13328_v36 = vunpack.c.h.bf16 %v9168_v21 }
  0xd2   : > { %8380 = vset.pattern.permute.xlu2 %v13339_v3  ;;  %2796 = vmatpush.bf16.msra.mxu0 %v7228_v45 }
  0xd3   : > { %957 = vperm.xlu2 %8380, %v855_v27   ;;  %3013 = vmatpush.bf16.msra.mxu2 %v7364_v40 }
  0xd4   : > { %3123 = vmatpush.bf16.msra.mxu3 %v7420_v53 }
  0xd6   : > { %3225 = vmatpush.bf16.msrb.mxu0 %v7540_v1  ;;  %v9238_v1 = vld [vmem:[%s9044_s24 + $0x48] sm:$0xff] }
  0xd7   : > { %3014 = vmatpush.bf16.msra.mxu2 %v7356_v50  ;;  %v9138_v7 = vpop.permute.xlu2 %892  ;;  %14022 = vst [vmem:[#allocation32_spill] sm:$0xff] %v9238_v1 }
  0xd8   : > { %8381 = vset.pattern.permute.xlu1 %v13336_v2  ;;  %3552 = vmatpush.bf16.msrb.mxu3 %v7352_v59 }
  0xd9   : > { %1394 = vperm.xlu1 %8381, %v855_v27   ;;  %1418 = vperm.xlu0 %8386, %v9132_v6   ;;  %v13330_v27 = vunpack.c.h.bf16 %v9160_v19 }
  0xdb   : > { %3443 = vmatpush.bf16.msrb.mxu2 %v7288_v57  ;;  %962 = vperm.xlu2 %8380, %v856_v60  }
  0xdf   : > { %v9197_v39 = vpop.permute.xlu2 %897 }
  0xe1   : > { %1398 = vperm.xlu1 %8381, %v856_v60   ;;  %1422 = vperm.xlu0 %8386, %v9145_v10  }
  0xe3   : > { %8383 = vset.pattern.permute.xlu2 %v13336_v2 }
  0xe4   : > { %1402 = vperm.xlu2 %8383, %v9123_v30  }
  0xe9   : > { %8384 = vset.pattern.permute.xlu1 %v13339_v3  ;;  %8392 = vset.pattern.permute.xlu0 %v13339_v3 }
  0xea   : > { %972 = vperm.xlu1 %8384, %v858_v61  }
  0xec   : > { %8385 = vset.pattern.permute.xlu2 %v13339_v3 }
  0xed   : > { %v9150_v12 = vpop.permute.xlu1 %1334  ;;  %v883_v13 = vpop.permute.xlu0 %882  ;;  %977 = vperm.xlu2 %8385, %v859_v15  }
  0xee   : > { %v1093_v29 = vmul.f32 %v9154_v17, %v883_v13  ;;  %v1493_v30 = vmul.f32 %v9150_v12, %v13335_v16  ;;  %v1094_v31 = vmul.f32 %v9157_v14, %v883_v13  ;;  %v1494_v32 = vmul.f32 %v9150_v12, %v13334_v18  ;;  %v8074_v18 = vld [vmem:[#allocation8 + $0x264] sm:$0xf0]  ;;  %v7595_v16 = vld [vmem:[#allocation8 + $0x2e0] sm:$0xf] }
  0xef   : > { %v1097_v37 = vmul.f32 %v9171_v24, %v883_v13  ;;  %v1497_v23 = vmul.f32 %v9150_v12, %v13327_v22  ;;  %v1095_v40 = vmul.f32 %v9174_v26, %v883_v13  ;;  %v1495_v41 = vmul.f32 %v9150_v12, %v13331_v25  ;;  %v7531_v22 = vld [vmem:[#allocation8 + $0x260] sm:$0xf] }
  0xf0   : > { %v1096_v42 = vmul.f32 %v9177_v28, %v883_v13  ;;  %v1496_v43 = vmul.f32 %v9150_v12, %v13330_v27  ;;  %v1733_v46 = vadd.f32 %v1493_v30, %v1093_v29  ;;  %v1734_v47 = vadd.f32 %v1494_v32, %v1094_v31  ;;  %v9255_v31 = vld [vmem:[%s9044_s24 + $0x30] sm:$0xff] }
  0xf1   : > { %v9212_v48 = vadd.f32 %v1497_v23, %v1097_v37  ;;  %v1735_v61 = vadd.f32 %v1495_v41, %v1095_v40  ;;  %v1098_v8 = vmul.f32 %v9214_v49, %v883_v13  ;;  %14025 = vst [vmem:[#allocation35_spill] sm:$0xff] %v9255_v31  ;;  %v9263_v23 = vld [vmem:[%s9044_s24 + $0x50] sm:$0xff]  ;;  %v9269_v13 = vld [vmem:[%s9044_s24 + $0x38] sm:$0xff]  ;;  %v13348_v41 = vunpack.c.l.bf16 %v9244_v5 }
  0xf2   : > { %8387 = vset.pattern.permute.xlu1 %v13336_v2  ;;  %v1736_v62 = vadd.f32 %v1496_v43, %v1096_v42  ;;  %14028 = vst [vmem:[#allocation38_spill] sm:$0xff] %v9263_v23  ;;  %v13338_v42 = vunpack.c.l.bf16 %v9255_v31  ;;  %v13347_v43 = vunpack.c.h.bf16 %v9255_v31  ;;  %v7532_v40 = vor.u32 %v8074_v18, %v7531_v22 }
  0xf3   : > { %1410 = vperm.xlu1 %8387, %v859_v15   ;;  %v1498_v15 = vmul.f32 %v9150_v12, %v13326_v38  ;;  %v13341_v12 = vunpack.c.l.bf16 %v9238_v1  ;;  %14029 = vst [vmem:[#allocation39_spill] sm:$0xff] %v9269_v13  ;;  %v7341_v38 = vld [vmem:[#allocation8 + $0xe8] sm:$0xf0] }
  0xf4   : > { %3226 = vmatpush.bf16.msrb.mxu0 %v7532_v40 }
  0xf5   : > { %v9207_v44 = vpop.permute.xlu1 %1338  ;;  %v9209_v45 = vpop.permute.xlu0 %887  ;;  %982 = vperm.xlu2 %8385, %v860_v58  }
  0xf6   : > { %v1099_v50 = vmul.f32 %v9154_v17, %v9209_v45  ;;  %v1499_v51 = vmul.f32 %v9207_v44, %v13333_v33  ;;  %v1100_v52 = vmul.f32 %v9157_v14, %v9209_v45  ;;  %v1500_v53 = vmul.f32 %v9207_v44, %v13332_v34 }
  0xf7   : > { %v1101_v54 = vmul.f32 %v9174_v26, %v9209_v45  ;;  %v1501_v55 = vmul.f32 %v9207_v44, %v13329_v35  ;;  %v1102_v56 = vmul.f32 %v9177_v28, %v9209_v45  ;;  %v1502_v57 = vmul.f32 %v9207_v44, %v13328_v36  ;;  %v9307_v35 = vld [vmem:[%s9044_s24 + $0x40] sm:$0xff]  ;;  %v9322_v36 = vld [vmem:[%s9044_s24 + $0x58] sm:$0xff] }
  0xf8   : > { %v1739_v59 = vadd.f32 %v1499_v51, %v1099_v50  ;;  %v1740_v60 = vadd.f32 %v1500_v53, %v1100_v52  ;;  %v1105_v52 = vmul.f32 %v9154_v17, %v9138_v7  ;;  %v13344_v53 = vunpack.c.l.bf16 %v9263_v23  ;;  %14030 = vst [vmem:[#allocation40_spill] sm:$0xff] %v9307_v35 }
  0xf9   : > { %v1741_v63 = vadd.f32 %v1501_v55, %v1101_v54  ;;  %v1742_v0 = vadd.f32 %v1502_v57, %v1102_v56  ;;  %v13343_v54 = vunpack.c.h.bf16 %v9263_v23  ;;  %v9290_v56 = vpop.permute.xlu2 %902  ;;  %v1111_v57 = vmul.f32 %v9154_v17, %v9197_v39  ;;  %14031 = vst [vmem:[#allocation41_spill] sm:$0xff] %v9322_v36 }
  0xfa   : > { %v9250_v29 = vpack.c.bf16 %v1739_v59, %v1733_v46  ;;  %v9252_v30 = vpack.c.bf16 %v1740_v60, %v1734_v47  ;;  %v13342_v46 = vunpack.c.h.bf16 %v9238_v1  ;;  %v9278_v47 = vadd.f32 %v1498_v15, %v1098_v8 }
  0xfb   : > { %v9257_v32 = vpack.c.bf16 %v1741_v63, %v1735_v61  ;;  %v9259_v37 = vpack.c.bf16 %v1742_v0, %v1736_v62  ;;  %8388 = vset.pattern.permute.xlu1 %v13339_v3  ;;  %v1106_v59 = vmul.f32 %v9157_v14, %v9138_v7  ;;  %v13345_v60 = vunpack.c.h.bf16 %v9269_v13  ;;  %v8009_v61 = vld [vmem:[#allocation8 + $0x64] sm:$0xf]  ;;  %v7277_v62 = vld [vmem:[#allocation8 + $0x68] sm:$0xf0] }
  0xfc   : > { %2797 = vmatmul.bf16.vlgmr.msra.gmra.mxu0 %v9250_v29  ;;  %2906 = vmatmul.bf16.vlgmr.msra.gmra.mxu1 %v9252_v30  ;;  %v8025_v63 = vld [vmem:[#allocation8 + $0xe4] sm:$0xf]  ;;  %v1112_v0 = vmul.f32 %v9157_v14, %v9197_v39  ;;  %v1113_v8 = vmul.f32 %v9174_v26, %v9197_v39  ;;  %v1114_v15 = vmul.f32 %v9177_v28, %v9197_v39 }
  0xfd   : > { %14026 = vst [vmem:[#allocation36_spill] sm:$0xff] %v9257_v32  ;;  %3015 = vmatmul.bf16.vlgmr.msra.gmra.mxu2 %v9257_v32  ;;  %3124 = vmatmul.bf16.vlgmr.msra.gmra.mxu3 %v9259_v37  ;;  %v9280_v50 = vpop.permute.xlu1 %1346  ;;  %v7280_v55 = vor.u32 %v8009_v61, %v7277_v62  ;;  %v1103_v18 = vmul.f32 %v9171_v24, %v9209_v45  ;;  %v9344_v61 = vld [vmem:[%s9044_s24 + $0x78] sm:$0xff]  ;;  %v9347_v62 = vld [vmem:[%s9044_s24 + $0x68] sm:$0xff] }
  0xfe   : > { %14027 = vst [vmem:[#allocation37_spill] sm:$0xff] %v9259_v37  ;;  %v9282_v51 = vpop.permute.xlu0 %1342  ;;  %987 = vperm.xlu1 %8388, %v9132_v6   ;;  %v13346_v6 = vunpack.c.l.bf16 %v9269_v13  ;;  %8389 = vset.pattern.permute.xlu2 %v13336_v2  ;;  %v1511_v25 = vmul.f32 %v9280_v50, %v13341_v12  ;;  %v1512_v33 = vmul.f32 %v9280_v50, %v13342_v46  ;;  %v8090_v2 = vld [vmem:[#allocation8 + $0x2e4] sm:$0xf0]  ;;  %v8088_v32 = vld [vmem:[#allocation8 + $0x2d4] sm:$0xf0] }
  0xff   : > { %v1505_v27 = vmul.f32 %v9282_v51, %v13338_v42  ;;  %v1506_v34 = vmul.f32 %v9282_v51, %v13347_v43  ;;  %1414 = vperm.xlu2 %8389, %v860_v58   ;;  %v7344_v42 = vor.u32 %v8025_v63, %v7341_v38  ;;  %v7596_v3 = vor.u32 %v8090_v2, %v7595_v16 }
 0x100   : > { %v1507_v12 = vmul.f32 %v9282_v51, %v13346_v6  ;;  %v1513_v46 = vmul.f32 %v9280_v50, %v13344_v53  ;;  %v1508_v58 = vmul.f32 %v9282_v51, %v13345_v60  ;;  %v1514_v38 = vmul.f32 %v9280_v50, %v13343_v54  ;;  %3444 = vmatpush.bf16.msrb.mxu2 %v7280_v55 }
 0x101   : > { %v1107_v2 = vmul.f32 %v9174_v26, %v9138_v7  ;;  %v1108_v16 = vmul.f32 %v9177_v28, %v9138_v7  ;;  %3553 = vmatpush.bf16.msrb.mxu3 %v7344_v42  ;;  %14032 = vst [vmem:[#allocation42_spill] sm:$0xff] %v9344_v61  ;;  %3335 = vmatpush.bf16.msrb.mxu1 %v7596_v3  ;;  %v14034_v42 = vunpack.c.h.bf16 %v9244_v5  ;;  %v9363_v53 = vpop.permute.xlu2 %1350 }
 0x102   : > { %14033 = vst [vmem:[#allocation43_spill] sm:$0xff] %v9347_v62  ;;  %v1503_v63 = vmul.f32 %v9207_v44, %v13348_v41  ;;  %v1104_v54 = vmul.f32 %v9214_v49, %v9209_v45  ;;  %v1745_v60 = vadd.f32 %v1505_v27, %v1105_v52  ;;  %v1751_v40 = vadd.f32 %v1511_v25, %v1111_v57  ;;  %v9371_v27 = vld [vmem:[%s9044_s24 + $0x80] sm:$0xff] }
 0x103   : > { %v1504_v55 = vmul.f32 %v9207_v44, %v14034_v42  ;;  %v1746_v3 = vadd.f32 %v1506_v34, %v1106_v59  ;;  %v1752_v6 = vadd.f32 %v1512_v33, %v1112_v0  ;;  %v1747_v43 = vadd.f32 %v1507_v12, %v1107_v2  ;;  %14035 = vst [vmem:[#allocation44_spill] sm:$0xff] %v9371_v27 }
 0x104   : > { %v1753_v22 = vadd.f32 %v1513_v46, %v1113_v8  ;;  %v1748_v41 = vadd.f32 %v1508_v58, %v1108_v16  ;;  %v1754_v11 = vadd.f32 %v1514_v38, %v1114_v15  ;;  %v9368_v25 = vmul.f32 %v9154_v17, %v9290_v56 }
 0x105   : > { %v14036_v33 = vmov 0   ;;  %v1743_v34 = vadd.f32 %v1503_v63, %v1103_v18  ;;  %v1744_v12 = vadd.f32 %v1504_v55, %v1104_v54  ;;  %v1115_v46 = vmul.f32 %v9171_v24, %v9197_v39  ;;  %v9420_v63 = vld [vmem:[%s9044_s24 + $0x88] sm:$0xff] }
 0x106   : > { %992 = vperm.xlu1 %8388, %v9145_v10   ;;  %v863_v10 = vld [vmem:[%s9065_s20 + $0xb8] sm:$0xff]  ;;  %v9376_v52 = vpack.c.bf16 %v1751_v40, %v1745_v60  ;;  %v9378_v57 = vpack.c.bf16 %v1752_v6, %v1746_v3  ;;  %v14037_v59 = vunpack.c.l.bf16 %v9307_v35  ;;  %v14038_v8 = vunpack.c.l.bf16 %v9322_v36  ;;  %v9386_v58 = vpop.permute.xlu1 %907  ;;  %v9400_v2 = vpop.permute.xlu0 %1354  ;;  %14043 = vst [vmem:[#allocation48_spill] sm:$0xff] %v9420_v63 }
 0x107   : > { %8390 = vset.pattern.permute.xlu2 %v14036_v33  ;;  %v9388_v54 = vpack.c.bf16 %v1753_v22, %v1747_v43  ;;  %v9390_v38 = vpack.c.bf16 %v1754_v11, %v1748_v41  ;;  %v9394_v6 = vmul.f32 %v9157_v14, %v9290_v56  ;;  %v9398_v60 = vmul.f32 %v9174_v26, %v9290_v56  ;;  %v9417_v22 = vld [vmem:[%s9044_s24 + $0x70] sm:$0xff] }
 0x108   : > { %997 = vperm.xlu2 %8390, %v863_v10   ;;  %v1509_v0 = vmul.f32 %v9282_v51, %v14037_v59  ;;  %v1515_v15 = vmul.f32 %v9280_v50, %v14038_v8  ;;  %v14041_v43 = vunpack.c.l.bf16 %v9241_v4  ;;  %v9412_v16 = vmul.f32 %v9177_v28, %v9290_v56  ;;  %14042 = vst [vmem:[#allocation47_spill] sm:$0xff] %v9417_v22  ;;  %v865_v59 = vld [vmem:[%s9065_s20 + $0xc8] sm:$0xff] }
 0x109   : > { %14039 = vst [vmem:[#allocation45_spill] sm:$0xff] %v9388_v54  ;;  %v1109_v18 = vmul.f32 %v9171_v24, %v9138_v7  ;;  %v14044_v55 = vunpack.c.h.bf16 %v9241_v4  ;;  %v9430_v8 = vpack.c.bf16 %v1743_v34, %v9212_v48  ;;  %v14045_v42 = vmov 1   ;;  %1007 = vperm.xlu0 %8392, %v865_v59  }
 0x10a   : > { %14040 = vst [vmem:[#allocation46_spill] sm:$0xff] %v9390_v38  ;;  %v9407_v11 = vmul.f32 %v9363_v53, %v14041_v43  ;;  %v9433_v43 = vpack.c.bf16 %v1744_v12, %v9278_v47  ;;  %v1755_v41 = vadd.f32 %v1515_v15, %v1115_v46  ;;  %v14046_v48 = vunpack.c.l.bf16 %v9344_v61  ;;  %v864_v47 = vld [vmem:[%s9065_s20 + $0xc0] sm:$0xff] }
 0x10b   : > { %v1518_v40 = vmul.f32 %v9363_v53, %v14044_v55  ;;  %v1749_v44 = vadd.f32 %v1509_v0, %v1109_v18  ;;  %v1123_v55 = vmul.f32 %v9154_v17, %v9386_v58  ;;  %v1124_v0 = vmul.f32 %v9157_v14, %v9386_v58 }
 0x10c   : > { %2802 = vmatmul.bf16.gmra.mxu0 %v9376_v52  ;;  %2911 = vmatmul.bf16.gmra.mxu1 %v9378_v57  ;;  %v1523_v34 = vmul.f32 %v9400_v2, %v14046_v48  ;;  %v14047_v46 = vunpack.c.h.bf16 %v9344_v61  ;;  %v14048_v18 = vunpack.c.l.bf16 %v9371_v27  ;;  %v1126_v48 = vmul.f32 %v9177_v28, %v9386_v58  ;;  %v9491_v61 = vpop.permute.xlu2 %917 }
 0x10d   : > { %3020 = vmatmul.bf16.gmra.mxu2 %v9388_v54  ;;  %3129 = vmatmul.bf16.gmra.mxu3 %v9390_v38  ;;  %v9458_v5 = vpack.c.bf16 %v1755_v41, %v1749_v44  ;;  %v1116_v12 = vmul.f32 %v9214_v49, %v9197_v39  ;;  %v1110_v13 = vmul.f32 %v9214_v49, %v9138_v7  ;;  %v14051_v44 = vunpack.c.h.bf16 %v9322_v36  ;;  %v8072_v38 = vld [vmem:[#allocation8 + $0x254] sm:$0xf0] }
 0x10e   : > { %8391 = vset.pattern.permute.xlu1 %v14045_v42  ;;  %v1524_v15 = vmul.f32 %v9400_v2, %v14047_v46  ;;  %v1525_v45 = vmul.f32 %v9400_v2, %v14048_v18  ;;  %v14049_v46 = vunpack.c.h.bf16 %v9371_v27  ;;  %v14050_v18 = vunpack.c.h.bf16 %v9307_v35  ;;  %v9489_v19 = vpop.permute.xlu1 %912 }
 0x10f   : > { %1426 = vperm.xlu1 %8391, %v863_v10   ;;  %v1125_v10 = vmul.f32 %v9174_v26, %v9386_v58  ;;  %v1516_v41 = vmul.f32 %v9280_v50, %v14051_v44  ;;  %v1121_v39 = vmul.f32 %v9171_v24, %v9290_v56  ;;  %v1127_v3 = vmul.f32 %v9171_v24, %v9386_v58 }
 0x110   : > { %v1526_v23 = vmul.f32 %v9400_v2, %v14049_v46  ;;  %1002 = vperm.xlu2 %8390, %v864_v47   ;;  %v1510_v21 = vmul.f32 %v9282_v51, %v14050_v18  ;;  %v14052_v46 = vunpack.c.l.bf16 %v9417_v22  ;;  %v14053_v7 = vunpack.c.l.bf16 %v9420_v63 }
 0x111   : > { %v14054_v51 = vunpack.c.l.bf16 %v9347_v62  ;;  %v1756_v44 = vadd.f32 %v1516_v41, %v1116_v12  ;;  %v1122_v36 = vmul.f32 %v9214_v49, %v9290_v56  ;;  %v14055_v4 = vunpack.c.h.bf16 %v9347_v62  ;;  %v866_v12 = vld [vmem:[%s9065_s20 + $0xd0] sm:$0xff]  ;;  %8396 = vset.pattern.permute.xlu0 %v14045_v42 }
 0x112   : > { %v1521_v27 = vmul.f32 %v9363_v53, %v14052_v46  ;;  %v1527_v35 = vmul.f32 %v9400_v2, %v14053_v7  ;;  %v1750_v50 = vadd.f32 %v1510_v21, %v1110_v13  ;;  %v14056_v7 = vunpack.c.h.bf16 %v9417_v22  ;;  %1438 = vperm.xlu0 %8396, %v866_v12   ;;  %v9619_v22 = vld [vmem:[%s9065_s20 + $0xf0] sm:$0xff] }
 0x113   : > { %v1519_v18 = vmul.f32 %v9363_v53, %v14054_v51  ;;  %v1520_v46 = vmul.f32 %v9363_v53, %v14055_v4  ;;  %v1763_v51 = vadd.f32 %v1523_v34, %v1123_v55  ;;  %v1764_v21 = vadd.f32 %v1524_v15, %v1124_v0 }
 0x114   : > { %v1761_v1 = vadd.f32 %v1521_v27, %v1121_v39  ;;  %v1767_v31 = vadd.f32 %v1527_v35, %v1127_v3  ;;  %v1522_v20 = vmul.f32 %v9363_v53, %v14056_v7  ;;  %v1765_v13 = vadd.f32 %v1525_v45, %v1125_v10  ;;  %v9545_v55 = vpop.permute.xlu2 %922  ;;  %v9558_v39 = vpop.permute.xlu0 %1358 }
 0x115   : > { %v9501_v56 = vpack.c.bf16 %v1756_v44, %v1750_v50  ;;  %v1766_v41 = vadd.f32 %v1526_v23, %v1126_v48  ;;  %v1757_v4 = vadd.f32 %v9407_v11, %v9368_v25  ;;  %v1758_v53 = vadd.f32 %v1518_v40, %v9394_v6  ;;  %v9528_v25 = vld [vmem:[%s9044_s24 + $0xb0] sm:$0xff]  ;;  %v9541_v40 = vld [vmem:[%s9065_s20 + $0xe8] sm:$0xff] }
 0x116   : > { %v9503_v62 = vpack.c.bf16 %v1767_v31, %v1761_v1  ;;  %v9505_v35 = vadd.f32 %v1522_v20, %v1122_v36  ;;  %v1759_v45 = vadd.f32 %v1519_v18, %v9398_v60  ;;  %v1760_v27 = vadd.f32 %v1520_v46, %v9412_v16  ;;  %v9522_v1 = vld [vmem:[%s9044_s24 + $0xa8] sm:$0xff]  ;;  %14060 = vst [vmem:[#allocation52_spill] sm:$0xff] %v9528_v25  ;;  %v9533_v6 = vld [vmem:[%s9044_s24 + $0x90] sm:$0xff]  ;;  %v9538_v16 = vld [vmem:[%s9044_s24 + $0x98] sm:$0xff] }
 0x117   : > { %1430 = vperm.xlu1 %8391, %v864_v47   ;;  %v9512_v3 = vpack.c.bf16 %v1763_v51, %v1757_v4  ;;  %v9514_v23 = vpack.c.bf16 %v1764_v21, %v1758_v53  ;;  %14059 = vst [vmem:[#allocation51_spill] sm:$0xff] %v9522_v1  ;;  %v13379_v31 = vunpack.c.h.bf16 %v9420_v63  ;;  %v13383_v60 = vunpack.c.l.bf16 %v9522_v1  ;;  %v9616_v63 = vld [vmem:[%s9044_s24 + $0xe0] sm:$0xff] }
 0x118   : > { %8393 = vset.pattern.permute.xlu2 %v14045_v42  ;;  %v9517_v20 = vpack.c.bf16 %v1765_v13, %v1759_v45  ;;  %v9519_v36 = vpack.c.bf16 %v1766_v41, %v1760_v27  ;;  %14061 = vst [vmem:[#allocation53_spill] sm:$0xff] %v9533_v6  ;;  %v13382_v11 = vunpack.c.h.bf16 %v9522_v1  ;;  %v13381_v34 = vunpack.c.l.bf16 %v9528_v25 }
 0x119   : > { %1434 = vperm.xlu2 %8393, %v865_v59   ;;  %14062 = vst [vmem:[#allocation54_spill] sm:$0xff] %v9538_v16  ;;  %v9543_v59 = vpop.permute.xlu1 %1362  ;;  %v13380_v47 = vunpack.c.h.bf16 %v9528_v25  ;;  %v1128_v0 = vmul.f32 %v9214_v49, %v9386_v58  ;;  %v1528_v15 = vmul.f32 %v9400_v2, %v13379_v31  ;;  %v13385_v10 = vunpack.c.l.bf16 %v9533_v6  ;;  %v9597_v31 = vld [vmem:[%s9044_s24 + $0xc0] sm:$0xff] }
 0x11a   : > { %14057 = vst [vmem:[#allocation49_spill] sm:$0xff] %v9517_v20  ;;  %1450 = vperm.xlu0 %8396, %v9541_v40   ;;  %v13384_v48 = vunpack.c.h.bf16 %v9533_v6  ;;  %v1135_v18 = vmul.f32 %v9154_v17, %v9491_v61  ;;  %v13396_v50 = vunpack.c.l.bf16 %v9538_v16  ;;  %v13401_v58 = vunpack.c.h.bf16 %v9538_v16 }
 0x11b   : > { %14058 = vst [vmem:[#allocation50_spill] sm:$0xff] %v9519_v36  ;;  %v1535_v2 = vmul.f32 %v9543_v59, %v13383_v60  ;;  %v1136_v44 = vmul.f32 %v9157_v14, %v9491_v61  ;;  %v1536_v46 = vmul.f32 %v9543_v59, %v13382_v11  ;;  %v1137_v7 = vmul.f32 %v9174_v26, %v9491_v61 }
 0x11c   : > { %2807 = vmatmul.bf16.gmra.mxu0 %v9512_v3  ;;  %2916 = vmatmul.bf16.gmra.mxu1 %v9514_v23  ;;  %v1537_v51 = vmul.f32 %v9543_v59, %v13381_v34  ;;  %v1138_v21 = vmul.f32 %v9177_v28, %v9491_v61  ;;  %v1538_v13 = vmul.f32 %v9543_v59, %v13380_v47  ;;  %v9600_v47 = vld [vmem:[%s9044_s24 + $0xd8] sm:$0xff]  ;;  %v13415_v6 = vunpack.c.l.bf16 %v9597_v31 }
 0x11d   : > { %3025 = vmatmul.bf16.gmra.mxu2 %v9517_v20  ;;  %3134 = vmatmul.bf16.gmra.mxu3 %v9519_v36  ;;  %v9584_v41 = vadd.f32 %v1528_v15, %v1128_v0  ;;  %v1129_v4 = vmul.f32 %v9154_v17, %v9489_v19  ;;  %v1529_v53 = vmul.f32 %v9558_v39, %v13385_v10  ;;  %v9613_v10 = vld [vmem:[%s9044_s24 + $0xc8] sm:$0xff]  ;;  %v7333_v20 = vld [vmem:[#allocation8 + $0xd8] sm:$0xf0] }
 0x11e   : > { %v1130_v45 = vmul.f32 %v9157_v14, %v9489_v19  ;;  %v1530_v27 = vmul.f32 %v9558_v39, %v13384_v48  ;;  %14063 = vst [vmem:[#allocation55_spill] sm:$0xff] %v9597_v31  ;;  %v1131_v0 = vmul.f32 %v9174_v26, %v9489_v19  ;;  %v1531_v15 = vmul.f32 %v9558_v39, %v13396_v50 }
 0x11f   : > { %8394 = vset.pattern.permute.xlu1 %v14036_v33  ;;  %14064 = vst [vmem:[#allocation56_spill] sm:$0xff] %v9600_v47  ;;  %v1132_v34 = vmul.f32 %v9177_v28, %v9489_v19  ;;  %v1532_v11 = vmul.f32 %v9558_v39, %v13401_v58  ;;  %v1775_v60 = vadd.f32 %v1535_v2, %v1135_v18  ;;  %v13402_v50 = vunpack.c.l.bf16 %v9600_v47  ;;  %v9641_v58 = vld [vmem:[%s9044_s24 + $0xa0] sm:$0xff] }
 0x120   : > { %1012 = vperm.xlu1 %8394, %v866_v12   ;;  %v867_v12 = vld [vmem:[%s9065_s20 + $0xd8] sm:$0xff]  ;;  %v1776_v48 = vadd.f32 %v1536_v46, %v1136_v44  ;;  %14065 = vst [vmem:[#allocation57_spill] sm:$0xff] %v9613_v10  ;;  %v1777_v25 = vadd.f32 %v1537_v51, %v1137_v7  ;;  %v1778_v1 = vadd.f32 %v1538_v13, %v1138_v21  ;;  %v13407_v2 = vunpack.c.h.bf16 %v9600_v47  ;;  %v9627_v44 = vpop.permute.xlu2 %1370  ;;  %v9629_v46 = vpop.permute.xlu0 %927 }
 0x121   : > { %8395 = vset.pattern.permute.xlu2 %v14036_v33  ;;  %14066 = vst [vmem:[#allocation58_spill] sm:$0xff] %v9616_v63  ;;  %v1769_v9 = vadd.f32 %v1529_v53, %v1129_v4  ;;  %v1770_v16 = vadd.f32 %v1530_v27, %v1130_v45  ;;  %v1771_v7 = vadd.f32 %v1531_v15, %v1131_v0  ;;  %v13410_v13 = vunpack.c.l.bf16 %v9616_v63  ;;  %v9643_v18 = vpop.permute.xlu1 %1366  ;;  %v7587_v21 = vld [vmem:[#allocation8 + $0x2d0] sm:$0xf] }
 0x122   : > { %1017 = vperm.xlu2 %8395, %v867_v12   ;;  %1454 = vperm.xlu0 %8396, %v9619_v22   ;;  %v1772_v51 = vadd.f32 %v1532_v11, %v1132_v34  ;;  %v1141_v45 = vmul.f32 %v9154_v17, %v9545_v55  ;;  %14069 = vst [vmem:[#allocation61_spill] sm:$0xff] %v9641_v58  ;;  %v14074_v47 = vunpack.c.h.bf16 %v9616_v63 }
 0x123   : > { %v9633_v4 = vpack.c.bf16 %v1775_v60, %v1769_v9  ;;  %v9635_v53 = vpack.c.bf16 %v1776_v48, %v1770_v16  ;;  %v9645_v11 = vpack.c.bf16 %v1777_v25, %v1771_v7  ;;  %v1142_v9 = vmul.f32 %v9157_v14, %v9545_v55 }
 0x124   : > { %v9647_v34 = vpack.c.bf16 %v1778_v1, %v1772_v51  ;;  %v9653_v60 = vmul.f32 %v9174_v26, %v9545_v55  ;;  %v1147_v16 = vmul.f32 %v9154_v17, %v9629_v46  ;;  %v1547_v25 = vmul.f32 %v9627_v44, %v13402_v50  ;;  %v8007_v51 = vld [vmem:[#allocation8 + $0x54] sm:$0xf]  ;;  %v7269_v50 = vld [vmem:[#allocation8 + $0x58] sm:$0xf0] }
 0x125   : > { %14067 = vst [vmem:[#allocation59_spill] sm:$0xff] %v9633_v4  ;;  %v1144_v48 = vmul.f32 %v9177_v28, %v9545_v55  ;;  %v1148_v0 = vmul.f32 %v9157_v14, %v9629_v46  ;;  %v1548_v15 = vmul.f32 %v9627_v44, %v13407_v2  ;;  %v1549_v7 = vmul.f32 %v9627_v44, %v13410_v13  ;;  %v8023_v1 = vld [vmem:[#allocation8 + $0xd4] sm:$0xf]  ;;  %v7523_v13 = vld [vmem:[#allocation8 + $0x250] sm:$0xf] }
 0x126   : > { %14068 = vst [vmem:[#allocation60_spill] sm:$0xff] %v9635_v53  ;;  %v1541_v27 = vmul.f32 %v9643_v18, %v13415_v6  ;;  %v1550_v2 = vmul.f32 %v9627_v44, %v14074_v47  ;;  %v7272_v36 = vor.u32 %v8007_v51, %v7269_v50  ;;  %v7336_v54 = vor.u32 %v8023_v1, %v7333_v20  ;;  %v9700_v1 = vld [vmem:[%s9065_s20 + $0xe0] sm:$0xff] }
 0x127   : > { %14070 = vst [vmem:[#allocation62_spill] sm:$0xff] %v9645_v11  ;;  %v7524_v37 = vor.u32 %v8072_v38, %v7523_v13  ;;  %v1787_v63 = vadd.f32 %v1547_v25, %v1147_v16  ;;  %v1149_v47 = vmul.f32 %v9174_v26, %v9629_v46  ;;  %v1150_v50 = vmul.f32 %v9177_v28, %v9629_v46  ;;  %v9708_v6 = vld [vmem:[%s9044_s24 + $0xd0] sm:$0xff] }
 0x128   : > { %8397 = vset.pattern.permute.xlu1 %v14045_v42  ;;  %14071 = vst [vmem:[#allocation63_spill] sm:$0xff] %v9647_v34  ;;  %3445 = vmatpush.bf16.msrb.mxu2 %v7272_v36  ;;  %v7588_v20 = vor.u32 %v8088_v32, %v7587_v21  ;;  %v9696_v38 = vpop.permute.xlu2 %937  ;;  %v1788_v13 = vadd.f32 %v1548_v15, %v1148_v0  ;;  %v14075_v16 = vunpack.c.l.bf16 %v9641_v58  ;;  %v14077_v21 = vunpack.c.l.bf16 %v9613_v10 }
 0x129   : > { %1442 = vperm.xlu1 %8397, %v867_v12   ;;  %v9666_v12 = vld [vmem:[%s9044_s24 + $0xb8] sm:$0xff]  ;;  %3554 = vmatpush.bf16.msrb.mxu3 %v7336_v54  ;;  %v1139_v51 = vmul.f32 %v9171_v24, %v9491_v61  ;;  %14076 = vst [vmem:[#allocation65_spill] sm:$0xff] %v9708_v6  ;;  %v1781_v36 = vadd.f32 %v1541_v27, %v1141_v45  ;;  %v14078_v54 = vunpack.c.h.bf16 %v9613_v10  ;;  %v13424_v27 = vunpack.c.h.bf16 %v9641_v58 }
 0x12a   : > { %14072 = vst [vmem:[#allocation64_spill] sm:$0xff] %v9666_v12  ;;  %8402 = vset.pattern.permute.xlu0 %v14036_v33  ;;  %v1533_v25 = vmul.f32 %v9558_v39, %v14075_v16  ;;  %v1543_v0 = vmul.f32 %v9643_v18, %v14077_v21  ;;  %3227 = vmatpush.bf16.msrb.mxu0 %v7524_v37  ;;  %v13423_v37 = vunpack.c.l.bf16 %v9708_v6  ;;  %v9882_v10 = vld [vmem:[%s9044_s24 + $0x118] sm:$0xff] }
 0x12b   : > { %v1544_v15 = vmul.f32 %v9643_v18, %v14078_v54  ;;  %3336 = vmatpush.bf16.msrb.mxu1 %v7588_v20  ;;  %v9719_v16 = vpack.c.bf16 %v9584_v41, %v9505_v35  ;;  %v1790_v21 = vadd.f32 %v1550_v2, %v1150_v50  ;;  %1022 = vperm.xlu2 %8395, %v9700_v1   ;;  %v9728_v54 = vld [vmem:[%s9044_s24 + $0xe8] sm:$0xff]  ;;  %v14083_v50 = vunpack.c.h.bf16 %v9666_v12 }
 0x12c   : > { %2812 = vmatmul.bf16.gmra.mxu0 %v9633_v4  ;;  %2921 = vmatmul.bf16.gmra.mxu1 %v9635_v53  ;;  %14080 = vst [vmem:[#allocation66_spill] sm:$0xff] %v9728_v54  ;;  %v1134_v35 = vmul.f32 %v9214_v49, %v9489_v19  ;;  %v9735_v41 = vpack.c.bf16 %v1787_v63, %v1781_v36  ;;  %v13421_v63 = vunpack.c.l.bf16 %v9728_v54  ;;  %v7515_v53 = vld [vmem:[#allocation8 + $0x240] sm:$0xf] }
 0x12d   : > { %3030 = vmatmul.bf16.gmra.mxu2 %v9645_v11  ;;  %3139 = vmatmul.bf16.gmra.mxu3 %v9647_v34  ;;  %v14073_v34 = vunpack.c.h.bf16 %v9597_v31  ;;  %v14079_v31 = vunpack.c.l.bf16 %v9666_v12  ;;  %v1783_v2 = vadd.f32 %v1543_v0, %v9653_v60  ;;  %v1145_v60 = vmul.f32 %v9171_v24, %v9545_v55  ;;  %v9768_v0 = vld [vmem:[%s9044_s24 + $0x108] sm:$0xff]  ;;  %14099 = vst [vmem:[#allocation83_spill] sm:$0xff] %v9882_v10 }
 0x12e   : > { %14081 = vst [vmem:[#allocation67_spill] sm:$0xff] %v9735_v41 }
 0x12f   : > { %v1542_v11 = vmul.f32 %v9643_v18, %v14073_v34  ;;  %v1133_v34 = vmul.f32 %v9171_v24, %v9489_v19  ;;  %v1539_v45 = vmul.f32 %v9543_v59, %v14079_v31  ;;  %v1140_v31 = vmul.f32 %v9214_v49, %v9491_v61  ;;  %14085 = vst [vmem:[#allocation70_spill] sm:$0xff] %v9768_v0 }
 0x130   : > { %v1534_v19 = vmul.f32 %v9558_v39, %v13424_v27  ;;  %v1540_v61 = vmul.f32 %v9543_v59, %v14083_v50  ;;  %v1551_v59 = vmul.f32 %v9627_v44, %v13421_v63  ;;  %v1160_v63 = vmul.f32 %v9157_v14, %v9696_v38 }
 0x131   : > { %8398 = vset.pattern.permute.xlu1 %v14036_v33  ;;  %v1782_v32 = vadd.f32 %v1542_v11, %v1142_v9  ;;  %v1789_v9 = vadd.f32 %v1549_v7, %v1149_v47  ;;  %v1779_v20 = vadd.f32 %v1539_v45, %v1139_v51  ;;  %v1784_v7 = vadd.f32 %v1544_v15, %v1144_v48  ;;  %v9740_v47 = vpop.permute.xlu1 %932  ;;  %v9771_v15 = vld [vmem:[%s9044_s24 + $0xf8] sm:$0xff] }
 0x132   : > { %1027 = vperm.xlu1 %8398, %v9541_v40   ;;  %v1773_v40 = vadd.f32 %v1533_v25, %v1133_v34  ;;  %v1151_v48 = vmul.f32 %v9171_v24, %v9629_v46  ;;  %v13422_v51 = vunpack.c.h.bf16 %v9708_v6  ;;  %v9760_v25 = vld [vmem:[%s9044_s24 + $0xf0] sm:$0xff]  ;;  %v1774_v39 = vadd.f32 %v1534_v19, %v1134_v35  ;;  %14086 = vst [vmem:[#allocation71_spill] sm:$0xff] %v9771_v15 }
 0x133   : > { %v9737_v11 = vpack.c.bf16 %v1788_v13, %v1782_v32  ;;  %v1545_v13 = vmul.f32 %v9643_v18, %v13423_v37  ;;  %14084 = vst [vmem:[#allocation69_spill] sm:$0xff] %v9760_v25  ;;  %v1780_v36 = vadd.f32 %v1540_v61, %v1140_v31  ;;  %v13420_v32 = vunpack.c.h.bf16 %v9728_v54  ;;  %v9780_v31 = vpop.permute.xlu2 %942  ;;  %8399 = vset.pattern.permute.xlu2 %v14045_v42 }
 0x134   : > { %v9742_v34 = vpack.c.bf16 %v1779_v20, %v1773_v40  ;;  %v1146_v40 = vmul.f32 %v9214_v49, %v9545_v55  ;;  %v1152_v20 = vmul.f32 %v9214_v49, %v9629_v46  ;;  %v1546_v35 = vmul.f32 %v9643_v18, %v13422_v51  ;;  %v9790_v55 = vld [vmem:[%s9044_s24 + $0x110] sm:$0xff]  ;;  %1446 = vperm.xlu2 %8399, %v9700_v1  }
 0x135   : > { %14082 = vst [vmem:[#allocation68_spill] sm:$0xff] %v9737_v11  ;;  %v1785_v45 = vadd.f32 %v1545_v13, %v1145_v60  ;;  %v9782_v19 = vpack.c.bf16 %v1789_v9, %v1783_v2  ;;  %v13428_v50 = vunpack.c.l.bf16 %v9760_v25  ;;  %v9792_v61 = vpack.c.bf16 %v1780_v36, %v1774_v39 }
 0x136   : > { %14089 = vst [vmem:[#allocation74_spill] sm:$0xff] %v9790_v55  ;;  %v1791_v46 = vadd.f32 %v1551_v59, %v1151_v48  ;;  %v1552_v18 = vmul.f32 %v9627_v44, %v13420_v32  ;;  %v13429_v9 = vunpack.c.l.bf16 %v9768_v0  ;;  %v13426_v2 = vunpack.c.l.bf16 %v9771_v15  ;;  %v9812_v32 = vpop.permute.xlu0 %1374 }
 0x137   : > { %14087 = vst [vmem:[#allocation72_spill] sm:$0xff] %v9782_v19  ;;  %v13434_v60 = vunpack.c.h.bf16 %v9768_v0  ;;  %v1786_v44 = vadd.f32 %v1546_v35, %v1146_v40  ;;  %v1159_v39 = vmul.f32 %v9154_v17, %v9696_v38  ;;  %v13443_v36 = vunpack.c.l.bf16 %v9790_v55  ;;  %v9874_v0 = vld [vmem:[%s9044_s24 + $0x140] sm:$0xff] }
 0x138   : > { %14090 = vst [vmem:[#allocation75_spill] sm:$0xff] %v9792_v61  ;;  %v9805_v48 = vpack.c.bf16 %v1791_v46, %v1785_v45  ;;  %v1792_v13 = vadd.f32 %v1552_v18, %v1152_v20  ;;  %v1161_v45 = vmul.f32 %v9174_v26, %v9696_v38  ;;  %v1162_v40 = vmul.f32 %v9177_v28, %v9696_v38  ;;  %v871_v20 = vld [vmem:[%s9065_s20 + $0xf8] sm:$0xff] }
 0x139   : > { %v9823_v46 = vpop.permute.xlu1 %1378  ;;  %v1553_v1 = vmul.f32 %v9812_v32, %v13428_v50  ;;  %v1555_v51 = vmul.f32 %v9812_v32, %v13426_v2  ;;  %v9855_v50 = vld [vmem:[%s9044_s24 + $0x128] sm:$0xff]  ;;  %v1155_v59 = vmul.f32 %v9174_v26, %v9740_v47  ;;  %v1156_v54 = vmul.f32 %v9177_v28, %v9740_v47  ;;  %14097 = vst [vmem:[#allocation81_spill] sm:$0xff] %v9874_v0 }
 0x13a   : > { %1032 = vperm.xlu1 %8398, %v9619_v22   ;;  %v9784_v22 = vpack.c.bf16 %v1790_v21, %v1784_v7  ;;  %v13425_v21 = vunpack.c.h.bf16 %v9760_v25  ;;  %v13427_v7 = vunpack.c.h.bf16 %v9771_v15  ;;  %14091 = vst [vmem:[#allocation76_spill] sm:$0xff] %v9805_v48  ;;  %v9821_v35 = vpack.c.bf16 %v1792_v13, %v1786_v44  ;;  %v9838_v44 = vld [vmem:[%s9044_s24 + $0x120] sm:$0xff] }
 0x13b   : > { %14093 = vst [vmem:[#allocation78_spill] sm:$0xff] %v9838_v44  ;;  %v1153_v13 = vmul.f32 %v9154_v17, %v9740_v47  ;;  %v1559_v27 = vmul.f32 %v9823_v46, %v13429_v9  ;;  %v1560_v2 = vmul.f32 %v9823_v46, %v13434_v60  ;;  %v1561_v9 = vmul.f32 %v9823_v46, %v13443_v36  ;;  %v9868_v58 = vpop.permute.xlu2 %1382  ;;  %v9879_v15 = vld [vmem:[%s9044_s24 + $0x100] sm:$0xff] }
 0x13c   : > { %14088 = vst [vmem:[#allocation73_spill] sm:$0xff] %v9784_v22  ;;  %2817 = vmatmul.bf16.gmra.mxu0 %v9735_v41  ;;  %2926 = vmatmul.bf16.gmra.mxu1 %v9737_v11  ;;  %v1554_v18 = vmul.f32 %v9812_v32, %v13425_v21  ;;  %v1556_v37 = vmul.f32 %v9812_v32, %v13427_v7  ;;  %v9852_v7 = vld [vmem:[%s9044_s24 + $0x138] sm:$0xff]  ;;  %v14096_v6 = vunpack.c.h.bf16 %v9790_v55  ;;  %v14100_v25 = vunpack.c.l.bf16 %v9838_v44 }
 0x13d   : > { %3035 = vmatmul.bf16.gmra.mxu2 %v9782_v19  ;;  %3144 = vmatmul.bf16.gmra.mxu3 %v9784_v22  ;;  %14092 = vst [vmem:[#allocation77_spill] sm:$0xff] %v9821_v35  ;;  %v1154_v21 = vmul.f32 %v9157_v14, %v9740_v47  ;;  %v1793_v55 = vadd.f32 %v1553_v1, %v1153_v13 }
 0x13e   : > { %14094 = vst [vmem:[#allocation79_spill] sm:$0xff] %v9852_v7  ;;  %v1562_v60 = vmul.f32 %v9823_v46, %v14096_v6  ;;  %v1799_v6 = vadd.f32 %v1559_v27, %v1159_v39  ;;  %v1800_v19 = vadd.f32 %v1560_v2, %v1160_v63  ;;  %v1795_v12 = vadd.f32 %v1555_v51, %v1155_v59 }
 0x13f   : > { %14095 = vst [vmem:[#allocation80_spill] sm:$0xff] %v9855_v50  ;;  %v1794_v22 = vadd.f32 %v1554_v18, %v1154_v21  ;;  %v1801_v11 = vadd.f32 %v1561_v9, %v1161_v45  ;;  %v1796_v41 = vadd.f32 %v1556_v37, %v1156_v54  ;;  %8400 = vset.pattern.permute.xlu2 %v14036_v33  ;;  %v13463_v63 = vunpack.c.l.bf16 %v9874_v0  ;;  %v872_v54 = vld [vmem:[%s9065_s20 + $0x100] sm:$0xff]  ;;  %v9942_v45 = vld [vmem:[%s9065_s20 + $0x108] sm:$0xff] }
 0x140   : > { %v1802_v35 = vadd.f32 %v1562_v60, %v1162_v40  ;;  %14098 = vst [vmem:[#allocation82_spill] sm:$0xff] %v9879_v15  ;;  %v1165_v36 = vmul.f32 %v9154_v17, %v9780_v31  ;;  %v1565_v1 = vmul.f32 %v9868_v58, %v14100_v25  ;;  %v1166_v27 = vmul.f32 %v9157_v14, %v9780_v31 }
 0x141   : > { %1037 = vperm.xlu2 %8400, %v871_v20   ;;  %v14101_v37 = vunpack.c.h.bf16 %v9838_v44  ;;  %v9898_v9 = vmul.f32 %v9174_v26, %v9780_v31  ;;  %v14102_v21 = vunpack.c.l.bf16 %v9855_v50  ;;  %v13466_v25 = vunpack.c.h.bf16 %v9855_v50  ;;  %v9912_v40 = vpop.permute.xlu1 %947  ;;  %1047 = vperm.xlu0 %8402, %v9942_v45   ;;  %v9960_v50 = vld [vmem:[%s9044_s24 + $0x130] sm:$0xff] }
 0x142   : > { %8401 = vset.pattern.permute.xlu1 %v14045_v42  ;;  %v9906_v60 = vpack.c.bf16 %v1799_v6, %v1793_v55  ;;  %v9908_v39 = vpack.c.bf16 %v1800_v19, %v1794_v22  ;;  %v13460_v59 = vunpack.c.l.bf16 %v9879_v15  ;;  %v9916_v18 = vpack.c.bf16 %v1801_v11, %v1795_v12  ;;  %14110 = vst [vmem:[#allocation88_spill] sm:$0xff] %v9960_v50 }
 0x143   : > { %1458 = vperm.xlu1 %8401, %v871_v20   ;;  %v1566_v51 = vmul.f32 %v9868_v58, %v14101_v37  ;;  %v9903_v2 = vmul.f32 %v9868_v58, %v14102_v21  ;;  %v9914_v20 = vpop.permute.xlu0 %1386  ;;  %v9918_v13 = vpack.c.bf16 %v1802_v35, %v1796_v41  ;;  %v1168_v37 = vmul.f32 %v9177_v28, %v9780_v31 }
 0x144   : > { %14103 = vst [vmem:[#allocation84_spill] sm:$0xff] %v9906_v60  ;;  %v1157_v19 = vmul.f32 %v9171_v24, %v9740_v47  ;;  %v14107_v22 = vunpack.c.l.bf16 %v9852_v7  ;;  %v9929_v6 = vadd.f32 %v1565_v1, %v1165_v36  ;;  %v1163_v11 = vmul.f32 %v9171_v24, %v9696_v38  ;;  %v8005_v36 = vld [vmem:[#allocation8 + $0x44] sm:$0xf] }
 0x145   : > { %14104 = vst [vmem:[#allocation85_spill] sm:$0xff] %v9908_v39  ;;  %v14108_v41 = vunpack.c.h.bf16 %v9852_v7  ;;  %v9939_v21 = vadd.f32 %v1566_v51, %v1166_v27  ;;  %v1557_v1 = vmul.f32 %v9812_v32, %v13460_v59  ;;  %v1568_v12 = vmul.f32 %v9868_v58, %v13466_v25  ;;  %v7261_v27 = vld [vmem:[#allocation8 + $0x48] sm:$0xf0]  ;;  %v8021_v51 = vld [vmem:[#allocation8 + $0xc4] sm:$0xf] }
 0x146   : > { %14105 = vst [vmem:[#allocation86_spill] sm:$0xff] %v9916_v18  ;;  %v1571_v55 = vmul.f32 %v9914_v20, %v14107_v22  ;;  %v1573_v22 = vmul.f32 %v9914_v20, %v13463_v63  ;;  %v14109_v7 = vunpack.c.l.bf16 %v9882_v10  ;;  %v7264_v59 = vor.u32 %v8005_v36, %v7261_v27  ;;  %v9963_v25 = vld [vmem:[%s9044_s24 + $0x148] sm:$0xff]  ;;  %v7579_v27 = vld [vmem:[#allocation8 + $0x2c0] sm:$0xf] }
 0x147   : > { %14106 = vst [vmem:[#allocation87_spill] sm:$0xff] %v9918_v13  ;;  %v1572_v35 = vmul.f32 %v9914_v20, %v14108_v41  ;;  %v7325_v41 = vld [vmem:[#allocation8 + $0xc8] sm:$0xf0]  ;;  %v1172_v48 = vmul.f32 %v9157_v14, %v9912_v40  ;;  %v8070_v36 = vld [vmem:[#allocation8 + $0x244] sm:$0xf0]  ;;  %v1158_v4 = vmul.f32 %v9214_v49, %v9740_v47  ;;  %v14115_v47 = vunpack.c.h.bf16 %v9882_v10 }
 0x148   : > { %v1563_v44 = vmul.f32 %v9823_v46, %v14109_v7  ;;  %14111 = vst [vmem:[#allocation89_spill] sm:$0xff] %v9963_v25  ;;  %v14112_v7 = vunpack.c.h.bf16 %v9874_v0  ;;  %3446 = vmatpush.bf16.msrb.mxu2 %v7264_v59  ;;  %v8086_v63 = vld [vmem:[#allocation8 + $0x2c4] sm:$0xf0] }
 0x149   : > { %1042 = vperm.xlu2 %8400, %v872_v54   ;;  %v7580_v61 = vor.u32 %v8086_v63, %v7579_v27  ;;  %v1564_v63 = vmul.f32 %v9823_v46, %v14115_v47  ;;  %v9998_v27 = vpop.permute.xlu1 %952  ;;  %v1175_v46 = vmul.f32 %v9171_v24, %v9912_v40  ;;  %v1812_v47 = vadd.f32 %v1572_v35, %v1172_v48 }
 0x14a   : > { %8406 = vset.pattern.permute.xlu0 %v14045_v42  ;;  %v1170_v48 = vmul.f32 %v9214_v49, %v9780_v31 }
 0x14b   : > { %1462 = vperm.xlu1 %8401, %v872_v54   ;;  %v13476_v54 = vunpack.c.l.bf16 %v9960_v50  ;;  %3337 = vmatpush.bf16.msrb.mxu1 %v7580_v61 }
 0x14c   : > { %2822 = vmatmul.bf16.gmra.mxu0 %v9906_v60  ;;  %2931 = vmatmul.bf16.gmra.mxu1 %v9908_v39  ;;  %v1797_v39 = vadd.f32 %v1557_v1, %v1157_v19  ;;  %v1171_v60 = vmul.f32 %v9154_v17, %v9912_v40  ;;  %v1803_v19 = vadd.f32 %v1563_v44, %v1163_v11 }
 0x14d   : > { %3040 = vmatmul.bf16.gmra.mxu2 %v9916_v18  ;;  %3149 = vmatmul.bf16.gmra.mxu3 %v9918_v13  ;;  %v7328_v18 = vor.u32 %v8021_v51, %v7325_v41  ;;  %v1574_v13 = vmul.f32 %v9914_v20, %v14112_v7  ;;  %v1173_v1 = vmul.f32 %v9174_v26, %v9912_v40  ;;  %v874_v51 = vld [vmem:[%s9065_s20 + $0x110] sm:$0xff] }
 0x14e   : > { %v7516_v41 = vor.u32 %v8070_v36, %v7515_v53  ;;  %v9977_v0 = vpack.c.bf16 %v1803_v19, %v1797_v39  ;;  %v1164_v7 = vmul.f32 %v9214_v49, %v9696_v38  ;;  %v1174_v44 = vmul.f32 %v9177_v28, %v9912_v40  ;;  %1470 = vperm.xlu0 %8406, %v874_v51  }
 0x14f   : > { %3555 = vmatpush.bf16.msrb.mxu3 %v7328_v18  ;;  %v14114_v53 = vunpack.c.h.bf16 %v9879_v15  ;;  %v9992_v18 = vpop.permute.xlu2 %957  ;;  %v1807_v38 = vadd.f32 %v9903_v2, %v9898_v9  ;;  %v1808_v11 = vadd.f32 %v1568_v12, %v1168_v37  ;;  %v1169_v36 = vmul.f32 %v9171_v24, %v9780_v31  ;;  %v10027_v31 = vld [vmem:[%s9044_s24 + $0x150] sm:$0xff] }
 0x150   : > { %14113 = vst [vmem:[#allocation90_spill] sm:$0xff] %v9977_v0  ;;  %3228 = vmatpush.bf16.msrb.mxu0 %v7516_v41  ;;  %v1804_v19 = vadd.f32 %v1564_v63, %v1164_v7  ;;  %v13475_v41 = vunpack.c.h.bf16 %v9960_v50  ;;  %v1813_v39 = vadd.f32 %v1573_v22, %v1173_v1  ;;  %v1569_v61 = vmul.f32 %v9868_v58, %v13476_v54  ;;  %v10093_v54 = vld [vmem:[%s9044_s24 + $0x180] sm:$0xff] }
 0x151   : > { %v1558_v59 = vmul.f32 %v9812_v32, %v14114_v53  ;;  %v1811_v53 = vadd.f32 %v1571_v55, %v1171_v60  ;;  %v1814_v9 = vadd.f32 %v1574_v13, %v1174_v44  ;;  %v14117_v2 = vunpack.c.l.bf16 %v9963_v25  ;;  %8403 = vset.pattern.permute.xlu2 %v14045_v42  ;;  %14120 = vst [vmem:[#allocation94_spill] sm:$0xff] %v10027_v31 }
 0x152   : > { %v1809_v60 = vadd.f32 %v1569_v61, %v1169_v36  ;;  %1466 = vperm.xlu2 %8403, %v9942_v45   ;;  %v13474_v13 = vunpack.c.h.bf16 %v9963_v25  ;;  %v1570_v12 = vmul.f32 %v9868_v58, %v13475_v41  ;;  %v10024_v22 = vpack.c.bf16 %v1812_v47, %v9939_v21  ;;  %v10043_v58 = vld [vmem:[%s9044_s24 + $0x170] sm:$0xff]  ;;  %v10046_v21 = vpop.permute.xlu0 %1390  ;;  %14127 = vst [vmem:[#allocation101_spill] sm:$0xff] %v10093_v54 }
 0x153   : > { %8404 = vset.pattern.permute.xlu1 %v14036_v33  ;;  %v1798_v32 = vadd.f32 %v1558_v59, %v1158_v4  ;;  %v1575_v37 = vmul.f32 %v9914_v20, %v14117_v2  ;;  %v10021_v35 = vpack.c.bf16 %v1811_v53, %v9929_v6  ;;  %v10029_v1 = vpack.c.bf16 %v1813_v39, %v1807_v38  ;;  %v875_v6 = vld [vmem:[%s9065_s20 + $0x118] sm:$0xff]  ;;  %v10052_v39 = vld [vmem:[%s9044_s24 + $0x158] sm:$0xff] }
 0x154   : > { %1052 = vperm.xlu1 %8404, %v874_v51   ;;  %14119 = vst [vmem:[#allocation93_spill] sm:$0xff] %v10024_v22  ;;  %v10031_v45 = vpack.c.bf16 %v1814_v9, %v1808_v11  ;;  %v10034_v51 = vld [vmem:[%s9044_s24 + $0x168] sm:$0xff]  ;;  %v1810_v44 = vadd.f32 %v1570_v12, %v1170_v48  ;;  %v13477_v63 = vunpack.c.l.bf16 %v10027_v31  ;;  %v1176_v38 = vmul.f32 %v9214_v49, %v9912_v40 }
 0x155   : > { %v10007_v4 = vpack.c.bf16 %v1804_v19, %v1798_v32  ;;  %v1815_v55 = vadd.f32 %v1575_v37, %v1175_v46  ;;  %14118 = vst [vmem:[#allocation92_spill] sm:$0xff] %v10021_v35  ;;  %v1576_v11 = vmul.f32 %v9914_v20, %v13474_v13  ;;  %v13478_v36 = vunpack.c.l.bf16 %v10034_v51  ;;  %v10063_v46 = vpop.permute.xlu1 %1394 }
 0x156   : > { %14121 = vst [vmem:[#allocation95_spill] sm:$0xff] %v10029_v1  ;;  %v13479_v32 = vunpack.c.h.bf16 %v10027_v31  ;;  %v13480_v19 = vunpack.c.h.bf16 %v10034_v51  ;;  %v13483_v53 = vunpack.c.l.bf16 %v10043_v58  ;;  %v13486_v47 = vunpack.c.h.bf16 %v10043_v58 }
 0x157   : > { %14116 = vst [vmem:[#allocation91_spill] sm:$0xff] %v10007_v4  ;;  %v10036_v7 = vpack.c.bf16 %v1815_v55, %v1809_v60  ;;  %v10038_v59 = vpop.permute.xlu2 %962  ;;  %v1183_v40 = vmul.f32 %v9154_v17, %v9992_v18  ;;  %v1184_v20 = vmul.f32 %v9157_v14, %v9992_v18  ;;  %v13491_v61 = vunpack.c.l.bf16 %v10052_v39 }
 0x158   : > { %14122 = vst [vmem:[#allocation96_spill] sm:$0xff] %v10031_v45  ;;  %v1577_v2 = vmul.f32 %v10046_v21, %v13477_v63  ;;  %v1185_v37 = vmul.f32 %v9174_v26, %v9992_v18  ;;  %v1186_v48 = vmul.f32 %v9177_v28, %v9992_v18  ;;  %v1816_v60 = vadd.f32 %v1576_v11, %v1176_v38  ;;  %v10096_v63 = vld [vmem:[%s9044_s24 + $0x198] sm:$0xff] }
 0x159   : > { %14123 = vst [vmem:[#allocation97_spill] sm:$0xff] %v10034_v51  ;;  %v1177_v55 = vmul.f32 %v9154_v17, %v9998_v27  ;;  %v1583_v12 = vmul.f32 %v10063_v46, %v13478_v36  ;;  %v1578_v13 = vmul.f32 %v10046_v21, %v13479_v32  ;;  %v1584_v41 = vmul.f32 %v10063_v46, %v13480_v19  ;;  %v877_v38 = vld [vmem:[%s9065_s20 + $0x128] sm:$0xff] }
 0x15a   : > { %14124 = vst [vmem:[#allocation98_spill] sm:$0xff] %v10036_v7  ;;  %8405 = vset.pattern.permute.xlu2 %v14036_v33  ;;  %v1178_v11 = vmul.f32 %v9157_v14, %v9998_v27  ;;  %v1585_v36 = vmul.f32 %v10063_v46, %v13483_v53  ;;  %v1586_v32 = vmul.f32 %v10063_v46, %v13486_v47  ;;  %v14130_v53 = vunpack.c.h.bf16 %v10052_v39  ;;  %v10119_v47 = vpop.permute.xlu0 %967 }
 0x15b   : > { %14125 = vst [vmem:[#allocation99_spill] sm:$0xff] %v10043_v58  ;;  %1057 = vperm.xlu2 %8405, %v875_v6   ;;  %1482 = vperm.xlu0 %8406, %v877_v38   ;;  %v10107_v19 = vpack.c.bf16 %v1816_v60, %v1810_v44  ;;  %v1179_v9 = vmul.f32 %v9174_v26, %v9998_v27  ;;  %v10132_v44 = vld [vmem:[%s9044_s24 + $0x160] sm:$0xff]  ;;  %v10135_v60 = vld [vmem:[%s9044_s24 + $0x178] sm:$0xff]  ;;  %v10142_v58 = vld [vmem:[%s9044_s24 + $0x188] sm:$0xff] }
 0x15c   : > { %2827 = vmatmul.bf16.gmra.mxu0 %v10021_v35  ;;  %2936 = vmatmul.bf16.gmra.mxu1 %v10024_v22  ;;  %14126 = vst [vmem:[#allocation100_spill] sm:$0xff] %v10052_v39  ;;  %v1180_v25 = vmul.f32 %v9177_v28, %v9998_v27  ;;  %v1580_v50 = vmul.f32 %v10046_v21, %v14130_v53  ;;  %v10128_v39 = vld [vmem:[%s9044_s24 + $0x1a0] sm:$0xff]  ;;  %v13523_v22 = vunpack.c.h.bf16 %v10135_v60 }
 0x15d   : > { %3045 = vmatmul.bf16.gmra.mxu2 %v10029_v1  ;;  %3154 = vmatmul.bf16.gmra.mxu3 %v10031_v45  ;;  %14128 = vst [vmem:[#allocation102_spill] sm:$0xff] %v10096_v63  ;;  %v1823_v15 = vadd.f32 %v1583_v12, %v1183_v40  ;;  %v1817_v31 = vadd.f32 %v1577_v2, %v1177_v55  ;;  %v13512_v55 = vunpack.c.l.bf16 %v10135_v60 }
 0x15e   : > { %8407 = vset.pattern.permute.xlu1 %v14045_v42  ;;  %14129 = vst [vmem:[#allocation103_spill] sm:$0xff] %v10107_v19  ;;  %v1818_v53 = vadd.f32 %v1578_v13, %v1178_v11  ;;  %v1825_v45 = vadd.f32 %v1585_v36, %v1185_v37  ;;  %v1826_v1 = vadd.f32 %v1586_v32, %v1186_v48  ;;  %v14135_v13 = vunpack.c.l.bf16 %v10096_v63  ;;  %v878_v37 = vld [vmem:[%s9065_s20 + $0x130] sm:$0xff] }
 0x15f   : > { %1474 = vperm.xlu1 %8407, %v875_v6   ;;  %v1579_v6 = vmul.f32 %v10046_v21, %v13491_v61  ;;  %v10123_v10 = vpop.permute.xlu2 %1402  ;;  %v1824_v61 = vadd.f32 %v1584_v41, %v1184_v20  ;;  %14131 = vst [vmem:[#allocation104_spill] sm:$0xff] %v10128_v39  ;;  %v1820_v12 = vadd.f32 %v1580_v50, %v1180_v25  ;;  %v13504_v50 = vunpack.c.l.bf16 %v10128_v39 }
 0x160   : > { %14132 = vst [vmem:[#allocation105_spill] sm:$0xff] %v10132_v44  ;;  %v1189_v41 = vmul.f32 %v9154_v17, %v10038_v59  ;;  %v1195_v20 = vmul.f32 %v9154_v17, %v10119_v47  ;;  %v1595_v36 = vmul.f32 %v10123_v10, %v14135_v13  ;;  %v1190_v32 = vmul.f32 %v9157_v14, %v10038_v59 }
 0x161   : > { %14133 = vst [vmem:[#allocation106_spill] sm:$0xff] %v10135_v60  ;;  %v1819_v40 = vadd.f32 %v1579_v6, %v1179_v9  ;;  %v1196_v9 = vmul.f32 %v9157_v14, %v10119_v47  ;;  %v10152_v25 = vpack.c.bf16 %v1823_v15, %v1817_v31  ;;  %v10154_v2 = vpack.c.bf16 %v1824_v61, %v1818_v53 }
 0x162   : > { %14134 = vst [vmem:[#allocation107_spill] sm:$0xff] %v10142_v58  ;;  %v13510_v48 = vunpack.c.l.bf16 %v10132_v44  ;;  %v10163_v6 = vpack.c.bf16 %v1826_v1, %v1820_v12  ;;  %v14140_v15 = vunpack.c.h.bf16 %v10096_v63  ;;  %v1191_v61 = vmul.f32 %v9174_v26, %v10038_v59 }
 0x163   : > { %14136 = vst [vmem:[#allocation108_spill] sm:$0xff] %v10152_v25  ;;  %v10161_v11 = vpack.c.bf16 %v1825_v45, %v1819_v40  ;;  %1486 = vperm.xlu0 %8406, %v878_v37   ;;  %v1197_v1 = vmul.f32 %v9174_v26, %v10119_v47  ;;  %v14141_v53 = vunpack.c.l.bf16 %v10093_v54  ;;  %v14142_v12 = vunpack.c.h.bf16 %v10093_v54 }
 0x164   : > { %14137 = vst [vmem:[#allocation109_spill] sm:$0xff] %v10154_v2  ;;  %v1596_v31 = vmul.f32 %v10123_v10, %v14140_v15  ;;  %v1597_v51 = vmul.f32 %v10123_v10, %v13504_v50  ;;  %v1181_v13 = vmul.f32 %v9171_v24, %v9998_v27  ;;  %v1187_v45 = vmul.f32 %v9171_v24, %v9992_v18 }
 0x165   : > { %14138 = vst [vmem:[#allocation110_spill] sm:$0xff] %v10161_v11  ;;  %v14143_v63 = vunpack.c.l.bf16 %v10142_v58  ;;  %v1198_v54 = vmul.f32 %v9177_v28, %v10119_v47  ;;  %v1835_v35 = vadd.f32 %v1595_v36, %v1195_v20  ;;  %v1182_v0 = vmul.f32 %v9214_v49, %v9998_v27 }
 0x166   : > { %14139 = vst [vmem:[#allocation111_spill] sm:$0xff] %v10163_v6  ;;  %v1836_v7 = vadd.f32 %v1596_v31, %v1196_v9  ;;  %v1837_v20 = vadd.f32 %v1597_v51, %v1197_v1 }
 0x167   : > { %8408 = vset.pattern.permute.xlu1 %v14036_v33 }
 0x168   : > { %1067 = vperm.xlu1 %8408, %v877_v38   ;;  %v10159_v38 = vpop.permute.xlu1 %1398 }
 0x169   : > { %v1589_v40 = vmul.f32 %v10159_v38, %v14141_v53  ;;  %v1590_v15 = vmul.f32 %v10159_v38, %v14142_v12  ;;  %v1581_v53 = vmul.f32 %v10046_v21, %v13510_v48  ;;  %v1587_v12 = vmul.f32 %v10063_v46, %v13512_v55 }
 0x16a   : > { %v1591_v50 = vmul.f32 %v10159_v38, %v14143_v63  ;;  %v1192_v48 = vmul.f32 %v9177_v28, %v10038_v59 }
 0x16b   : > { %v1829_v63 = vadd.f32 %v1589_v40, %v1189_v41  ;;  %v1830_v19 = vadd.f32 %v1590_v15, %v1190_v32  ;;  %v1821_v4 = vadd.f32 %v1581_v53, %v1181_v13  ;;  %v14147_v32 = vunpack.c.h.bf16 %v10132_v44  ;;  %v10227_v13 = vld [vmem:[%s9044_s24 + $0x1a8] sm:$0xff]  ;;  %v10265_v15 = vld [vmem:[%s9044_s24 + $0x1b8] sm:$0xff] }
 0x16c   : > { %2832 = vmatmul.bf16.gmra.mxu0 %v10152_v25  ;;  %2941 = vmatmul.bf16.gmra.mxu1 %v10154_v2  ;;  %v14145_v25 = vunpack.c.h.bf16 %v10142_v58  ;;  %v1827_v2 = vadd.f32 %v1587_v12, %v1187_v45  ;;  %v1831_v41 = vadd.f32 %v1591_v50, %v1191_v61  ;;  %14148 = vst [vmem:[#allocation113_spill] sm:$0xff] %v10227_v13 }
 0x16d   : > { %3050 = vmatmul.bf16.gmra.mxu2 %v10161_v11  ;;  %3159 = vmatmul.bf16.gmra.mxu3 %v10163_v6  ;;  %v14144_v6 = vunpack.c.h.bf16 %v10128_v39  ;;  %v10214_v39 = vld [vmem:[%s9044_s24 + $0x190] sm:$0xff]  ;;  %v1582_v9 = vmul.f32 %v10046_v21, %v14147_v32  ;;  %v10239_v51 = vpack.c.bf16 %v1836_v7, %v1830_v19  ;;  %14156 = vst [vmem:[#allocation121_spill] sm:$0xff] %v10265_v15  ;;  %v13530_v32 = vunpack.c.h.bf16 %v10227_v13 }
 0x16e   : > { %v1592_v55 = vmul.f32 %v10159_v38, %v14145_v25  ;;  %14146 = vst [vmem:[#allocation112_spill] sm:$0xff] %v10214_v39  ;;  %v1188_v25 = vmul.f32 %v9214_v49, %v9992_v18  ;;  %v10229_v45 = vpack.c.bf16 %v1827_v2, %v1821_v4  ;;  %v1588_v18 = vmul.f32 %v10063_v46, %v13523_v22  ;;  %v10242_v21 = vld [vmem:[%s9044_s24 + $0x1b0] sm:$0xff] }
 0x16f   : > { %v1598_v11 = vmul.f32 %v10123_v10, %v14144_v6  ;;  %v2189_v6 = vld [vmem:[%s9051_s16] sm:$0xff]  ;;  %v13522_v27 = vunpack.c.l.bf16 %v10214_v39  ;;  %14151 = vst [vmem:[#allocation116_spill] sm:$0xff] %v10239_v51  ;;  %v10248_v4 = vld [vmem:[%s9065_s20 + $0x138] sm:$0xff]  ;;  %v1822_v2 = vadd.f32 %v1582_v9, %v1182_v0  ;;  %v13521_v46 = vunpack.c.l.bf16 %v10227_v13 }
 0x170   : > { %1072 = vperm.xlu1 %8408, %v878_v37   ;;  %v10221_v37 = vpop.permute.xlu2 %977  ;;  %v1832_v31 = vadd.f32 %v1592_v55, %v1192_v48  ;;  %14149 = vst [vmem:[#allocation114_spill] sm:$0xff] %v10229_v45  ;;  %v10235_v40 = vpop.permute.xlu1 %972  ;;  %v2229_v50 = vunpack.c.l.bf16 %v2189_v6  ;;  %v1828_v48 = vadd.f32 %v1588_v18, %v1188_v25  ;;  %v1193_v55 = vmul.f32 %v9171_v24, %v10038_v59  ;;  %v10341_v13 = vld [vmem:[%s9044_s24 + $0x1e0] sm:$0xff] }
 0x171   : > { %v1838_v36 = vadd.f32 %v1598_v11, %v1198_v54  ;;  %v10237_v54 = vpack.c.bf16 %v1835_v35, %v1829_v63  ;;  %14152 = vst [vmem:[#allocation117_spill] sm:$0xff] %v10242_v21  ;;  %v10245_v11 = vld [vmem:[%s9044_s24 + $0x1c8] sm:$0xff]  ;;  %v10253_v61 = vpack.c.bf16 %v1837_v20, %v1831_v41  ;;  %v1199_v35 = vmul.f32 %v9171_v24, %v10119_v47  ;;  %v10276_v20 = vld [vmem:[%s9044_s24 + $0x1d0] sm:$0xff] }
 0x172   : > { %14153 = vst [vmem:[#allocation118_spill] sm:$0xff] %v10245_v11  ;;  %v1593_v7 = vmul.f32 %v10159_v38, %v13522_v27  ;;  %v13524_v19 = vunpack.c.h.bf16 %v10214_v39  ;;  %v13525_v1 = vunpack.c.l.bf16 %v10242_v21  ;;  %v10268_v53 = vpack.c.bf16 %v1828_v48, %v1822_v2  ;;  %v2190_v27 = vld [vmem:[%s9051_s16 + $0x8] sm:$0xff] }
 0x173   : > { %14150 = vst [vmem:[#allocation115_spill] sm:$0xff] %v10237_v54  ;;  %v10261_v0 = vpack.c.bf16 %v1838_v36, %v1832_v31  ;;  %v1599_v12 = vmul.f32 %v10123_v10, %v13521_v46  ;;  %v10280_v36 = vld [vmem:[%s9065_s20 + $0x120] sm:$0xff]  ;;  %v1194_v9 = vmul.f32 %v9214_v49, %v10038_v59  ;;  %v10287_v46 = vpop.permute.xlu0 %1406  ;;  %v1201_v22 = vmul.f32 %v9154_v17, %v10235_v40 }
 0x174   : > { %14154 = vst [vmem:[#allocation119_spill] sm:$0xff] %v10253_v61  ;;  %1062 = vperm.xlu2 %8405, %v10280_v36   ;;  %v1833_v2 = vadd.f32 %v1593_v7, %v1193_v55  ;;  %v1200_v41 = vmul.f32 %v9214_v49, %v10119_v47  ;;  %v1594_v59 = vmul.f32 %v10159_v38, %v13524_v19  ;;  %v8003_v7 = vld [vmem:[#allocation8 + $0x34] sm:$0xf] }
 0x175   : > { %14155 = vst [vmem:[#allocation120_spill] sm:$0xff] %v10261_v0  ;;  %v1839_v48 = vadd.f32 %v1599_v12, %v1199_v35  ;;  %v1601_v55 = vmul.f32 %v10287_v46, %v13525_v1  ;;  %v7253_v12 = vld [vmem:[#allocation8 + $0x38] sm:$0xf0]  ;;  %v1600_v19 = vmul.f32 %v10123_v10, %v13530_v32  ;;  %v2231_v35 = vunpack.c.l.bf16 %v2190_v27 }
 0x176   : > { %14157 = vst [vmem:[#allocation122_spill] sm:$0xff] %v10268_v53  ;;  %v1834_v1 = vadd.f32 %v1594_v59, %v1194_v9  ;;  %v1202_v60 = vmul.f32 %v9157_v14, %v10235_v40 }
 0x177   : > { %14158 = vst [vmem:[#allocation123_spill] sm:$0xff] %v10276_v20  ;;  %v10304_v18 = vpack.c.bf16 %v1839_v48, %v1833_v2  ;;  %v1207_v2 = vmul.f32 %v9154_v17, %v10221_v37  ;;  %v1840_v27 = vadd.f32 %v1600_v19, %v1200_v41  ;;  %v10326_v32 = vadd.f32 %v1601_v55, %v1201_v22 }
 0x178   : > { %8411 = vset.pattern.permute.xlu1 %v14045_v42  ;;  %v10306_v47 = vpop.permute.xlu2 %982  ;;  %v10317_v39 = vpop.permute.xlu1 %1410  ;;  %v14161_v48 = vunpack.c.l.bf16 %v10265_v15  ;;  %v1204_v41 = vmul.f32 %v9177_v28, %v10235_v40  ;;  %v14162_v22 = vunpack.c.h.bf16 %v10265_v15  ;;  %14163 = vst [vmem:[#allocation125_spill] sm:$0xff] %v10341_v13  ;;  %v10356_v15 = vld [vmem:[%s9044_s24 + $0x1f8] sm:$0xff] }
 0x179   : > { %v2798_v63 = vpop.f32.mrf.mxu0  ;;  %v2907_v6 = vpop.f32.mrf.mxu1  ;;  %1490 = vperm.xlu1 %8411, %v10248_v4   ;;  %14159 = vst [vmem:[#allocation124_spill] sm:$0xff] %v10304_v18  ;;  %v10343_v44 = vpack.c.bf16 %v1840_v27, %v1834_v1  ;;  %v14170_v27 = vunpack.c.h.bf16 %v10276_v20 }
 0x17a   : > { %v2799_v31 = vadd.f32 %v2798_v63, %v2229_v50  ;;  %v8019_v63 = vld [vmem:[#allocation8 + $0xb4] sm:$0xf]  ;;  %v1603_v38 = vmul.f32 %v10287_v46, %v14161_v48  ;;  %v1604_v55 = vmul.f32 %v10287_v46, %v14162_v22  ;;  %14168 = vst [vmem:[#allocation127_spill] sm:$0xff] %v10356_v15 }
 0x17b   : > { %14164 = vst [vmem:[#allocation126_spill] sm:$0xff] %v10343_v44 }
 0x17c   : > { %v2908_v50 = vadd.f32 %v2907_v6, %v2799_v31  ;;  %2837 = vmatmul.bf16.gmra.mxu0 %v10237_v54  ;;  %2946 = vmatmul.bf16.gmra.mxu1 %v10239_v51  ;;  %v7256_v6 = vor.u32 %v8003_v7, %v7253_v12  ;;  %v7317_v31 = vld [vmem:[#allocation8 + $0xb8] sm:$0xf0]  ;;  %v1208_v7 = vmul.f32 %v9157_v14, %v10221_v37  ;;  %v14160_v12 = vunpack.c.h.bf16 %v10242_v21  ;;  %v2191_v21 = vld [vmem:[%s9051_s16 + $0x10] sm:$0xff] }
 0x17d   : > { %3055 = vmatmul.bf16.gmra.mxu2 %v10253_v61  ;;  %3164 = vmatmul.bf16.gmra.mxu3 %v10261_v0  ;;  %v7320_v25 = vor.u32 %v8019_v63, %v7317_v31  ;;  %v1203_v63 = vmul.f32 %v9174_v26, %v10235_v40  ;;  %v1209_v31 = vmul.f32 %v9174_v26, %v10221_v37  ;;  %v14165_v0 = vunpack.c.l.bf16 %v10245_v11  ;;  %v7571_v61 = vld [vmem:[#allocation8 + $0x2b0] sm:$0xf] }
 0x17e   : > { %v1602_v10 = vmul.f32 %v10287_v46, %v14160_v12  ;;  %3447 = vmatpush.bf16.msrb.mxu2 %v7256_v6  ;;  %8409 = vset.pattern.permute.xlu2 %v14045_v42  ;;  %v13552_v54 = vunpack.c.l.bf16 %v10341_v13  ;;  %v10369_v42 = vld [vmem:[%s9044_s24 + $0x1e8] sm:$0xff]  ;;  %v2233_v18 = vunpack.c.l.bf16 %v2191_v21  ;;  %v1213_v21 = vmul.f32 %v9154_v17, %v10306_v47 }
 0x17f   : > { %3556 = vmatpush.bf16.msrb.mxu3 %v7320_v25  ;;  %v1607_v25 = vmul.f32 %v10317_v39, %v14165_v0  ;;  %v1210_v0 = vmul.f32 %v9177_v28, %v10221_v37  ;;  %1478 = vperm.xlu2 %8409, %v10280_v36   ;;  %v1843_v51 = vadd.f32 %v1603_v38, %v1203_v63  ;;  %v10378_v38 = vpop.permute.xlu0 %1418 }
 0x180   : > { %v3016_v9 = vpop.f32.mrf.mxu2  ;;  %v3125_v59 = vpop.f32.mrf.mxu3  ;;  %14171 = vst [vmem:[#allocation129_spill] sm:$0xff] %v10369_v42 }
 0x181   : > { %v3017_v12 = vadd.f32 %v3016_v9, %v2908_v50  ;;  %v2800_v6 = vpop.f32.mrf.mxu0  ;;  %v2909_v19 = vpop.f32.mrf.mxu1  ;;  %v14166_v50 = vunpack.c.h.bf16 %v10245_v11  ;;  %v14167_v9 = vunpack.c.l.bf16 %v10276_v20  ;;  %v8068_v11 = vld [vmem:[#allocation8 + $0x234] sm:$0xf0]  ;;  %v13553_v20 = vunpack.c.l.bf16 %v10356_v15 }
 0x182   : > { %v2801_v58 = vadd.f32 %v2800_v6, %v2231_v35  ;;  %v1842_v35 = vadd.f32 %v1602_v10, %v1202_v60  ;;  %v1610_v6 = vmul.f32 %v10317_v39, %v14170_v27  ;;  %v8084_v10 = vld [vmem:[#allocation8 + $0x2b4] sm:$0xf0]  ;;  %v13554_v27 = vunpack.c.h.bf16 %v10341_v13 }
 0x183   : > { %v1608_v48 = vmul.f32 %v10317_v39, %v14166_v50  ;;  %v1609_v22 = vmul.f32 %v10317_v39, %v14167_v9  ;;  %v10359_v1 = vadd.f32 %v3125_v59, %v3017_v12  ;;  %v7507_v50 = vld [vmem:[#allocation8 + $0x230] sm:$0xf]  ;;  %v10372_v59 = vld [vmem:[%s9044_s24 + $0x200] sm:$0xff]  ;;  %v1844_v12 = vadd.f32 %v1604_v55, %v1204_v41 }
 0x184   : > { %v2910_v9 = vadd.f32 %v2909_v19, %v2801_v58  ;;  %14172 = vst [vmem:[#allocation130_spill] sm:$0xff] %v10372_v59  ;;  %v7508_v60 = vor.u32 %v8068_v11, %v7507_v50  ;;  %v7572_v44 = vor.u32 %v8084_v10, %v7571_v61  ;;  %v10376_v58 = vpop.permute.xlu2 %1414  ;;  %v1850_v63 = vadd.f32 %v1610_v6, %v1210_v0 }
 0x185   : > { %14169 = vst [vmem:[#allocation128_spill] sm:$0xff] %v10359_v1  ;;  %v1847_v1 = vadd.f32 %v1607_v25, %v1207_v2  ;;  %v1848_v53 = vadd.f32 %v1608_v48, %v1208_v7  ;;  %v1849_v36 = vadd.f32 %v1609_v22, %v1209_v31  ;;  %v13557_v19 = vunpack.c.h.bf16 %v10356_v15  ;;  %v2192_v7 = vld [vmem:[%s9051_s16 + $0x18] sm:$0xff] }
 0x186   : > { %3229 = vmatpush.bf16.msrb.mxu0 %v7508_v60  ;;  %v13556_v11 = vunpack.c.l.bf16 %v10369_v42  ;;  %v13565_v41 = vunpack.c.l.bf16 %v10372_v59  ;;  %3338 = vmatpush.bf16.msrb.mxu1 %v7572_v44  ;;  %v1613_v61 = vmul.f32 %v10376_v58, %v13552_v54  ;;  %v13555_v2 = vunpack.c.h.bf16 %v10369_v42  ;;  %v2193_v42 = vld [vmem:[%s9051_s16 + $0x20] sm:$0xff] }
 0x187   : > { %v1619_v44 = vmul.f32 %v10378_v38, %v13553_v20  ;;  %v1214_v22 = vmul.f32 %v9157_v14, %v10306_v47  ;;  %v1614_v0 = vmul.f32 %v10376_v58, %v13554_v27  ;;  %v10399_v60 = vpack.c.bf16 %v1847_v1, %v10326_v32  ;;  %8410 = vset.pattern.permute.xlu2 %v14036_v33 }
 0x188   : > { %v3018_v55 = vpop.f32.mrf.mxu2  ;;  %v3127_v50 = vpop.f32.mrf.mxu3  ;;  %v10401_v10 = vpack.c.bf16 %v1848_v53, %v1842_v35  ;;  %v10409_v20 = vpack.c.bf16 %v1850_v63, %v1844_v12  ;;  %v1215_v27 = vmul.f32 %v9174_v26, %v10306_v47  ;;  %v1615_v32 = vmul.f32 %v10376_v58, %v13556_v11  ;;  %v10435_v12 = vld [vmem:[%s9044_s24 + $0x1c0] sm:$0xff]  ;;  %1077 = vperm.xlu2 %8410, %v10248_v4  }
 0x189   : > { %v3019_v31 = vadd.f32 %v3018_v55, %v2910_v9  ;;  %v2803_v25 = vpop.f32.mrf.mxu0  ;;  %v2912_v48 = vpop.f32.mrf.mxu1  ;;  %14173 = vst [vmem:[#allocation131_spill] sm:$0xff] %v10399_v60  ;;  %v10403_v9 = vpack.c.bf16 %v1849_v36, %v1843_v51  ;;  %v1216_v53 = vmul.f32 %v9177_v28, %v10306_v47  ;;  %v1620_v35 = vmul.f32 %v10378_v38, %v13557_v19  ;;  %v10438_v36 = vld [vmem:[%s9044_s24 + $0x1d8] sm:$0xff] }
 0x18a   : > { %v2804_v6 = vadd.f32 %v2803_v25, %v2233_v18  ;;  %14174 = vst [vmem:[#allocation132_spill] sm:$0xff] %v10401_v10  ;;  %v10405_v55 = vpop.permute.xlu1 %987  ;;  %v1616_v18 = vmul.f32 %v10376_v58, %v13555_v2  ;;  %v2235_v63 = vunpack.c.l.bf16 %v2192_v7  ;;  %v1853_v25 = vadd.f32 %v1613_v61, %v1213_v21 }
 0x18b   : > { %14175 = vst [vmem:[#allocation133_spill] sm:$0xff] %v10403_v9  ;;  %v10407_v54 = vadd.f32 %v3127_v50, %v3019_v31  ;;  %v1219_v33 = vmul.f32 %v9154_v17, %v10405_v55  ;;  %v1220_v1 = vmul.f32 %v9157_v14, %v10405_v55  ;;  %v1221_v50 = vmul.f32 %v9174_v26, %v10405_v55 }
 0x18c   : > { %14177 = vst [vmem:[#allocation135_spill] sm:$0xff] %v10409_v20  ;;  %v2913_v51 = vadd.f32 %v2912_v48, %v2804_v6  ;;  %2842 = vmatmul.bf16.gmra.mxu0 %v10399_v60  ;;  %2951 = vmatmul.bf16.gmra.mxu1 %v10401_v10  ;;  %v1621_v31 = vmul.f32 %v10378_v38, %v13565_v41  ;;  %v14180_v6 = vunpack.c.h.bf16 %v10372_v59  ;;  %v13572_v13 = vunpack.c.l.bf16 %v10435_v12  ;;  %v8017_v10 = vld [vmem:[#allocation8 + $0xa4] sm:$0xf] }
 0x18d   : > { %14176 = vst [vmem:[#allocation134_spill] sm:$0xff] %v10407_v54  ;;  %3060 = vmatmul.bf16.gmra.mxu2 %v10403_v9  ;;  %3169 = vmatmul.bf16.gmra.mxu3 %v10409_v20  ;;  %v1854_v48 = vadd.f32 %v1614_v0, %v1214_v22  ;;  %v1855_v7 = vadd.f32 %v1615_v32, %v1215_v27  ;;  %v13569_v20 = vunpack.c.l.bf16 %v10438_v36  ;;  %v10459_v32 = vld [vmem:[%s9044_s24 + $0x1f0] sm:$0xff] }
 0x18e   : > { %14178 = vst [vmem:[#allocation136_spill] sm:$0xff] %v10435_v12  ;;  %v1622_v2 = vmul.f32 %v10378_v38, %v14180_v6  ;;  %v1856_v15 = vadd.f32 %v1616_v18, %v1216_v53  ;;  %v1859_v21 = vadd.f32 %v1619_v44, %v1219_v33  ;;  %v1860_v61 = vadd.f32 %v1620_v35, %v1220_v1 }
 0x18f   : > { %14179 = vst [vmem:[#allocation137_spill] sm:$0xff] %v10438_v36  ;;  %v1222_v22 = vmul.f32 %v9177_v28, %v10405_v55  ;;  %v1861_v6 = vadd.f32 %v1621_v31, %v1221_v50  ;;  %v1205_v59 = vmul.f32 %v9171_v24, %v10235_v40  ;;  %v1211_v27 = vmul.f32 %v9171_v24, %v10221_v37 }
 0x190   : > { %v3021_v11 = vpop.f32.mrf.mxu2  ;;  %v3130_v19 = vpop.f32.mrf.mxu3  ;;  %14181 = vst [vmem:[#allocation138_spill] sm:$0xff] %v10459_v32  ;;  %v1605_v44 = vmul.f32 %v10287_v46, %v13572_v13  ;;  %v13571_v33 = vunpack.c.h.bf16 %v10435_v12  ;;  %v13570_v1 = vunpack.c.h.bf16 %v10438_v36  ;;  %v13573_v50 = vunpack.c.l.bf16 %v10459_v32  ;;  %v10506_v13 = vld [vmem:[%s9044_s24 + $0x218] sm:$0xff] }
 0x191   : > { %v3022_v41 = vadd.f32 %v3021_v11, %v2913_v51  ;;  %v2805_v9 = vpop.f32.mrf.mxu0  ;;  %v2914_v4 = vpop.f32.mrf.mxu1  ;;  %v2237_v11 = vunpack.c.l.bf16 %v2193_v42  ;;  %v10470_v51 = vld [vmem:[%s9044_s24 + $0x208] sm:$0xff]  ;;  %14188 = vst [vmem:[#allocation145_spill] sm:$0xff] %v10506_v13 }
 0x192   : > { %v2806_v0 = vadd.f32 %v2805_v9, %v2235_v63  ;;  %v1611_v9 = vmul.f32 %v10317_v39, %v13569_v20  ;;  %14183 = vst [vmem:[#allocation140_spill] sm:$0xff] %v10470_v51  ;;  %v10476_v42 = vpop.permute.xlu1 %992  ;;  %v1212_v63 = vmul.f32 %v9214_v49, %v10221_v37  ;;  %v1606_v31 = vmul.f32 %v10287_v46, %v13571_v33  ;;  %v10498_v20 = vld [vmem:[%s9044_s24 + $0x210] sm:$0xff]  ;;  %v10510_v36 = vpop.permute.xlu2 %997 }
 0x193   : > { %v10461_v53 = vadd.f32 %v3130_v19, %v3022_v41  ;;  %v1206_v19 = vmul.f32 %v9214_v49, %v10235_v40  ;;  %14184 = vst [vmem:[#allocation141_spill] sm:$0xff] %v10476_v42  ;;  %v1845_v41 = vadd.f32 %v1605_v44, %v1205_v59  ;;  %v13576_v40 = vunpack.c.l.bf16 %v10470_v51 }
 0x194   : > { %v2915_v18 = vadd.f32 %v2914_v4, %v2806_v0  ;;  %v1851_v35 = vadd.f32 %v1611_v9, %v1211_v27  ;;  %v1612_v4 = vmul.f32 %v10317_v39, %v13570_v1  ;;  %v1217_v59 = vmul.f32 %v9171_v24, %v10306_v47  ;;  %14186 = vst [vmem:[#allocation143_spill] sm:$0xff] %v10498_v20 }
 0x195   : > { %14182 = vst [vmem:[#allocation139_spill] sm:$0xff] %v10461_v53  ;;  %v1862_v0 = vadd.f32 %v1622_v2, %v1222_v22  ;;  %v1223_v37 = vmul.f32 %v9171_v24, %v10405_v55  ;;  %v1617_v46 = vmul.f32 %v10376_v58, %v13573_v50  ;;  %v1846_v39 = vadd.f32 %v1606_v31, %v1206_v19 }
 0x196   : > { %v10490_v27 = vpack.c.bf16 %v1851_v35, %v1845_v41  ;;  %v1852_v1 = vadd.f32 %v1612_v4, %v1212_v63  ;;  %v1623_v2 = vmul.f32 %v10378_v38, %v13576_v40  ;;  %v10503_v33 = vpack.c.bf16 %v1859_v21, %v1853_v25  ;;  %14189 = vst [vmem:[#allocation146_spill] sm:$0xff] %v10510_v36  ;;  %v2194_v21 = vld [vmem:[%s9051_s16 + $0x28] sm:$0xff] }
 0x197   : > { %v10508_v50 = vadd.f32 %v1617_v46, %v1217_v59  ;;  %v10512_v63 = vpack.c.bf16 %v1860_v61, %v1854_v48  ;;  %v10522_v25 = vpack.c.bf16 %v1862_v0, %v1856_v15  ;;  %v13577_v59 = vunpack.c.l.bf16 %v10498_v20  ;;  %v10529_v46 = vpop.permute.xlu0 %1422  ;;  %v10535_v61 = vld [vmem:[%s9044_s24 + $0x230] sm:$0xff] }
 0x198   : > { %14185 = vst [vmem:[#allocation142_spill] sm:$0xff] %v10490_v27  ;;  %v3023_v44 = vpop.f32.mrf.mxu2  ;;  %v3132_v9 = vpop.f32.mrf.mxu3  ;;  %v10514_v31 = vpack.c.bf16 %v1852_v1, %v1846_v39  ;;  %v10516_v4 = vadd.f32 %v1623_v2, %v1223_v37  ;;  %v13580_v48 = vunpack.c.h.bf16 %v10498_v20  ;;  %v1231_v0 = vmul.f32 %v9154_v17, %v10510_v36 }
 0x199   : > { %v3024_v22 = vadd.f32 %v3023_v44, %v2915_v18  ;;  %v2808_v41 = vpop.f32.mrf.mxu0  ;;  %v2917_v35 = vpop.f32.mrf.mxu1  ;;  %14187 = vst [vmem:[#allocation144_spill] sm:$0xff] %v10503_v33  ;;  %v10520_v18 = vpack.c.bf16 %v1861_v6, %v1855_v7  ;;  %v10526_v44 = vld [vmem:[%s9044_s24 + $0x228] sm:$0xff]  ;;  %v13587_v7 = vunpack.c.l.bf16 %v10506_v13  ;;  %v2239_v6 = vunpack.c.l.bf16 %v2194_v21 }
 0x19a   : > { %v2809_v19 = vadd.f32 %v2808_v41, %v2237_v11  ;;  %14190 = vst [vmem:[#allocation147_spill] sm:$0xff] %v10512_v63  ;;  %v1625_v39 = vmul.f32 %v10529_v46, %v13577_v59  ;;  %v1232_v2 = vmul.f32 %v9157_v14, %v10510_v36  ;;  %v1626_v21 = vmul.f32 %v10529_v46, %v13580_v48 }
 0x19b   : > { %14191 = vst [vmem:[#allocation148_spill] sm:$0xff] %v10514_v31  ;;  %v10518_v40 = vadd.f32 %v3132_v9, %v3024_v22  ;;  %v10545_v9 = vpop.permute.xlu1 %1426  ;;  %v1233_v37 = vmul.f32 %v9174_v26, %v10510_v36  ;;  %v1627_v59 = vmul.f32 %v10529_v46, %v13587_v7  ;;  %v1234_v1 = vmul.f32 %v9177_v28, %v10510_v36 }
 0x19c   : > { %14193 = vst [vmem:[#allocation150_spill] sm:$0xff] %v10520_v18  ;;  %v2918_v11 = vadd.f32 %v2917_v35, %v2809_v19  ;;  %2847 = vmatmul.bf16.gmra.mxu0 %v10503_v33  ;;  %2956 = vmatmul.bf16.gmra.mxu1 %v10512_v63  ;;  %v1225_v12 = vmul.f32 %v9154_v17, %v10476_v42  ;;  %v14198_v20 = vunpack.c.h.bf16 %v10506_v13  ;;  %v14200_v7 = vunpack.c.l.bf16 %v10526_v44 }
 0x19d   : > { %14192 = vst [vmem:[#allocation149_spill] sm:$0xff] %v10518_v40  ;;  %3065 = vmatmul.bf16.gmra.mxu2 %v10520_v18  ;;  %3174 = vmatmul.bf16.gmra.mxu3 %v10522_v25  ;;  %v1226_v48 = vmul.f32 %v9157_v14, %v10476_v42  ;;  %v10571_v18 = vpop.permute.xlu2 %1002  ;;  %v1227_v63 = vmul.f32 %v9174_v26, %v10476_v42  ;;  %v2195_v40 = vld [vmem:[%s9051_s16 + $0x30] sm:$0xff]  ;;  %v14203_v13 = vunpack.c.l.bf16 %v10535_v61 }
 0x19e   : > { %14194 = vst [vmem:[#allocation151_spill] sm:$0xff] %v10522_v25  ;;  %v1628_v25 = vmul.f32 %v10529_v46, %v14198_v20  ;;  %v1631_v36 = vmul.f32 %v10545_v9, %v14200_v7  ;;  %v1865_v60 = vadd.f32 %v1625_v39, %v1225_v12  ;;  %v2241_v31 = vunpack.c.l.bf16 %v2195_v40 }
 0x19f   : > { %14195 = vst [vmem:[#allocation152_spill] sm:$0xff] %v10526_v44  ;;  %v1633_v20 = vmul.f32 %v10545_v9, %v14203_v13 }
 0x1a0   : > { %14196 = vst [vmem:[#allocation153_spill] sm:$0xff] %v10529_v46  ;;  %v3026_v35 = vpop.f32.mrf.mxu2  ;;  %v3135_v19 = vpop.f32.mrf.mxu3  ;;  %v8001_v46 = vld [vmem:[#allocation8 + $0x24] sm:$0xf]  ;;  %v1871_v27 = vadd.f32 %v1631_v36, %v1231_v0 }
 0x1a1   : > { %14197 = vst [vmem:[#allocation154_spill] sm:$0xff] %v10535_v61  ;;  %v3027_v22 = vadd.f32 %v3026_v35, %v2918_v11  ;;  %v2810_v15 = vpop.f32.mrf.mxu0  ;;  %v2919_v41 = vpop.f32.mrf.mxu1  ;;  %v14201_v11 = vunpack.c.h.bf16 %v10526_v44  ;;  %v10598_v0 = vld [vmem:[%s9044_s24 + $0x240] sm:$0xff] }
 0x1a2   : > { %14199 = vst [vmem:[#allocation155_spill] sm:$0xff] %v10571_v18  ;;  %v2811_v24 = vadd.f32 %v2810_v15, %v2239_v6  ;;  %v1228_v15 = vmul.f32 %v9177_v28, %v10476_v42  ;;  %v14204_v6 = vunpack.c.h.bf16 %v10535_v61  ;;  %v1867_v42 = vadd.f32 %v1627_v59, %v1227_v63  ;;  %v2196_v59 = vld [vmem:[%s9051_s16 + $0x38] sm:$0xff] }
 0x1a3   : > { %v1632_v35 = vmul.f32 %v10545_v9, %v14201_v11  ;;  %v10581_v33 = vadd.f32 %v3135_v19, %v3027_v22  ;;  %v7245_v11 = vld [vmem:[#allocation8 + $0x28] sm:$0xf0]  ;;  %v1866_v22 = vadd.f32 %v1626_v21, %v1226_v48  ;;  %v10592_v54 = vpop.permute.xlu1 %1430  ;;  %v1873_v61 = vadd.f32 %v1633_v20, %v1233_v37  ;;  %v10595_v48 = vld [vmem:[%s9044_s24 + $0x258] sm:$0xff]  ;;  %14206 = vst [vmem:[#allocation158_spill] sm:$0xff] %v10598_v0  ;;  %v7499_v21 = vld [vmem:[#allocation8 + $0x220] sm:$0xf] }
 0x1a4   : > { %v1634_v7 = vmul.f32 %v10545_v9, %v14204_v6  ;;  %v2920_v44 = vadd.f32 %v2919_v41, %v2811_v24  ;;  %v7248_v19 = vor.u32 %v8001_v46, %v7245_v11  ;;  %v1868_v24 = vadd.f32 %v1628_v25, %v1228_v15  ;;  %14205 = vst [vmem:[#allocation157_spill] sm:$0xff] %v10595_v48  ;;  %v10606_v25 = vld [vmem:[%s9044_s24 + $0x248] sm:$0xff] }
 0x1a5   : > { %14202 = vst [vmem:[#allocation156_spill] sm:$0xff] %v10581_v33  ;;  %v7309_v33 = vld [vmem:[#allocation8 + $0xa8] sm:$0xf0]  ;;  %v1872_v13 = vadd.f32 %v1632_v35, %v1232_v2  ;;  %v10613_v2 = vpack.c.bf16 %v1873_v61, %v1867_v42  ;;  %v8066_v35 = vld [vmem:[#allocation8 + $0x224] sm:$0xf0]  ;;  %v13607_v15 = vunpack.c.l.bf16 %v10598_v0  ;;  %v13608_v42 = vunpack.c.h.bf16 %v10595_v48 }
 0x1a6   : > { %v7312_v53 = vor.u32 %v8017_v10, %v7309_v33  ;;  %v1874_v41 = vadd.f32 %v1634_v7, %v1234_v1  ;;  %3448 = vmatpush.bf16.msrb.mxu2 %v7248_v19  ;;  %v10600_v33 = vpack.c.bf16 %v1871_v27, %v1865_v60  ;;  %14209 = vst [vmem:[#allocation161_spill] sm:$0xff] %v10606_v25  ;;  %v10609_v1 = vld [vmem:[%s9044_s24 + $0x260] sm:$0xff]  ;;  %v10618_v60 = vpop.permute.xlu2 %1434  ;;  %v10620_v27 = vpop.permute.xlu0 %1007  ;;  %v8082_v6 = vld [vmem:[#allocation8 + $0x2a4] sm:$0xf0]  ;;  %v13609_v7 = vunpack.c.h.bf16 %v10598_v0 }
 0x1a7   : > { %v10602_v63 = vpack.c.bf16 %v1872_v13, %v1866_v22  ;;  %14210 = vst [vmem:[#allocation162_spill] sm:$0xff] %v10609_v1  ;;  %v7500_v61 = vor.u32 %v8066_v35, %v7499_v21  ;;  %v2243_v22 = vunpack.c.l.bf16 %v2196_v59  ;;  %v1237_v19 = vmul.f32 %v9154_v17, %v10571_v18 }
 0x1a8   : > { %v3028_v12 = vpop.f32.mrf.mxu2  ;;  %v3137_v39 = vpop.f32.mrf.mxu3  ;;  %3557 = vmatpush.bf16.msrb.mxu3 %v7312_v53  ;;  %14207 = vst [vmem:[#allocation159_spill] sm:$0xff] %v10600_v33  ;;  %v10615_v53 = vpack.c.bf16 %v1874_v41, %v1868_v24  ;;  %v13614_v13 = vunpack.c.l.bf16 %v10606_v25  ;;  %v13616_v24 = vunpack.c.l.bf16 %v10609_v1  ;;  %v1243_v41 = vmul.f32 %v9154_v17, %v10620_v27 }
 0x1a9   : > { %v3029_v40 = vadd.f32 %v3028_v12, %v2920_v44  ;;  %v2813_v36 = vpop.f32.mrf.mxu0  ;;  %v2922_v46 = vpop.f32.mrf.mxu1  ;;  %14208 = vst [vmem:[#allocation160_spill] sm:$0xff] %v10602_v63  ;;  %v13606_v44 = vunpack.c.l.bf16 %v10595_v48  ;;  %3230 = vmatpush.bf16.msrb.mxu0 %v7500_v61  ;;  %v1238_v59 = vmul.f32 %v9157_v14, %v10571_v18  ;;  %v1244_v21 = vmul.f32 %v9157_v14, %v10620_v27  ;;  %v2197_v48 = vld [vmem:[%s9051_s16 + $0x40] sm:$0xff] }
 0x1aa   : > { %v2814_v10 = vadd.f32 %v2813_v36, %v2241_v31  ;;  %14212 = vst [vmem:[#allocation164_spill] sm:$0xff] %v10613_v2  ;;  %v7563_v31 = vld [vmem:[#allocation8 + $0x2a0] sm:$0xf]  ;;  %v1644_v35 = vmul.f32 %v10618_v60, %v13608_v42  ;;  %v1246_v0 = vmul.f32 %v9177_v28, %v10620_v27 }
 0x1ab   : > { %v10611_v37 = vadd.f32 %v3137_v39, %v3029_v40  ;;  %14213 = vst [vmem:[#allocation165_spill] sm:$0xff] %v10615_v53  ;;  %v7564_v11 = vor.u32 %v8082_v6, %v7563_v31  ;;  %v1643_v12 = vmul.f32 %v10618_v60, %v13606_v44  ;;  %v1239_v44 = vmul.f32 %v9174_v26, %v10571_v18  ;;  %v10665_v42 = vpop.permute.xlu1 %1012 }
 0x1ac   : > { %14214 = vst [vmem:[#allocation166_spill] sm:$0xff] %v10618_v60  ;;  %v2923_v20 = vadd.f32 %v2922_v46, %v2814_v10  ;;  %2852 = vmatmul.bf16.gmra.mxu0 %v10600_v33  ;;  %2961 = vmatmul.bf16.gmra.mxu1 %v10602_v63  ;;  %v1637_v10 = vmul.f32 %v10592_v54, %v13607_v15  ;;  %v2245_v33 = vunpack.c.l.bf16 %v2197_v48 }
 0x1ad   : > { %14211 = vst [vmem:[#allocation163_spill] sm:$0xff] %v10611_v37  ;;  %3070 = vmatmul.bf16.gmra.mxu2 %v10613_v2  ;;  %3179 = vmatmul.bf16.gmra.mxu3 %v10615_v53  ;;  %v1245_v15 = vmul.f32 %v9174_v26, %v10620_v27  ;;  %v1639_v39 = vmul.f32 %v10592_v54, %v13614_v13  ;;  %v14219_v13 = vunpack.c.h.bf16 %v10609_v1 }
 0x1ae   : > { %14215 = vst [vmem:[#allocation167_spill] sm:$0xff] %v10620_v27  ;;  %3339 = vmatpush.bf16.msrb.mxu1 %v7564_v11  ;;  %v1638_v11 = vmul.f32 %v10592_v54, %v13609_v7  ;;  %v1877_v2 = vadd.f32 %v1637_v10, %v1237_v19  ;;  %v10686_v19 = vld [vmem:[%s9044_s24 + $0x288] sm:$0xff]  ;;  %v10703_v10 = vld [vmem:[%s9044_s24 + $0x290] sm:$0xff] }
 0x1af   : > { %14216 = vst [vmem:[#allocation168_spill] sm:$0xff] %v10665_v42  ;;  %v1646_v53 = vmul.f32 %v10618_v60, %v14219_v13 }
 0x1b0   : > { %v3031_v36 = vpop.f32.mrf.mxu2  ;;  %v3140_v46 = vpop.f32.mrf.mxu3  ;;  %v1878_v63 = vadd.f32 %v1638_v11, %v1238_v59  ;;  %14221 = vst [vmem:[#allocation171_spill] sm:$0xff] %v10686_v19  ;;  %v10722_v59 = vpack.c.bf16 %v10516_v4, %v10508_v50  ;;  %v1249_v50 = vmul.f32 %v9154_v17, %v10665_v42 }
 0x1b1   : > { %v3032_v31 = vadd.f32 %v3031_v36, %v2923_v20  ;;  %v2815_v61 = vpop.f32.mrf.mxu0  ;;  %v2924_v6 = vpop.f32.mrf.mxu1  ;;  %v1645_v20 = vmul.f32 %v10618_v60, %v13616_v24  ;;  %v1240_v36 = vmul.f32 %v9177_v28, %v10571_v18  ;;  %v1883_v18 = vadd.f32 %v1643_v12, %v1243_v41  ;;  %14226 = vst [vmem:[#allocation176_spill] sm:$0xff] %v10703_v10 }
 0x1b2   : > { %v2816_v40 = vadd.f32 %v2815_v61, %v2243_v22  ;;  %v14218_v22 = vunpack.c.h.bf16 %v10606_v25  ;;  %v13630_v25 = vunpack.c.h.bf16 %v10470_v51  ;;  %14228 = vst [vmem:[#allocation178_spill] sm:$0xff] %v10722_v59  ;;  %v10731_v11 = vpop.permute.xlu0 %1438 }
 0x1b3   : > { %v10667_v7 = vadd.f32 %v3140_v46, %v3032_v31  ;;  %v1884_v46 = vadd.f32 %v1644_v35, %v1244_v21  ;;  %v13631_v31 = vunpack.c.h.bf16 %v10459_v32  ;;  %v1885_v27 = vadd.f32 %v1645_v20, %v1245_v15  ;;  %14230 = vst [vmem:[#allocation180_spill] sm:$0xff] %v10731_v11 }
 0x1b4   : > { %v1640_v61 = vmul.f32 %v10592_v54, %v14218_v22  ;;  %v2925_v24 = vadd.f32 %v2924_v6, %v2816_v40  ;;  %v1886_v22 = vadd.f32 %v1646_v53, %v1246_v0  ;;  %v10680_v60 = vpack.c.bf16 %v1883_v18, %v1877_v2  ;;  %v10683_v40 = vld [vmem:[%s9044_s24 + $0x270] sm:$0xff]  ;;  %v10695_v53 = vpop.permute.xlu2 %1017 }
 0x1b5   : > { %14217 = vst [vmem:[#allocation169_spill] sm:$0xff] %v10667_v7  ;;  %v1879_v7 = vadd.f32 %v1639_v39, %v1239_v44  ;;  %v10688_v44 = vpack.c.bf16 %v1884_v46, %v1878_v63  ;;  %v1218_v15 = vmul.f32 %v9214_v49, %v10306_v47  ;;  %v1618_v0 = vmul.f32 %v10376_v58, %v13631_v31  ;;  %v10700_v39 = vld [vmem:[%s9044_s24 + $0x278] sm:$0xff]  ;;  %v2198_v58 = vld [vmem:[%s9051_s16 + $0x48] sm:$0xff] }
 0x1b6   : > { %v1880_v37 = vadd.f32 %v1640_v61, %v1240_v36  ;;  %14220 = vst [vmem:[#allocation170_spill] sm:$0xff] %v10683_v40  ;;  %v1224_v63 = vmul.f32 %v9214_v49, %v10405_v55  ;;  %v1624_v47 = vmul.f32 %v10378_v38, %v13630_v25  ;;  %v13634_v55 = vunpack.c.h.bf16 %v10683_v40  ;;  %v10724_v38 = vpop.permute.xlu1 %1442 }
 0x1b7   : > { %14222 = vst [vmem:[#allocation172_spill] sm:$0xff] %v10688_v44  ;;  %v10697_v2 = vpack.c.bf16 %v1885_v27, %v1879_v7  ;;  %v13632_v27 = vunpack.c.l.bf16 %v10686_v19  ;;  %v13636_v21 = vunpack.c.l.bf16 %v10700_v39  ;;  %v13637_v35 = vunpack.c.l.bf16 %v10703_v10 }
 0x1b8   : > { %v3033_v1 = vpop.f32.mrf.mxu2  ;;  %v3142_v13 = vpop.f32.mrf.mxu3  ;;  %14223 = vst [vmem:[#allocation173_spill] sm:$0xff] %v10695_v53  ;;  %v1858_v6 = vadd.f32 %v1618_v0, %v1218_v15  ;;  %v2247_v20 = vunpack.c.l.bf16 %v2198_v58  ;;  %v13649_v4 = vunpack.c.h.bf16 %v10700_v39  ;;  %v1864_v36 = vadd.f32 %v1624_v47, %v1224_v63 }
 0x1b9   : > { %v3034_v41 = vadd.f32 %v3033_v1, %v2925_v24  ;;  %v2818_v12 = vpop.f32.mrf.mxu0  ;;  %v2927_v48 = vpop.f32.mrf.mxu1  ;;  %14224 = vst [vmem:[#allocation174_spill] sm:$0xff] %v10697_v2  ;;  %v10712_v24 = vpack.c.bf16 %v1886_v22, %v1880_v37  ;;  %v13635_v37 = vunpack.c.h.bf16 %v10686_v19  ;;  %v1255_v61 = vmul.f32 %v9154_v17, %v10695_v53 }
 0x1ba   : > { %v2819_v18 = vadd.f32 %v2818_v12, %v2245_v33  ;;  %14225 = vst [vmem:[#allocation175_spill] sm:$0xff] %v10700_v39  ;;  %v13633_v33 = vunpack.c.l.bf16 %v10683_v40  ;;  %v1655_v22 = vmul.f32 %v10724_v38, %v13632_v27  ;;  %v1256_v15 = vmul.f32 %v9157_v14, %v10695_v53 }
 0x1bb   : > { %v10710_v1 = vadd.f32 %v3142_v13, %v3034_v41  ;;  %14227 = vst [vmem:[#allocation177_spill] sm:$0xff] %v10712_v24  ;;  %v13653_v13 = vunpack.c.h.bf16 %v10703_v10  ;;  %v1650_v0 = vmul.f32 %v10731_v11, %v13634_v55  ;;  %v1656_v25 = vmul.f32 %v10724_v38, %v13635_v37 }
 0x1bc   : > { %v2928_v7 = vadd.f32 %v2927_v48, %v2819_v18  ;;  %2857 = vmatmul.bf16.gmra.mxu0 %v10680_v60  ;;  %2966 = vmatmul.bf16.gmra.mxu1 %v10688_v44  ;;  %14229 = vst [vmem:[#allocation179_spill] sm:$0xff] %v10724_v38  ;;  %v1649_v46 = vmul.f32 %v10731_v11, %v13633_v33 }
 0x1bd   : > { %3075 = vmatmul.bf16.gmra.mxu2 %v10697_v2  ;;  %3184 = vmatmul.bf16.gmra.mxu3 %v10712_v24  ;;  %v1250_v48 = vmul.f32 %v9157_v14, %v10665_v42  ;;  %v10752_v18 = vpack.c.bf16 %v1864_v36, %v1858_v6  ;;  %v1251_v31 = vmul.f32 %v9174_v26, %v10665_v42 }
 0x1be   : > { %v1257_v27 = vmul.f32 %v9174_v26, %v10695_v53  ;;  %v1651_v55 = vmul.f32 %v10731_v11, %v13636_v21  ;;  %v1252_v6 = vmul.f32 %v9177_v28, %v10665_v42  ;;  %v1258_v37 = vmul.f32 %v9177_v28, %v10695_v53  ;;  %v10780_v21 = vpop.permute.xlu2 %1022  ;;  %v10782_v40 = vpop.permute.xlu1 %1027  ;;  %v8080_v53 = vld [vmem:[#allocation8 + $0x294] sm:$0xf0] }
 0x1bf   : > { %14231 = vst [vmem:[#allocation181_spill] sm:$0xff] %v10752_v18  ;;  %v1889_v51 = vadd.f32 %v1649_v46, %v1249_v50  ;;  %v1890_v32 = vadd.f32 %v1650_v0, %v1250_v48  ;;  %v1896_v19 = vadd.f32 %v1656_v25, %v1256_v15  ;;  %v10803_v15 = vld [vmem:[%s9044_s24 + $0x2a8] sm:$0xff] }
 0x1c0   : > { %v3036_v41 = vpop.f32.mrf.mxu2  ;;  %v3145_v12 = vpop.f32.mrf.mxu3  ;;  %14232 = vst [vmem:[#allocation182_spill] sm:$0xff] %v10780_v21  ;;  %v1891_v24 = vadd.f32 %v1651_v55, %v1251_v31 }
 0x1c1   : > { %v3037_v63 = vadd.f32 %v3036_v41, %v2928_v7  ;;  %v2820_v47 = vpop.f32.mrf.mxu0  ;;  %v2929_v58 = vpop.f32.mrf.mxu1  ;;  %v1657_v7 = vmul.f32 %v10724_v38, %v13637_v35  ;;  %v2199_v41 = vld [vmem:[%s9051_s16 + $0x50] sm:$0xff]  ;;  %14233 = vst [vmem:[#allocation183_spill] sm:$0xff] %v10782_v40 }
 0x1c2   : > { %v2821_v33 = vadd.f32 %v2820_v47, %v2247_v20  ;;  %v1652_v20 = vmul.f32 %v10731_v11, %v13649_v4  ;;  %v1658_v47 = vmul.f32 %v10724_v38, %v13653_v13  ;;  %v10785_v38 = vld [vmem:[%s9044_s24 + $0x2a0] sm:$0xff]  ;;  %14241 = vst [vmem:[#allocation191_spill] sm:$0xff] %v10803_v15 }
 0x1c3   : > { %v10769_v36 = vadd.f32 %v3145_v12, %v3037_v63  ;;  %v2249_v12 = vunpack.c.l.bf16 %v2199_v41  ;;  %v1895_v63 = vadd.f32 %v1655_v22, %v1255_v61  ;;  %v1897_v39 = vadd.f32 %v1657_v7, %v1257_v27  ;;  %14234 = vst [vmem:[#allocation184_spill] sm:$0xff] %v10785_v38 }
 0x1c4   : > { %v2930_v35 = vadd.f32 %v2929_v58, %v2821_v33  ;;  %v1892_v4 = vadd.f32 %v1652_v20, %v1252_v6  ;;  %v1898_v2 = vadd.f32 %v1658_v47, %v1258_v37  ;;  %v10788_v58 = vld [vmem:[%s9044_s24 + $0x2b8] sm:$0xff]  ;;  %v10792_v22 = vpack.c.bf16 %v1896_v19, %v1890_v32 }
 0x1c5   : > { %14235 = vst [vmem:[#allocation185_spill] sm:$0xff] %v10788_v58  ;;  %v10790_v25 = vpack.c.bf16 %v1895_v63, %v1889_v51  ;;  %v10796_v27 = vpack.c.bf16 %v1897_v39, %v1891_v24  ;;  %v2200_v37 = vld [vmem:[%s9051_s16 + $0x58] sm:$0xff]  ;;  %v13656_v48 = vunpack.c.l.bf16 %v10785_v38  ;;  %v13657_v32 = vunpack.c.l.bf16 %v10788_v58  ;;  %v7999_v24 = vld [vmem:[#allocation8 + $0x14] sm:$0xf] }
 0x1c6   : > { %14237 = vst [vmem:[#allocation187_spill] sm:$0xff] %v10792_v22  ;;  %v10798_v55 = vpack.c.bf16 %v1898_v2, %v1892_v4  ;;  %v13663_v51 = vunpack.c.h.bf16 %v10785_v38  ;;  %v1261_v19 = vmul.f32 %v9154_v17, %v10780_v21  ;;  %v1267_v2 = vmul.f32 %v9154_v17, %v10782_v40  ;;  %v7237_v4 = vld [vmem:[#allocation8 + $0x18] sm:$0xf0]  ;;  %v10819_v0 = vpop.permute.xlu2 %1446 }
 0x1c7   : > { %14236 = vst [vmem:[#allocation186_spill] sm:$0xff] %v10790_v25  ;;  %v13662_v39 = vunpack.c.h.bf16 %v10788_v58  ;;  %v2251_v7 = vunpack.c.l.bf16 %v2200_v37  ;;  %v7240_v20 = vor.u32 %v7999_v24, %v7237_v4  ;;  %v7301_v47 = vld [vmem:[#allocation8 + $0x98] sm:$0xf0]  ;;  %v1661_v63 = vmul.f32 %v10819_v0, %v13656_v48 }
 0x1c8   : > { %v3038_v10 = vpop.f32.mrf.mxu2  ;;  %v3147_v13 = vpop.f32.mrf.mxu3  ;;  %14239 = vst [vmem:[#allocation189_spill] sm:$0xff] %v10796_v27  ;;  %v1262_v24 = vmul.f32 %v9157_v14, %v10780_v21  ;;  %v1268_v4 = vmul.f32 %v9157_v14, %v10782_v40  ;;  %v1662_v48 = vmul.f32 %v10819_v0, %v13663_v51  ;;  %v1269_v6 = vmul.f32 %v9174_v26, %v10782_v40 }
 0x1c9   : > { %v3039_v33 = vadd.f32 %v3038_v10, %v2930_v35  ;;  %v2823_v50 = vpop.f32.mrf.mxu0  ;;  %v2932_v46 = vpop.f32.mrf.mxu1  ;;  %14240 = vst [vmem:[#allocation190_spill] sm:$0xff] %v10798_v55  ;;  %v10806_v10 = vld [vmem:[%s9044_s24 + $0x2c0] sm:$0xff]  ;;  %3449 = vmatpush.bf16.msrb.mxu2 %v7240_v20  ;;  %v14245_v38 = vunpack.c.l.bf16 %v10803_v15 }
 0x1ca   : > { %v2824_v61 = vadd.f32 %v2823_v50, %v2249_v12  ;;  %14242 = vst [vmem:[#allocation192_spill] sm:$0xff] %v10806_v10  ;;  %v10823_v12 = vpop.permute.xlu0 %1450  ;;  %v10856_v51 = vpop.permute.xlu1 %1032  ;;  %v1902_v42 = vadd.f32 %v1662_v48, %v1262_v24 }
 0x1cb   : > { %v10794_v31 = vadd.f32 %v3147_v13, %v3039_v33  ;;  %v8015_v13 = vld [vmem:[#allocation8 + $0x94] sm:$0xf]  ;;  %14243 = vst [vmem:[#allocation193_spill] sm:$0xff] %v10819_v0  ;;  %v1667_v41 = vmul.f32 %v10823_v12, %v13657_v32  ;;  %v1668_v33 = vmul.f32 %v10823_v12, %v13662_v39  ;;  %v1263_v32 = vmul.f32 %v9174_v26, %v10780_v21 }
 0x1cc   : > { %v2933_v35 = vadd.f32 %v2932_v46, %v2824_v61  ;;  %2862 = vmatmul.bf16.gmra.mxu0 %v10790_v25  ;;  %2971 = vmatmul.bf16.gmra.mxu1 %v10792_v22  ;;  %14244 = vst [vmem:[#allocation194_spill] sm:$0xff] %v10823_v12  ;;  %v7304_v46 = vor.u32 %v8015_v13, %v7301_v47  ;;  %v7491_v25 = vld [vmem:[#allocation8 + $0x210] sm:$0xf] }
 0x1cd   : > { %14238 = vst [vmem:[#allocation188_spill] sm:$0xff] %v10794_v31  ;;  %3080 = vmatmul.bf16.gmra.mxu2 %v10796_v27  ;;  %3189 = vmatmul.bf16.gmra.mxu3 %v10798_v55  ;;  %v2201_v27 = vld [vmem:[%s9051_s16 + $0x60] sm:$0xff]  ;;  %v1663_v20 = vmul.f32 %v10819_v0, %v14245_v38  ;;  %v1264_v39 = vmul.f32 %v9177_v28, %v10780_v21  ;;  %v14250_v38 = vunpack.c.h.bf16 %v10806_v10  ;;  %v7555_v31 = vld [vmem:[#allocation8 + $0x290] sm:$0xf] }
 0x1ce   : > { %3558 = vmatpush.bf16.msrb.mxu3 %v7304_v46  ;;  %14247 = vst [vmem:[#allocation195_spill] sm:$0xff] %v10856_v51  ;;  %v1270_v46 = vmul.f32 %v9177_v28, %v10782_v40  ;;  %v1907_v40 = vadd.f32 %v1667_v41, %v1267_v2  ;;  %v2202_v41 = vld [vmem:[%s9051_s16 + $0x68] sm:$0xff]  ;;  %v1273_v24 = vmul.f32 %v9154_v17, %v10856_v51 }
 0x1cf   : > { %v1670_v22 = vmul.f32 %v10823_v12, %v14250_v38 }
 0x1d0   : > { %v3041_v61 = vpop.f32.mrf.mxu2  ;;  %v3150_v37 = vpop.f32.mrf.mxu3 }
 0x1d1   : > { %v3042_v50 = vadd.f32 %v3041_v61, %v2933_v35  ;;  %v2825_v13 = vpop.f32.mrf.mxu0  ;;  %v2934_v47 = vpop.f32.mrf.mxu1  ;;  %v14246_v35 = vunpack.c.l.bf16 %v10806_v10  ;;  %v1910_v44 = vadd.f32 %v1670_v22, %v1270_v46  ;;  %v2203_v46 = vld [vmem:[%s9051_s16 + $0x70] sm:$0xff] }
 0x1d2   : > { %v2826_v55 = vadd.f32 %v2825_v13, %v2251_v7  ;;  %v14249_v7 = vunpack.c.h.bf16 %v10803_v15  ;;  %v1908_v15 = vadd.f32 %v1668_v33, %v1268_v4  ;;  %v10892_v33 = vld [vmem:[%s9044_s24 + $0x2f0] sm:$0xff] }
 0x1d3   : > { %v1669_v61 = vmul.f32 %v10823_v12, %v14246_v35  ;;  %v10858_v58 = vadd.f32 %v3150_v37, %v3042_v50  ;;  %v8064_v35 = vld [vmem:[#allocation8 + $0x214] sm:$0xf0]  ;;  %v1901_v50 = vadd.f32 %v1661_v63, %v1261_v19  ;;  %v7556_v37 = vor.u32 %v8080_v53, %v7555_v31  ;;  %14260 = vst [vmem:[#allocation206_spill] sm:$0xff] %v10892_v33 }
 0x1d4   : > { %v1664_v13 = vmul.f32 %v10819_v0, %v14249_v7  ;;  %v2935_v11 = vadd.f32 %v2934_v47, %v2826_v55  ;;  %v7492_v21 = vor.u32 %v8064_v35, %v7491_v25  ;;  %v1903_v7 = vadd.f32 %v1663_v20, %v1263_v32  ;;  %v10869_v25 = vld [vmem:[%s9044_s24 + $0x2d0] sm:$0xff]  ;;  %v10878_v32 = vpop.permute.xlu2 %1037  ;;  %v10889_v63 = vld [vmem:[%s9044_s24 + $0x2d8] sm:$0xff] }
 0x1d5   : > { %14248 = vst [vmem:[#allocation196_spill] sm:$0xff] %v10858_v58  ;;  %v2253_v58 = vunpack.c.l.bf16 %v2201_v27  ;;  %v1909_v0 = vadd.f32 %v1669_v61, %v1269_v6  ;;  %3340 = vmatpush.bf16.msrb.mxu1 %v7556_v37  ;;  %v10872_v27 = vld [vmem:[%s9044_s24 + $0x2e8] sm:$0xff]  ;;  %v10874_v2 = vpack.c.bf16 %v1907_v40, %v1901_v50  ;;  %v13691_v4 = vunpack.c.l.bf16 %v10889_v63 }
 0x1d6   : > { %3231 = vmatpush.bf16.msrb.mxu0 %v7492_v21  ;;  %v1904_v10 = vadd.f32 %v1664_v13, %v1264_v39  ;;  %14251 = vst [vmem:[#allocation197_spill] sm:$0xff] %v10869_v25  ;;  %v10876_v21 = vpack.c.bf16 %v1908_v15, %v1902_v42  ;;  %v13685_v42 = vunpack.c.l.bf16 %v10872_v27  ;;  %v13687_v15 = vunpack.c.h.bf16 %v10869_v25 }
 0x1d7   : > { %14252 = vst [vmem:[#allocation198_spill] sm:$0xff] %v10872_v27  ;;  %v10882_v39 = vpack.c.bf16 %v1909_v0, %v1903_v7  ;;  %v2255_v0 = vunpack.c.l.bf16 %v2202_v41  ;;  %v13692_v47 = vunpack.c.l.bf16 %v10892_v33  ;;  %v1279_v20 = vmul.f32 %v9154_v17, %v10878_v32 }
 0x1d8   : > { %v3043_v38 = vpop.f32.mrf.mxu2  ;;  %v3152_v55 = vpop.f32.mrf.mxu3  ;;  %14253 = vst [vmem:[#allocation199_spill] sm:$0xff] %v10874_v2  ;;  %v10884_v6 = vpack.c.bf16 %v1910_v44, %v1904_v10  ;;  %v13688_v10 = vunpack.c.h.bf16 %v10872_v27  ;;  %v1274_v7 = vmul.f32 %v9157_v14, %v10856_v51  ;;  %v1275_v41 = vmul.f32 %v9174_v26, %v10856_v51 }
 0x1d9   : > { %v3044_v19 = vadd.f32 %v3043_v38, %v2935_v11  ;;  %v2828_v53 = vpop.f32.mrf.mxu0  ;;  %v2937_v31 = vpop.f32.mrf.mxu1  ;;  %14254 = vst [vmem:[#allocation200_spill] sm:$0xff] %v10876_v21  ;;  %v13686_v11 = vunpack.c.l.bf16 %v10869_v25  ;;  %v1280_v38 = vmul.f32 %v9157_v14, %v10878_v32  ;;  %v1282_v27 = vmul.f32 %v9177_v28, %v10878_v32 }
 0x1da   : > { %v2829_v48 = vadd.f32 %v2828_v53, %v2253_v58  ;;  %14255 = vst [vmem:[#allocation201_spill] sm:$0xff] %v10878_v32  ;;  %v10894_v58 = vpop.permute.xlu0 %1454  ;;  %v10900_v44 = vpop.permute.xlu1 %1458 }
 0x1db   : > { %v10880_v22 = vadd.f32 %v3152_v55, %v3044_v19  ;;  %14257 = vst [vmem:[#allocation203_spill] sm:$0xff] %v10882_v39  ;;  %v1673_v61 = vmul.f32 %v10894_v58, %v13686_v11  ;;  %v1679_v37 = vmul.f32 %v10900_v44, %v13685_v42  ;;  %v1674_v55 = vmul.f32 %v10894_v58, %v13687_v15 }
 0x1dc   : > { %14258 = vst [vmem:[#allocation204_spill] sm:$0xff] %v10884_v6  ;;  %v2938_v40 = vadd.f32 %v2937_v31, %v2829_v48  ;;  %2867 = vmatmul.bf16.gmra.mxu0 %v10874_v2  ;;  %2976 = vmatmul.bf16.gmra.mxu1 %v10876_v21  ;;  %v1680_v48 = vmul.f32 %v10900_v44, %v13688_v10  ;;  %v10941_v15 = vpop.permute.xlu2 %1042 }
 0x1dd   : > { %14256 = vst [vmem:[#allocation202_spill] sm:$0xff] %v10880_v22  ;;  %3085 = vmatmul.bf16.gmra.mxu2 %v10882_v39  ;;  %3194 = vmatmul.bf16.gmra.mxu3 %v10884_v6  ;;  %v1281_v42 = vmul.f32 %v9174_v26, %v10878_v32  ;;  %v1675_v13 = vmul.f32 %v10894_v58, %v13691_v4  ;;  %v14266_v4 = vunpack.c.h.bf16 %v10892_v33  ;;  %v2257_v39 = vunpack.c.l.bf16 %v2203_v46 }
 0x1de   : > { %14259 = vst [vmem:[#allocation205_spill] sm:$0xff] %v10889_v63  ;;  %v1913_v6 = vadd.f32 %v1673_v61, %v1273_v24  ;;  %v10960_v61 = vld [vmem:[%s9044_s24 + $0x318] sm:$0xff] }
 0x1df   : > { %14261 = vst [vmem:[#allocation207_spill] sm:$0xff] %v10894_v58  ;;  %v1915_v2 = vadd.f32 %v1675_v13, %v1275_v41 }
 0x1e0   : > { %14262 = vst [vmem:[#allocation208_spill] sm:$0xff] %v10900_v44  ;;  %v3046_v35 = vpop.f32.mrf.mxu2  ;;  %v3155_v50 = vpop.f32.mrf.mxu3 }
 0x1e1   : > { %v3047_v19 = vadd.f32 %v3046_v35, %v2938_v40  ;;  %v2830_v53 = vpop.f32.mrf.mxu0  ;;  %v2939_v31 = vpop.f32.mrf.mxu1  ;;  %v1681_v40 = vmul.f32 %v10900_v44, %v13692_v47  ;;  %v1276_v35 = vmul.f32 %v9177_v28, %v10856_v51  ;;  %14263 = vst [vmem:[#allocation209_spill] sm:$0xff] %v10941_v15  ;;  %v1682_v47 = vmul.f32 %v10900_v44, %v14266_v4 }
 0x1e2   : > { %v2831_v11 = vadd.f32 %v2830_v53, %v2255_v0  ;;  %v14265_v0 = vunpack.c.h.bf16 %v10889_v63  ;;  %v1919_v51 = vadd.f32 %v1679_v37, %v1279_v20  ;;  %v10954_v21 = vpop.permute.xlu1 %1462  ;;  %14268 = vst [vmem:[#allocation212_spill] sm:$0xff] %v10960_v61 }
 0x1e3   : > { %v10943_v10 = vadd.f32 %v3155_v50, %v3047_v19  ;;  %v1914_v50 = vadd.f32 %v1674_v55, %v1274_v7  ;;  %v1920_v19 = vadd.f32 %v1680_v48, %v1280_v38  ;;  %v1921_v32 = vadd.f32 %v1681_v40, %v1281_v42  ;;  %v10975_v38 = vld [vmem:[%s9044_s24 + $0x308] sm:$0xff]  ;;  %v10980_v55 = vpop.permute.xlu0 %1047 }
 0x1e4   : > { %v1676_v53 = vmul.f32 %v10894_v58, %v14265_v0  ;;  %v2940_v25 = vadd.f32 %v2939_v31, %v2831_v11  ;;  %v10957_v58 = vld [vmem:[%s9044_s24 + $0x300] sm:$0xff]  ;;  %v10962_v46 = vpack.c.bf16 %v1919_v51, %v1913_v6  ;;  %14274 = vst [vmem:[#allocation218_spill] sm:$0xff] %v10975_v38  ;;  %v13710_v51 = vunpack.c.l.bf16 %v10960_v61 }
 0x1e5   : > { %14264 = vst [vmem:[#allocation210_spill] sm:$0xff] %v10943_v10  ;;  %v1922_v10 = vadd.f32 %v1682_v47, %v1282_v27  ;;  %v10964_v37 = vpack.c.bf16 %v1920_v19, %v1914_v50  ;;  %v10968_v13 = vpack.c.bf16 %v1921_v32, %v1915_v2  ;;  %v2204_v47 = vld [vmem:[%s9051_s16 + $0x78] sm:$0xff]  ;;  %v13709_v7 = vunpack.c.l.bf16 %v10957_v58  ;;  %v10986_v32 = vpop.permute.xlu2 %1466 }
 0x1e6   : > { %v1916_v63 = vadd.f32 %v1676_v53, %v1276_v35  ;;  %14267 = vst [vmem:[#allocation211_spill] sm:$0xff] %v10957_v58  ;;  %v13711_v2 = vunpack.c.h.bf16 %v10957_v58  ;;  %v13714_v6 = vunpack.c.h.bf16 %v10960_v61  ;;  %v1285_v48 = vmul.f32 %v9154_v17, %v10941_v15  ;;  %v2205_v58 = vld [vmem:[%s9051_s16 + $0x80] sm:$0xff] }
 0x1e7   : > { %14269 = vst [vmem:[#allocation213_spill] sm:$0xff] %v10962_v46  ;;  %v1291_v41 = vmul.f32 %v9154_v17, %v10980_v55  ;;  %v1685_v40 = vmul.f32 %v10954_v21, %v13709_v7  ;;  %v1691_v19 = vmul.f32 %v10986_v32, %v13710_v51  ;;  %v1287_v51 = vmul.f32 %v9174_v26, %v10941_v15 }
 0x1e8   : > { %v3048_v0 = vpop.f32.mrf.mxu2  ;;  %v3157_v33 = vpop.f32.mrf.mxu3  ;;  %14270 = vst [vmem:[#allocation214_spill] sm:$0xff] %v10964_v37  ;;  %v10970_v27 = vpack.c.bf16 %v1922_v10, %v1916_v63  ;;  %v2259_v63 = vunpack.c.l.bf16 %v2204_v47  ;;  %v1692_v7 = vmul.f32 %v10986_v32, %v13714_v6  ;;  %v1293_v35 = vmul.f32 %v9174_v26, %v10980_v55 }
 0x1e9   : > { %v3049_v11 = vadd.f32 %v3048_v0, %v2940_v25  ;;  %v2833_v24 = vpop.f32.mrf.mxu0  ;;  %v2942_v4 = vpop.f32.mrf.mxu1  ;;  %14272 = vst [vmem:[#allocation216_spill] sm:$0xff] %v10968_v13  ;;  %v10978_v25 = vld [vmem:[%s9044_s24 + $0x320] sm:$0xff]  ;;  %v1286_v0 = vmul.f32 %v9157_v14, %v10941_v15  ;;  %v2261_v44 = vunpack.c.l.bf16 %v2205_v58 }
 0x1ea   : > { %v2834_v20 = vadd.f32 %v2833_v24, %v2257_v39  ;;  %14273 = vst [vmem:[#allocation217_spill] sm:$0xff] %v10970_v27  ;;  %v1686_v24 = vmul.f32 %v10954_v21, %v13711_v2  ;;  %v14278_v2 = vunpack.c.l.bf16 %v10978_v25  ;;  %v11027_v61 = vpop.permute.xlu1 %1052 }
 0x1eb   : > { %v10966_v42 = vadd.f32 %v3157_v33, %v3049_v11  ;;  %14275 = vst [vmem:[#allocation219_spill] sm:$0xff] %v10978_v25  ;;  %v13718_v33 = vunpack.c.l.bf16 %v10975_v38  ;;  %v1292_v11 = vmul.f32 %v9157_v14, %v10980_v55 }
 0x1ec   : > { %14276 = vst [vmem:[#allocation220_spill] sm:$0xff] %v10980_v55  ;;  %v2943_v39 = vadd.f32 %v2942_v4, %v2834_v20  ;;  %2872 = vmatmul.bf16.gmra.mxu0 %v10962_v46  ;;  %2981 = vmatmul.bf16.gmra.mxu1 %v10964_v37  ;;  %v7997_v37 = vld [vmem:[#allocation8 + $0x4] sm:$0xf]  ;;  %v7229_v46 = vld [vmem:[#allocation8 + $0x8] sm:$0xf0] }
 0x1ed   : > { %14271 = vst [vmem:[#allocation215_spill] sm:$0xff] %v10966_v42  ;;  %3090 = vmatmul.bf16.gmra.mxu2 %v10968_v13  ;;  %3199 = vmatmul.bf16.gmra.mxu3 %v10970_v27  ;;  %v1687_v10 = vmul.f32 %v10954_v21, %v13718_v33  ;;  %v1294_v27 = vmul.f32 %v9177_v28, %v10980_v55  ;;  %v14282_v33 = vunpack.c.h.bf16 %v10978_v25 }
 0x1ee   : > { %14277 = vst [vmem:[#allocation221_spill] sm:$0xff] %v10986_v32  ;;  %v1925_v42 = vadd.f32 %v1685_v40, %v1285_v48  ;;  %v1926_v55 = vadd.f32 %v1686_v24, %v1286_v0  ;;  %v1932_v22 = vadd.f32 %v1692_v7, %v1292_v11  ;;  %v11044_v48 = vld [vmem:[%s9044_s24 + $0x348] sm:$0xff]  ;;  %v11046_v7 = vpop.permute.xlu2 %1057 }
 0x1ef   : > { %14279 = vst [vmem:[#allocation222_spill] sm:$0xff] %v11027_v61  ;;  %v1694_v13 = vmul.f32 %v10986_v32, %v14282_v33  ;;  %v1927_v12 = vadd.f32 %v1687_v10, %v1287_v51  ;;  %v11057_v10 = vld [vmem:[%s9044_s24 + $0x350] sm:$0xff]  ;;  %v8062_v0 = vld [vmem:[#allocation8 + $0x204] sm:$0xf0] }
 0x1f0   : > { %v3051_v53 = vpop.f32.mrf.mxu2  ;;  %v3160_v50 = vpop.f32.mrf.mxu3  ;;  %14284 = vst [vmem:[#allocation225_spill] sm:$0xff] %v11044_v48  ;;  %v8078_v24 = vld [vmem:[#allocation8 + $0x284] sm:$0xf0] }
 0x1f1   : > { %v3052_v4 = vadd.f32 %v3051_v53, %v2943_v39  ;;  %v2835_v20 = vpop.f32.mrf.mxu0  ;;  %v2944_v47 = vpop.f32.mrf.mxu1  ;;  %v1693_v39 = vmul.f32 %v10986_v32, %v14278_v2  ;;  %v1288_v53 = vmul.f32 %v9177_v28, %v10941_v15  ;;  %v8013_v15 = vld [vmem:[#allocation8 + $0x84] sm:$0xf]  ;;  %v1934_v33 = vadd.f32 %v1694_v13, %v1294_v27  ;;  %v11041_v32 = vld [vmem:[%s9044_s24 + $0x330] sm:$0xff]  ;;  %14285 = vst [vmem:[#allocation226_spill] sm:$0xff] %v11046_v7  ;;  %v2206_v13 = vld [vmem:[%s9051_s16 + $0x88] sm:$0xff] }
 0x1f2   : > { %v2836_v31 = vadd.f32 %v2835_v20, %v2259_v63  ;;  %v14281_v63 = vunpack.c.h.bf16 %v10975_v38  ;;  %14283 = vst [vmem:[#allocation224_spill] sm:$0xff] %v11041_v32  ;;  %v11054_v27 = vld [vmem:[%s9044_s24 + $0x338] sm:$0xff] }
 0x1f3   : > { %v11029_v6 = vadd.f32 %v3160_v50, %v3052_v4  ;;  %v1931_v50 = vadd.f32 %v1691_v19, %v1291_v41  ;;  %v7232_v4 = vor.u32 %v7997_v37, %v7229_v46  ;;  %14288 = vst [vmem:[#allocation229_spill] sm:$0xff] %v11054_v27  ;;  %v7483_v19 = vld [vmem:[#allocation8 + $0x200] sm:$0xf] }
 0x1f4   : > { %v1688_v20 = vmul.f32 %v10954_v21, %v14281_v63  ;;  %v2945_v2 = vadd.f32 %v2944_v47, %v2836_v31  ;;  %v1933_v63 = vadd.f32 %v1693_v39, %v1293_v35  ;;  %14289 = vst [vmem:[#allocation230_spill] sm:$0xff] %v11057_v10  ;;  %v13737_v35 = vunpack.c.l.bf16 %v11041_v32 }
 0x1f5   : > { %14280 = vst [vmem:[#allocation223_spill] sm:$0xff] %v11029_v6  ;;  %v7293_v6 = vld [vmem:[#allocation8 + $0x88] sm:$0xf0]  ;;  %3450 = vmatpush.bf16.msrb.mxu2 %v7232_v4  ;;  %v11048_v51 = vpack.c.bf16 %v1931_v50, %v1925_v42  ;;  %v7484_v11 = vor.u32 %v8062_v0, %v7483_v19  ;;  %v13745_v50 = vunpack.c.l.bf16 %v11057_v10  ;;  %v1306_v4 = vmul.f32 %v9177_v28, %v11046_v7 }
 0x1f6   : > { %v7296_v38 = vor.u32 %v8013_v15, %v7293_v6  ;;  %v1928_v25 = vadd.f32 %v1688_v20, %v1288_v53  ;;  %v11050_v6 = vpack.c.bf16 %v1932_v22, %v1926_v55  ;;  %v13736_v22 = vunpack.c.l.bf16 %v11044_v48  ;;  %v11075_v53 = vpop.permute.xlu0 %1470 }
 0x1f7   : > { %14286 = vst [vmem:[#allocation227_spill] sm:$0xff] %v11048_v51  ;;  %v13738_v55 = vunpack.c.h.bf16 %v11041_v32  ;;  %v2263_v20 = vunpack.c.l.bf16 %v2206_v13  ;;  %3232 = vmatpush.bf16.msrb.mxu0 %v7484_v11  ;;  %v1304_v13 = vmul.f32 %v9157_v14, %v11046_v7  ;;  %v11124_v32 = vpop.permute.xlu2 %1062 }
 0x1f8   : > { %v3053_v31 = vpop.f32.mrf.mxu2  ;;  %v3162_v47 = vpop.f32.mrf.mxu3  ;;  %3559 = vmatpush.bf16.msrb.mxu3 %v7296_v38  ;;  %14287 = vst [vmem:[#allocation228_spill] sm:$0xff] %v11050_v6  ;;  %v11061_v38 = vpack.c.bf16 %v1933_v63, %v1927_v12  ;;  %v11063_v40 = vpack.c.bf16 %v1934_v33, %v1928_v25  ;;  %v13739_v25 = vunpack.c.h.bf16 %v11044_v48  ;;  %v1297_v63 = vmul.f32 %v9154_v17, %v11027_v61 }
 0x1f9   : > { %v3054_v46 = vadd.f32 %v3053_v31, %v2945_v2  ;;  %v2838_v37 = vpop.f32.mrf.mxu0  ;;  %v2947_v58 = vpop.f32.mrf.mxu1  ;;  %14294 = vst [vmem:[#allocation235_spill] sm:$0xff] %v11075_v53  ;;  %v13742_v2 = vunpack.c.l.bf16 %v11054_v27  ;;  %v1303_v33 = vmul.f32 %v9154_v17, %v11046_v7  ;;  %v1697_v31 = vmul.f32 %v11075_v53, %v13737_v35 }
 0x1fa   : > { %v2839_v15 = vadd.f32 %v2838_v37, %v2261_v44  ;;  %14291 = vst [vmem:[#allocation232_spill] sm:$0xff] %v11061_v38  ;;  %v7547_v44 = vld [vmem:[#allocation8 + $0x280] sm:$0xf]  ;;  %v11070_v12 = vpop.permute.xlu1 %1474  ;;  %v1698_v19 = vmul.f32 %v11075_v53, %v13738_v55  ;;  %v14296_v48 = vunpack.c.h.bf16 %v11054_v27 }
 0x1fb   : > { %v11059_v41 = vadd.f32 %v3162_v47, %v3054_v46  ;;  %14292 = vst [vmem:[#allocation233_spill] sm:$0xff] %v11063_v40  ;;  %v7548_v39 = vor.u32 %v8078_v24, %v7547_v44  ;;  %v1704_v24 = vmul.f32 %v11070_v12, %v13739_v25  ;;  %v1699_v47 = vmul.f32 %v11075_v53, %v13742_v2  ;;  %v2207_v25 = vld [vmem:[%s9051_s16 + $0x90] sm:$0xff] }
 0x1fc   : > { %v2948_v42 = vadd.f32 %v2947_v58, %v2839_v15  ;;  %2877 = vmatmul.bf16.gmra.mxu0 %v11048_v51  ;;  %2986 = vmatmul.bf16.gmra.mxu1 %v11050_v6  ;;  %14293 = vst [vmem:[#allocation234_spill] sm:$0xff] %v11070_v12  ;;  %v1703_v58 = vmul.f32 %v11070_v12, %v13736_v22 }
 0x1fd   : > { %14290 = vst [vmem:[#allocation231_spill] sm:$0xff] %v11059_v41  ;;  %3095 = vmatmul.bf16.gmra.mxu2 %v11061_v38  ;;  %3204 = vmatmul.bf16.gmra.mxu3 %v11063_v40  ;;  %v1298_v15 = vmul.f32 %v9157_v14, %v11027_v61  ;;  %v1305_v22 = vmul.f32 %v9174_v26, %v11046_v7 }
 0x1fe   : > { %3341 = vmatpush.bf16.msrb.mxu1 %v7548_v39  ;;  %v1299_v39 = vmul.f32 %v9174_v26, %v11027_v61  ;;  %14298 = vst [vmem:[#allocation237_spill] sm:$0xff] %v11124_v32  ;;  %v1937_v40 = vadd.f32 %v1697_v31, %v1297_v63 }
 0x1ff   : > { %v1938_v38 = vadd.f32 %v1698_v19, %v1298_v15  ;;  %v11147_v19 = vld [vmem:[%s9044_s24 + $0x368] sm:$0xff] }
 0x200   : > { %v3056_v46 = vpop.f32.mrf.mxu2  ;;  %v3165_v37 = vpop.f32.mrf.mxu3  ;;  %v1939_v7 = vadd.f32 %v1699_v47, %v1299_v39  ;;  %14307 = vst [vmem:[#allocation246_spill] sm:$0xff] %v11147_v19 }
 0x201   : > { %v3057_v0 = vadd.f32 %v3056_v46, %v2948_v42  ;;  %v2840_v44 = vpop.f32.mrf.mxu0  ;;  %v2949_v11 = vpop.f32.mrf.mxu1  ;;  %v1705_v42 = vmul.f32 %v11070_v12, %v13745_v50  ;;  %v1300_v46 = vmul.f32 %v9177_v28, %v11027_v61  ;;  %v1944_v61 = vadd.f32 %v1704_v24, %v1304_v13 }
 0x202   : > { %v2841_v35 = vadd.f32 %v2840_v44, %v2263_v20  ;;  %v1700_v20 = vmul.f32 %v11075_v53, %v14296_v48  ;;  %v14297_v44 = vunpack.c.h.bf16 %v11057_v10  ;;  %v11126_v6 = vpop.permute.xlu1 %1067  ;;  %v11165_v39 = vpop.permute.xlu0 %1482 }
 0x203   : > { %v11113_v55 = vadd.f32 %v3165_v37, %v3057_v0  ;;  %v2265_v37 = vunpack.c.l.bf16 %v2207_v25  ;;  %v1943_v0 = vadd.f32 %v1703_v58, %v1303_v33  ;;  %14299 = vst [vmem:[#allocation238_spill] sm:$0xff] %v11126_v6  ;;  %v1945_v27 = vadd.f32 %v1705_v42, %v1305_v22  ;;  %v11132_v25 = vld [vmem:[%s9044_s24 + $0x378] sm:$0xff] }
 0x204   : > { %v1706_v2 = vmul.f32 %v11070_v12, %v14297_v44  ;;  %v2950_v50 = vadd.f32 %v2949_v11, %v2841_v35  ;;  %v1940_v48 = vadd.f32 %v1700_v20, %v1300_v46  ;;  %v11129_v12 = vld [vmem:[%s9044_s24 + $0x360] sm:$0xff]  ;;  %14301 = vst [vmem:[#allocation240_spill] sm:$0xff] %v11132_v25  ;;  %v11136_v15 = vpack.c.bf16 %v1944_v61, %v1938_v38 }
 0x205   : > { %14295 = vst [vmem:[#allocation236_spill] sm:$0xff] %v11113_v55  ;;  %v11134_v58 = vpack.c.bf16 %v1943_v0, %v1937_v40  ;;  %v11140_v47 = vpack.c.bf16 %v1945_v27, %v1939_v7  ;;  %v13761_v13 = vunpack.c.l.bf16 %v11129_v12  ;;  %v13762_v61 = vunpack.c.l.bf16 %v11132_v25  ;;  %v11159_v27 = vpop.permute.xlu2 %1478 }
 0x206   : > { %v1946_v53 = vadd.f32 %v1706_v2, %v1306_v4  ;;  %14300 = vst [vmem:[#allocation239_spill] sm:$0xff] %v11129_v12  ;;  %v2208_v4 = vld [vmem:[%s9051_s16 + $0x98] sm:$0xff]  ;;  %v13765_v38 = vunpack.c.h.bf16 %v11129_v12  ;;  %v13768_v7 = vunpack.c.h.bf16 %v11132_v25  ;;  %v13770_v11 = vunpack.c.l.bf16 %v11147_v19 }
 0x207   : > { %14302 = vst [vmem:[#allocation241_spill] sm:$0xff] %v11134_v58  ;;  %v2267_v40 = vunpack.c.l.bf16 %v2208_v4  ;;  %v1315_v42 = vmul.f32 %v9154_v17, %v11126_v6  ;;  %v1709_v46 = vmul.f32 %v11159_v27, %v13761_v13  ;;  %v1317_v20 = vmul.f32 %v9174_v26, %v11126_v6 }
 0x208   : > { %v3058_v10 = vpop.f32.mrf.mxu2  ;;  %v3167_v44 = vpop.f32.mrf.mxu3  ;;  %14303 = vst [vmem:[#allocation242_spill] sm:$0xff] %v11136_v15  ;;  %v11142_v2 = vpack.c.bf16 %v1946_v53, %v1940_v48  ;;  %v1309_v53 = vmul.f32 %v9154_v17, %v11124_v32  ;;  %v1711_v12 = vmul.f32 %v11159_v27, %v13770_v11 }
 0x209   : > { %v3059_v35 = vadd.f32 %v3058_v10, %v2950_v50  ;;  %v2843_v63 = vpop.f32.mrf.mxu0  ;;  %v2952_v31 = vpop.f32.mrf.mxu1  ;;  %14305 = vst [vmem:[#allocation244_spill] sm:$0xff] %v11140_v47  ;;  %v11150_v10 = vld [vmem:[%s9044_s24 + $0x380] sm:$0xff] }
 0x20a   : > { %v2844_v33 = vadd.f32 %v2843_v63, %v2265_v37  ;;  %14306 = vst [vmem:[#allocation245_spill] sm:$0xff] %v11142_v2  ;;  %v1316_v63 = vmul.f32 %v9157_v14, %v11126_v6  ;;  %v1716_v37 = vmul.f32 %v11165_v39, %v13768_v7  ;;  %v11199_v25 = vpop.permute.xlu1 %1072 }
 0x20b   : > { %v11138_v22 = vadd.f32 %v3167_v44, %v3059_v35  ;;  %14308 = vst [vmem:[#allocation247_spill] sm:$0xff] %v11150_v10  ;;  %v1715_v44 = vmul.f32 %v11165_v39, %v13762_v61  ;;  %v1310_v35 = vmul.f32 %v9157_v14, %v11124_v32  ;;  %v1311_v61 = vmul.f32 %v9174_v26, %v11124_v32 }
 0x20c   : > { %v2953_v50 = vadd.f32 %v2952_v31, %v2844_v33  ;;  %2882 = vmatmul.bf16.gmra.mxu0 %v11134_v58  ;;  %2991 = vmatmul.bf16.gmra.mxu1 %v11136_v15  ;;  %v1710_v31 = vmul.f32 %v11159_v27, %v13765_v38  ;;  %v14309_v38 = vunpack.c.l.bf16 %v11150_v10  ;;  %14310 = vst [vmem:[#allocation248_spill] sm:$0xff] %v11199_v25 }
 0x20d   : > { %14304 = vst [vmem:[#allocation243_spill] sm:$0xff] %v11138_v22  ;;  %3100 = vmatmul.bf16.gmra.mxu2 %v11140_v47  ;;  %3209 = vmatmul.bf16.gmra.mxu3 %v11142_v2  ;;  %v2209_v2 = vld [vmem:[%s9051_s16 + $0xa0] sm:$0xff]  ;;  %v14313_v47 = vunpack.c.h.bf16 %v11150_v10  ;;  %v1955_v22 = vadd.f32 %v1715_v44, %v1315_v42  ;;  %v11238_v44 = vpop.permute.xlu0 %1486 }
 0x20e   : > { %v2269_v58 = vunpack.c.l.bf16 %v2209_v2  ;;  %v11218_v2 = vpop.permute.xlu2 %1077  ;;  %14324 = vst [vmem:[#allocation260_spill] sm:$0xff] %v11238_v44 }
 0x20f   : > { %14316 = vst [vmem:[#allocation252_spill] sm:$0xff] %v11218_v2 }
 0x210   : > { %v3061_v0 = vpop.f32.mrf.mxu2  ;;  %v3170_v48 = vpop.f32.mrf.mxu3 }
 0x211   : > { %v3062_v33 = vadd.f32 %v3061_v0, %v2953_v50  ;;  %v2845_v4 = vpop.f32.mrf.mxu0  ;;  %v2954_v13 = vpop.f32.mrf.mxu1  ;;  %v1717_v50 = vmul.f32 %v11165_v39, %v14309_v38  ;;  %v1312_v0 = vmul.f32 %v9177_v28, %v11124_v32  ;;  %v1718_v38 = vmul.f32 %v11165_v39, %v14313_v47 }
 0x212   : > { %v2846_v24 = vadd.f32 %v2845_v4, %v2267_v40  ;;  %v1318_v40 = vmul.f32 %v9177_v28, %v11126_v6  ;;  %v14312_v4 = vunpack.c.h.bf16 %v11147_v19  ;;  %v1949_v32 = vadd.f32 %v1709_v46, %v1309_v53 }
 0x213   : > { %v11201_v7 = vadd.f32 %v3170_v48, %v3062_v33  ;;  %v1950_v48 = vadd.f32 %v1710_v31, %v1310_v35  ;;  %v1956_v33 = vadd.f32 %v1716_v37, %v1316_v63  ;;  %v1957_v51 = vadd.f32 %v1717_v50, %v1317_v20  ;;  %v2210_v20 = vld [vmem:[%s9051_s16 + $0xa8] sm:$0xff]  ;;  %v11236_v37 = vld [vmem:[%s9044_s24 + $0x3b0] sm:$0xff] }
 0x214   : > { %v1712_v11 = vmul.f32 %v11159_v27, %v14312_v4  ;;  %v2955_v15 = vadd.f32 %v2954_v13, %v2846_v24  ;;  %v1958_v6 = vadd.f32 %v1718_v38, %v1318_v40  ;;  %v11213_v4 = vld [vmem:[%s9044_s24 + $0x390] sm:$0xff]  ;;  %v11216_v24 = vld [vmem:[%s9044_s24 + $0x3a8] sm:$0xff]  ;;  %v11220_v42 = vpack.c.bf16 %v1955_v22, %v1949_v32  ;;  %14323 = vst [vmem:[#allocation259_spill] sm:$0xff] %v11236_v37  ;;  %v7605_v40 = vld [vmem:[#allocation8 + $0x2f8] sm:$0xf0] }
 0x215   : > { %14311 = vst [vmem:[#allocation249_spill] sm:$0xff] %v11201_v7  ;;  %v1951_v7 = vadd.f32 %v1711_v12, %v1311_v61  ;;  %v11222_v12 = vpack.c.bf16 %v1956_v33, %v1950_v48  ;;  %v13784_v32 = vunpack.c.l.bf16 %v11216_v24  ;;  %v1327_v22 = vmul.f32 %v9154_v17, %v11218_v2  ;;  %v8091_v35 = vld [vmem:[#allocation8 + $0x2f4] sm:$0xf] }
 0x216   : > { %v1952_v55 = vadd.f32 %v1712_v11, %v1312_v0  ;;  %14314 = vst [vmem:[#allocation250_spill] sm:$0xff] %v11213_v4  ;;  %v2271_v63 = vunpack.c.l.bf16 %v2210_v20  ;;  %v7608_v33 = vor.u32 %v8091_v35, %v7605_v40  ;;  %v1322_v20 = vmul.f32 %v9157_v14, %v11199_v25  ;;  %v2211_v50 = vld [vmem:[%s9051_s16 + $0xb0] sm:$0xff] }
 0x217   : > { %14315 = vst [vmem:[#allocation251_spill] sm:$0xff] %v11216_v24  ;;  %v11226_v11 = vpack.c.bf16 %v1957_v51, %v1951_v7  ;;  %v13786_v51 = vunpack.c.h.bf16 %v11213_v4  ;;  %v7541_v7 = vld [vmem:[#allocation8 + $0x278] sm:$0xf0]  ;;  %v1329_v48 = vmul.f32 %v9174_v26, %v11218_v2 }
 0x218   : > { %v3063_v41 = vpop.f32.mrf.mxu2  ;;  %v3172_v19 = vpop.f32.mrf.mxu3  ;;  %14317 = vst [vmem:[#allocation253_spill] sm:$0xff] %v11220_v42  ;;  %v11228_v46 = vpack.c.bf16 %v1958_v6, %v1952_v55  ;;  %v1321_v55 = vmul.f32 %v9154_v17, %v11199_v25  ;;  %3988 = vmatpush.bf16.msra.mxu3 %v7608_v33  ;;  %v14329_v33 = vunpack.c.h.bf16 %v11236_v37 }
 0x219   : > { %v3064_v10 = vadd.f32 %v3063_v41, %v2955_v15  ;;  %v2848_v47 = vpop.f32.mrf.mxu0  ;;  %v2957_v13 = vpop.f32.mrf.mxu1  ;;  %14318 = vst [vmem:[#allocation254_spill] sm:$0xff] %v11222_v12  ;;  %v13783_v41 = vunpack.c.l.bf16 %v11213_v4  ;;  %v11233_v15 = vld [vmem:[%s9044_s24 + $0x398] sm:$0xff] }
 0x21a   : > { %v2849_v53 = vadd.f32 %v2848_v47, %v2269_v58  ;;  %14320 = vst [vmem:[#allocation256_spill] sm:$0xff] %v11226_v11  ;;  %v11244_v6 = vpop.permute.xlu1 %1490  ;;  %v13789_v31 = vunpack.c.l.bf16 %v11233_v15  ;;  %v7413_v4 = vld [vmem:[#allocation8 + $0x178] sm:$0xf0] }
 0x21b   : > { %v11224_v61 = vadd.f32 %v3172_v19, %v3064_v10  ;;  %14321 = vst [vmem:[#allocation257_spill] sm:$0xff] %v11228_v46  ;;  %v13785_v19 = vunpack.c.h.bf16 %v11216_v24  ;;  %v8075_v10 = vld [vmem:[#allocation8 + $0x274] sm:$0xf]  ;;  %v1721_v38 = vmul.f32 %v11238_v44, %v13783_v41  ;;  %v1330_v24 = vmul.f32 %v9177_v28, %v11218_v2 }
 0x21c   : > { %14322 = vst [vmem:[#allocation258_spill] sm:$0xff] %v11233_v15  ;;  %v2958_v58 = vadd.f32 %v2957_v13, %v2849_v53  ;;  %2887 = vmatmul.bf16.gmra.mxu0 %v11220_v42  ;;  %2996 = vmatmul.bf16.gmra.mxu1 %v11222_v12  ;;  %v7544_v0 = vor.u32 %v8075_v10, %v7541_v7  ;;  %v7477_v12 = vld [vmem:[#allocation8 + $0x1f8] sm:$0xf0] }
 0x21d   : > { %14319 = vst [vmem:[#allocation255_spill] sm:$0xff] %v11224_v61  ;;  %3105 = vmatmul.bf16.gmra.mxu2 %v11226_v11  ;;  %3214 = vmatmul.bf16.gmra.mxu3 %v11228_v46  ;;  %v1727_v53 = vmul.f32 %v11244_v6, %v13784_v32  ;;  %v1328_v10 = vmul.f32 %v9157_v14, %v11218_v2  ;;  %v8059_v46 = vld [vmem:[#allocation8 + $0x1f4] sm:$0xf] }
 0x21e   : > { %14325 = vst [vmem:[#allocation261_spill] sm:$0xff] %v11244_v6  ;;  %v1722_v7 = vmul.f32 %v11238_v44, %v13786_v51  ;;  %3879 = vmatpush.bf16.msra.mxu2 %v7544_v0  ;;  %v1728_v17 = vmul.f32 %v11244_v6, %v13785_v19  ;;  %v1323_v32 = vmul.f32 %v9174_v26, %v11199_v25  ;;  %v14328_v26 = vunpack.c.h.bf16 %v11233_v15 }
 0x21f   : > { %v1723_v0 = vmul.f32 %v11238_v44, %v13789_v31  ;;  %v1324_v19 = vmul.f32 %v9177_v28, %v11199_v25  ;;  %v8043_v31 = vld [vmem:[#allocation8 + $0x174] sm:$0xf]  ;;  %v1961_v25 = vadd.f32 %v1721_v38, %v1321_v55  ;;  %v1967_v42 = vadd.f32 %v1727_v53, %v1327_v22 }
 0x220   : > { %v3066_v47 = vpop.f32.mrf.mxu2  ;;  %v3175_v13 = vpop.f32.mrf.mxu3  ;;  %v7416_v11 = vor.u32 %v8043_v31, %v7413_v4  ;;  %v1968_v28 = vadd.f32 %v1728_v17, %v1328_v10 }
 0x221   : > { %v3067_v41 = vadd.f32 %v3066_v47, %v2958_v58  ;;  %v2850_v35 = vpop.f32.mrf.mxu0  ;;  %v2959_v40 = vpop.f32.mrf.mxu1  ;;  %v14326_v58 = vunpack.c.l.bf16 %v11236_v37  ;;  %v1963_v15 = vadd.f32 %v1723_v0, %v1323_v32  ;;  %v11296_v31 = vpack.c.bf16 %v1967_v42, %v1961_v25  ;;  %v2212_v32 = vld [vmem:[%s9051_s16 + $0xb8] sm:$0xff] }
 0x222   : > { %v2851_v14 = vadd.f32 %v2850_v35, %v2271_v63  ;;  %v1724_v63 = vmul.f32 %v11238_v44, %v14328_v26  ;;  %v1730_v35 = vmul.f32 %v11244_v6, %v14329_v33  ;;  %3661 = vmatpush.bf16.msra.mxu0 %v7416_v11  ;;  %v2275_v25 = vunpack.c.l.bf16 %v2212_v32  ;;  %v8089_v32 = vld [vmem:[#allocation8 + $0x2e4] sm:$0xf] }
 0x223   : > { %v1729_v47 = vmul.f32 %v11244_v6, %v14326_v58  ;;  %v11286_v51 = vadd.f32 %v3175_v13, %v3067_v41  ;;  %v7480_v41 = vor.u32 %v8059_v46, %v7477_v12  ;;  %v2273_v13 = vunpack.c.l.bf16 %v2211_v50 }
 0x224   : > { %v2960_v58 = vadd.f32 %v2959_v40, %v2851_v14  ;;  %v1964_v44 = vadd.f32 %v1724_v63, %v1324_v19  ;;  %v1970_v37 = vadd.f32 %v1730_v35, %v1330_v24 }
 0x225   : > { %14327 = vst [vmem:[#allocation262_spill] sm:$0xff] %v11286_v51  ;;  %v1962_v51 = vadd.f32 %v1722_v7, %v1322_v20  ;;  %v1969_v26 = vadd.f32 %v1729_v47, %v1329_v48  ;;  %3770 = vmatpush.bf16.msra.mxu1 %v7480_v41  ;;  %v2214_v7 = vld [vmem:[%s9051_s16 + $0xc8] sm:$0xff] }
 0x226   : > { %v11304_v11 = vpack.c.bf16 %v1970_v37, %v1964_v44  ;;  %v2213_v44 = vld [vmem:[%s9051_s16 + $0xc0] sm:$0xff]  ;;  %v2279_v0 = vunpack.c.l.bf16 %v2214_v7 }
 0x227   : > { %v11298_v12 = vpack.c.bf16 %v1968_v28, %v1962_v51  ;;  %v11302_v55 = vpack.c.bf16 %v1969_v26, %v1963_v15  ;;  %v2277_v19 = vunpack.c.l.bf16 %v2213_v44  ;;  %v2215_v26 = vld [vmem:[%s9051_s16 + $0xd0] sm:$0xff]  ;;  %v2216_v44 = vld [vmem:[%s9051_s16 + $0xd8] sm:$0xff] }
 0x228   : > { %v3068_v33 = vpop.f32.mrf.mxu2  ;;  %v3177_v6 = vpop.f32.mrf.mxu3  ;;  %14331 = vst [vmem:[#allocation264_spill] sm:$0xff] %v11304_v11  ;;  %v2283_v7 = vunpack.c.l.bf16 %v2216_v44 }
 0x229   : > { %v3069_v2 = vadd.f32 %v3068_v33, %v2960_v58  ;;  %v2853_v61 = vpop.f32.mrf.mxu0  ;;  %v2962_v40 = vpop.f32.mrf.mxu1  ;;  %14330 = vst [vmem:[#allocation263_spill] sm:$0xff] %v11302_v55 }
 0x22a   : > { %v2854_v4 = vadd.f32 %v2853_v61, %v2273_v13 }
 0x22b   : > { %v11300_v46 = vadd.f32 %v3177_v6, %v3069_v2 }
 0x22c   : > { %v2963_v24 = vadd.f32 %v2962_v40, %v2854_v4  ;;  %2892 = vmatmul.bf16.gmra.mxu0 %v11296_v31  ;;  %3001 = vmatmul.bf16.gmra.mxu1 %v11298_v12  ;;  %v8073_v40 = vld [vmem:[#allocation8 + $0x264] sm:$0xf]  ;;  %v7533_v4 = vld [vmem:[#allocation8 + $0x268] sm:$0xf0] }
 0x22d   : > { %3110 = vmatmul.bf16.gmra.mxu2 %v11302_v55  ;;  %3219 = vmatmul.bf16.gmra.mxu3 %v11304_v11 }
 0x230   : > { %v3071_v42 = vpop.f32.mrf.mxu2  ;;  %v3180_v61 = vpop.f32.mrf.mxu3 }
 0x231   : > { %v3072_v2 = vadd.f32 %v3071_v42, %v2963_v24  ;;  %v2855_v15 = vpop.f32.mrf.mxu0  ;;  %v2964_v51 = vpop.f32.mrf.mxu1  ;;  %v7536_v24 = vor.u32 %v8073_v40, %v7533_v4 }
 0x232   : > { %v2856_v6 = vadd.f32 %v2855_v15, %v2275_v25  ;;  %v7597_v25 = vld [vmem:[#allocation8 + $0x2e8] sm:$0xf0] }
 0x233   : > { %v11311_v37 = vadd.f32 %v3180_v61, %v3072_v2  ;;  %v7600_v42 = vor.u32 %v8089_v32, %v7597_v25  ;;  %3880 = vmatpush.bf16.msra.mxu2 %v7536_v24 }
 0x234   : > { %v2965_v22 = vadd.f32 %v2964_v51, %v2856_v6 }
 0x235   : > { %3989 = vmatpush.bf16.msra.mxu3 %v7600_v42 }
 0x238   : > { %v3073_v50 = vpop.f32.mrf.mxu2  ;;  %v3182_v38 = vpop.f32.mrf.mxu3 }
 0x239   : > { %v3074_v48 = vadd.f32 %v3073_v50, %v2965_v22  ;;  %v2858_v17 = vpop.f32.mrf.mxu0  ;;  %v2967_v53 = vpop.f32.mrf.mxu1  ;;  %v7405_v50 = vld [vmem:[#allocation8 + $0x168] sm:$0xf0] }
 0x23a   : > { %v2859_v20 = vadd.f32 %v2858_v17, %v2277_v19  ;;  %v8041_v19 = vld [vmem:[#allocation8 + $0x164] sm:$0xf] }
 0x23b   : > { %v11314_v10 = vadd.f32 %v3182_v38, %v3074_v48  ;;  %v8057_v38 = vld [vmem:[#allocation8 + $0x1e4] sm:$0xf]  ;;  %v7408_v17 = vor.u32 %v8041_v19, %v7405_v50  ;;  %v2219_v50 = vld [vmem:[%s9051_s16 + $0xf0] sm:$0xff] }
 0x23c   : > { %v2968_v14 = vadd.f32 %v2967_v53, %v2859_v20  ;;  %3233 = vmatmul.bf16.vlgmr.msrb.gmra.mxu0 %v9430_v8  ;;  %3342 = vmatmul.bf16.vlgmr.msrb.gmra.mxu1 %v9433_v43  ;;  %v7469_v53 = vld [vmem:[#allocation8 + $0x1e8] sm:$0xf0] }
 0x23d   : > { %3451 = vmatmul.bf16.vlgmr.msrb.gmra.mxu2 %v9250_v29  ;;  %3560 = vmatmul.bf16.vlgmr.msrb.gmra.mxu3 %v9252_v30  ;;  %v2281_v29 = vunpack.c.l.bf16 %v2215_v26  ;;  %v7472_v20 = vor.u32 %v8057_v38, %v7469_v53 }
 0x23e   : > { %3662 = vmatpush.bf16.msra.mxu0 %v7408_v17 }
 0x23f   : > { %3771 = vmatpush.bf16.msra.mxu1 %v7472_v20 }
 0x240   : > { %v3076_v47 = vpop.f32.mrf.mxu2  ;;  %v3185_v63 = vpop.f32.mrf.mxu3 }
 0x241   : > { %v3077_v35 = vadd.f32 %v3076_v47, %v2968_v14  ;;  %v2860_v58 = vpop.f32.mrf.mxu0  ;;  %v2969_v41 = vpop.f32.mrf.mxu1 }
 0x242   : > { %v2861_v13 = vadd.f32 %v2860_v58, %v2279_v0 }
 0x243   : > { %v11321_v28 = vadd.f32 %v3185_v63, %v3077_v35 }
 0x244   : > { %v2970_v33 = vadd.f32 %v2969_v41, %v2861_v13  ;;  %v2217_v13 = vld [vmem:[%s9051_s16 + $0xe0] sm:$0xff] }
 0x248   : > { %v3078_v30 = vpop.f32.mrf.mxu2  ;;  %v3187_v61 = vpop.f32.mrf.mxu3 }
 0x249   : > { %v3079_v2 = vadd.f32 %v3078_v30, %v2970_v33  ;;  %v2863_v15 = vpop.f32.mrf.mxu0  ;;  %v2972_v51 = vpop.f32.mrf.mxu1  ;;  %v2285_v33 = vunpack.c.l.bf16 %v2217_v13  ;;  %v8071_v13 = vld [vmem:[#allocation8 + $0x254] sm:$0xf] }
 0x24a   : > { %v2864_v6 = vadd.f32 %v2863_v15, %v2281_v29  ;;  %v2218_v29 = vld [vmem:[%s9051_s16 + $0xe8] sm:$0xff] }
 0x24b   : > { %v11325_v22 = vadd.f32 %v3187_v61, %v3079_v2  ;;  %v2287_v30 = vunpack.c.l.bf16 %v2218_v29 }
 0x24c   : > { %v2973_v48 = vadd.f32 %v2972_v51, %v2864_v6  ;;  %3238 = vmatmul.bf16.gmra.mxu0 %v9458_v5  ;;  %3347 = vmatmul.bf16.gmra.mxu1 %v9501_v56 }
 0x24d   : > { %3456 = vmatmul.bf16.gmra.mxu2 %v9376_v52  ;;  %3565 = vmatmul.bf16.gmra.mxu3 %v9378_v57 }
 0x250   : > { %v3081_v14 = vpop.f32.mrf.mxu2  ;;  %v3190_v0 = vpop.f32.mrf.mxu3 }
 0x251   : > { %v3082_v47 = vadd.f32 %v3081_v14, %v2973_v48  ;;  %v2865_v63 = vpop.f32.mrf.mxu0  ;;  %v2974_v35 = vpop.f32.mrf.mxu1  ;;  %v2289_v48 = vunpack.c.l.bf16 %v2219_v50 }
 0x252   : > { %v2866_v58 = vadd.f32 %v2865_v63, %v2283_v7  ;;  %v14332_v63 = vld [vmem:[#allocation75_spill] sm:$0xff] }
 0x253   : > { %v11331_v41 = vadd.f32 %v3190_v0, %v3082_v47  ;;  %v2220_v0 = vld [vmem:[%s9051_s16 + $0xf8] sm:$0xff] }
 0x254   : > { %v2975_v26 = vadd.f32 %v2974_v35, %v2866_v58  ;;  %v14333_v35 = vld [vmem:[#allocation59_spill] sm:$0xff]  ;;  %v14334_v58 = vld [vmem:[#allocation60_spill] sm:$0xff] }
 0x258   : > { %v3083_v40 = vpop.f32.mrf.mxu2  ;;  %v3192_v52 = vpop.f32.mrf.mxu3 }
 0x259   : > { %v3084_v4 = vadd.f32 %v3083_v40, %v2975_v26  ;;  %v2868_v57 = vpop.f32.mrf.mxu0  ;;  %v2977_v32 = vpop.f32.mrf.mxu1  ;;  %v7525_v26 = vld [vmem:[#allocation8 + $0x258] sm:$0xf0]  ;;  %v2291_v40 = vunpack.c.l.bf16 %v2220_v0 }
 0x25a   : > { %v2869_v24 = vadd.f32 %v2868_v57, %v2285_v33  ;;  %v8087_v33 = vld [vmem:[#allocation8 + $0x2d4] sm:$0xf] }
 0x25b   : > { %v11334_v25 = vadd.f32 %v3192_v52, %v3084_v4  ;;  %v7528_v52 = vor.u32 %v8071_v13, %v7525_v26  ;;  %v7589_v4 = vld [vmem:[#allocation8 + $0x2d8] sm:$0xf0]  ;;  %v14335_v26 = vld [vmem:[#allocation76_spill] sm:$0xff] }
 0x25c   : > { %v2978_v42 = vadd.f32 %v2977_v32, %v2869_v24  ;;  %3243 = vmatmul.bf16.gmra.mxu0 %v9503_v62  ;;  %3352 = vmatmul.bf16.gmra.mxu1 %v9719_v16  ;;  %v7592_v57 = vor.u32 %v8087_v33, %v7589_v4  ;;  %v14336_v33 = vld [vmem:[#allocation77_spill] sm:$0xff] }
 0x25d   : > { %3461 = vmatmul.bf16.gmra.mxu2 %v9512_v3  ;;  %3570 = vmatmul.bf16.gmra.mxu3 %v9514_v23 }
 0x25e   : > { %3881 = vmatpush.bf16.msra.mxu2 %v7528_v52  ;;  %3990 = vmatpush.bf16.msra.mxu3 %v7592_v57  ;;  %v14338_v52 = vld [vmem:[#allocation68_spill] sm:$0xff] }
 0x260   : > { %v3086_v61 = vpop.f32.mrf.mxu2  ;;  %v3195_v2 = vpop.f32.mrf.mxu3 }
 0x261   : > { %v3087_v15 = vadd.f32 %v3086_v61, %v2978_v42  ;;  %v2870_v51 = vpop.f32.mrf.mxu0  ;;  %v2979_v6 = vpop.f32.mrf.mxu1 }
 0x262   : > { %v2871_v44 = vadd.f32 %v2870_v51, %v2287_v30  ;;  %v8039_v51 = vld [vmem:[#allocation8 + $0x154] sm:$0xf] }
 0x263   : > { %v11341_v19 = vadd.f32 %v3195_v2, %v3087_v15  ;;  %v2221_v2 = vld [vmem:[%s9051_s16 + $0x100] sm:$0xff] }
 0x264   : > { %v2980_v38 = vadd.f32 %v2979_v6, %v2871_v44  ;;  %v7397_v6 = vld [vmem:[#allocation8 + $0x158] sm:$0xf0]  ;;  %v8055_v44 = vld [vmem:[#allocation8 + $0x1d4] sm:$0xf] }
 0x268   : > { %v3088_v17 = vpop.f32.mrf.mxu2  ;;  %v3197_v53 = vpop.f32.mrf.mxu3 }
 0x269   : > { %v3089_v20 = vadd.f32 %v3088_v17, %v2980_v38  ;;  %v2873_v7 = vpop.f32.mrf.mxu0  ;;  %v2982_v3 = vpop.f32.mrf.mxu1  ;;  %v7400_v38 = vor.u32 %v8039_v51, %v7397_v6 }
 0x26a   : > { %v2874_v14 = vadd.f32 %v2873_v7, %v2289_v48  ;;  %v7461_v48 = vld [vmem:[#allocation8 + $0x1d8] sm:$0xf0] }
 0x26b   : > { %v11344_v23 = vadd.f32 %v3197_v53, %v3089_v20  ;;  %v7464_v17 = vor.u32 %v8055_v44, %v7461_v48  ;;  %v2293_v53 = vunpack.c.l.bf16 %v2221_v2  ;;  %3663 = vmatpush.bf16.msra.mxu0 %v7400_v38  ;;  %v2223_v2 = vld [vmem:[%s9051_s16 + $0x110] sm:$0xff] }
 0x26c   : > { %v2983_v47 = vadd.f32 %v2982_v3, %v2874_v14  ;;  %3248 = vmatmul.bf16.gmra.mxu0 %v9742_v34  ;;  %3357 = vmatmul.bf16.gmra.mxu1 %v14332_v63  ;;  %v2297_v6 = vunpack.c.l.bf16 %v2223_v2  ;;  %v8069_v2 = vld [vmem:[#allocation8 + $0x244] sm:$0xf] }
 0x26d   : > { %3466 = vmatmul.bf16.gmra.mxu2 %v14333_v35  ;;  %3575 = vmatmul.bf16.gmra.mxu3 %v14334_v58  ;;  %v2222_v58 = vld [vmem:[%s9051_s16 + $0x108] sm:$0xff] }
 0x26e   : > { %3772 = vmatpush.bf16.msra.mxu1 %v7464_v17  ;;  %v2295_v4 = vunpack.c.l.bf16 %v2222_v58  ;;  %v14342_v58 = vld [vmem:[#allocation85_spill] sm:$0xff] }
 0x270   : > { %v3091_v32 = vpop.f32.mrf.mxu2  ;;  %v3200_v24 = vpop.f32.mrf.mxu3 }
 0x271   : > { %v3092_v29 = vadd.f32 %v3091_v32, %v2983_v47  ;;  %v2875_v42 = vpop.f32.mrf.mxu0  ;;  %v2984_v30 = vpop.f32.mrf.mxu1 }
 0x272   : > { %v2876_v61 = vadd.f32 %v2875_v42, %v2291_v40  ;;  %v14337_v40 = vld [vmem:[#allocation67_spill] sm:$0xff] }
 0x273   : > { %v11352_v15 = vadd.f32 %v3200_v24, %v3092_v29 }
 0x274   : > { %v2985_v50 = vadd.f32 %v2984_v30, %v2876_v61 }
 0x278   : > { %v3093_v20 = vpop.f32.mrf.mxu2  ;;  %v3202_v7 = vpop.f32.mrf.mxu3 }
 0x279   : > { %v3094_v3 = vadd.f32 %v3093_v20, %v2985_v50  ;;  %v2878_v14 = vpop.f32.mrf.mxu0  ;;  %v2987_v0 = vpop.f32.mrf.mxu1 }
 0x27a   : > { %v2879_v47 = vadd.f32 %v2878_v14, %v2293_v53  ;;  %v14339_v14 = vld [vmem:[#allocation90_spill] sm:$0xff] }
 0x27b   : > { %v11354_v35 = vadd.f32 %v3202_v7, %v3094_v3  ;;  %v2224_v7 = vld [vmem:[%s9051_s16 + $0x118] sm:$0xff] }
 0x27c   : > { %v2988_v13 = vadd.f32 %v2987_v0, %v2879_v47  ;;  %3253 = vmatmul.bf16.gmra.mxu0 %v14335_v26  ;;  %3362 = vmatmul.bf16.gmra.mxu1 %v14336_v33  ;;  %v14340_v0 = vld [vmem:[#allocation91_spill] sm:$0xff]  ;;  %v14341_v47 = vld [vmem:[#allocation84_spill] sm:$0xff] }
 0x27d   : > { %3471 = vmatmul.bf16.gmra.mxu2 %v14337_v40  ;;  %3580 = vmatmul.bf16.gmra.mxu3 %v14338_v52 }
 0x280   : > { %v3096_v57 = vpop.f32.mrf.mxu2  ;;  %v3205_v32 = vpop.f32.mrf.mxu3 }
 0x281   : > { %v3097_v24 = vadd.f32 %v3096_v57, %v2988_v13  ;;  %v2880_v29 = vpop.f32.mrf.mxu0  ;;  %v2989_v42 = vpop.f32.mrf.mxu1  ;;  %v2299_v13 = vunpack.c.l.bf16 %v2224_v7 }
 0x282   : > { %v2881_v30 = vadd.f32 %v2880_v29, %v2295_v4 }
 0x283   : > { %v11361_v61 = vadd.f32 %v3205_v32, %v3097_v24 }
 0x284   : > { %v2990_v51 = vadd.f32 %v2989_v42, %v2881_v30  ;;  %v2225_v42 = vld [vmem:[%s9051_s16 + $0x120] sm:$0xff] }
 0x288   : > { %v3098_v44 = vpop.f32.mrf.mxu2  ;;  %v3207_v50 = vpop.f32.mrf.mxu3 }
 0x289   : > { %v3099_v38 = vadd.f32 %v3098_v44, %v2990_v51  ;;  %v2883_v48 = vpop.f32.mrf.mxu0  ;;  %v2992_v17 = vpop.f32.mrf.mxu1  ;;  %v7517_v51 = vld [vmem:[#allocation8 + $0x248] sm:$0xf0] }
 0x28a   : > { %v2884_v53 = vadd.f32 %v2883_v48, %v2297_v6  ;;  %v8085_v6 = vld [vmem:[#allocation8 + $0x2c4] sm:$0xf]  ;;  %v7520_v44 = vor.u32 %v8069_v2, %v7517_v51  ;;  %v14346_v2 = vld [vmem:[#allocation103_spill] sm:$0xff] }
 0x28b   : > { %v11364_v20 = vadd.f32 %v3207_v50, %v3099_v38  ;;  %v7581_v50 = vld [vmem:[#allocation8 + $0x2c8] sm:$0xf0]  ;;  %v2301_v38 = vunpack.c.l.bf16 %v2225_v42 }
 0x28c   : > { %v2993_v3 = vadd.f32 %v2992_v17, %v2884_v53  ;;  %3258 = vmatmul.bf16.gmra.mxu0 %v14339_v14  ;;  %3367 = vmatmul.bf16.gmra.mxu1 %v14340_v0  ;;  %v7584_v48 = vor.u32 %v8085_v6, %v7581_v50  ;;  %v7453_v51 = vld [vmem:[#allocation8 + $0x1c8] sm:$0xf0]  ;;  %v14347_v6 = vld [vmem:[#allocation92_spill] sm:$0xff] }
 0x28d   : > { %3476 = vmatmul.bf16.gmra.mxu2 %v14341_v47  ;;  %3585 = vmatmul.bf16.gmra.mxu3 %v14342_v58 }
 0x28e   : > { %3882 = vmatpush.bf16.msra.mxu2 %v7520_v44  ;;  %3991 = vmatpush.bf16.msra.mxu3 %v7584_v48 }
 0x290   : > { %v3101_v40 = vpop.f32.mrf.mxu2  ;;  %v3210_v52 = vpop.f32.mrf.mxu3 }
 0x291   : > { %v3102_v4 = vadd.f32 %v3101_v40, %v2993_v3  ;;  %v2885_v57 = vpop.f32.mrf.mxu0  ;;  %v2994_v32 = vpop.f32.mrf.mxu1 }
 0x292   : > { %v2886_v24 = vadd.f32 %v2885_v57, %v2299_v13  ;;  %v2226_v13 = vld [vmem:[%s9051_s16 + $0x128] sm:$0xff]  ;;  %v8053_v57 = vld [vmem:[#allocation8 + $0x1c4] sm:$0xf] }
 0x293   : > { %v11371_v29 = vadd.f32 %v3210_v52, %v3102_v4  ;;  %v8037_v52 = vld [vmem:[#allocation8 + $0x144] sm:$0xf]  ;;  %v7389_v4 = vld [vmem:[#allocation8 + $0x148] sm:$0xf0]  ;;  %v7456_v44 = vor.u32 %v8053_v57, %v7453_v51  ;;  %v2303_v50 = vunpack.c.l.bf16 %v2226_v13  ;;  %v2228_v51 = vld [vmem:[%s9051_s16 + $0x138] sm:$0xff] }
 0x294   : > { %v2995_v30 = vadd.f32 %v2994_v32, %v2886_v24  ;;  %v14345_v24 = vld [vmem:[#allocation98_spill] sm:$0xff]  ;;  %v7392_v42 = vor.u32 %v8037_v52, %v7389_v4 }
 0x295   : > { %14343 = vst [vmem:[#allocation75_spill] sm:$0xff] %v11371_v29  ;;  %3773 = vmatpush.bf16.msra.mxu1 %v7456_v44  ;;  %v7501_v29 = vld [vmem:[#allocation8 + $0x228] sm:$0xf0] }
 0x296   : > { %3664 = vmatpush.bf16.msra.mxu0 %v7392_v42 }
 0x298   : > { %v3103_v17 = vpop.f32.mrf.mxu2  ;;  %v3212_v53 = vpop.f32.mrf.mxu3 }
 0x299   : > { %v3104_v7 = vadd.f32 %v3103_v17, %v2995_v30  ;;  %v2888_v3 = vpop.f32.mrf.mxu0  ;;  %v2997_v47 = vpop.f32.mrf.mxu1  ;;  %v14348_v30 = vld [vmem:[#allocation93_spill] sm:$0xff] }
 0x29a   : > { %v2889_v58 = vadd.f32 %v2888_v3, %v2301_v38 }
 0x29b   : > { %v11375_v40 = vadd.f32 %v3212_v53, %v3104_v7 }
 0x29c   : > { %v2998_v32 = vadd.f32 %v2997_v47, %v2889_v58  ;;  %3263 = vmatmul.bf16.gmra.mxu0 %v14345_v24  ;;  %3372 = vmatmul.bf16.gmra.mxu1 %v14346_v2  ;;  %v2227_v58 = vld [vmem:[%s9051_s16 + $0x130] sm:$0xff] }
 0x29d   : > { %14344 = vst [vmem:[#allocation59_spill] sm:$0xff] %v11375_v40  ;;  %3481 = vmatmul.bf16.gmra.mxu2 %v14347_v6  ;;  %3590 = vmatmul.bf16.gmra.mxu3 %v14348_v30  ;;  %v2305_v4 = vunpack.c.l.bf16 %v2227_v58 }
 0x2a0   : > { %v3106_v38 = vpop.f32.mrf.mxu2  ;;  %v3215_v48 = vpop.f32.mrf.mxu3 }
 0x2a1   : > { %v3107_v17 = vadd.f32 %v3106_v38, %v2998_v32  ;;  %v2890_v53 = vpop.f32.mrf.mxu0  ;;  %v2999_v7 = vpop.f32.mrf.mxu1  ;;  %v14351_v32 = vld [vmem:[#allocation122_spill] sm:$0xff]  ;;  %v14353_v38 = vld [vmem:[#allocation109_spill] sm:$0xff] }
 0x2a2   : > { %v2891_v3 = vadd.f32 %v2890_v53, %v2303_v50  ;;  %v14352_v50 = vld [vmem:[#allocation108_spill] sm:$0xff] }
 0x2a3   : > { %v11381_v47 = vadd.f32 %v3215_v48, %v3107_v17  ;;  %v2307_v48 = vunpack.c.l.bf16 %v2228_v51 }
 0x2a4   : > { %v3000_v52 = vadd.f32 %v2999_v7, %v2891_v3 }
 0x2a5   : > { %14349 = vst [vmem:[#allocation60_spill] sm:$0xff] %v11381_v47 }
 0x2a8   : > { %v3108_v11 = vpop.f32.mrf.mxu2  ;;  %v3217_v6 = vpop.f32.mrf.mxu3 }
 0x2a9   : > { %v3109_v55 = vadd.f32 %v3108_v11, %v3000_v52  ;;  %v2893_v30 = vpop.f32.mrf.mxu0  ;;  %v3002_v57 = vpop.f32.mrf.mxu1 }
 0x2aa   : > { %v2894_v13 = vadd.f32 %v2893_v30, %v2305_v4 }
 0x2ab   : > { %v11384_v42 = vadd.f32 %v3217_v6, %v3109_v55 }
 0x2ac   : > { %v3003_v44 = vadd.f32 %v3002_v57, %v2894_v13  ;;  %3268 = vmatmul.bf16.gmra.mxu0 %v10229_v45  ;;  %3377 = vmatmul.bf16.gmra.mxu1 %v14351_v32  ;;  %v14355_v32 = vld [vmem:[#allocation128_spill] sm:$0xff] }
 0x2ad   : > { %14350 = vst [vmem:[#allocation76_spill] sm:$0xff] %v11384_v42  ;;  %3486 = vmatmul.bf16.gmra.mxu2 %v14352_v50  ;;  %3595 = vmatmul.bf16.gmra.mxu3 %v14353_v38  ;;  %v14357_v38 = vld [vmem:[#allocation124_spill] sm:$0xff]  ;;  %v8413_v42 = vld [vmem:[%s9051_s16 + $0x8] sm:$0xff] }
 0x2ae   : > { %v2232_v2 = vunpack.c.h.bf16 %v8413_v42  ;;  %v14366_v42 = vld [vmem:[#allocation142_spill] sm:$0xff] }
 0x2b0   : > { %v3111_v17 = vpop.f32.mrf.mxu2  ;;  %v3220_v53 = vpop.f32.mrf.mxu3 }
 0x2b1   : > { %v3112_v7 = vadd.f32 %v3111_v17, %v3003_v44  ;;  %v2895_v11 = vpop.f32.mrf.mxu0  ;;  %v3004_v3 = vpop.f32.mrf.mxu1  ;;  %v14358_v44 = vld [vmem:[#allocation126_spill] sm:$0xff]  ;;  %v14359_v17 = vld [vmem:[#allocation115_spill] sm:$0xff] }
 0x2b2   : > { %v2896_v58 = vadd.f32 %v2895_v11, %v2307_v48  ;;  %v14360_v48 = vld [vmem:[#allocation116_spill] sm:$0xff] }
 0x2b3   : > { %v11391_v55 = vadd.f32 %v3220_v53, %v3112_v7  ;;  %v8412_v53 = vld [vmem:[%s9051_s16] sm:$0xff]  ;;  %v8067_v11 = vld [vmem:[#allocation8 + $0x234] sm:$0xf] }
 0x2b4   : > { %v3005_v52 = vadd.f32 %v3004_v3, %v2896_v58  ;;  %v2230_v7 = vunpack.c.h.bf16 %v8412_v53  ;;  %v7509_v3 = vld [vmem:[#allocation8 + $0x238] sm:$0xf0] }
 0x2b5   : > { %14354 = vst [vmem:[#allocation77_spill] sm:$0xff] %v11391_v55  ;;  %v7512_v58 = vor.u32 %v8067_v11, %v7509_v3  ;;  %v7381_v53 = vld [vmem:[#allocation8 + $0x138] sm:$0xf0] }
 0x2b6   : > { %v7445_v3 = vld [vmem:[#allocation8 + $0x1b8] sm:$0xf0] }
 0x2b7   : > { %3883 = vmatpush.bf16.msra.mxu2 %v7512_v58 }
 0x2b8   : > { %v3113_v4 = vpop.f32.mrf.mxu2  ;;  %v3222_v6 = vpop.f32.mrf.mxu3 }
 0x2b9   : > { %v3114_v30 = vadd.f32 %v3113_v4, %v3005_v52  ;;  %v3234_v57 = vpop.f32.mrf.mxu0  ;;  %v3343_v13 = vpop.f32.mrf.mxu1  ;;  %v8083_v52 = vld [vmem:[#allocation8 + $0x2b4] sm:$0xf]  ;;  %v7573_v4 = vld [vmem:[#allocation8 + $0x2b8] sm:$0xf0] }
 0x2ba   : > { %v3235_v50 = vadd.f32 %v3234_v57, %v14355_v32 }
 0x2bb   : > { %v11394_v45 = vadd.f32 %v3222_v6, %v3114_v30  ;;  %v7576_v6 = vor.u32 %v8083_v52, %v7573_v4 }
 0x2bc   : > { %v3344_v51 = vadd.f32 %v3343_v13, %v3235_v50  ;;  %3273 = vmatmul.bf16.gmra.mxu0 %v14357_v38  ;;  %3382 = vmatmul.bf16.gmra.mxu1 %v14358_v44  ;;  %v14361_v50 = vld [vmem:[#allocation134_spill] sm:$0xff]  ;;  %v8051_v38 = vld [vmem:[#allocation8 + $0x1b4] sm:$0xf] }
 0x2bd   : > { %14356 = vst [vmem:[#allocation67_spill] sm:$0xff] %v11394_v45  ;;  %3491 = vmatmul.bf16.gmra.mxu2 %v14359_v17  ;;  %3600 = vmatmul.bf16.gmra.mxu3 %v14360_v48  ;;  %v8035_v48 = vld [vmem:[#allocation8 + $0x134] sm:$0xf]  ;;  %v7448_v24 = vor.u32 %v8051_v38, %v7445_v3  ;;  %v14370_v3 = vld [vmem:[#allocation149_spill] sm:$0xff] }
 0x2be   : > { %3992 = vmatpush.bf16.msra.mxu3 %v7576_v6  ;;  %v7384_v11 = vor.u32 %v8035_v48, %v7381_v53  ;;  %v4097_v47 = vmax.f32 %v3344_v51, 0.0  ;;  %v14367_v51 = vld [vmem:[#allocation148_spill] sm:$0xff] }
 0x2bf   : > { %3774 = vmatpush.bf16.msra.mxu1 %v7448_v24  ;;  %v14369_v24 = vld [vmem:[#allocation132_spill] sm:$0xff] }
 0x2c0   : > { %v3452_v55 = vpop.f32.mrf.mxu2  ;;  %v3561_v32 = vpop.f32.mrf.mxu3  ;;  %3665 = vmatpush.bf16.msra.mxu0 %v7384_v11 }
 0x2c1   : > { %v3453_v30 = vadd.f32 %v3452_v55, %v2230_v7  ;;  %v3236_v57 = vpop.f32.mrf.mxu0  ;;  %v3345_v13 = vpop.f32.mrf.mxu1 }
 0x2c2   : > { %v3237_v44 = vadd.f32 %v3236_v57, %v14361_v50 }
 0x2c3   : > { %v11402_v17 = vadd.f32 %v3561_v32, %v3453_v30  ;;  %v14364_v30 = vld [vmem:[#allocation139_spill] sm:$0xff] }
 0x2c4   : > { %v3346_v45 = vadd.f32 %v3345_v13, %v3237_v44 }
 0x2c5   : > { %14362 = vst [vmem:[#allocation68_spill] sm:$0xff] %v11402_v17 }
 0x2c6   : > { %v4099_v52 = vmax.f32 %v3346_v45, 0.0  ;;  %v14368_v45 = vld [vmem:[#allocation131_spill] sm:$0xff] }
 0x2c8   : > { %v11405_v55 = vpack.c.bf16 %v4099_v52, %v4097_v47  ;;  %v3454_v7 = vpop.f32.mrf.mxu2  ;;  %v3563_v58 = vpop.f32.mrf.mxu3  ;;  %v8414_v47 = vld [vmem:[%s9051_s16 + $0x10] sm:$0xff] }
 0x2c9   : > { %v3455_v4 = vadd.f32 %v3454_v7, %v2232_v2  ;;  %v3239_v32 = vpop.f32.mrf.mxu0  ;;  %v3348_v6 = vpop.f32.mrf.mxu1  ;;  %v2234_v38 = vunpack.c.h.bf16 %v8414_v47 }
 0x2ca   : > { %14363 = vst [vmem:[#allocation84_spill] sm:$0xff] %v11405_v55  ;;  %v3240_v57 = vadd.f32 %v3239_v32, %v14364_v30  ;;  %v14373_v55 = vld [vmem:[#allocation156_spill] sm:$0xff] }
 0x2cb   : > { %v11408_v44 = vadd.f32 %v3563_v58, %v3455_v4  ;;  %v8415_v4 = vld [vmem:[%s9051_s16 + $0x18] sm:$0xff] }
 0x2cc   : > { %v3349_v13 = vadd.f32 %v3348_v6, %v3240_v57  ;;  %3278 = vmatmul.bf16.gmra.mxu0 %v14366_v42  ;;  %3387 = vmatmul.bf16.gmra.mxu1 %v14367_v51  ;;  %v2236_v32 = vunpack.c.h.bf16 %v8415_v4  ;;  %v11423_v42 = vld [vmem:[%s9044_s24 + $0x220] sm:$0xff] }
 0x2cd   : > { %14365 = vst [vmem:[#allocation85_spill] sm:$0xff] %v11408_v44  ;;  %3496 = vmatmul.bf16.gmra.mxu2 %v14368_v45  ;;  %3605 = vmatmul.bf16.gmra.mxu3 %v14369_v24 }
 0x2ce   : > { %v4101_v6 = vmax.f32 %v3349_v13, 0.0  ;;  %14374 = vst [vmem:[#allocation108_spill] sm:$0xff] %v11423_v42  ;;  %v14377_v13 = vld [vmem:[#allocation144_spill] sm:$0xff] }
 0x2d0   : > { %v3457_v50 = vpop.f32.mrf.mxu2  ;;  %v3566_v2 = vpop.f32.mrf.mxu3 }
 0x2d1   : > { %v3458_v48 = vadd.f32 %v3457_v50, %v2234_v38  ;;  %v3241_v53 = vpop.f32.mrf.mxu0  ;;  %v3350_v11 = vpop.f32.mrf.mxu1 }
 0x2d2   : > { %v3242_v52 = vadd.f32 %v3241_v53, %v14370_v3  ;;  %v11426_v53 = vld [vmem:[%s9044_s24 + $0x238] sm:$0xff]  ;;  %v8416_v3 = vld [vmem:[%s9051_s16 + $0x20] sm:$0xff] }
 0x2d3   : > { %v11416_v7 = vadd.f32 %v3566_v2, %v3458_v48  ;;  %14375 = vst [vmem:[#allocation109_spill] sm:$0xff] %v11426_v53  ;;  %v14383_v4 = vunpack.c.l.bf16 %v11426_v53 }
 0x2d4   : > { %v3351_v58 = vadd.f32 %v3350_v11, %v3242_v52  ;;  %v14378_v11 = vld [vmem:[#allocation147_spill] sm:$0xff]  ;;  %v2238_v52 = vunpack.c.h.bf16 %v8416_v3  ;;  %v14382_v3 = vld [vmem:[#allocation153_spill] sm:$0xff] }
 0x2d5   : > { %14371 = vst [vmem:[#allocation92_spill] sm:$0xff] %v11416_v7  ;;  %v14386_v7 = vunpack.c.h.bf16 %v11426_v53  ;;  %v8065_v53 = vld [vmem:[#allocation8 + $0x224] sm:$0xf] }
 0x2d6   : > { %v4103_v30 = vmax.f32 %v3351_v58, 0.0  ;;  %v13815_v58 = vunpack.c.l.bf16 %v11423_v42 }
 0x2d8   : > { %v11419_v57 = vpack.c.bf16 %v4103_v30, %v4101_v6  ;;  %v3459_v45 = vpop.f32.mrf.mxu2  ;;  %v3568_v24 = vpop.f32.mrf.mxu3  ;;  %v14379_v30 = vld [vmem:[#allocation141_spill] sm:$0xff] }
 0x2d9   : > { %v3460_v47 = vadd.f32 %v3459_v45, %v2236_v32  ;;  %v3244_v38 = vpop.f32.mrf.mxu0  ;;  %v3353_v50 = vpop.f32.mrf.mxu1  ;;  %v14380_v45 = vld [vmem:[#allocation31_spill] sm:$0xff]  ;;  %v1635_v32 = vmul.f32 %v10545_v9, %v14383_v4 }
 0x2da   : > { %14372 = vst [vmem:[#allocation93_spill] sm:$0xff] %v11419_v57  ;;  %v3245_v51 = vadd.f32 %v3244_v38, %v14373_v55  ;;  %v1629_v55 = vmul.f32 %v14382_v3, %v13815_v58  ;;  %v1230_v57 = vmul.f32 %v9214_v49, %v14379_v30  ;;  %v1636_v58 = vmul.f32 %v10545_v9, %v14386_v7  ;;  %v8417_v4 = vld [vmem:[%s9051_s16 + $0x28] sm:$0xff]  ;;  %v8081_v9 = vld [vmem:[#allocation8 + $0x2a4] sm:$0xf] }
 0x2db   : > { %v11428_v2 = vadd.f32 %v3568_v24, %v3460_v47  ;;  %v1229_v24 = vmul.f32 %v14380_v45, %v14379_v30  ;;  %v14381_v47 = vld [vmem:[#allocation146_spill] sm:$0xff]  ;;  %v2240_v40 = vunpack.c.h.bf16 %v8417_v4  ;;  %v14394_v4 = vld [vmem:[#allocation160_spill] sm:$0xff] }
 0x2dc   : > { %v3354_v48 = vadd.f32 %v3353_v50, %v3245_v51  ;;  %3283 = vmatmul.bf16.gmra.mxu0 %v10722_v59  ;;  %3392 = vmatmul.bf16.gmra.mxu1 %v10752_v18  ;;  %v1235_v38 = vmul.f32 %v14380_v45, %v14381_v47  ;;  %v14384_v18 = vld [vmem:[#allocation163_spill] sm:$0xff] }
 0x2dd   : > { %14376 = vst [vmem:[#allocation128_spill] sm:$0xff] %v11428_v2  ;;  %3501 = vmatmul.bf16.gmra.mxu2 %v14377_v13  ;;  %3610 = vmatmul.bf16.gmra.mxu3 %v14378_v11  ;;  %v1236_v2 = vmul.f32 %v9214_v49, %v14381_v47  ;;  %v1869_v0 = vadd.f32 %v1629_v55, %v1229_v24  ;;  %v14388_v55 = vld [vmem:[#allocation169_spill] sm:$0xff]  ;;  %v7373_v24 = vld [vmem:[#allocation8 + $0x128] sm:$0xf0] }
 0x2de   : > { %v1875_v30 = vadd.f32 %v1635_v32, %v1235_v38  ;;  %v4105_v14 = vmax.f32 %v3354_v48, 0.0  ;;  %v8049_v38 = vld [vmem:[#allocation8 + $0x1a4] sm:$0xf] }
 0x2df   : > { %v1876_v47 = vadd.f32 %v1636_v58, %v1236_v2 }
 0x2e0   : > { %v3462_v6 = vpop.f32.mrf.mxu2  ;;  %v3571_v51 = vpop.f32.mrf.mxu3  ;;  %v11466_v48 = vpack.c.bf16 %v1875_v30, %v1869_v0  ;;  %v8418_v30 = vld [vmem:[%s9051_s16 + $0x30] sm:$0xff] }
 0x2e1   : > { %v3463_v50 = vadd.f32 %v3462_v6, %v2238_v52  ;;  %v3246_v13 = vpop.f32.mrf.mxu0  ;;  %v3355_v11 = vpop.f32.mrf.mxu1  ;;  %v14385_v52 = vunpack.c.h.bf16 %v11423_v42 }
 0x2e2   : > { %v3247_v59 = vadd.f32 %v3246_v13, %v14384_v18  ;;  %14389 = vst [vmem:[#allocation116_spill] sm:$0xff] %v11466_v48 }
 0x2e3   : > { %v1630_v6 = vmul.f32 %v14382_v3, %v14385_v52  ;;  %v11460_v44 = vadd.f32 %v3571_v51, %v3463_v50  ;;  %v7504_v50 = vor.u32 %v8065_v53, %v7501_v29  ;;  %v7437_v53 = vld [vmem:[#allocation8 + $0x1a8] sm:$0xf0] }
 0x2e4   : > { %v3356_v17 = vadd.f32 %v3355_v11, %v3247_v59  ;;  %v7565_v11 = vld [vmem:[#allocation8 + $0x2a8] sm:$0xf0] }
 0x2e5   : > { %v1870_v13 = vadd.f32 %v1630_v6, %v1230_v57  ;;  %v11471_v57 = vld [vmem:[%s9044_s24 + $0x250] sm:$0xff]  ;;  %v7568_v2 = vor.u32 %v8081_v9, %v7565_v11  ;;  %3884 = vmatpush.bf16.msra.mxu2 %v7504_v50 }
 0x2e6   : > { %v4107_v18 = vmax.f32 %v3356_v17, 0.0  ;;  %14391 = vst [vmem:[#allocation139_spill] sm:$0xff] %v11471_v57  ;;  %v14393_v6 = vld [vmem:[#allocation159_spill] sm:$0xff] }
 0x2e7   : > { %v11468_v17 = vpack.c.bf16 %v1876_v47, %v1870_v13  ;;  %v13821_v13 = vunpack.c.l.bf16 %v11471_v57  ;;  %3993 = vmatpush.bf16.msra.mxu3 %v7568_v2  ;;  %v14396_v11 = vld [vmem:[#allocation167_spill] sm:$0xff]  ;;  %v14397_v2 = vld [vmem:[#allocation166_spill] sm:$0xff] }
 0x2e8   : > { %v11463_v42 = vpack.c.bf16 %v4107_v18, %v4105_v14  ;;  %v3464_v3 = vpop.f32.mrf.mxu2  ;;  %v3573_v52 = vpop.f32.mrf.mxu3  ;;  %v11474_v14 = vld [vmem:[%s9044_s24 + $0x268] sm:$0xff]  ;;  %v2242_v18 = vunpack.c.h.bf16 %v8418_v30 }
 0x2e9   : > { %v3465_v7 = vadd.f32 %v3464_v3, %v2240_v40  ;;  %v3249_v51 = vpop.f32.mrf.mxu0  ;;  %v3358_v59 = vpop.f32.mrf.mxu1  ;;  %14390 = vst [vmem:[#allocation134_spill] sm:$0xff] %v11468_v17  ;;  %v8033_v40 = vld [vmem:[#allocation8 + $0x124] sm:$0xf]  ;;  %v13820_v47 = vunpack.c.l.bf16 %v11474_v14  ;;  %v7440_v3 = vor.u32 %v8049_v38, %v7437_v53  ;;  %v13830_v9 = vunpack.c.h.bf16 %v11474_v14 }
 0x2ea   : > { %14387 = vst [vmem:[#allocation115_spill] sm:$0xff] %v11463_v42  ;;  %v3250_v32 = vadd.f32 %v3249_v51, %v14388_v55  ;;  %v7376_v0 = vor.u32 %v8033_v40, %v7373_v24  ;;  %v1247_v55 = vmul.f32 %v14380_v45, %v14396_v11  ;;  %v1641_v38 = vmul.f32 %v10592_v54, %v13821_v13 }
 0x2eb   : > { %14392 = vst [vmem:[#allocation131_spill] sm:$0xff] %v11474_v14  ;;  %v11476_v58 = vadd.f32 %v3573_v52, %v3465_v7  ;;  %v13826_v52 = vunpack.c.h.bf16 %v11471_v57  ;;  %3775 = vmatpush.bf16.msra.mxu1 %v7440_v3 }
 0x2ec   : > { %v3359_v29 = vadd.f32 %v3358_v59, %v3250_v32  ;;  %3288 = vmatmul.bf16.gmra.mxu0 %v11466_v48  ;;  %3397 = vmatmul.bf16.gmra.mxu1 %v11468_v17  ;;  %v14395_v59 = vld [vmem:[#allocation155_spill] sm:$0xff] }
 0x2ed   : > { %3506 = vmatmul.bf16.gmra.mxu2 %v14393_v6  ;;  %3615 = vmatmul.bf16.gmra.mxu3 %v14394_v4  ;;  %v1241_v50 = vmul.f32 %v14380_v45, %v14395_v59  ;;  %v1242_v53 = vmul.f32 %v9214_v49, %v14395_v59  ;;  %v1248_v4 = vmul.f32 %v9214_v49, %v14396_v11 }
 0x2ee   : > { %3666 = vmatpush.bf16.msra.mxu0 %v7376_v0  ;;  %v1647_v0 = vmul.f32 %v14397_v2, %v13820_v47  ;;  %v1642_v30 = vmul.f32 %v10592_v54, %v13826_v52  ;;  %v8419_v47 = vld [vmem:[%s9051_s16 + $0x38] sm:$0xff] }
 0x2ef   : > { %v2244_v13 = vunpack.c.h.bf16 %v8419_v47  ;;  %v1881_v59 = vadd.f32 %v1641_v38, %v1241_v50  ;;  %v11519_v50 = vld [vmem:[%s9044_s24 + $0x280] sm:$0xff] }
 0x2f0   : > { %v3467_v7 = vpop.f32.mrf.mxu2  ;;  %v3576_v51 = vpop.f32.mrf.mxu3  ;;  %v1882_v11 = vadd.f32 %v1642_v30, %v1242_v53  ;;  %14401 = vst [vmem:[#allocation144_spill] sm:$0xff] %v11519_v50  ;;  %v13837_v53 = vunpack.c.h.bf16 %v11519_v50 }
 0x2f1   : > { %v3468_v32 = vadd.f32 %v3467_v7, %v2242_v18  ;;  %v3251_v40 = vpop.f32.mrf.mxu0  ;;  %v3360_v24 = vpop.f32.mrf.mxu1  ;;  %v1648_v18 = vmul.f32 %v14397_v2, %v13830_v9 }
 0x2f2   : > { %v3252_v6 = vadd.f32 %v3251_v40, %v10710_v1  ;;  %v1887_v1 = vadd.f32 %v1647_v0, %v1247_v55  ;;  %v4109_v40 = vmax.f32 %v3359_v29, 0.0  ;;  %v11522_v29 = vld [vmem:[%s9044_s24 + $0x298] sm:$0xff] }
 0x2f3   : > { %v11508_v3 = vadd.f32 %v3576_v51, %v3468_v32  ;;  %v1888_v17 = vadd.f32 %v1648_v18, %v1248_v4  ;;  %14402 = vst [vmem:[#allocation147_spill] sm:$0xff] %v11522_v29  ;;  %v13831_v0 = vunpack.c.l.bf16 %v11522_v29  ;;  %v14405_v4 = vld [vmem:[#allocation168_spill] sm:$0xff]  ;;  %v14406_v18 = vld [vmem:[#allocation173_spill] sm:$0xff] }
 0x2f4   : > { %v3361_v7 = vadd.f32 %v3360_v24, %v3252_v6  ;;  %v11514_v24 = vpack.c.bf16 %v1887_v1, %v1881_v59  ;;  %v1253_v30 = vmul.f32 %v14380_v45, %v14405_v4 }
 0x2f5   : > { %v11516_v47 = vpack.c.bf16 %v1888_v17, %v1882_v11  ;;  %v13829_v17 = vunpack.c.l.bf16 %v11519_v50 }
 0x2f6   : > { %v4111_v42 = vmax.f32 %v3361_v7, 0.0  ;;  %14399 = vst [vmem:[#allocation149_spill] sm:$0xff] %v11514_v24 }
 0x2f7   : > { %14400 = vst [vmem:[#allocation156_spill] sm:$0xff] %v11516_v47 }
 0x2f8   : > { %v11511_v57 = vpack.c.bf16 %v4111_v42, %v4109_v40  ;;  %v3469_v54 = vpop.f32.mrf.mxu2  ;;  %v3578_v52 = vpop.f32.mrf.mxu3  ;;  %v14407_v40 = vld [vmem:[#allocation180_spill] sm:$0xff] }
 0x2f9   : > { %v3470_v14 = vadd.f32 %v3469_v54, %v2244_v13  ;;  %v3254_v2 = vpop.f32.mrf.mxu0  ;;  %v3363_v51 = vpop.f32.mrf.mxu1  ;;  %v14404_v13 = vld [vmem:[#allocation172_spill] sm:$0xff]  ;;  %v1653_v11 = vmul.f32 %v14407_v40, %v13829_v17  ;;  %v14408_v54 = vld [vmem:[#allocation179_spill] sm:$0xff] }
 0x2fa   : > { %14398 = vst [vmem:[#allocation132_spill] sm:$0xff] %v11511_v57  ;;  %v3255_v32 = vadd.f32 %v3254_v2, %v10769_v36  ;;  %v8420_v36 = vld [vmem:[%s9051_s16 + $0x40] sm:$0xff]  ;;  %v1659_v2 = vmul.f32 %v14408_v54, %v13831_v0  ;;  %v8421_v0 = vld [vmem:[%s9051_s16 + $0x48] sm:$0xff] }
 0x2fb   : > { %v11524_v55 = vadd.f32 %v3578_v52, %v3470_v14  ;;  %v2246_v38 = vunpack.c.h.bf16 %v8420_v36  ;;  %v13840_v14 = vunpack.c.h.bf16 %v11522_v29  ;;  %v1260_v36 = vmul.f32 %v9214_v49, %v14406_v18 }
 0x2fc   : > { %v3364_v42 = vadd.f32 %v3363_v51, %v3255_v32  ;;  %3293 = vmatmul.bf16.gmra.mxu0 %v11514_v24  ;;  %3402 = vmatmul.bf16.gmra.mxu1 %v11516_v47  ;;  %v1254_v51 = vmul.f32 %v9214_v49, %v14405_v4  ;;  %v14409_v32 = vld [vmem:[#allocation188_spill] sm:$0xff]  ;;  %v2248_v57 = vunpack.c.h.bf16 %v8421_v0  ;;  %v1893_v4 = vadd.f32 %v1653_v11, %v1253_v30 }
 0x2fd   : > { %14403 = vst [vmem:[#allocation141_spill] sm:$0xff] %v11524_v55  ;;  %3511 = vmatmul.bf16.gmra.mxu2 %v10680_v60  ;;  %3620 = vmatmul.bf16.gmra.mxu3 %v14404_v13  ;;  %v1259_v60 = vmul.f32 %v14380_v45, %v14406_v18  ;;  %v11567_v30 = vld [vmem:[%s9044_s24 + $0x2b0] sm:$0xff] }
 0x2fe   : > { %14415 = vst [vmem:[#allocation169_spill] sm:$0xff] %v11567_v30  ;;  %v8422_v11 = vld [vmem:[%s9051_s16 + $0x50] sm:$0xff] }
 0x300   : > { %v3472_v52 = vpop.f32.mrf.mxu2  ;;  %v3581_v6 = vpop.f32.mrf.mxu3 }
 0x301   : > { %v3473_v7 = vadd.f32 %v3472_v52, %v2246_v38  ;;  %v3256_v59 = vpop.f32.mrf.mxu0  ;;  %v3365_v1 = vpop.f32.mrf.mxu1  ;;  %v1654_v38 = vmul.f32 %v14407_v40, %v13837_v53  ;;  %v1660_v52 = vmul.f32 %v14408_v54, %v13840_v14  ;;  %v14422_v14 = vld [vmem:[#allocation193_spill] sm:$0xff] }
 0x302   : > { %v3257_v13 = vadd.f32 %v3256_v59, %v14409_v32  ;;  %v1899_v59 = vadd.f32 %v1659_v2, %v1259_v60  ;;  %v4113_v32 = vmax.f32 %v3364_v42, 0.0  ;;  %v11570_v42 = vld [vmem:[%s9044_s24 + $0x2c8] sm:$0xff]  ;;  %v2250_v2 = vunpack.c.h.bf16 %v8422_v11 }
 0x303   : > { %v11556_v17 = vadd.f32 %v3581_v6, %v3473_v7  ;;  %v1894_v18 = vadd.f32 %v1654_v38, %v1254_v51  ;;  %v1900_v24 = vadd.f32 %v1660_v52, %v1260_v36  ;;  %v14412_v7 = vld [vmem:[#allocation196_spill] sm:$0xff]  ;;  %14416 = vst [vmem:[#allocation159_spill] sm:$0xff] %v11570_v42  ;;  %v14419_v60 = vld [vmem:[#allocation187_spill] sm:$0xff]  ;;  %v13845_v51 = vunpack.c.l.bf16 %v11570_v42  ;;  %v7493_v38 = vld [vmem:[#allocation8 + $0x218] sm:$0xf0] }
 0x304   : > { %v3366_v9 = vadd.f32 %v3365_v1, %v3257_v13  ;;  %v11562_v13 = vpack.c.bf16 %v1899_v59, %v1893_v4  ;;  %v8079_v4 = vld [vmem:[#allocation8 + $0x294] sm:$0xf]  ;;  %v7557_v59 = vld [vmem:[#allocation8 + $0x298] sm:$0xf0] }
 0x305   : > { %14410 = vst [vmem:[#allocation31_spill] sm:$0xff] %v11556_v17  ;;  %v11564_v0 = vpack.c.bf16 %v1900_v24, %v1894_v18  ;;  %v13843_v24 = vunpack.c.l.bf16 %v11567_v30 }
 0x306   : > { %v4115_v47 = vmax.f32 %v3366_v9, 0.0  ;;  %14413 = vst [vmem:[#allocation153_spill] sm:$0xff] %v11562_v13 }
 0x307   : > { %14414 = vst [vmem:[#allocation163_spill] sm:$0xff] %v11564_v0 }
 0x308   : > { %v11559_v50 = vpack.c.bf16 %v4115_v47, %v4113_v32  ;;  %v3474_v40 = vpop.f32.mrf.mxu2  ;;  %v3583_v53 = vpop.f32.mrf.mxu3 }
 0x309   : > { %v3475_v29 = vadd.f32 %v3474_v40, %v2248_v57  ;;  %v3259_v54 = vpop.f32.mrf.mxu0  ;;  %v3368_v6 = vpop.f32.mrf.mxu1  ;;  %v14418_v57 = vld [vmem:[#allocation186_spill] sm:$0xff] }
 0x30a   : > { %14411 = vst [vmem:[#allocation146_spill] sm:$0xff] %v11559_v50  ;;  %v3260_v1 = vadd.f32 %v3259_v54, %v14412_v7  ;;  %v14420_v40 = vld [vmem:[#allocation182_spill] sm:$0xff] }
 0x30b   : > { %v11572_v9 = vadd.f32 %v3583_v53, %v3475_v29  ;;  %v8063_v53 = vld [vmem:[#allocation8 + $0x214] sm:$0xf]  ;;  %v1265_v54 = vmul.f32 %v14380_v45, %v14420_v40  ;;  %v1665_v29 = vmul.f32 %v14422_v14, %v13843_v24  ;;  %v1266_v36 = vmul.f32 %v9214_v49, %v14420_v40  ;;  %v14424_v50 = vld [vmem:[#allocation202_spill] sm:$0xff] }
 0x30c   : > { %v3369_v47 = vadd.f32 %v3368_v6, %v3260_v1  ;;  %3298 = vmatmul.bf16.gmra.mxu0 %v11562_v13  ;;  %3407 = vmatmul.bf16.gmra.mxu1 %v11564_v0  ;;  %v7496_v52 = vor.u32 %v8063_v53, %v7493_v38  ;;  %v14421_v6 = vld [vmem:[#allocation183_spill] sm:$0xff]  ;;  %v7560_v1 = vor.u32 %v8079_v4, %v7557_v59  ;;  %v14423_v53 = vld [vmem:[#allocation194_spill] sm:$0xff]  ;;  %v14425_v4 = vunpack.c.h.bf16 %v11567_v30  ;;  %v8047_v40 = vld [vmem:[#allocation8 + $0x194] sm:$0xf] }
 0x30d   : > { %14417 = vst [vmem:[#allocation160_spill] sm:$0xff] %v11572_v9  ;;  %3516 = vmatmul.bf16.gmra.mxu2 %v14418_v57  ;;  %3625 = vmatmul.bf16.gmra.mxu3 %v14419_v60  ;;  %v1271_v7 = vmul.f32 %v14380_v45, %v14421_v6  ;;  %v1671_v38 = vmul.f32 %v14423_v53, %v13845_v51  ;;  %v8031_v51 = vld [vmem:[#allocation8 + $0x114] sm:$0xf]  ;;  %v7365_v9 = vld [vmem:[#allocation8 + $0x118] sm:$0xf0] }
 0x30e   : > { %3885 = vmatpush.bf16.msra.mxu2 %v7496_v52  ;;  %v1666_v59 = vmul.f32 %v14422_v14, %v14425_v4  ;;  %3994 = vmatpush.bf16.msra.mxu3 %v7560_v1  ;;  %v7368_v17 = vor.u32 %v8031_v51, %v7365_v9  ;;  %v4117_v14 = vmax.f32 %v3369_v47, 0.0  ;;  %v11615_v47 = vld [vmem:[%s9044_s24 + $0x2e0] sm:$0xff] }
 0x30f   : > { %v1911_v48 = vadd.f32 %v1671_v38, %v1271_v7  ;;  %14431 = vst [vmem:[#allocation172_spill] sm:$0xff] %v11615_v47  ;;  %v8424_v38 = vld [vmem:[%s9051_s16 + $0x60] sm:$0xff] }
 0x310   : > { %v3477_v32 = vpop.f32.mrf.mxu2  ;;  %v3586_v18 = vpop.f32.mrf.mxu3  ;;  %3667 = vmatpush.bf16.msra.mxu0 %v7368_v17 }
 0x311   : > { %v3478_v57 = vadd.f32 %v3477_v32, %v2250_v2  ;;  %v3261_v60 = vpop.f32.mrf.mxu0  ;;  %v3370_v11 = vpop.f32.mrf.mxu1  ;;  %v1272_v2 = vmul.f32 %v9214_v49, %v14421_v6  ;;  %v14426_v32 = vunpack.c.h.bf16 %v11570_v42  ;;  %v1905_v6 = vadd.f32 %v1665_v29, %v1265_v54 }
 0x312   : > { %v3262_v0 = vadd.f32 %v3261_v60, %v14424_v50  ;;  %v7429_v50 = vld [vmem:[#allocation8 + $0x198] sm:$0xf0]  ;;  %v1906_v42 = vadd.f32 %v1666_v59, %v1266_v36  ;;  %v13858_v59 = vunpack.c.h.bf16 %v11615_v47 }
 0x313   : > { %v1672_v24 = vmul.f32 %v14423_v53, %v14426_v32  ;;  %v11604_v13 = vadd.f32 %v3586_v18, %v3478_v57  ;;  %v8423_v60 = vld [vmem:[%s9051_s16 + $0x58] sm:$0xff]  ;;  %v7432_v30 = vor.u32 %v8047_v40, %v7429_v50  ;;  %v11610_v54 = vpack.c.bf16 %v1911_v48, %v1905_v6  ;;  %v14435_v50 = vld [vmem:[#allocation195_spill] sm:$0xff] }
 0x314   : > { %v3371_v52 = vadd.f32 %v3370_v11, %v3262_v0  ;;  %v2252_v55 = vunpack.c.h.bf16 %v8423_v60  ;;  %v14428_v11 = vld [vmem:[#allocation210_spill] sm:$0xff]  ;;  %v11618_v36 = vld [vmem:[%s9044_s24 + $0x2f8] sm:$0xff]  ;;  %v2254_v48 = vunpack.c.h.bf16 %v8424_v38  ;;  %v1277_v60 = vmul.f32 %v14380_v45, %v14435_v50 }
 0x315   : > { %v1912_v53 = vadd.f32 %v1672_v24, %v1272_v2  ;;  %3776 = vmatpush.bf16.msra.mxu1 %v7432_v30  ;;  %14429 = vst [vmem:[#allocation167_spill] sm:$0xff] %v11610_v54  ;;  %v14434_v24 = vld [vmem:[#allocation200_spill] sm:$0xff]  ;;  %v13852_v2 = vunpack.c.l.bf16 %v11618_v36  ;;  %v13861_v32 = vunpack.c.h.bf16 %v11618_v36  ;;  %v14436_v6 = vld [vmem:[#allocation201_spill] sm:$0xff] }
 0x316   : > { %v4119_v4 = vmax.f32 %v3371_v52, 0.0  ;;  %14432 = vst [vmem:[#allocation168_spill] sm:$0xff] %v11618_v36 }
 0x317   : > { %v11612_v7 = vpack.c.bf16 %v1912_v53, %v1906_v42  ;;  %v13851_v42 = vunpack.c.l.bf16 %v11615_v47 }
 0x318   : > { %v11607_v18 = vpack.c.bf16 %v4119_v4, %v4117_v14  ;;  %v3479_v1 = vpop.f32.mrf.mxu2  ;;  %v3588_v0 = vpop.f32.mrf.mxu3  ;;  %v1283_v14 = vmul.f32 %v14380_v45, %v14436_v6 }
 0x319   : > { %v3480_v9 = vadd.f32 %v3479_v1, %v2252_v55  ;;  %v3264_v51 = vpop.f32.mrf.mxu0  ;;  %v3373_v57 = vpop.f32.mrf.mxu1  ;;  %14430 = vst [vmem:[#allocation166_spill] sm:$0xff] %v11612_v7  ;;  %v14433_v55 = vld [vmem:[#allocation199_spill] sm:$0xff] }
 0x31a   : > { %14427 = vst [vmem:[#allocation155_spill] sm:$0xff] %v11607_v18  ;;  %v3265_v29 = vadd.f32 %v3264_v51, %v14428_v11  ;;  %v14438_v51 = vld [vmem:[#allocation208_spill] sm:$0xff]  ;;  %v1278_v11 = vmul.f32 %v9214_v49, %v14435_v50 }
 0x31b   : > { %v11620_v17 = vadd.f32 %v3588_v0, %v3480_v9  ;;  %v14437_v0 = vld [vmem:[#allocation207_spill] sm:$0xff] }
 0x31c   : > { %v3374_v30 = vadd.f32 %v3373_v57, %v3265_v29  ;;  %3303 = vmatmul.bf16.gmra.mxu0 %v11610_v54  ;;  %3412 = vmatmul.bf16.gmra.mxu1 %v11612_v7  ;;  %v1677_v9 = vmul.f32 %v14437_v0, %v13851_v42  ;;  %v1683_v57 = vmul.f32 %v14438_v51, %v13852_v2  ;;  %v14439_v29 = vld [vmem:[#allocation215_spill] sm:$0xff] }
 0x31d   : > { %3521 = vmatmul.bf16.gmra.mxu2 %v14433_v55  ;;  %3630 = vmatmul.bf16.gmra.mxu3 %v14434_v24  ;;  %v1284_v24 = vmul.f32 %v9214_v49, %v14436_v6  ;;  %v1678_v38 = vmul.f32 %v14437_v0, %v13858_v59  ;;  %v8425_v2 = vld [vmem:[%s9051_s16 + $0x68] sm:$0xff] }
 0x31e   : > { %v2256_v18 = vunpack.c.h.bf16 %v8425_v2  ;;  %v1917_v50 = vadd.f32 %v1677_v9, %v1277_v60  ;;  %v11663_v60 = vld [vmem:[%s9044_s24 + $0x310] sm:$0xff] }
 0x31f   : > { %v1918_v6 = vadd.f32 %v1678_v38, %v1278_v11  ;;  %14445 = vst [vmem:[#allocation196_spill] sm:$0xff] %v11663_v60  ;;  %v8426_v9 = vld [vmem:[%s9051_s16 + $0x70] sm:$0xff] }
 0x320   : > { %v3482_v40 = vpop.f32.mrf.mxu2  ;;  %v3591_v52 = vpop.f32.mrf.mxu3 }
 0x321   : > { %v3483_v4 = vadd.f32 %v3482_v40, %v2254_v48  ;;  %v3266_v53 = vpop.f32.mrf.mxu0  ;;  %v3375_v1 = vpop.f32.mrf.mxu1  ;;  %v1684_v48 = vmul.f32 %v14438_v51, %v13861_v32 }
 0x322   : > { %v3267_v55 = vadd.f32 %v3266_v53, %v14439_v29  ;;  %v1923_v53 = vadd.f32 %v1683_v57, %v1283_v14  ;;  %v4121_v29 = vmax.f32 %v3374_v30, 0.0  ;;  %v11666_v30 = vld [vmem:[%s9044_s24 + $0x328] sm:$0xff]  ;;  %v2258_v57 = vunpack.c.h.bf16 %v8426_v9 }
 0x323   : > { %v11652_v40 = vadd.f32 %v3591_v52, %v3483_v4  ;;  %v1924_v54 = vadd.f32 %v1684_v48, %v1284_v24  ;;  %v14442_v4 = vld [vmem:[#allocation223_spill] sm:$0xff]  ;;  %14446 = vst [vmem:[#allocation186_spill] sm:$0xff] %v11666_v30  ;;  %v14449_v14 = vld [vmem:[#allocation214_spill] sm:$0xff]  ;;  %v13864_v11 = vunpack.c.l.bf16 %v11666_v30  ;;  %v13869_v24 = vunpack.c.h.bf16 %v11663_v60  ;;  %v14450_v48 = vld [vmem:[#allocation209_spill] sm:$0xff] }
 0x324   : > { %v3376_v42 = vadd.f32 %v3375_v1, %v3267_v55  ;;  %v11658_v55 = vpack.c.bf16 %v1923_v53, %v1917_v50  ;;  %v1289_v50 = vmul.f32 %v14380_v45, %v14450_v48  ;;  %v14451_v53 = vld [vmem:[#allocation220_spill] sm:$0xff] }
 0x325   : > { %14440 = vst [vmem:[#allocation173_spill] sm:$0xff] %v11652_v40  ;;  %v11660_v2 = vpack.c.bf16 %v1924_v54, %v1918_v6  ;;  %v13862_v54 = vunpack.c.l.bf16 %v11663_v60  ;;  %v1296_v32 = vmul.f32 %v9214_v49, %v14451_v53  ;;  %v7485_v40 = vld [vmem:[#allocation8 + $0x208] sm:$0xf0] }
 0x326   : > { %v4123_v7 = vmax.f32 %v3376_v42, 0.0  ;;  %14443 = vst [vmem:[#allocation179_spill] sm:$0xff] %v11658_v55 }
 0x327   : > { %14444 = vst [vmem:[#allocation188_spill] sm:$0xff] %v11660_v2 }
 0x328   : > { %v11655_v47 = vpack.c.bf16 %v4123_v7, %v4121_v29  ;;  %v3484_v0 = vpop.f32.mrf.mxu2  ;;  %v3593_v59 = vpop.f32.mrf.mxu3  ;;  %v1295_v29 = vmul.f32 %v14380_v45, %v14451_v53 }
 0x329   : > { %v3485_v36 = vadd.f32 %v3484_v0, %v2256_v18  ;;  %v3269_v51 = vpop.f32.mrf.mxu0  ;;  %v3378_v52 = vpop.f32.mrf.mxu1  ;;  %v14448_v18 = vld [vmem:[#allocation213_spill] sm:$0xff] }
 0x32a   : > { %14441 = vst [vmem:[#allocation180_spill] sm:$0xff] %v11655_v47  ;;  %v3270_v1 = vadd.f32 %v3269_v51, %v14442_v4  ;;  %v14452_v4 = vld [vmem:[#allocation221_spill] sm:$0xff] }
 0x32b   : > { %v11668_v42 = vadd.f32 %v3593_v59, %v3485_v36  ;;  %v13872_v36 = vunpack.c.h.bf16 %v11666_v30  ;;  %v8061_v30 = vld [vmem:[#allocation8 + $0x204] sm:$0xf] }
 0x32c   : > { %v3379_v7 = vadd.f32 %v3378_v52, %v3270_v1  ;;  %3308 = vmatmul.bf16.gmra.mxu0 %v11658_v55  ;;  %3417 = vmatmul.bf16.gmra.mxu1 %v11660_v2  ;;  %v1689_v52 = vmul.f32 %v10954_v21, %v13862_v54  ;;  %v1695_v1 = vmul.f32 %v14452_v4, %v13864_v11  ;;  %v8427_v11 = vld [vmem:[%s9051_s16 + $0x78] sm:$0xff] }
 0x32d   : > { %14447 = vst [vmem:[#allocation187_spill] sm:$0xff] %v11668_v42  ;;  %3526 = vmatmul.bf16.gmra.mxu2 %v14448_v18  ;;  %3635 = vmatmul.bf16.gmra.mxu3 %v14449_v14  ;;  %v1290_v18 = vmul.f32 %v9214_v49, %v14450_v48  ;;  %v14453_v14 = vld [vmem:[#allocation231_spill] sm:$0xff]  ;;  %v2260_v2 = vunpack.c.h.bf16 %v8427_v11 }
 0x32e   : > { %v1929_v55 = vadd.f32 %v1689_v52, %v1289_v50  ;;  %v1935_v48 = vadd.f32 %v1695_v1, %v1295_v29  ;;  %v4125_v42 = vmax.f32 %v3379_v7, 0.0  ;;  %v7549_v11 = vld [vmem:[#allocation8 + $0x288] sm:$0xf0]  ;;  %v14455_v50 = vld [vmem:[#allocation236_spill] sm:$0xff] }
 0x330   : > { %v3487_v59 = vpop.f32.mrf.mxu2  ;;  %v3596_v38 = vpop.f32.mrf.mxu3  ;;  %v11706_v7 = vpack.c.bf16 %v1935_v48, %v1929_v55  ;;  %v14462_v48 = vld [vmem:[#allocation228_spill] sm:$0xff] }
 0x331   : > { %v3488_v6 = vadd.f32 %v3487_v59, %v2258_v57  ;;  %v3271_v0 = vpop.f32.mrf.mxu0  ;;  %v3380_v51 = vpop.f32.mrf.mxu1  ;;  %v1690_v57 = vmul.f32 %v10954_v21, %v13869_v24  ;;  %v1696_v59 = vmul.f32 %v14452_v4, %v13872_v36  ;;  %v8077_v4 = vld [vmem:[#allocation8 + $0x284] sm:$0xf] }
 0x332   : > { %v3272_v9 = vadd.f32 %v3271_v0, %v14453_v14  ;;  %14456 = vst [vmem:[#allocation183_spill] sm:$0xff] %v11706_v7  ;;  %v7552_v52 = vor.u32 %v8077_v4, %v7549_v11 }
 0x333   : > { %v11700_v54 = vadd.f32 %v3596_v38, %v3488_v6  ;;  %v1930_v14 = vadd.f32 %v1690_v57, %v1290_v18  ;;  %v1936_v53 = vadd.f32 %v1696_v59, %v1296_v32  ;;  %v11711_v32 = vld [vmem:[%s9044_s24 + $0x340] sm:$0xff]  ;;  %v7357_v18 = vld [vmem:[#allocation8 + $0x108] sm:$0xf0] }
 0x334   : > { %v3381_v47 = vadd.f32 %v3380_v51, %v3272_v9  ;;  %v7488_v9 = vor.u32 %v8061_v30, %v7485_v40  ;;  %14458 = vst [vmem:[#allocation194_spill] sm:$0xff] %v11711_v32  ;;  %v8045_v57 = vld [vmem:[#allocation8 + $0x184] sm:$0xf]  ;;  %v7421_v30 = vld [vmem:[#allocation8 + $0x188] sm:$0xf0]  ;;  %v13880_v4 = vunpack.c.h.bf16 %v11711_v32  ;;  %3995 = vmatpush.bf16.msra.mxu3 %v7552_v52 }
 0x335   : > { %v14461_v59 = vld [vmem:[#allocation227_spill] sm:$0xff]  ;;  %v14466_v52 = vld [vmem:[#allocation234_spill] sm:$0xff] }
 0x336   : > { %v4127_v0 = vmax.f32 %v3381_v47, 0.0  ;;  %v11708_v47 = vpack.c.bf16 %v1936_v53, %v1930_v14  ;;  %3886 = vmatpush.bf16.msra.mxu2 %v7488_v9  ;;  %v14463_v9 = vld [vmem:[#allocation222_spill] sm:$0xff] }
 0x337   : > { %v1301_v11 = vmul.f32 %v14380_v45, %v14463_v9 }
 0x338   : > { %v11703_v60 = vpack.c.bf16 %v4127_v0, %v4125_v42  ;;  %v3489_v21 = vpop.f32.mrf.mxu2  ;;  %v3598_v24 = vpop.f32.mrf.mxu3  ;;  %14457 = vst [vmem:[#allocation193_spill] sm:$0xff] %v11708_v47  ;;  %v11714_v42 = vld [vmem:[%s9044_s24 + $0x358] sm:$0xff]  ;;  %v8428_v0 = vld [vmem:[%s9051_s16 + $0x80] sm:$0xff] }
 0x339   : > { %v3490_v38 = vadd.f32 %v3489_v21, %v2260_v2  ;;  %v3274_v6 = vpop.f32.mrf.mxu0  ;;  %v3383_v51 = vpop.f32.mrf.mxu1  ;;  %14459 = vst [vmem:[#allocation202_spill] sm:$0xff] %v11714_v42  ;;  %v8029_v2 = vld [vmem:[#allocation8 + $0x104] sm:$0xf]  ;;  %v2262_v14 = vunpack.c.h.bf16 %v8428_v0  ;;  %v13875_v53 = vunpack.c.l.bf16 %v11714_v42  ;;  %v7424_v21 = vor.u32 %v8045_v57, %v7421_v30  ;;  %v14465_v57 = vld [vmem:[#allocation235_spill] sm:$0xff] }
 0x33a   : > { %14454 = vst [vmem:[#allocation182_spill] sm:$0xff] %v11703_v60  ;;  %v3275_v29 = vadd.f32 %v3274_v6, %v14455_v50  ;;  %v7360_v55 = vor.u32 %v8029_v2, %v7357_v18  ;;  %v14464_v50 = vld [vmem:[#allocation226_spill] sm:$0xff]  ;;  %v14467_v0 = vld [vmem:[#allocation243_spill] sm:$0xff] }
 0x33b   : > { %v11716_v1 = vadd.f32 %v3598_v24, %v3490_v38  ;;  %v13873_v24 = vunpack.c.l.bf16 %v11711_v32  ;;  %v13884_v38 = vunpack.c.h.bf16 %v11714_v42  ;;  %3777 = vmatpush.bf16.msra.mxu1 %v7424_v21  ;;  %v1308_v36 = vmul.f32 %v9214_v49, %v14464_v50 }
 0x33c   : > { %v3384_v40 = vadd.f32 %v3383_v51, %v3275_v29  ;;  %3313 = vmatmul.bf16.gmra.mxu0 %v11706_v7  ;;  %3422 = vmatmul.bf16.gmra.mxu1 %v11708_v47  ;;  %v1307_v29 = vmul.f32 %v14380_v45, %v14464_v50 }
 0x33d   : > { %14460 = vst [vmem:[#allocation210_spill] sm:$0xff] %v11716_v1  ;;  %3531 = vmatmul.bf16.gmra.mxu2 %v14461_v59  ;;  %3640 = vmatmul.bf16.gmra.mxu3 %v14462_v48  ;;  %v1701_v30 = vmul.f32 %v14465_v57, %v13873_v24  ;;  %v1302_v48 = vmul.f32 %v9214_v49, %v14463_v9 }
 0x33e   : > { %3668 = vmatpush.bf16.msra.mxu0 %v7360_v55  ;;  %v1707_v55 = vmul.f32 %v14466_v52, %v13875_v53  ;;  %v8429_v53 = vld [vmem:[%s9051_s16 + $0x88] sm:$0xff] }
 0x33f   : > { %v2264_v47 = vunpack.c.h.bf16 %v8429_v53  ;;  %v1941_v9 = vadd.f32 %v1701_v30, %v1301_v11  ;;  %v11759_v11 = vld [vmem:[%s9044_s24 + $0x370] sm:$0xff] }
 0x340   : > { %v3492_v6 = vpop.f32.mrf.mxu2  ;;  %v3601_v51 = vpop.f32.mrf.mxu3  ;;  %14472 = vst [vmem:[#allocation201_spill] sm:$0xff] %v11759_v11 }
 0x341   : > { %v3493_v2 = vadd.f32 %v3492_v6, %v2262_v14  ;;  %v3276_v18 = vpop.f32.mrf.mxu0  ;;  %v3385_v59 = vpop.f32.mrf.mxu1  ;;  %v1702_v14 = vmul.f32 %v14465_v57, %v13880_v4  ;;  %v1708_v6 = vmul.f32 %v14466_v52, %v13884_v38 }
 0x342   : > { %v3277_v21 = vadd.f32 %v3276_v18, %v14467_v0  ;;  %v1947_v18 = vadd.f32 %v1707_v55, %v1307_v29  ;;  %v4129_v0 = vmax.f32 %v3384_v40, 0.0  ;;  %v11762_v40 = vld [vmem:[%s9044_s24 + $0x388] sm:$0xff]  ;;  %v8430_v29 = vld [vmem:[%s9051_s16 + $0x90] sm:$0xff] }
 0x343   : > { %v11748_v24 = vadd.f32 %v3601_v51, %v3493_v2  ;;  %v1942_v50 = vadd.f32 %v1702_v14, %v1302_v48  ;;  %v1948_v1 = vadd.f32 %v1708_v6, %v1308_v36  ;;  %v14469_v2 = vld [vmem:[#allocation249_spill] sm:$0xff]  ;;  %14473 = vst [vmem:[#allocation207_spill] sm:$0xff] %v11762_v40  ;;  %v2266_v30 = vunpack.c.h.bf16 %v8430_v29 }
 0x344   : > { %v3386_v60 = vadd.f32 %v3385_v59, %v3277_v21  ;;  %v11754_v21 = vpack.c.bf16 %v1947_v18, %v1941_v9  ;;  %v13885_v55 = vunpack.c.l.bf16 %v11762_v40  ;;  %v13891_v48 = vunpack.c.h.bf16 %v11759_v11  ;;  %v14476_v6 = vld [vmem:[#allocation237_spill] sm:$0xff]  ;;  %v14477_v18 = vld [vmem:[#allocation238_spill] sm:$0xff] }
 0x345   : > { %v11756_v53 = vpack.c.bf16 %v1948_v1, %v1942_v50  ;;  %v13883_v1 = vunpack.c.l.bf16 %v11759_v11  ;;  %v1313_v9 = vmul.f32 %v14380_v45, %v14476_v6  ;;  %v1320_v29 = vmul.f32 %v9214_v49, %v14477_v18 }
 0x346   : > { %v4131_v7 = vmax.f32 %v3386_v60, 0.0  ;;  %14470 = vst [vmem:[#allocation200_spill] sm:$0xff] %v11754_v21 }
 0x347   : > { %14471 = vst [vmem:[#allocation195_spill] sm:$0xff] %v11756_v53 }
 0x348   : > { %v11751_v32 = vpack.c.bf16 %v4131_v7, %v4129_v0  ;;  %v3494_v57 = vpop.f32.mrf.mxu2  ;;  %v3603_v4 = vpop.f32.mrf.mxu3  ;;  %v14474_v7 = vld [vmem:[#allocation241_spill] sm:$0xff]  ;;  %v1319_v0 = vmul.f32 %v14380_v45, %v14477_v18 }
 0x349   : > { %v3495_v42 = vadd.f32 %v3494_v57, %v2264_v47  ;;  %v3279_v52 = vpop.f32.mrf.mxu0  ;;  %v3388_v51 = vpop.f32.mrf.mxu1  ;;  %v14475_v47 = vld [vmem:[#allocation242_spill] sm:$0xff] }
 0x34a   : > { %14468 = vst [vmem:[#allocation199_spill] sm:$0xff] %v11751_v32  ;;  %v3280_v59 = vadd.f32 %v3279_v52, %v14469_v2  ;;  %v1719_v2 = vmul.f32 %v11165_v39, %v13885_v55  ;;  %v8431_v55 = vld [vmem:[%s9051_s16 + $0x98] sm:$0xff] }
 0x34b   : > { %v11764_v60 = vadd.f32 %v3603_v4, %v3495_v42  ;;  %v13894_v42 = vunpack.c.h.bf16 %v11762_v40  ;;  %v2268_v32 = vunpack.c.h.bf16 %v8431_v55 }
 0x34c   : > { %v3389_v36 = vadd.f32 %v3388_v51, %v3280_v59  ;;  %3318 = vmatmul.bf16.gmra.mxu0 %v11754_v21  ;;  %3427 = vmatmul.bf16.gmra.mxu1 %v11756_v53  ;;  %v1713_v51 = vmul.f32 %v11159_v27, %v13883_v1  ;;  %v1314_v59 = vmul.f32 %v9214_v49, %v14476_v6 }
 0x34d   : > { %3536 = vmatmul.bf16.gmra.mxu2 %v14474_v7  ;;  %3645 = vmatmul.bf16.gmra.mxu3 %v14475_v47  ;;  %v14478_v7 = vld [vmem:[#allocation255_spill] sm:$0xff] }
 0x34e   : > { %v1953_v6 = vadd.f32 %v1713_v51, %v1313_v9  ;;  %v11807_v9 = vld [vmem:[%s9044_s24 + $0x3a0] sm:$0xff] }
 0x34f   : > { %14484 = vst [vmem:[#allocation214_spill] sm:$0xff] %v11807_v9  ;;  %v8432_v51 = vld [vmem:[%s9051_s16 + $0xa0] sm:$0xff] }
 0x350   : > { %v3497_v4 = vpop.f32.mrf.mxu2  ;;  %v3606_v14 = vpop.f32.mrf.mxu3 }
 0x351   : > { %v3498_v50 = vadd.f32 %v3497_v4, %v2266_v30  ;;  %v3281_v57 = vpop.f32.mrf.mxu0  ;;  %v3390_v52 = vpop.f32.mrf.mxu1  ;;  %v1714_v30 = vmul.f32 %v11159_v27, %v13891_v48  ;;  %v1720_v4 = vmul.f32 %v11165_v39, %v13894_v42  ;;  %v14491_v42 = vld [vmem:[#allocation260_spill] sm:$0xff] }
 0x352   : > { %v3282_v47 = vadd.f32 %v3281_v57, %v14478_v7  ;;  %v1959_v57 = vadd.f32 %v1719_v2, %v1319_v0  ;;  %v4133_v7 = vmax.f32 %v3389_v36, 0.0  ;;  %v11810_v36 = vld [vmem:[%s9044_s24 + $0x3b8] sm:$0xff]  ;;  %v14488_v0 = vld [vmem:[#allocation254_spill] sm:$0xff]  ;;  %v2270_v2 = vunpack.c.h.bf16 %v8432_v51 }
 0x353   : > { %v11796_v1 = vadd.f32 %v3606_v14, %v3498_v50  ;;  %v1954_v18 = vadd.f32 %v1714_v30, %v1314_v59  ;;  %v1960_v21 = vadd.f32 %v1720_v4, %v1320_v29  ;;  %v14481_v50 = vld [vmem:[#allocation262_spill] sm:$0xff]  ;;  %14485 = vst [vmem:[#allocation209_spill] sm:$0xff] %v11810_v36  ;;  %v13897_v59 = vunpack.c.l.bf16 %v11810_v36  ;;  %v7781_v30 = vld [vmem:[#allocation10 + $0x168] sm:$0xf0] }
 0x354   : > { %v3391_v38 = vadd.f32 %v3390_v52, %v3282_v47  ;;  %v11802_v47 = vpack.c.bf16 %v1959_v57, %v1953_v6  ;;  %v8183_v6 = vld [vmem:[#allocation10 + $0x2d4] sm:$0xf]  ;;  %v7973_v57 = vld [vmem:[#allocation10 + $0x2e8] sm:$0xf0] }
 0x355   : > { %14479 = vst [vmem:[#allocation208_spill] sm:$0xff] %v11796_v1  ;;  %v11804_v55 = vpack.c.bf16 %v1960_v21, %v1954_v18  ;;  %v13896_v21 = vunpack.c.l.bf16 %v11807_v9 }
 0x356   : > { %v4135_v53 = vmax.f32 %v3391_v38, 0.0  ;;  %14482 = vst [vmem:[#allocation223_spill] sm:$0xff] %v11802_v47 }
 0x357   : > { %14483 = vst [vmem:[#allocation213_spill] sm:$0xff] %v11804_v55 }
 0x358   : > { %v11799_v11 = vpack.c.bf16 %v4135_v53, %v4133_v7  ;;  %v3499_v27 = vpop.f32.mrf.mxu2  ;;  %v3608_v48 = vpop.f32.mrf.mxu3 }
 0x359   : > { %v3500_v40 = vadd.f32 %v3499_v27, %v2268_v32  ;;  %v3284_v39 = vpop.f32.mrf.mxu0  ;;  %v3393_v14 = vpop.f32.mrf.mxu1  ;;  %v14487_v32 = vld [vmem:[#allocation253_spill] sm:$0xff]  ;;  %v14489_v27 = vld [vmem:[#allocation248_spill] sm:$0xff] }
 0x35a   : > { %14480 = vst [vmem:[#allocation215_spill] sm:$0xff] %v11799_v11  ;;  %v3285_v52 = vadd.f32 %v3284_v39, %v14481_v50  ;;  %v1325_v39 = vmul.f32 %v14380_v45, %v14489_v27  ;;  %v1326_v29 = vmul.f32 %v9214_v49, %v14489_v27  ;;  %v7971_v27 = vld [vmem:[#allocation10 + $0x2d0] sm:$0xf] }
 0x35b   : > { %v11812_v38 = vadd.f32 %v3608_v48, %v3500_v40  ;;  %v8135_v48 = vld [vmem:[#allocation10 + $0x154] sm:$0xf]  ;;  %v1725_v40 = vmul.f32 %v14491_v42, %v13896_v21 }
 0x35c   : > { %v3394_v53 = vadd.f32 %v3393_v14, %v3285_v52  ;;  %3323 = vmatmul.bf16.gmra.mxu0 %v11802_v47  ;;  %3432 = vmatmul.bf16.gmra.mxu1 %v11804_v55  ;;  %v7784_v4 = vor.u32 %v8135_v48, %v7781_v30  ;;  %v14490_v14 = vld [vmem:[#allocation252_spill] sm:$0xff]  ;;  %v7976_v52 = vor.u32 %v8183_v6, %v7973_v57  ;;  %v14492_v48 = vld [vmem:[#allocation261_spill] sm:$0xff]  ;;  %v14494_v57 = vunpack.c.h.bf16 %v11810_v36  ;;  %v8138_v55 = vld [vmem:[#allocation10 + $0x164] sm:$0xf0] }
 0x35d   : > { %14486 = vst [vmem:[#allocation220_spill] sm:$0xff] %v11812_v38  ;;  %3541 = vmatmul.bf16.gmra.mxu2 %v14487_v32  ;;  %3650 = vmatmul.bf16.gmra.mxu3 %v14488_v0  ;;  %v1331_v50 = vmul.f32 %v14380_v45, %v14490_v14  ;;  %v1731_v30 = vmul.f32 %v14492_v48, %v13897_v59  ;;  %v7779_v59 = vld [vmem:[#allocation10 + $0x150] sm:$0xf] }
 0x35e   : > { %5011 = vmatpush.bf16.msrb.mxu2 %v7784_v4  ;;  %v1332_v45 = vmul.f32 %v9214_v49, %v14490_v14  ;;  %5120 = vmatpush.bf16.msrb.mxu3 %v7976_v52  ;;  %v7780_v47 = vor.u32 %v8138_v55, %v7779_v59  ;;  %v1965_v49 = vadd.f32 %v1725_v40, %v1325_v39  ;;  %v4137_v1 = vmax.f32 %v3394_v53, 0.0 }
 0x35f   : > { %v1971_v14 = vadd.f32 %v1731_v30, %v1331_v50 }
 0x360   : > { %v3502_v7 = vpop.f32.mrf.mxu2  ;;  %v3611_v18 = vpop.f32.mrf.mxu3  ;;  %4793 = vmatpush.bf16.msrb.mxu0 %v7780_v47 }
 0x361   : > { %v3503_v32 = vadd.f32 %v3502_v7, %v2270_v2  ;;  %v3286_v0 = vpop.f32.mrf.mxu0  ;;  %v3395_v51 = vpop.f32.mrf.mxu1  ;;  %v14493_v2 = vunpack.c.h.bf16 %v11807_v9  ;;  %v1732_v7 = vmul.f32 %v14492_v48, %v14494_v57 }
 0x362   : > { %v3287_v11 = vadd.f32 %v3286_v0, %v11300_v46  ;;  %v8186_v46 = vld [vmem:[#allocation10 + $0x2e4] sm:$0xf0] }
 0x363   : > { %v1726_v6 = vmul.f32 %v14491_v42, %v14493_v2  ;;  %v11844_v21 = vadd.f32 %v3611_v18, %v3503_v32  ;;  %v8433_v0 = vld [vmem:[%s9051_s16 + $0xa8] sm:$0xff]  ;;  %v7972_v9 = vor.u32 %v8186_v46, %v7971_v27  ;;  %v1972_v36 = vadd.f32 %v1732_v7, %v1332_v45 }
 0x364   : > { %v3396_v4 = vadd.f32 %v3395_v51, %v3287_v11  ;;  %v2272_v38 = vunpack.c.h.bf16 %v8433_v0  ;;  %v11850_v51 = vpack.c.bf16 %v1971_v14, %v1965_v49 }
 0x365   : > { %v1966_v2 = vadd.f32 %v1726_v6, %v1326_v29  ;;  %4902 = vmatpush.bf16.msrb.mxu1 %v7972_v9  ;;  %v8435_v6 = vld [vmem:[%s9051_s16 + $0xb8] sm:$0xff] }
 0x366   : > { %v4139_v42 = vmax.f32 %v3396_v4, 0.0  ;;  %v2276_v57 = vunpack.c.h.bf16 %v8435_v6  ;;  %v7757_v6 = vld [vmem:[#allocation10 + $0x138] sm:$0xf0] }
 0x367   : > { %v11852_v40 = vpack.c.bf16 %v1972_v36, %v1966_v2  ;;  %v14497_v2 = vld [vmem:[#allocation36_spill] sm:$0xff] }
 0x368   : > { %v11847_v18 = vpack.c.bf16 %v4139_v42, %v4137_v1  ;;  %v3504_v52 = vpop.f32.mrf.mxu2  ;;  %v3613_v32 = vpop.f32.mrf.mxu3  ;;  %v8434_v1 = vld [vmem:[%s9051_s16 + $0xb0] sm:$0xff] }
 0x369   : > { %v3505_v48 = vadd.f32 %v3504_v52, %v2272_v38  ;;  %v3289_v11 = vpop.f32.mrf.mxu0  ;;  %v3398_v55 = vpop.f32.mrf.mxu1  ;;  %v2274_v47 = vunpack.c.h.bf16 %v8434_v1  ;;  %v14498_v52 = vld [vmem:[#allocation37_spill] sm:$0xff] }
 0x36a   : > { %14495 = vst [vmem:[#allocation221_spill] sm:$0xff] %v11847_v18  ;;  %v3290_v59 = vadd.f32 %v3289_v11, %v11311_v37 }
 0x36b   : > { %v11854_v53 = vadd.f32 %v3613_v32, %v3505_v48  ;;  %v8436_v32 = vld [vmem:[%s9051_s16 + $0xc0] sm:$0xff] }
 0x36c   : > { %v3399_v29 = vadd.f32 %v3398_v55, %v3290_v59  ;;  %3328 = vmatmul.bf16.gmra.mxu0 %v11850_v51  ;;  %3437 = vmatmul.bf16.gmra.mxu1 %v11852_v40  ;;  %v2278_v48 = vunpack.c.h.bf16 %v8436_v32  ;;  %v14500_v32 = vld [vmem:[#allocation45_spill] sm:$0xff] }
 0x36d   : > { %3546 = vmatmul.bf16.gmra.mxu2 %v11296_v31  ;;  %3655 = vmatmul.bf16.gmra.mxu3 %v11298_v12 }
 0x36e   : > { %v4141_v7 = vmax.f32 %v3399_v29, 0.0 }
 0x370   : > { %v3507_v9 = vpop.f32.mrf.mxu2  ;;  %v3616_v37 = vpop.f32.mrf.mxu3 }
 0x371   : > { %v3508_v38 = vadd.f32 %v3507_v9, %v2274_v47  ;;  %v3291_v39 = vpop.f32.mrf.mxu0  ;;  %v3400_v36 = vpop.f32.mrf.mxu1 }
 0x372   : > { %v3292_v50 = vadd.f32 %v3291_v39, %v11314_v10 }
 0x373   : > { %v11862_v30 = vadd.f32 %v3616_v37, %v3508_v38  ;;  %v8437_v37 = vld [vmem:[%s9051_s16 + $0xc8] sm:$0xff] }
 0x374   : > { %v3401_v45 = vadd.f32 %v3400_v36, %v3292_v50  ;;  %v2280_v38 = vunpack.c.h.bf16 %v8437_v37 }
 0x376   : > { %v4143_v27 = vmax.f32 %v3401_v45, 0.0  ;;  %v8129_v45 = vld [vmem:[#allocation10 + $0x124] sm:$0xf] }
 0x378   : > { %v11865_v31 = vpack.c.bf16 %v4143_v27, %v4141_v7  ;;  %v3509_v12 = vpop.f32.mrf.mxu2  ;;  %v3618_v4 = vpop.f32.mrf.mxu3 }
 0x379   : > { %v3510_v46 = vadd.f32 %v3509_v12, %v2276_v57  ;;  %v3294_v0 = vpop.f32.mrf.mxu0  ;;  %v3403_v49 = vpop.f32.mrf.mxu1  ;;  %v8177_v57 = vld [vmem:[#allocation10 + $0x2a4] sm:$0xf] }
 0x37a   : > { %14496 = vst [vmem:[#allocation231_spill] sm:$0xff] %v11865_v31  ;;  %v3295_v14 = vadd.f32 %v3294_v0, %v11321_v28 }
 0x37b   : > { %v11868_v42 = vadd.f32 %v3618_v4, %v3510_v46  ;;  %v7760_v4 = vor.u32 %v8129_v45, %v7757_v6 }
 0x37c   : > { %v3404_v10 = vadd.f32 %v3403_v49, %v3295_v14  ;;  %3669 = vmatmul.bf16.vlgmr.msra.gmra.mxu0 %v14497_v2  ;;  %3778 = vmatmul.bf16.vlgmr.msra.gmra.mxu1 %v14498_v52  ;;  %v7755_v14 = vld [vmem:[#allocation10 + $0x120] sm:$0xf] }
 0x37d   : > { %3887 = vmatmul.bf16.vlgmr.msra.gmra.mxu2 %v9430_v8  ;;  %3996 = vmatmul.bf16.vlgmr.msra.gmra.mxu3 %v9433_v43  ;;  %v7947_v2 = vld [vmem:[#allocation10 + $0x2a0] sm:$0xf] }
 0x37e   : > { %v4145_v39 = vmax.f32 %v3404_v10, 0.0  ;;  %5012 = vmatpush.bf16.msrb.mxu2 %v7760_v4  ;;  %v8132_v10 = vld [vmem:[#allocation10 + $0x134] sm:$0xf0] }
 0x380   : > { %v3512_v11 = vpop.f32.mrf.mxu2  ;;  %v3621_v55 = vpop.f32.mrf.mxu3 }
 0x381   : > { %v3513_v59 = vadd.f32 %v3512_v11, %v2278_v48  ;;  %v3296_v29 = vpop.f32.mrf.mxu0  ;;  %v3405_v1 = vpop.f32.mrf.mxu1  ;;  %v14501_v48 = vld [vmem:[#allocation46_spill] sm:$0xff]  ;;  %v7756_v11 = vor.u32 %v8132_v10, %v7755_v14 }
 0x382   : > { %v3297_v28 = vadd.f32 %v3296_v29, %v11325_v22  ;;  %v7949_v22 = vld [vmem:[#allocation10 + $0x2b8] sm:$0xf0]  ;;  %v14504_v14 = vld [vmem:[#allocation50_spill] sm:$0xff] }
 0x383   : > { %v11876_v47 = vadd.f32 %v3621_v55, %v3513_v59  ;;  %v7952_v0 = vor.u32 %v8177_v57, %v7949_v22  ;;  %v8180_v55 = vld [vmem:[#allocation10 + $0x2b4] sm:$0xf0]  ;;  %4794 = vmatpush.bf16.msrb.mxu0 %v7756_v11  ;;  %v8440_v10 = vld [vmem:[%s9051_s16 + $0xe0] sm:$0xff] }
 0x384   : > { %v3406_v9 = vadd.f32 %v3405_v1, %v3297_v28  ;;  %v7948_v29 = vor.u32 %v8180_v55, %v7947_v2  ;;  %v2286_v2 = vunpack.c.h.bf16 %v8440_v10 }
 0x385   : > { %5121 = vmatpush.bf16.msrb.mxu3 %v7952_v0  ;;  %v14503_v0 = vld [vmem:[#allocation49_spill] sm:$0xff] }
 0x386   : > { %v4147_v36 = vmax.f32 %v3406_v9, 0.0  ;;  %4903 = vmatpush.bf16.msrb.mxu1 %v7948_v29  ;;  %v8441_v29 = vld [vmem:[%s9051_s16 + $0xe8] sm:$0xff] }
 0x388   : > { %v11879_v50 = vpack.c.bf16 %v4147_v36, %v4145_v39  ;;  %v3514_v8 = vpop.f32.mrf.mxu2  ;;  %v3623_v43 = vpop.f32.mrf.mxu3 }
 0x389   : > { %v3515_v7 = vadd.f32 %v3514_v8, %v2280_v38  ;;  %v3299_v27 = vpop.f32.mrf.mxu0  ;;  %v3408_v12 = vpop.f32.mrf.mxu1 }
 0x38a   : > { %14499 = vst [vmem:[#allocation236_spill] sm:$0xff] %v11879_v50  ;;  %v3300_v46 = vadd.f32 %v3299_v27, %v11331_v41  ;;  %v8438_v41 = vld [vmem:[%s9051_s16 + $0xd0] sm:$0xff] }
 0x38b   : > { %v11882_v49 = vadd.f32 %v3623_v43, %v3515_v7  ;;  %v2282_v59 = vunpack.c.h.bf16 %v8438_v41 }
 0x38c   : > { %v3409_v52 = vadd.f32 %v3408_v12, %v3300_v46  ;;  %3674 = vmatmul.bf16.gmra.mxu0 %v14500_v32  ;;  %3783 = vmatmul.bf16.gmra.mxu1 %v14501_v48 }
 0x38d   : > { %3892 = vmatmul.bf16.gmra.mxu2 %v9458_v5  ;;  %4001 = vmatmul.bf16.gmra.mxu3 %v9501_v56  ;;  %v8439_v5 = vld [vmem:[%s9051_s16 + $0xd8] sm:$0xff] }
 0x38e   : > { %v2284_v43 = vunpack.c.h.bf16 %v8439_v5  ;;  %v4149_v56 = vmax.f32 %v3409_v52, 0.0 }
 0x390   : > { %v3517_v1 = vpop.f32.mrf.mxu2  ;;  %v3626_v28 = vpop.f32.mrf.mxu3 }
 0x391   : > { %v3518_v9 = vadd.f32 %v3517_v1, %v2282_v59  ;;  %v3301_v37 = vpop.f32.mrf.mxu0  ;;  %v3410_v38 = vpop.f32.mrf.mxu1  ;;  %v2288_v1 = vunpack.c.h.bf16 %v8441_v29  ;;  %v8443_v29 = vld [vmem:[%s9051_s16 + $0xf8] sm:$0xff] }
 0x392   : > { %v3302_v39 = vadd.f32 %v3301_v37, %v11334_v25 }
 0x393   : > { %v11890_v36 = vadd.f32 %v3626_v28, %v3518_v9 }
 0x394   : > { %v3411_v8 = vadd.f32 %v3410_v38, %v3302_v39 }
 0x396   : > { %v4151_v45 = vmax.f32 %v3411_v8, 0.0 }
 0x398   : > { %v11893_v6 = vpack.c.bf16 %v4151_v45, %v4149_v56  ;;  %v3519_v57 = vpop.f32.mrf.mxu2  ;;  %v3628_v7 = vpop.f32.mrf.mxu3  ;;  %v14505_v56 = vld [vmem:[#allocation62_spill] sm:$0xff]  ;;  %v14506_v45 = vld [vmem:[#allocation63_spill] sm:$0xff] }
 0x399   : > { %v3520_v27 = vadd.f32 %v3519_v57, %v2284_v43  ;;  %v3304_v12 = vpop.f32.mrf.mxu0  ;;  %v3413_v4 = vpop.f32.mrf.mxu1  ;;  %v8442_v57 = vld [vmem:[%s9051_s16 + $0xf0] sm:$0xff] }
 0x39a   : > { %14502 = vst [vmem:[#allocation227_spill] sm:$0xff] %v11893_v6  ;;  %v3305_v22 = vadd.f32 %v3304_v12, %v11341_v19  ;;  %v7733_v12 = vld [vmem:[#allocation10 + $0x108] sm:$0xf0] }
 0x39b   : > { %v11896_v46 = vadd.f32 %v3628_v7, %v3520_v27  ;;  %v2290_v7 = vunpack.c.h.bf16 %v8442_v57  ;;  %v8123_v27 = vld [vmem:[#allocation10 + $0xf4] sm:$0xf] }
 0x39c   : > { %v3414_v25 = vadd.f32 %v3413_v4, %v3305_v22  ;;  %3679 = vmatmul.bf16.gmra.mxu0 %v14503_v0  ;;  %3788 = vmatmul.bf16.gmra.mxu1 %v14504_v14  ;;  %v7736_v4 = vor.u32 %v8123_v27, %v7733_v12  ;;  %v8171_v22 = vld [vmem:[#allocation10 + $0x274] sm:$0xf]  ;;  %v8444_v27 = vld [vmem:[%s9051_s16 + $0x100] sm:$0xff] }
 0x39d   : > { %3897 = vmatmul.bf16.gmra.mxu2 %v9503_v62  ;;  %4006 = vmatmul.bf16.gmra.mxu3 %v9719_v16  ;;  %v2294_v12 = vunpack.c.h.bf16 %v8444_v27 }
 0x39e   : > { %v4153_v28 = vmax.f32 %v3414_v25, 0.0  ;;  %v7925_v25 = vld [vmem:[#allocation10 + $0x288] sm:$0xf0]  ;;  %5013 = vmatpush.bf16.msrb.mxu2 %v7736_v4 }
 0x39f   : > { %v7928_v14 = vor.u32 %v8171_v22, %v7925_v25 }
 0x3a0   : > { %v3522_v52 = vpop.f32.mrf.mxu2  ;;  %v3631_v32 = vpop.f32.mrf.mxu3 }
 0x3a1   : > { %v3523_v48 = vadd.f32 %v3522_v52, %v2286_v2  ;;  %v3306_v11 = vpop.f32.mrf.mxu0  ;;  %v3415_v55 = vpop.f32.mrf.mxu1  ;;  %5122 = vmatpush.bf16.msrb.mxu3 %v7928_v14 }
 0x3a2   : > { %v3307_v19 = vadd.f32 %v3306_v11, %v11344_v23  ;;  %v7923_v11 = vld [vmem:[#allocation10 + $0x270] sm:$0xf] }
 0x3a3   : > { %v11904_v41 = vadd.f32 %v3631_v32, %v3523_v48  ;;  %v8126_v48 = vld [vmem:[#allocation10 + $0x104] sm:$0xf0] }
 0x3a4   : > { %v3416_v59 = vadd.f32 %v3415_v55, %v3307_v19 }
 0x3a6   : > { %v4155_v9 = vmax.f32 %v3416_v59, 0.0  ;;  %v8174_v59 = vld [vmem:[#allocation10 + $0x284] sm:$0xf0] }
 0x3a8   : > { %v11907_v62 = vpack.c.bf16 %v4155_v9, %v4153_v28  ;;  %v3524_v16 = vpop.f32.mrf.mxu2  ;;  %v3633_v37 = vpop.f32.mrf.mxu3  ;;  %v7924_v28 = vor.u32 %v8174_v59, %v7923_v11  ;;  %v14511_v59 = vld [vmem:[#allocation75_spill] sm:$0xff] }
 0x3a9   : > { %v3525_v38 = vadd.f32 %v3524_v16, %v2288_v1  ;;  %v3309_v39 = vpop.f32.mrf.mxu0  ;;  %v3418_v8 = vpop.f32.mrf.mxu1  ;;  %v2292_v1 = vunpack.c.h.bf16 %v8443_v29 }
 0x3aa   : > { %v3310_v5 = vadd.f32 %v3309_v39, %v11352_v15  ;;  %4904 = vmatpush.bf16.msrb.mxu1 %v7924_v28  ;;  %v14512_v28 = vld [vmem:[#allocation86_spill] sm:$0xff] }
 0x3ab   : > { %v11910_v43 = vadd.f32 %v3633_v37, %v3525_v38 }
 0x3ac   : > { %v3419_v23 = vadd.f32 %v3418_v8, %v3310_v5  ;;  %3684 = vmatmul.bf16.gmra.mxu0 %v14505_v56  ;;  %3793 = vmatmul.bf16.gmra.mxu1 %v14506_v45 }
 0x3ad   : > { %3902 = vmatmul.bf16.gmra.mxu2 %v9742_v34  ;;  %4011 = vmatmul.bf16.gmra.mxu3 %v14332_v63  ;;  %v7731_v63 = vld [vmem:[#allocation10 + $0xf0] sm:$0xf] }
 0x3ae   : > { %v7732_v19 = vor.u32 %v8126_v48, %v7731_v63  ;;  %v4157_v9 = vmax.f32 %v3419_v23, 0.0  ;;  %v14509_v23 = vld [vmem:[#allocation73_spill] sm:$0xff] }
 0x3b0   : > { %v3527_v0 = vpop.f32.mrf.mxu2  ;;  %v3636_v15 = vpop.f32.mrf.mxu3  ;;  %4795 = vmatpush.bf16.msrb.mxu0 %v7732_v19 }
 0x3b1   : > { %v3528_v10 = vadd.f32 %v3527_v0, %v2290_v7  ;;  %v3311_v2 = vpop.f32.mrf.mxu0  ;;  %v3420_v52 = vpop.f32.mrf.mxu1  ;;  %v14508_v7 = vld [vmem:[#allocation72_spill] sm:$0xff] }
 0x3b2   : > { %v3312_v32 = vadd.f32 %v3311_v2, %v11354_v35  ;;  %v8445_v2 = vld [vmem:[%s9051_s16 + $0x108] sm:$0xff] }
 0x3b3   : > { %v11918_v34 = vadd.f32 %v3636_v15, %v3528_v10 }
 0x3b4   : > { %v3421_v55 = vadd.f32 %v3420_v52, %v3312_v32  ;;  %v2296_v52 = vunpack.c.h.bf16 %v8445_v2 }
 0x3b6   : > { %v4159_v16 = vmax.f32 %v3421_v55, 0.0 }
 0x3b8   : > { %v11921_v37 = vpack.c.bf16 %v4159_v16, %v4157_v9  ;;  %v3529_v35 = vpop.f32.mrf.mxu2  ;;  %v3638_v38 = vpop.f32.mrf.mxu3  ;;  %v14513_v9 = vld [vmem:[#allocation87_spill] sm:$0xff]  ;;  %v14514_v16 = vld [vmem:[#allocation90_spill] sm:$0xff] }
 0x3b9   : > { %v3530_v39 = vadd.f32 %v3529_v35, %v2292_v1  ;;  %v3314_v8 = vpop.f32.mrf.mxu0  ;;  %v3423_v5 = vpop.f32.mrf.mxu1  ;;  %v14515_v35 = vld [vmem:[#allocation91_spill] sm:$0xff] }
 0x3ba   : > { %14507 = vst [vmem:[#allocation228_spill] sm:$0xff] %v11921_v37  ;;  %v3315_v56 = vadd.f32 %v3314_v8, %v11361_v61 }
 0x3bb   : > { %v11924_v45 = vadd.f32 %v3638_v38, %v3530_v39  ;;  %v8446_v38 = vld [vmem:[%s9051_s16 + $0x110] sm:$0xff] }
 0x3bc   : > { %v3424_v57 = vadd.f32 %v3423_v5, %v3315_v56  ;;  %3689 = vmatmul.bf16.gmra.mxu0 %v14508_v7  ;;  %3798 = vmatmul.bf16.gmra.mxu1 %v14509_v23  ;;  %v2298_v39 = vunpack.c.h.bf16 %v8446_v38  ;;  %v14516_v23 = vld [vmem:[#allocation59_spill] sm:$0xff] }
 0x3bd   : > { %3907 = vmatmul.bf16.gmra.mxu2 %v14335_v26  ;;  %4016 = vmatmul.bf16.gmra.mxu3 %v14336_v33 }
 0x3be   : > { %v4161_v32 = vmax.f32 %v3424_v57, 0.0 }
 0x3c0   : > { %v3532_v4 = vpop.f32.mrf.mxu2  ;;  %v3641_v22 = vpop.f32.mrf.mxu3 }
 0x3c1   : > { %v3533_v25 = vadd.f32 %v3532_v4, %v2294_v12  ;;  %v3316_v0 = vpop.f32.mrf.mxu0  ;;  %v3425_v15 = vpop.f32.mrf.mxu1 }
 0x3c2   : > { %v3317_v61 = vadd.f32 %v3316_v0, %v11364_v20 }
 0x3c3   : > { %v11932_v14 = vadd.f32 %v3641_v22, %v3533_v25  ;;  %v8447_v22 = vld [vmem:[%s9051_s16 + $0x118] sm:$0xff] }
 0x3c4   : > { %v3426_v10 = vadd.f32 %v3425_v15, %v3317_v61  ;;  %v2300_v25 = vunpack.c.h.bf16 %v8447_v22 }
 0x3c6   : > { %v4163_v63 = vmax.f32 %v3426_v10, 0.0 }
 0x3c8   : > { %v11935_v26 = vpack.c.bf16 %v4163_v63, %v4161_v32  ;;  %v3534_v33 = vpop.f32.mrf.mxu2  ;;  %v3643_v48 = vpop.f32.mrf.mxu3  ;;  %v7709_v32 = vld [vmem:[#allocation10 + $0xd8] sm:$0xf0]  ;;  %v8165_v63 = vld [vmem:[#allocation10 + $0x244] sm:$0xf] }
 0x3c9   : > { %v3535_v11 = vadd.f32 %v3534_v33, %v2296_v52  ;;  %v3319_v55 = vpop.f32.mrf.mxu0  ;;  %v3428_v19 = vpop.f32.mrf.mxu1  ;;  %v8117_v52 = vld [vmem:[#allocation10 + $0xc4] sm:$0xf] }
 0x3ca   : > { %14510 = vst [vmem:[#allocation222_spill] sm:$0xff] %v11935_v26  ;;  %v3320_v29 = vadd.f32 %v3319_v55, %v14511_v59  ;;  %v7712_v55 = vor.u32 %v8117_v52, %v7709_v32  ;;  %v14517_v59 = vld [vmem:[#allocation60_spill] sm:$0xff] }
 0x3cb   : > { %v11938_v1 = vadd.f32 %v3643_v48, %v3535_v11 }
 0x3cc   : > { %v3429_v20 = vadd.f32 %v3428_v19, %v3320_v29  ;;  %3694 = vmatmul.bf16.gmra.mxu0 %v14512_v28  ;;  %3803 = vmatmul.bf16.gmra.mxu1 %v14513_v9  ;;  %v7901_v19 = vld [vmem:[#allocation10 + $0x258] sm:$0xf0] }
 0x3cd   : > { %3912 = vmatmul.bf16.gmra.mxu2 %v14514_v16  ;;  %4021 = vmatmul.bf16.gmra.mxu3 %v14515_v35  ;;  %v7904_v28 = vor.u32 %v8165_v63, %v7901_v19  ;;  %v8120_v16 = vld [vmem:[#allocation10 + $0xd4] sm:$0xf0]  ;;  %v7899_v35 = vld [vmem:[#allocation10 + $0x240] sm:$0xf] }
 0x3ce   : > { %v4165_v0 = vmax.f32 %v3429_v20, 0.0  ;;  %5014 = vmatpush.bf16.msrb.mxu2 %v7712_v55  ;;  %v7707_v20 = vld [vmem:[#allocation10 + $0xc0] sm:$0xf] }
 0x3cf   : > { %5123 = vmatpush.bf16.msrb.mxu3 %v7904_v28 }
 0x3d0   : > { %v3537_v8 = vpop.f32.mrf.mxu2  ;;  %v3646_v5 = vpop.f32.mrf.mxu3 }
 0x3d1   : > { %v3538_v56 = vadd.f32 %v3537_v8, %v2298_v39  ;;  %v3321_v57 = vpop.f32.mrf.mxu0  ;;  %v3430_v7 = vpop.f32.mrf.mxu1  ;;  %v14518_v39 = vld [vmem:[#allocation95_spill] sm:$0xff]  ;;  %v14519_v8 = vld [vmem:[#allocation96_spill] sm:$0xff] }
 0x3d2   : > { %v3322_v27 = vadd.f32 %v3321_v57, %v14516_v23  ;;  %v14520_v57 = vld [vmem:[#allocation98_spill] sm:$0xff] }
 0x3d3   : > { %v11946_v12 = vadd.f32 %v3646_v5, %v3538_v56  ;;  %v7708_v5 = vor.u32 %v8120_v16, %v7707_v20  ;;  %v8168_v56 = vld [vmem:[#allocation10 + $0x254] sm:$0xf0]  ;;  %v8448_v23 = vld [vmem:[%s9051_s16 + $0x120] sm:$0xff] }
 0x3d4   : > { %v3431_v4 = vadd.f32 %v3430_v7, %v3322_v27  ;;  %v14521_v7 = vld [vmem:[#allocation103_spill] sm:$0xff]  ;;  %v2302_v27 = vunpack.c.h.bf16 %v8448_v23 }
 0x3d5   : > { %4796 = vmatpush.bf16.msrb.mxu0 %v7708_v5  ;;  %v8450_v23 = vld [vmem:[%s9051_s16 + $0x130] sm:$0xff] }
 0x3d6   : > { %v4167_v15 = vmax.f32 %v3431_v4, 0.0  ;;  %v7900_v4 = vor.u32 %v8168_v56, %v7899_v35  ;;  %v14524_v35 = vld [vmem:[#allocation77_spill] sm:$0xff]  ;;  %v14525_v56 = vld [vmem:[#allocation110_spill] sm:$0xff] }
 0x3d8   : > { %v11949_v61 = vpack.c.bf16 %v4167_v15, %v4165_v0  ;;  %v3539_v10 = vpop.f32.mrf.mxu2  ;;  %v3648_v2 = vpop.f32.mrf.mxu3  ;;  %4905 = vmatpush.bf16.msrb.mxu1 %v7900_v4 }
 0x3d9   : > { %v3540_v33 = vadd.f32 %v3539_v10, %v2300_v25  ;;  %v3324_v48 = vpop.f32.mrf.mxu0  ;;  %v3433_v11 = vpop.f32.mrf.mxu1 }
 0x3da   : > { %v3325_v29 = vadd.f32 %v3324_v48, %v14517_v59 }
 0x3db   : > { %v11952_v9 = vadd.f32 %v3648_v2, %v3540_v33  ;;  %v14522_v2 = vld [vmem:[#allocation76_spill] sm:$0xff]  ;;  %v8449_v33 = vld [vmem:[%s9051_s16 + $0x128] sm:$0xff] }
 0x3dc   : > { %v3434_v38 = vadd.f32 %v3433_v11, %v3325_v29  ;;  %3699 = vmatmul.bf16.gmra.mxu0 %v14518_v39  ;;  %3808 = vmatmul.bf16.gmra.mxu1 %v14519_v8  ;;  %v2304_v48 = vunpack.c.h.bf16 %v8449_v33  ;;  %v8451_v33 = vld [vmem:[%s9051_s16 + $0x138] sm:$0xff]  ;;  %s15055_s16 = sld [smem:[#allocation270_spill]] }
 0x3dd   : > { %3917 = vmatmul.bf16.gmra.mxu2 %v14520_v57  ;;  %4026 = vmatmul.bf16.gmra.mxu3 %v14521_v7  ;;  %v14526_v57 = vld [vmem:[#allocation111_spill] sm:$0xff]  ;;  %v14527_v7 = vld [vmem:[#allocation114_spill] sm:$0xff] }
 0x3de   : > { %v4169_v11 = vmax.f32 %v3434_v38, 0.0  ;;  %v14528_v38 = vld [vmem:[#allocation122_spill] sm:$0xff] }
 0x3e0   : > { %v3542_v22 = vpop.f32.mrf.mxu2  ;;  %v3651_v25 = vpop.f32.mrf.mxu3 }
 0x3e1   : > { %v3543_v0 = vadd.f32 %v3542_v22, %v2302_v27  ;;  %v3326_v15 = vpop.f32.mrf.mxu0  ;;  %v3435_v10 = vpop.f32.mrf.mxu1  ;;  %v2306_v27 = vunpack.c.h.bf16 %v8450_v23  ;;  %v14532_v23 = vld [vmem:[#allocation120_spill] sm:$0xff] }
 0x3e2   : > { %v3327_v52 = vadd.f32 %v3326_v15, %v14522_v2  ;;  %s7040_s2 = scalar_lea.hbm %s15055_s16, %s15054_s15  ;;  %s8622_s10 = scalar_lea.hbm %s15055_s16, 2 }
 0x3e3   : > { %v11960_v32 = vadd.f32 %v3651_v25, %v3543_v0  ;;  %s7044_s28 = sshll.u32 %s7040_s2, 4  ;;  %s7045_s28 = int_to_ptr.hbm [resolvable:$true] %s7044_s28 }
 0x3e4   : > { %v3436_v63 = vadd.f32 %v3435_v10, %v3327_v52  ;;  %v14529_v10 = vld [vmem:[#allocation67_spill] sm:$0xff]  ;;  %s8616_s19 = sshra.s32 %s7045_s28, 4  ;;  %s8617_s19 = int_to_ptr.hbm [resolvable:$true] %s8616_s19 }
 0x3e5   : > { %s8618_s7 = scalar_lea.hbm %s8617_s19, 1  ;;  %p8623_p9 = scmp.lt.s32.totalorder %s8617_s19, %s15055_s16 }
 0x3e6   : > { %v4171_v55 = vmax.f32 %v3436_v63, 0.0  ;;  %p8619_p0 = scmp.ne.s32.totalorder %s8617_s19, %s8618_s7  ;;  %p8624_p2 = scmp.lt.s32.totalorder %s8622_s10, %s8618_s7 }
 0x3e8   : > { %v11963_v19 = vpack.c.bf16 %v4171_v55, %v4169_v11  ;;  %v3544_v59 = vpop.f32.mrf.mxu2  ;;  %v3653_v29 = vpop.f32.mrf.mxu3  ;;  %p8620_p11 = pnand %p8619_p0, %p8987_p5  ;;  %p8625_p10 = por %p8624_p2, %p8623_p9 }
 0x3e9   : > { %v3545_v28 = vadd.f32 %v3544_v59, %v2304_v48  ;;  %v3329_v20 = vpop.f32.mrf.mxu0  ;;  %v3438_v16 = vpop.f32.mrf.mxu1  ;;  %v2308_v48 = vunpack.c.h.bf16 %v8451_v33 }
 0x3ea   : > { %14523 = vst [vmem:[#allocation226_spill] sm:$0xff] %v11963_v19  ;;  %v3330_v39 = vadd.f32 %v3329_v20, %v14524_v35  ;;  %p8621_p8 = pneg %p8620_p11 }
 0x3eb   : > { %v11966_v8 = vadd.f32 %v3653_v29, %v3545_v28 }
 0x3ec   : > { %v3439_v5 = vadd.f32 %v3438_v16, %v3330_v39  ;;  %3704 = vmatmul.bf16.gmra.mxu0 %v14525_v56  ;;  %3813 = vmatmul.bf16.gmra.mxu1 %v14526_v57  ;;  %v14530_v39 = vld [vmem:[#allocation68_spill] sm:$0xff]  ;;  %p8626_p4 = pnand %p8625_p10, %p8621_p8 }
 0x3ed   : > { %3922 = vmatmul.bf16.gmra.mxu2 %v14527_v7  ;;  %4031 = vmatmul.bf16.gmra.mxu3 %v14528_v38  ;;  %v14531_v38 = vld [vmem:[#allocation119_spill] sm:$0xff] }
 0x3ee   : > { %v4173_v11 = vmax.f32 %v3439_v5, 0.0  ;;  %v14534_v5 = vld [vmem:[#allocation126_spill] sm:$0xff] }
 0x3f0   : > { %v3547_v4 = vpop.f32.mrf.mxu2  ;;  %v3656_v22 = vpop.f32.mrf.mxu3 }
 0x3f1   : > { %v3548_v25 = vadd.f32 %v3547_v4, %v2306_v27  ;;  %v3331_v0 = vpop.f32.mrf.mxu0  ;;  %v3440_v15 = vpop.f32.mrf.mxu1  ;;  %v14533_v27 = vld [vmem:[#allocation124_spill] sm:$0xff] }
 0x3f2   : > { %v3332_v2 = vadd.f32 %v3331_v0, %v14529_v10  ;;  %v8111_v4 = vld [vmem:[#allocation10 + $0x94] sm:$0xf] }
 0x3f3   : > { %v11974_v52 = vadd.f32 %v3656_v22, %v3548_v25  ;;  %v7685_v22 = vld [vmem:[#allocation10 + $0xa8] sm:$0xf0]  ;;  %v8159_v25 = vld [vmem:[#allocation10 + $0x214] sm:$0xf] }
 0x3f4   : > { %v3441_v63 = vadd.f32 %v3440_v15, %v3332_v2  ;;  %v7688_v10 = vor.u32 %v8111_v4, %v7685_v22  ;;  %v7877_v2 = vld [vmem:[#allocation10 + $0x228] sm:$0xf0] }
 0x3f6   : > { %v4175_v55 = vmax.f32 %v3441_v63, 0.0  ;;  %5015 = vmatpush.bf16.msrb.mxu2 %v7688_v10 }
 0x3f8   : > { %v11977_v59 = vpack.c.bf16 %v4175_v55, %v4173_v11  ;;  %v3549_v29 = vpop.f32.mrf.mxu2  ;;  %v3658_v28 = vpop.f32.mrf.mxu3  ;;  %v7880_v11 = vor.u32 %v8159_v25, %v7877_v2  ;;  %v14535_v55 = vld [vmem:[#allocation85_spill] sm:$0xff]  ;;  %v14536_v25 = vld [vmem:[#allocation92_spill] sm:$0xff] }
 0x3f9   : > { %v3550_v20 = vadd.f32 %v3549_v29, %v2308_v48  ;;  %v3670_v16 = vpop.f32.mrf.mxu0  ;;  %v3779_v35 = vpop.f32.mrf.mxu1 }
 0x3fa   : > { %v3671_v56 = vadd.f32 %v3670_v16, %v14530_v39  ;;  %5124 = vmatpush.bf16.msrb.mxu3 %v7880_v11  ;;  %v7683_v16 = vld [vmem:[#allocation10 + $0x90] sm:$0xf]  ;;  %v14539_v11 = vld [vmem:[#allocation142_spill] sm:$0xff] }
 0x3fb   : > { %v11980_v57 = vadd.f32 %v3658_v28, %v3550_v20 }
 0x3fc   : > { %v3780_v7 = vadd.f32 %v3779_v35, %v3671_v56  ;;  %3709 = vmatmul.bf16.gmra.mxu0 %v14531_v38  ;;  %3818 = vmatmul.bf16.gmra.mxu1 %v14532_v23  ;;  %v8114_v35 = vld [vmem:[#allocation10 + $0xa4] sm:$0xf0]  ;;  %v7875_v56 = vld [vmem:[#allocation10 + $0x210] sm:$0xf] }
 0x3fd   : > { %3927 = vmatmul.bf16.gmra.mxu2 %v14533_v27  ;;  %4036 = vmatmul.bf16.gmra.mxu3 %v14534_v5  ;;  %v7684_v39 = vor.u32 %v8114_v35, %v7683_v16  ;;  %v8162_v38 = vld [vmem:[#allocation10 + $0x224] sm:$0xf0] }
 0x3fe   : > { %v7876_v23 = vor.u32 %v8162_v38, %v7875_v56  ;;  %v14542_v38 = vld [vmem:[#allocation128_spill] sm:$0xff] }
 0x3ff   : > { %4797 = vmatpush.bf16.msrb.mxu0 %v7684_v39 }
 0x400   : > { %v3888_v0 = vpop.f32.mrf.mxu2  ;;  %v3997_v15 = vpop.f32.mrf.mxu3  ;;  %4906 = vmatpush.bf16.msrb.mxu1 %v7876_v23 }
 0x401   : > { %v3889_v63 = vadd.f32 %v3888_v0, %v3780_v7  ;;  %v3672_v33 = vpop.f32.mrf.mxu0  ;;  %v3781_v48 = vpop.f32.mrf.mxu1 }
 0x402   : > { %v3673_v29 = vadd.f32 %v3672_v33, %v14535_v55  ;;  %v14540_v55 = vld [vmem:[#allocation148_spill] sm:$0xff] }
 0x403   : > { %v3998_v28 = vadd.f32 %v3997_v15, %v3889_v63  ;;  %v14537_v15 = vld [vmem:[#allocation133_spill] sm:$0xff]  ;;  %v14538_v63 = vld [vmem:[#allocation135_spill] sm:$0xff] }
 0x404   : > { %v3782_v20 = vadd.f32 %v3781_v48, %v3673_v29 }
 0x405   : > { %v4098_v33 = vmax.f32 %v3998_v28, 0.0 }
 0x408   : > { %v3890_v27 = vpop.f32.mrf.mxu2  ;;  %v3999_v5 = vpop.f32.mrf.mxu3 }
 0x409   : > { %v3891_v4 = vadd.f32 %v3890_v27, %v3782_v20  ;;  %v3675_v7 = vpop.f32.mrf.mxu0  ;;  %v3784_v22 = vpop.f32.mrf.mxu1 }
 0x40a   : > { %v3676_v0 = vadd.f32 %v3675_v7, %v14536_v25 }
 0x40b   : > { %v4000_v2 = vadd.f32 %v3999_v5, %v3891_v4 }
 0x40c   : > { %v3785_v10 = vadd.f32 %v3784_v22, %v3676_v0  ;;  %3714 = vmatmul.bf16.gmra.mxu0 %v14537_v15  ;;  %3823 = vmatmul.bf16.gmra.mxu1 %v14538_v63  ;;  %v14543_v63 = vld [vmem:[#allocation150_spill] sm:$0xff] }
 0x40d   : > { %v4100_v48 = vmax.f32 %v4000_v2, 0.0  ;;  %3932 = vmatmul.bf16.gmra.mxu2 %v14539_v11  ;;  %4041 = vmatmul.bf16.gmra.mxu3 %v14540_v55  ;;  %v14545_v11 = vld [vmem:[#allocation178_spill] sm:$0xff]  ;;  %v14546_v55 = vld [vmem:[#allocation181_spill] sm:$0xff] }
 0x40f   : > { %v11992_v29 = vpack.c.bf16 %v4100_v48, %v4098_v33  ;;  %v14544_v33 = vld [vmem:[#allocation151_spill] sm:$0xff] }
 0x410   : > { %v3893_v20 = vpop.f32.mrf.mxu2  ;;  %v4002_v16 = vpop.f32.mrf.mxu3 }
 0x411   : > { %14541 = vst [vmem:[#allocation235_spill] sm:$0xff] %v11992_v29  ;;  %v3894_v35 = vadd.f32 %v3893_v20, %v3785_v10  ;;  %v3677_v39 = vpop.f32.mrf.mxu0  ;;  %v3786_v56 = vpop.f32.mrf.mxu1 }
 0x412   : > { %v3678_v23 = vadd.f32 %v3677_v39, %v14542_v38 }
 0x413   : > { %v4003_v27 = vadd.f32 %v4002_v16, %v3894_v35 }
 0x414   : > { %v3787_v5 = vadd.f32 %v3786_v56, %v3678_v23 }
 0x415   : > { %v4102_v10 = vmax.f32 %v4003_v27, 0.0  ;;  %v8153_v27 = vld [vmem:[#allocation10 + $0x1e4] sm:$0xf] }
 0x418   : > { %v3895_v4 = vpop.f32.mrf.mxu2  ;;  %v4004_v7 = vpop.f32.mrf.mxu3 }
 0x419   : > { %v3896_v22 = vadd.f32 %v3895_v4, %v3787_v5  ;;  %v3680_v28 = vpop.f32.mrf.mxu0  ;;  %v3789_v25 = vpop.f32.mrf.mxu1  ;;  %v8105_v4 = vld [vmem:[#allocation10 + $0x64] sm:$0xf] }
 0x41a   : > { %v3681_v0 = vadd.f32 %v3680_v28, %v11460_v44  ;;  %v7853_v28 = vld [vmem:[#allocation10 + $0x1f8] sm:$0xf0] }
 0x41b   : > { %v4005_v2 = vadd.f32 %v4004_v7, %v3896_v22  ;;  %v7661_v7 = vld [vmem:[#allocation10 + $0x78] sm:$0xf0] }
 0x41c   : > { %v3790_v15 = vadd.f32 %v3789_v25, %v3681_v0  ;;  %3719 = vmatmul.bf16.gmra.mxu0 %v14543_v63  ;;  %3828 = vmatmul.bf16.gmra.mxu1 %v14544_v33  ;;  %v7664_v22 = vor.u32 %v8105_v4, %v7661_v7  ;;  %v7856_v25 = vor.u32 %v8153_v27, %v7853_v28  ;;  %v7851_v4 = vld [vmem:[#allocation10 + $0x1e0] sm:$0xf]  ;;  %v8156_v27 = vld [vmem:[#allocation10 + $0x1f4] sm:$0xf0] }
 0x41d   : > { %v4104_v48 = vmax.f32 %v4005_v2, 0.0  ;;  %3937 = vmatmul.bf16.gmra.mxu2 %v14545_v11  ;;  %4046 = vmatmul.bf16.gmra.mxu3 %v14546_v55  ;;  %v14549_v55 = vld [vmem:[#allocation165_spill] sm:$0xff] }
 0x41e   : > { %5016 = vmatpush.bf16.msrb.mxu2 %v7664_v22  ;;  %5125 = vmatpush.bf16.msrb.mxu3 %v7856_v25 }
 0x41f   : > { %v12000_v20 = vpack.c.bf16 %v4104_v48, %v4102_v10 }
 0x420   : > { %v3898_v16 = vpop.f32.mrf.mxu2  ;;  %v4007_v35 = vpop.f32.mrf.mxu3 }
 0x421   : > { %14547 = vst [vmem:[#allocation234_spill] sm:$0xff] %v12000_v20  ;;  %v3899_v39 = vadd.f32 %v3898_v16, %v3790_v15  ;;  %v3682_v56 = vpop.f32.mrf.mxu0  ;;  %v3791_v38 = vpop.f32.mrf.mxu1 }
 0x422   : > { %v3683_v44 = vadd.f32 %v3682_v56, %v11476_v58  ;;  %v14548_v58 = vld [vmem:[#allocation164_spill] sm:$0xff]  ;;  %v14551_v56 = vld [vmem:[#allocation134_spill] sm:$0xff] }
 0x423   : > { %v4008_v23 = vadd.f32 %v4007_v35, %v3899_v39  ;;  %v14550_v39 = vld [vmem:[#allocation116_spill] sm:$0xff] }
 0x424   : > { %v3792_v5 = vadd.f32 %v3791_v38, %v3683_v44  ;;  %v7659_v44 = vld [vmem:[#allocation10 + $0x60] sm:$0xf] }
 0x425   : > { %v4106_v16 = vmax.f32 %v4008_v23, 0.0 }
 0x428   : > { %v3900_v0 = vpop.f32.mrf.mxu2  ;;  %v4009_v2 = vpop.f32.mrf.mxu3 }
 0x429   : > { %v3901_v63 = vadd.f32 %v3900_v0, %v3792_v5  ;;  %v3685_v33 = vpop.f32.mrf.mxu0  ;;  %v3794_v10 = vpop.f32.mrf.mxu1  ;;  %v8108_v5 = vld [vmem:[#allocation10 + $0x74] sm:$0xf0] }
 0x42a   : > { %v3686_v15 = vadd.f32 %v3685_v33, %v11508_v3  ;;  %v7660_v3 = vor.u32 %v8108_v5, %v7659_v44  ;;  %v14555_v5 = vld [vmem:[#allocation174_spill] sm:$0xff] }
 0x42b   : > { %v4010_v48 = vadd.f32 %v4009_v2, %v3901_v63  ;;  %v7852_v2 = vor.u32 %v8156_v27, %v7851_v4  ;;  %v14553_v63 = vld [vmem:[#allocation141_spill] sm:$0xff] }
 0x42c   : > { %v3795_v11 = vadd.f32 %v3794_v10, %v3686_v15  ;;  %3724 = vmatmul.bf16.gmra.mxu0 %v14548_v58  ;;  %3833 = vmatmul.bf16.gmra.mxu1 %v14549_v55  ;;  %v14557_v27 = vld [vmem:[#allocation149_spill] sm:$0xff] }
 0x42d   : > { %v4108_v35 = vmax.f32 %v4010_v48, 0.0  ;;  %3942 = vmatmul.bf16.gmra.mxu2 %v14550_v39  ;;  %4051 = vmatmul.bf16.gmra.mxu3 %v14551_v56 }
 0x42e   : > { %4798 = vmatpush.bf16.msrb.mxu0 %v7660_v3  ;;  %4907 = vmatpush.bf16.msrb.mxu1 %v7852_v2 }
 0x42f   : > { %v12008_v38 = vpack.c.bf16 %v4108_v35, %v4106_v16  ;;  %v14554_v35 = vld [vmem:[#allocation31_spill] sm:$0xff] }
 0x430   : > { %v3903_v7 = vpop.f32.mrf.mxu2  ;;  %v4012_v22 = vpop.f32.mrf.mxu3 }
 0x431   : > { %14552 = vst [vmem:[#allocation243_spill] sm:$0xff] %v12008_v38  ;;  %v3904_v28 = vadd.f32 %v3903_v7, %v3795_v11  ;;  %v3687_v25 = vpop.f32.mrf.mxu0  ;;  %v3796_v0 = vpop.f32.mrf.mxu1  ;;  %v14556_v11 = vld [vmem:[#allocation177_spill] sm:$0xff] }
 0x432   : > { %v3688_v23 = vadd.f32 %v3687_v25, %v14553_v63 }
 0x433   : > { %v4013_v33 = vadd.f32 %v4012_v22, %v3904_v28  ;;  %v14558_v22 = vld [vmem:[#allocation156_spill] sm:$0xff] }
 0x434   : > { %v3797_v10 = vadd.f32 %v3796_v0, %v3688_v23  ;;  %v14560_v23 = vld [vmem:[#allocation160_spill] sm:$0xff] }
 0x435   : > { %v4110_v4 = vmax.f32 %v4013_v33, 0.0 }
 0x438   : > { %v3905_v15 = vpop.f32.mrf.mxu2  ;;  %v4014_v48 = vpop.f32.mrf.mxu3 }
 0x439   : > { %v3906_v58 = vadd.f32 %v3905_v15, %v3797_v10  ;;  %v3690_v55 = vpop.f32.mrf.mxu0  ;;  %v3799_v16 = vpop.f32.mrf.mxu1 }
 0x43a   : > { %v3691_v39 = vadd.f32 %v3690_v55, %v14554_v35 }
 0x43b   : > { %v4015_v56 = vadd.f32 %v4014_v48, %v3906_v58 }
 0x43c   : > { %v3800_v44 = vadd.f32 %v3799_v16, %v3691_v39  ;;  %3729 = vmatmul.bf16.gmra.mxu0 %v14555_v5  ;;  %3838 = vmatmul.bf16.gmra.mxu1 %v14556_v11  ;;  %v14561_v11 = vld [vmem:[#allocation189_spill] sm:$0xff] }
 0x43d   : > { %v4112_v7 = vmax.f32 %v4015_v56, 0.0  ;;  %3947 = vmatmul.bf16.gmra.mxu2 %v14557_v27  ;;  %4056 = vmatmul.bf16.gmra.mxu3 %v14558_v22  ;;  %v14563_v27 = vld [vmem:[#allocation153_spill] sm:$0xff]  ;;  %v14564_v22 = vld [vmem:[#allocation163_spill] sm:$0xff] }
 0x43f   : > { %v12016_v3 = vpack.c.bf16 %v4112_v7, %v4110_v4  ;;  %v14562_v4 = vld [vmem:[#allocation190_spill] sm:$0xff] }
 0x440   : > { %v3908_v28 = vpop.f32.mrf.mxu2  ;;  %v4017_v25 = vpop.f32.mrf.mxu3 }
 0x441   : > { %14559 = vst [vmem:[#allocation249_spill] sm:$0xff] %v12016_v3  ;;  %v3909_v0 = vadd.f32 %v3908_v28, %v3800_v44  ;;  %v3692_v2 = vpop.f32.mrf.mxu0  ;;  %v3801_v63 = vpop.f32.mrf.mxu1 }
 0x442   : > { %v3693_v10 = vadd.f32 %v3692_v2, %v14560_v23  ;;  %v8147_v2 = vld [vmem:[#allocation10 + $0x1b4] sm:$0xf] }
 0x443   : > { %v4018_v15 = vadd.f32 %v4017_v25, %v3909_v0  ;;  %v8099_v25 = vld [vmem:[#allocation10 + $0x34] sm:$0xf]  ;;  %v7637_v0 = vld [vmem:[#allocation10 + $0x48] sm:$0xf0] }
 0x444   : > { %v3802_v48 = vadd.f32 %v3801_v63, %v3693_v10  ;;  %v7829_v10 = vld [vmem:[#allocation10 + $0x1c8] sm:$0xf0] }
 0x445   : > { %v4114_v44 = vmax.f32 %v4018_v15, 0.0 }
 0x448   : > { %v3910_v58 = vpop.f32.mrf.mxu2  ;;  %v4019_v55 = vpop.f32.mrf.mxu3 }
 0x449   : > { %v3911_v16 = vadd.f32 %v3910_v58, %v3802_v48  ;;  %v3695_v33 = vpop.f32.mrf.mxu0  ;;  %v3804_v35 = vpop.f32.mrf.mxu1 }
 0x44a   : > { %v3696_v39 = vadd.f32 %v3695_v33, %v11604_v13  ;;  %v7640_v13 = vor.u32 %v8099_v25, %v7637_v0 }
 0x44b   : > { %v4020_v56 = vadd.f32 %v4019_v55, %v3911_v16  ;;  %v7832_v16 = vor.u32 %v8147_v2, %v7829_v10  ;;  %v14566_v2 = vld [vmem:[#allocation173_spill] sm:$0xff]  ;;  %v14568_v10 = vld [vmem:[#allocation204_spill] sm:$0xff] }
 0x44c   : > { %v3805_v5 = vadd.f32 %v3804_v35, %v3696_v39  ;;  %3734 = vmatmul.bf16.gmra.mxu0 %v14561_v11  ;;  %3843 = vmatmul.bf16.gmra.mxu1 %v14562_v4  ;;  %v7635_v39 = vld [vmem:[#allocation10 + $0x30] sm:$0xf] }
 0x44d   : > { %v4116_v7 = vmax.f32 %v4020_v56, 0.0  ;;  %3952 = vmatmul.bf16.gmra.mxu2 %v14563_v27  ;;  %4061 = vmatmul.bf16.gmra.mxu3 %v14564_v22  ;;  %v8102_v56 = vld [vmem:[#allocation10 + $0x44] sm:$0xf0]  ;;  %v7827_v4 = vld [vmem:[#allocation10 + $0x1b0] sm:$0xf] }
 0x44e   : > { %5017 = vmatpush.bf16.msrb.mxu2 %v7640_v13  ;;  %5126 = vmatpush.bf16.msrb.mxu3 %v7832_v16  ;;  %v7636_v11 = vor.u32 %v8102_v56, %v7635_v39  ;;  %v14570_v16 = vld [vmem:[#allocation166_spill] sm:$0xff] }
 0x44f   : > { %v12024_v28 = vpack.c.bf16 %v4116_v7, %v4114_v44  ;;  %v8150_v44 = vld [vmem:[#allocation10 + $0x1c4] sm:$0xf0] }
 0x450   : > { %v3913_v63 = vpop.f32.mrf.mxu2  ;;  %v4022_v23 = vpop.f32.mrf.mxu3  ;;  %v7828_v7 = vor.u32 %v8150_v44, %v7827_v4  ;;  %4799 = vmatpush.bf16.msrb.mxu0 %v7636_v11  ;;  %v14572_v44 = vld [vmem:[#allocation187_spill] sm:$0xff] }
 0x451   : > { %14565 = vst [vmem:[#allocation241_spill] sm:$0xff] %v12024_v28  ;;  %v3914_v48 = vadd.f32 %v3913_v63, %v3805_v5  ;;  %v3697_v58 = vpop.f32.mrf.mxu0  ;;  %v3806_v55 = vpop.f32.mrf.mxu1 }
 0x452   : > { %v3698_v15 = vadd.f32 %v3697_v58, %v11620_v17  ;;  %4908 = vmatpush.bf16.msrb.mxu1 %v7828_v7 }
 0x453   : > { %v4023_v33 = vadd.f32 %v4022_v23, %v3914_v48  ;;  %v14567_v23 = vld [vmem:[#allocation203_spill] sm:$0xff] }
 0x454   : > { %v3807_v35 = vadd.f32 %v3806_v55, %v3698_v15  ;;  %v14569_v55 = vld [vmem:[#allocation167_spill] sm:$0xff] }
 0x455   : > { %v4118_v48 = vmax.f32 %v4023_v33, 0.0 }
 0x458   : > { %v3915_v27 = vpop.f32.mrf.mxu2  ;;  %v4024_v22 = vpop.f32.mrf.mxu3 }
 0x459   : > { %v3916_v25 = vadd.f32 %v3915_v27, %v3807_v35  ;;  %v3700_v5 = vpop.f32.mrf.mxu0  ;;  %v3809_v0 = vpop.f32.mrf.mxu1 }
 0x45a   : > { %v3701_v63 = vadd.f32 %v3700_v5, %v14566_v2 }
 0x45b   : > { %v4025_v17 = vadd.f32 %v4024_v22, %v3916_v25 }
 0x45c   : > { %v3810_v13 = vadd.f32 %v3809_v0, %v3701_v63  ;;  %3739 = vmatmul.bf16.gmra.mxu0 %v14567_v23  ;;  %3848 = vmatmul.bf16.gmra.mxu1 %v14568_v10  ;;  %v14573_v10 = vld [vmem:[#allocation216_spill] sm:$0xff] }
 0x45d   : > { %v4120_v58 = vmax.f32 %v4025_v17, 0.0  ;;  %3957 = vmatmul.bf16.gmra.mxu2 %v14569_v55  ;;  %4066 = vmatmul.bf16.gmra.mxu3 %v14570_v16  ;;  %v14575_v55 = vld [vmem:[#allocation179_spill] sm:$0xff]  ;;  %v14576_v16 = vld [vmem:[#allocation188_spill] sm:$0xff] }
 0x45f   : > { %v12032_v15 = vpack.c.bf16 %v4120_v58, %v4118_v48  ;;  %v14574_v48 = vld [vmem:[#allocation217_spill] sm:$0xff] }
 0x460   : > { %v3918_v35 = vpop.f32.mrf.mxu2  ;;  %v4027_v39 = vpop.f32.mrf.mxu3 }
 0x461   : > { %14571 = vst [vmem:[#allocation242_spill] sm:$0xff] %v12032_v15  ;;  %v3919_v56 = vadd.f32 %v3918_v35, %v3810_v13  ;;  %v3702_v11 = vpop.f32.mrf.mxu0  ;;  %v3811_v4 = vpop.f32.mrf.mxu1 }
 0x462   : > { %v3703_v7 = vadd.f32 %v3702_v11, %v14572_v44 }
 0x463   : > { %v4028_v27 = vadd.f32 %v4027_v39, %v3919_v56 }
 0x464   : > { %v3812_v22 = vadd.f32 %v3811_v4, %v3703_v7 }
 0x465   : > { %v4122_v13 = vmax.f32 %v4028_v27, 0.0  ;;  %v8141_v27 = vld [vmem:[#allocation10 + $0x184] sm:$0xf] }
 0x468   : > { %v3920_v25 = vpop.f32.mrf.mxu2  ;;  %v4029_v5 = vpop.f32.mrf.mxu3 }
 0x469   : > { %v3921_v0 = vadd.f32 %v3920_v25, %v3812_v22  ;;  %v3705_v33 = vpop.f32.mrf.mxu0  ;;  %v3814_v2 = vpop.f32.mrf.mxu1 }
 0x46a   : > { %v3706_v63 = vadd.f32 %v3705_v33, %v11700_v54  ;;  %v14578_v54 = vld [vmem:[#allocation210_spill] sm:$0xff] }
 0x46b   : > { %v4030_v17 = vadd.f32 %v4029_v5, %v3921_v0  ;;  %v8093_v5 = vld [vmem:[#allocation10 + $0x4] sm:$0xf]  ;;  %v7613_v0 = vld [vmem:[#allocation10 + $0x18] sm:$0xf0] }
 0x46c   : > { %v3815_v23 = vadd.f32 %v3814_v2, %v3706_v63  ;;  %3744 = vmatmul.bf16.gmra.mxu0 %v14573_v10  ;;  %3853 = vmatmul.bf16.gmra.mxu1 %v14574_v48  ;;  %v7616_v33 = vor.u32 %v8093_v5, %v7613_v0  ;;  %v7805_v2 = vld [vmem:[#allocation10 + $0x198] sm:$0xf0]  ;;  %v8096_v5 = vld [vmem:[#allocation10 + $0x14] sm:$0xf0]  ;;  %v7803_v0 = vld [vmem:[#allocation10 + $0x180] sm:$0xf] }
 0x46d   : > { %v4124_v58 = vmax.f32 %v4030_v17, 0.0  ;;  %3962 = vmatmul.bf16.gmra.mxu2 %v14575_v55  ;;  %4071 = vmatmul.bf16.gmra.mxu3 %v14576_v16  ;;  %v7808_v63 = vor.u32 %v8141_v27, %v7805_v2  ;;  %v8144_v2 = vld [vmem:[#allocation10 + $0x194] sm:$0xf0] }
 0x46e   : > { %5018 = vmatpush.bf16.msrb.mxu2 %v7616_v33 }
 0x46f   : > { %v12040_v35 = vpack.c.bf16 %v4124_v58, %v4122_v13  ;;  %5127 = vmatpush.bf16.msrb.mxu3 %v7808_v63 }
 0x470   : > { %v3923_v39 = vpop.f32.mrf.mxu2  ;;  %v4032_v56 = vpop.f32.mrf.mxu3 }
 0x471   : > { %14577 = vst [vmem:[#allocation237_spill] sm:$0xff] %v12040_v35  ;;  %v3924_v11 = vadd.f32 %v3923_v39, %v3815_v23  ;;  %v3707_v4 = vpop.f32.mrf.mxu0  ;;  %v3816_v44 = vpop.f32.mrf.mxu1  ;;  %v14579_v39 = vld [vmem:[#allocation232_spill] sm:$0xff] }
 0x472   : > { %v3708_v7 = vadd.f32 %v3707_v4, %v14578_v54  ;;  %v14582_v54 = vld [vmem:[#allocation193_spill] sm:$0xff] }
 0x473   : > { %v4033_v22 = vadd.f32 %v4032_v56, %v3924_v11  ;;  %v14580_v56 = vld [vmem:[#allocation233_spill] sm:$0xff] }
 0x474   : > { %v3817_v25 = vadd.f32 %v3816_v44, %v3708_v7  ;;  %v14581_v44 = vld [vmem:[#allocation183_spill] sm:$0xff] }
 0x475   : > { %v4126_v11 = vmax.f32 %v4033_v22, 0.0 }
 0x478   : > { %v3925_v17 = vpop.f32.mrf.mxu2  ;;  %v4034_v10 = vpop.f32.mrf.mxu3 }
 0x479   : > { %v3926_v48 = vadd.f32 %v3925_v17, %v3817_v25  ;;  %v3710_v13 = vpop.f32.mrf.mxu0  ;;  %v3819_v58 = vpop.f32.mrf.mxu1  ;;  %v7611_v25 = vld [vmem:[#allocation10] sm:$0xf] }
 0x47a   : > { %v3711_v23 = vadd.f32 %v3710_v13, %v11748_v24  ;;  %v7612_v24 = vor.u32 %v8096_v5, %v7611_v25  ;;  %v14585_v5 = vld [vmem:[#allocation244_spill] sm:$0xff] }
 0x47b   : > { %v4035_v55 = vadd.f32 %v4034_v10, %v3926_v48  ;;  %v7804_v48 = vor.u32 %v8144_v2, %v7803_v0 }
 0x47c   : > { %v3820_v16 = vadd.f32 %v3819_v58, %v3711_v23  ;;  %3749 = vmatmul.bf16.gmra.mxu0 %v14579_v39  ;;  %3858 = vmatmul.bf16.gmra.mxu1 %v14580_v56 }
 0x47d   : > { %v4128_v4 = vmax.f32 %v4035_v55, 0.0  ;;  %3967 = vmatmul.bf16.gmra.mxu2 %v14581_v44  ;;  %4076 = vmatmul.bf16.gmra.mxu3 %v14582_v54 }
 0x47e   : > { %4800 = vmatpush.bf16.msrb.mxu0 %v7612_v24  ;;  %4909 = vmatpush.bf16.msrb.mxu1 %v7804_v48 }
 0x47f   : > { %v12048_v7 = vpack.c.bf16 %v4128_v4, %v4126_v11  ;;  %v14584_v4 = vld [vmem:[#allocation208_spill] sm:$0xff] }
 0x480   : > { %v3928_v33 = vpop.f32.mrf.mxu2  ;;  %v4037_v27 = vpop.f32.mrf.mxu3 }
 0x481   : > { %14583 = vst [vmem:[#allocation238_spill] sm:$0xff] %v12048_v7  ;;  %v3929_v63 = vadd.f32 %v3928_v33, %v3820_v16  ;;  %v3712_v17 = vpop.f32.mrf.mxu0  ;;  %v3821_v10 = vpop.f32.mrf.mxu1  ;;  %v14586_v16 = vld [vmem:[#allocation245_spill] sm:$0xff] }
 0x482   : > { %v3713_v22 = vadd.f32 %v3712_v17, %v11764_v60  ;;  %v14587_v60 = vld [vmem:[#allocation200_spill] sm:$0xff] }
 0x483   : > { %v4038_v13 = vadd.f32 %v4037_v27, %v3929_v63  ;;  %v14588_v27 = vld [vmem:[#allocation195_spill] sm:$0xff] }
 0x484   : > { %v3822_v58 = vadd.f32 %v3821_v10, %v3713_v22  ;;  %v14590_v22 = vld [vmem:[#allocation220_spill] sm:$0xff] }
 0x485   : > { %v4130_v0 = vmax.f32 %v4038_v13, 0.0 }
 0x488   : > { %v3930_v23 = vpop.f32.mrf.mxu2  ;;  %v4039_v55 = vpop.f32.mrf.mxu3 }
 0x489   : > { %v3931_v39 = vadd.f32 %v3930_v23, %v3822_v58  ;;  %v3715_v56 = vpop.f32.mrf.mxu0  ;;  %v3824_v11 = vpop.f32.mrf.mxu1 }
 0x48a   : > { %v3716_v44 = vadd.f32 %v3715_v56, %v14584_v4 }
 0x48b   : > { %v4040_v54 = vadd.f32 %v4039_v55, %v3931_v39 }
 0x48c   : > { %v3825_v25 = vadd.f32 %v3824_v11, %v3716_v44  ;;  %3754 = vmatmul.bf16.gmra.mxu0 %v14585_v5  ;;  %3863 = vmatmul.bf16.gmra.mxu1 %v14586_v16  ;;  %v14591_v16 = vld [vmem:[#allocation256_spill] sm:$0xff] }
 0x48d   : > { %v4132_v33 = vmax.f32 %v4040_v54, 0.0  ;;  %3972 = vmatmul.bf16.gmra.mxu2 %v14587_v60  ;;  %4081 = vmatmul.bf16.gmra.mxu3 %v14588_v27  ;;  %v14593_v60 = vld [vmem:[#allocation223_spill] sm:$0xff]  ;;  %v14594_v27 = vld [vmem:[#allocation213_spill] sm:$0xff] }
 0x48f   : > { %v12056_v24 = vpack.c.bf16 %v4132_v33, %v4130_v0  ;;  %v14592_v0 = vld [vmem:[#allocation257_spill] sm:$0xff] }
 0x490   : > { %v3933_v2 = vpop.f32.mrf.mxu2  ;;  %v4042_v63 = vpop.f32.mrf.mxu3 }
 0x491   : > { %14589 = vst [vmem:[#allocation255_spill] sm:$0xff] %v12056_v24  ;;  %v3934_v17 = vadd.f32 %v3933_v2, %v3825_v25  ;;  %v3717_v10 = vpop.f32.mrf.mxu0  ;;  %v3826_v48 = vpop.f32.mrf.mxu1 }
 0x492   : > { %v3718_v58 = vadd.f32 %v3717_v10, %v14590_v22  ;;  %v8184_v10 = vld [vmem:[#allocation10 + $0x2dc] sm:$0xf] }
 0x493   : > { %v4043_v23 = vadd.f32 %v4042_v63, %v3934_v17  ;;  %v8136_v63 = vld [vmem:[#allocation10 + $0x15c] sm:$0xf]  ;;  %v7789_v17 = vld [vmem:[#allocation10 + $0x170] sm:$0xf0] }
 0x494   : > { %v3827_v55 = vadd.f32 %v3826_v48, %v3718_v58  ;;  %v7981_v58 = vld [vmem:[#allocation10 + $0x2f0] sm:$0xf0] }
 0x495   : > { %v4134_v25 = vmax.f32 %v4043_v23, 0.0 }
 0x498   : > { %v3935_v39 = vpop.f32.mrf.mxu2  ;;  %v4044_v56 = vpop.f32.mrf.mxu3 }
 0x499   : > { %v3936_v11 = vadd.f32 %v3935_v39, %v3827_v55  ;;  %v3720_v13 = vpop.f32.mrf.mxu0  ;;  %v3829_v4 = vpop.f32.mrf.mxu1 }
 0x49a   : > { %v3721_v44 = vadd.f32 %v3720_v13, %v11844_v21  ;;  %v7792_v21 = vor.u32 %v8136_v63, %v7789_v17 }
 0x49b   : > { %v4045_v54 = vadd.f32 %v4044_v56, %v3936_v11  ;;  %v7984_v11 = vor.u32 %v8184_v10, %v7981_v58 }
 0x49c   : > { %v3830_v5 = vadd.f32 %v3829_v4, %v3721_v44  ;;  %3759 = vmatmul.bf16.gmra.mxu0 %v14591_v16  ;;  %3868 = vmatmul.bf16.gmra.mxu1 %v14592_v0  ;;  %v7787_v44 = vld [vmem:[#allocation10 + $0x158] sm:$0xf] }
 0x49d   : > { %v4136_v33 = vmax.f32 %v4045_v54, 0.0  ;;  %3977 = vmatmul.bf16.gmra.mxu2 %v14593_v60  ;;  %4086 = vmatmul.bf16.gmra.mxu3 %v14594_v27  ;;  %v8139_v54 = vld [vmem:[#allocation10 + $0x16c] sm:$0xf0]  ;;  %v7979_v0 = vld [vmem:[#allocation10 + $0x2d8] sm:$0xf] }
 0x49e   : > { %5447 = vmatpush.bf16.msra.mxu2 %v7792_v21  ;;  %5556 = vmatpush.bf16.msra.mxu3 %v7984_v11  ;;  %v7788_v16 = vor.u32 %v8139_v54, %v7787_v44  ;;  %v14597_v21 = vld [vmem:[#allocation264_spill] sm:$0xff] }
 0x49f   : > { %v12064_v2 = vpack.c.bf16 %v4136_v33, %v4134_v25  ;;  %v8187_v25 = vld [vmem:[#allocation10 + $0x2ec] sm:$0xf0] }
 0x4a0   : > { %v3938_v48 = vpop.f32.mrf.mxu2  ;;  %v4047_v22 = vpop.f32.mrf.mxu3  ;;  %v7980_v33 = vor.u32 %v8187_v25, %v7979_v0  ;;  %5229 = vmatpush.bf16.msra.mxu0 %v7788_v16 }
 0x4a1   : > { %14595 = vst [vmem:[#allocation262_spill] sm:$0xff] %v12064_v2  ;;  %v3939_v55 = vadd.f32 %v3938_v48, %v3830_v5  ;;  %v3722_v39 = vpop.f32.mrf.mxu0  ;;  %v3831_v56 = vpop.f32.mrf.mxu1 }
 0x4a2   : > { %v3723_v23 = vadd.f32 %v3722_v39, %v11854_v53  ;;  %5338 = vmatpush.bf16.msra.mxu1 %v7980_v33 }
 0x4a3   : > { %v4048_v13 = vadd.f32 %v4047_v22, %v3939_v55  ;;  %v14596_v22 = vld [vmem:[#allocation263_spill] sm:$0xff] }
 0x4a4   : > { %v3832_v4 = vadd.f32 %v3831_v56, %v3723_v23 }
 0x4a5   : > { %v4138_v58 = vmax.f32 %v4048_v13, 0.0 }
 0x4a8   : > { %v3940_v60 = vpop.f32.mrf.mxu2  ;;  %v4049_v27 = vpop.f32.mrf.mxu3 }
 0x4a9   : > { %v3941_v63 = vadd.f32 %v3940_v60, %v3832_v4  ;;  %v3725_v5 = vpop.f32.mrf.mxu0  ;;  %v3834_v17 = vpop.f32.mrf.mxu1 }
 0x4aa   : > { %v3726_v10 = vadd.f32 %v3725_v5, %v11862_v30 }
 0x4ab   : > { %v4050_v53 = vadd.f32 %v4049_v27, %v3941_v63  ;;  %v14599_v63 = vld [vmem:[#allocation84_spill] sm:$0xff] }
 0x4ac   : > { %v3835_v48 = vadd.f32 %v3834_v17, %v3726_v10  ;;  %3764 = vmatmul.bf16.gmra.mxu0 %v14596_v22  ;;  %3873 = vmatmul.bf16.gmra.mxu1 %v14597_v21 }
 0x4ad   : > { %v4140_v55 = vmax.f32 %v4050_v53, 0.0  ;;  %3982 = vmatmul.bf16.gmra.mxu2 %v11850_v51  ;;  %4091 = vmatmul.bf16.gmra.mxu3 %v11852_v40 }
 0x4af   : > { %v12072_v39 = vpack.c.bf16 %v4140_v55, %v4138_v58 }
 0x4b0   : > { %v3943_v56 = vpop.f32.mrf.mxu2  ;;  %v4052_v11 = vpop.f32.mrf.mxu3 }
 0x4b1   : > { %14598 = vst [vmem:[#allocation253_spill] sm:$0xff] %v12072_v39  ;;  %v3944_v23 = vadd.f32 %v3943_v56, %v3835_v48  ;;  %v3727_v4 = vpop.f32.mrf.mxu0  ;;  %v3836_v44 = vpop.f32.mrf.mxu1  ;;  %v8130_v56 = vld [vmem:[#allocation10 + $0x12c] sm:$0xf] }
 0x4b2   : > { %v3728_v30 = vadd.f32 %v3727_v4, %v11868_v42  ;;  %v8178_v4 = vld [vmem:[#allocation10 + $0x2ac] sm:$0xf] }
 0x4b3   : > { %v4053_v54 = vadd.f32 %v4052_v11, %v3944_v23  ;;  %v7765_v11 = vld [vmem:[#allocation10 + $0x140] sm:$0xf0] }
 0x4b4   : > { %v3837_v16 = vadd.f32 %v3836_v44, %v3728_v30  ;;  %v7768_v23 = vor.u32 %v8130_v56, %v7765_v11  ;;  %v7957_v44 = vld [vmem:[#allocation10 + $0x2c0] sm:$0xf0] }
 0x4b5   : > { %v4142_v5 = vmax.f32 %v4053_v54, 0.0  ;;  %v7960_v30 = vor.u32 %v8178_v4, %v7957_v44 }
 0x4b6   : > { %5448 = vmatpush.bf16.msra.mxu2 %v7768_v23 }
 0x4b7   : > { %5557 = vmatpush.bf16.msra.mxu3 %v7960_v30 }
 0x4b8   : > { %v3945_v0 = vpop.f32.mrf.mxu2  ;;  %v4054_v25 = vpop.f32.mrf.mxu3 }
 0x4b9   : > { %v3946_v33 = vadd.f32 %v3945_v0, %v3837_v16  ;;  %v3730_v13 = vpop.f32.mrf.mxu0  ;;  %v3839_v60 = vpop.f32.mrf.mxu1 }
 0x4ba   : > { %v3731_v51 = vadd.f32 %v3730_v13, %v11876_v47 }
 0x4bb   : > { %v4055_v27 = vadd.f32 %v4054_v25, %v3946_v33 }
 0x4bc   : > { %v3840_v40 = vadd.f32 %v3839_v60, %v3731_v51  ;;  %4801 = vmatmul.bf16.vlgmr.msrb.gmra.mxu0 %v14599_v63  ;;  %4910 = vmatmul.bf16.vlgmr.msrb.gmra.mxu1 %v11992_v29 }
 0x4bd   : > { %v4144_v17 = vmax.f32 %v4055_v27, 0.0  ;;  %5019 = vmatmul.bf16.vlgmr.msrb.gmra.mxu2 %v14599_v63  ;;  %5128 = vmatmul.bf16.vlgmr.msrb.gmra.mxu3 %v11992_v29 }
 0x4bf   : > { %v12080_v42 = vpack.c.bf16 %v4144_v17, %v4142_v5  ;;  %v7763_v17 = vld [vmem:[#allocation10 + $0x128] sm:$0xf] }
 0x4c0   : > { %v3948_v10 = vpop.f32.mrf.mxu2  ;;  %v4057_v53 = vpop.f32.mrf.mxu3 }
 0x4c1   : > { %14600 = vst [vmem:[#allocation254_spill] sm:$0xff] %v12080_v42  ;;  %v3949_v48 = vadd.f32 %v3948_v10, %v3840_v40  ;;  %v3732_v22 = vpop.f32.mrf.mxu0  ;;  %v3841_v21 = vpop.f32.mrf.mxu1  ;;  %v8133_v10 = vld [vmem:[#allocation10 + $0x13c] sm:$0xf0] }
 0x4c2   : > { %v3733_v47 = vadd.f32 %v3732_v22, %v11882_v49  ;;  %v14601_v49 = vld [vmem:[#allocation93_spill] sm:$0xff] }
 0x4c3   : > { %v4058_v58 = vadd.f32 %v4057_v53, %v3949_v48  ;;  %v7955_v53 = vld [vmem:[#allocation10 + $0x2a8] sm:$0xf] }
 0x4c4   : > { %v3842_v55 = vadd.f32 %v3841_v21, %v3733_v47  ;;  %v8181_v21 = vld [vmem:[#allocation10 + $0x2bc] sm:$0xf0] }
 0x4c5   : > { %v4146_v27 = vmax.f32 %v4058_v58, 0.0  ;;  %v7956_v11 = vor.u32 %v8181_v21, %v7955_v53 }
 0x4c7   : > { %5339 = vmatpush.bf16.msra.mxu1 %v7956_v11 }
 0x4c8   : > { %v3950_v54 = vpop.f32.mrf.mxu2  ;;  %v4059_v16 = vpop.f32.mrf.mxu3 }
 0x4c9   : > { %v3951_v0 = vadd.f32 %v3950_v54, %v3842_v55  ;;  %v3735_v25 = vpop.f32.mrf.mxu0  ;;  %v3844_v33 = vpop.f32.mrf.mxu1 }
 0x4ca   : > { %v3736_v13 = vadd.f32 %v3735_v25, %v11890_v36  ;;  %v7764_v36 = vor.u32 %v8133_v10, %v7763_v17 }
 0x4cb   : > { %v4060_v60 = vadd.f32 %v4059_v16, %v3951_v0 }
 0x4cc   : > { %v3845_v51 = vadd.f32 %v3844_v33, %v3736_v13  ;;  %4806 = vmatmul.bf16.gmra.mxu0 %v14601_v49  ;;  %4915 = vmatmul.bf16.gmra.mxu1 %v12000_v20 }
 0x4cd   : > { %v4148_v40 = vmax.f32 %v4060_v60, 0.0  ;;  %5024 = vmatmul.bf16.gmra.mxu2 %v14601_v49  ;;  %5133 = vmatmul.bf16.gmra.mxu3 %v12000_v20  ;;  %v14603_v60 = vld [vmem:[#allocation115_spill] sm:$0xff] }
 0x4ce   : > { %5230 = vmatpush.bf16.msra.mxu0 %v7764_v36 }
 0x4cf   : > { %v12088_v5 = vpack.c.bf16 %v4148_v40, %v4146_v27 }
 0x4d0   : > { %v3953_v48 = vpop.f32.mrf.mxu2  ;;  %v4062_v22 = vpop.f32.mrf.mxu3 }
 0x4d1   : > { %14602 = vst [vmem:[#allocation248_spill] sm:$0xff] %v12088_v5  ;;  %v3954_v47 = vadd.f32 %v3953_v48, %v3845_v51  ;;  %v3737_v55 = vpop.f32.mrf.mxu0  ;;  %v3846_v56 = vpop.f32.mrf.mxu1 }
 0x4d2   : > { %v3738_v58 = vadd.f32 %v3737_v55, %v11896_v46 }
 0x4d3   : > { %v4063_v23 = vadd.f32 %v4062_v22, %v3954_v47 }
 0x4d4   : > { %v3847_v4 = vadd.f32 %v3846_v56, %v3738_v58 }
 0x4d5   : > { %v4150_v51 = vmax.f32 %v4063_v23, 0.0 }
 0x4d8   : > { %v3955_v44 = vpop.f32.mrf.mxu2  ;;  %v4064_v30 = vpop.f32.mrf.mxu3 }
 0x4d9   : > { %v3956_v54 = vadd.f32 %v3955_v44, %v3847_v4  ;;  %v3740_v16 = vpop.f32.mrf.mxu0  ;;  %v3849_v0 = vpop.f32.mrf.mxu1  ;;  %v14605_v44 = vld [vmem:[#allocation132_spill] sm:$0xff] }
 0x4da   : > { %v3741_v25 = vadd.f32 %v3740_v16, %v11904_v41  ;;  %v8124_v16 = vld [vmem:[#allocation10 + $0xfc] sm:$0xf] }
 0x4db   : > { %v4065_v33 = vadd.f32 %v4064_v30, %v3956_v54 }
 0x4dc   : > { %v3850_v13 = vadd.f32 %v3849_v0, %v3741_v25  ;;  %4811 = vmatmul.bf16.gmra.mxu0 %v14603_v60  ;;  %4920 = vmatmul.bf16.gmra.mxu1 %v12008_v38  ;;  %v7741_v0 = vld [vmem:[#allocation10 + $0x110] sm:$0xf0]  ;;  %v8172_v25 = vld [vmem:[#allocation10 + $0x27c] sm:$0xf] }
 0x4dd   : > { %v4152_v27 = vmax.f32 %v4065_v33, 0.0  ;;  %5029 = vmatmul.bf16.gmra.mxu2 %v14603_v60  ;;  %5138 = vmatmul.bf16.gmra.mxu3 %v12008_v38 }
 0x4df   : > { %v12096_v46 = vpack.c.bf16 %v4152_v27, %v4150_v51  ;;  %v7933_v51 = vld [vmem:[#allocation10 + $0x290] sm:$0xf0] }
 0x4e0   : > { %v3958_v40 = vpop.f32.mrf.mxu2  ;;  %v4067_v17 = vpop.f32.mrf.mxu3 }
 0x4e1   : > { %14604 = vst [vmem:[#allocation252_spill] sm:$0xff] %v12096_v46  ;;  %v3959_v10 = vadd.f32 %v3958_v40, %v3850_v13  ;;  %v3742_v53 = vpop.f32.mrf.mxu0  ;;  %v3851_v48 = vpop.f32.mrf.mxu1 }
 0x4e2   : > { %v3743_v41 = vadd.f32 %v3742_v53, %v11910_v43 }
 0x4e3   : > { %v4068_v22 = vadd.f32 %v4067_v17, %v3959_v10  ;;  %v7936_v10 = vor.u32 %v8172_v25, %v7933_v51 }
 0x4e4   : > { %v3852_v36 = vadd.f32 %v3851_v48, %v3743_v41 }
 0x4e5   : > { %v4154_v30 = vmax.f32 %v4068_v22, 0.0  ;;  %5558 = vmatpush.bf16.msra.mxu3 %v7936_v10  ;;  %v7739_v22 = vld [vmem:[#allocation10 + $0xf8] sm:$0xf] }
 0x4e8   : > { %v3960_v21 = vpop.f32.mrf.mxu2  ;;  %v4069_v47 = vpop.f32.mrf.mxu3 }
 0x4e9   : > { %v3961_v55 = vadd.f32 %v3960_v21, %v3852_v36  ;;  %v3745_v56 = vpop.f32.mrf.mxu0  ;;  %v3854_v11 = vpop.f32.mrf.mxu1  ;;  %v8127_v36 = vld [vmem:[#allocation10 + $0x10c] sm:$0xf0] }
 0x4ea   : > { %v3746_v58 = vadd.f32 %v3745_v56, %v11918_v34  ;;  %v7744_v34 = vor.u32 %v8124_v16, %v7741_v0  ;;  %v7740_v21 = vor.u32 %v8127_v36, %v7739_v22  ;;  %v14607_v0 = vld [vmem:[#allocation146_spill] sm:$0xff] }
 0x4eb   : > { %v4070_v23 = vadd.f32 %v4069_v47, %v3961_v55  ;;  %v7931_v47 = vld [vmem:[#allocation10 + $0x278] sm:$0xf]  ;;  %v8175_v55 = vld [vmem:[#allocation10 + $0x28c] sm:$0xf0] }
 0x4ec   : > { %v3855_v4 = vadd.f32 %v3854_v11, %v3746_v58  ;;  %4816 = vmatmul.bf16.gmra.mxu0 %v14605_v44  ;;  %4925 = vmatmul.bf16.gmra.mxu1 %v12016_v3  ;;  %v7932_v56 = vor.u32 %v8175_v55, %v7931_v47 }
 0x4ed   : > { %v4156_v54 = vmax.f32 %v4070_v23, 0.0  ;;  %5034 = vmatmul.bf16.gmra.mxu2 %v14605_v44  ;;  %5143 = vmatmul.bf16.gmra.mxu3 %v12016_v3 }
 0x4ee   : > { %5449 = vmatpush.bf16.msra.mxu2 %v7744_v34  ;;  %5231 = vmatpush.bf16.msra.mxu0 %v7740_v21 }
 0x4ef   : > { %v12104_v43 = vpack.c.bf16 %v4156_v54, %v4154_v30  ;;  %5340 = vmatpush.bf16.msra.mxu1 %v7932_v56 }
 0x4f0   : > { %v3963_v33 = vpop.f32.mrf.mxu2  ;;  %v4072_v13 = vpop.f32.mrf.mxu3 }
 0x4f1   : > { %14606 = vst [vmem:[#allocation260_spill] sm:$0xff] %v12104_v43  ;;  %v3964_v27 = vadd.f32 %v3963_v33, %v3855_v4  ;;  %v3747_v40 = vpop.f32.mrf.mxu0  ;;  %v3856_v17 = vpop.f32.mrf.mxu1 }
 0x4f2   : > { %v3748_v53 = vadd.f32 %v3747_v40, %v11924_v45 }
 0x4f3   : > { %v4073_v48 = vadd.f32 %v4072_v13, %v3964_v27 }
 0x4f4   : > { %v3857_v41 = vadd.f32 %v3856_v17, %v3748_v53 }
 0x4f5   : > { %v4158_v25 = vmax.f32 %v4073_v48, 0.0 }
 0x4f8   : > { %v3965_v11 = vpop.f32.mrf.mxu2  ;;  %v4074_v58 = vpop.f32.mrf.mxu3 }
 0x4f9   : > { %v3966_v23 = vadd.f32 %v3965_v11, %v3857_v41  ;;  %v3750_v4 = vpop.f32.mrf.mxu0  ;;  %v3859_v30 = vpop.f32.mrf.mxu1  ;;  %v14609_v11 = vld [vmem:[#allocation155_spill] sm:$0xff] }
 0x4fa   : > { %v3751_v54 = vadd.f32 %v3750_v4, %v11932_v14 }
 0x4fb   : > { %v4075_v45 = vadd.f32 %v4074_v58, %v3966_v23 }
 0x4fc   : > { %v3860_v16 = vadd.f32 %v3859_v30, %v3751_v54  ;;  %4821 = vmatmul.bf16.gmra.mxu0 %v14607_v0  ;;  %4930 = vmatmul.bf16.gmra.mxu1 %v12024_v28 }
 0x4fd   : > { %v4160_v33 = vmax.f32 %v4075_v45, 0.0  ;;  %5039 = vmatmul.bf16.gmra.mxu2 %v14607_v0  ;;  %5148 = vmatmul.bf16.gmra.mxu3 %v12024_v28 }
 0x4ff   : > { %v12112_v13 = vpack.c.bf16 %v4160_v33, %v4158_v25 }
 0x500   : > { %v3968_v34 = vpop.f32.mrf.mxu2  ;;  %v4077_v51 = vpop.f32.mrf.mxu3 }
 0x501   : > { %14608 = vst [vmem:[#allocation261_spill] sm:$0xff] %v12112_v13  ;;  %v3969_v27 = vadd.f32 %v3968_v34, %v3860_v16  ;;  %v3752_v40 = vpop.f32.mrf.mxu0  ;;  %v3861_v17 = vpop.f32.mrf.mxu1  ;;  %v8118_v34 = vld [vmem:[#allocation10 + $0xcc] sm:$0xf] }
 0x502   : > { %v3753_v14 = vadd.f32 %v3752_v40, %v11938_v1  ;;  %v8166_v40 = vld [vmem:[#allocation10 + $0x24c] sm:$0xf] }
 0x503   : > { %v4078_v10 = vadd.f32 %v4077_v51, %v3969_v27  ;;  %v7717_v51 = vld [vmem:[#allocation10 + $0xe0] sm:$0xf0] }
 0x504   : > { %v3862_v53 = vadd.f32 %v3861_v17, %v3753_v14  ;;  %v7720_v27 = vor.u32 %v8118_v34, %v7717_v51  ;;  %v7909_v17 = vld [vmem:[#allocation10 + $0x260] sm:$0xf0] }
 0x505   : > { %v4162_v58 = vmax.f32 %v4078_v10, 0.0  ;;  %v7912_v14 = vor.u32 %v8166_v40, %v7909_v17 }
 0x506   : > { %5450 = vmatpush.bf16.msra.mxu2 %v7720_v27 }
 0x507   : > { %5559 = vmatpush.bf16.msra.mxu3 %v7912_v14 }
 0x508   : > { %v3970_v41 = vpop.f32.mrf.mxu2  ;;  %v4079_v22 = vpop.f32.mrf.mxu3 }
 0x509   : > { %v3971_v36 = vadd.f32 %v3970_v41, %v3862_v53  ;;  %v3755_v48 = vpop.f32.mrf.mxu0  ;;  %v3864_v21 = vpop.f32.mrf.mxu1 }
 0x50a   : > { %v3756_v47 = vadd.f32 %v3755_v48, %v11946_v12 }
 0x50b   : > { %v4080_v55 = vadd.f32 %v4079_v22, %v3971_v36 }
 0x50c   : > { %v3865_v56 = vadd.f32 %v3864_v21, %v3756_v47  ;;  %4826 = vmatmul.bf16.gmra.mxu0 %v14609_v11  ;;  %4935 = vmatmul.bf16.gmra.mxu1 %v12032_v15 }
 0x50d   : > { %v4164_v23 = vmax.f32 %v4080_v55, 0.0  ;;  %5044 = vmatmul.bf16.gmra.mxu2 %v14609_v11  ;;  %5153 = vmatmul.bf16.gmra.mxu3 %v12032_v15 }
 0x50f   : > { %v12120_v1 = vpack.c.bf16 %v4164_v23, %v4162_v58  ;;  %v7715_v23 = vld [vmem:[#allocation10 + $0xc8] sm:$0xf] }
 0x510   : > { %v3973_v4 = vpop.f32.mrf.mxu2  ;;  %v4082_v30 = vpop.f32.mrf.mxu3 }
 0x511   : > { %14610 = vst [vmem:[#allocation36_spill] sm:$0xff] %v12120_v1  ;;  %v3974_v54 = vadd.f32 %v3973_v4, %v3865_v56  ;;  %v3757_v45 = vpop.f32.mrf.mxu0  ;;  %v3866_v16 = vpop.f32.mrf.mxu1  ;;  %v8121_v4 = vld [vmem:[#allocation10 + $0xdc] sm:$0xf0] }
 0x512   : > { %v3758_v12 = vadd.f32 %v3757_v45, %v11952_v9  ;;  %v14611_v9 = vld [vmem:[#allocation180_spill] sm:$0xff] }
 0x513   : > { %v4083_v25 = vadd.f32 %v4082_v30, %v3974_v54  ;;  %v7907_v30 = vld [vmem:[#allocation10 + $0x248] sm:$0xf] }
 0x514   : > { %v3867_v33 = vadd.f32 %v3866_v16, %v3758_v12  ;;  %v8169_v16 = vld [vmem:[#allocation10 + $0x25c] sm:$0xf0] }
 0x515   : > { %v4166_v55 = vmax.f32 %v4083_v25, 0.0  ;;  %v7908_v51 = vor.u32 %v8169_v16, %v7907_v30 }
 0x517   : > { %5341 = vmatpush.bf16.msra.mxu1 %v7908_v51 }
 0x518   : > { %v3975_v10 = vpop.f32.mrf.mxu2  ;;  %v4084_v53 = vpop.f32.mrf.mxu3 }
 0x519   : > { %v3976_v41 = vadd.f32 %v3975_v10, %v3867_v33  ;;  %v3760_v22 = vpop.f32.mrf.mxu0  ;;  %v3869_v36 = vpop.f32.mrf.mxu1 }
 0x51a   : > { %v3761_v48 = vadd.f32 %v3760_v22, %v11960_v32  ;;  %v7716_v32 = vor.u32 %v8121_v4, %v7715_v23 }
 0x51b   : > { %v4085_v21 = vadd.f32 %v4084_v53, %v3976_v41 }
 0x51c   : > { %v3870_v47 = vadd.f32 %v3869_v36, %v3761_v48  ;;  %4831 = vmatmul.bf16.gmra.mxu0 %v14611_v9  ;;  %4940 = vmatmul.bf16.gmra.mxu1 %v12040_v35 }
 0x51d   : > { %v4168_v56 = vmax.f32 %v4085_v21, 0.0  ;;  %5049 = vmatmul.bf16.gmra.mxu2 %v14611_v9  ;;  %5158 = vmatmul.bf16.gmra.mxu3 %v12040_v35  ;;  %v14613_v21 = vld [vmem:[#allocation182_spill] sm:$0xff] }
 0x51e   : > { %5232 = vmatpush.bf16.msra.mxu0 %v7716_v32 }
 0x51f   : > { %v12128_v58 = vpack.c.bf16 %v4168_v56, %v4166_v55 }
 0x520   : > { %v3978_v54 = vpop.f32.mrf.mxu2  ;;  %v4087_v45 = vpop.f32.mrf.mxu3 }
 0x521   : > { %14612 = vst [vmem:[#allocation37_spill] sm:$0xff] %v12128_v58  ;;  %v3979_v12 = vadd.f32 %v3978_v54, %v3870_v47  ;;  %v3762_v33 = vpop.f32.mrf.mxu0  ;;  %v3871_v34 = vpop.f32.mrf.mxu1 }
 0x522   : > { %v3763_v25 = vadd.f32 %v3762_v33, %v11966_v8 }
 0x523   : > { %v4088_v27 = vadd.f32 %v4087_v45, %v3979_v12 }
 0x524   : > { %v3872_v40 = vadd.f32 %v3871_v34, %v3763_v25 }
 0x525   : > { %v4170_v47 = vmax.f32 %v4088_v27, 0.0 }
 0x528   : > { %v3980_v17 = vpop.f32.mrf.mxu2  ;;  %v4089_v14 = vpop.f32.mrf.mxu3 }
 0x529   : > { %v3981_v10 = vadd.f32 %v3980_v17, %v3872_v40  ;;  %v3765_v53 = vpop.f32.mrf.mxu0  ;;  %v3874_v41 = vpop.f32.mrf.mxu1  ;;  %v14615_v40 = vld [vmem:[#allocation199_spill] sm:$0xff] }
 0x52a   : > { %v3766_v22 = vadd.f32 %v3765_v53, %v11974_v52  ;;  %v7693_v53 = vld [vmem:[#allocation10 + $0xb0] sm:$0xf0] }
 0x52b   : > { %v4090_v36 = vadd.f32 %v4089_v14, %v3981_v10  ;;  %v8112_v10 = vld [vmem:[#allocation10 + $0x9c] sm:$0xf] }
 0x52c   : > { %v3875_v48 = vadd.f32 %v3874_v41, %v3766_v22  ;;  %4836 = vmatmul.bf16.gmra.mxu0 %v14613_v21  ;;  %4945 = vmatmul.bf16.gmra.mxu1 %v12048_v7  ;;  %v8160_v41 = vld [vmem:[#allocation10 + $0x21c] sm:$0xf] }
 0x52d   : > { %v4172_v55 = vmax.f32 %v4090_v36, 0.0  ;;  %5054 = vmatmul.bf16.gmra.mxu2 %v14613_v21  ;;  %5163 = vmatmul.bf16.gmra.mxu3 %v12048_v7 }
 0x52f   : > { %v12136_v8 = vpack.c.bf16 %v4172_v55, %v4170_v47  ;;  %v7885_v47 = vld [vmem:[#allocation10 + $0x230] sm:$0xf0]  ;;  %v14617_v55 = vld [vmem:[#allocation26_spill] sm:$0xff] }
 0x530   : > { %v3983_v56 = vpop.f32.mrf.mxu2  ;;  %v4092_v23 = vpop.f32.mrf.mxu3 }
 0x531   : > { %14614 = vst [vmem:[#allocation45_spill] sm:$0xff] %v12136_v8  ;;  %v3984_v4 = vadd.f32 %v3983_v56, %v3875_v48  ;;  %v3767_v30 = vpop.f32.mrf.mxu0  ;;  %v3876_v54 = vpop.f32.mrf.mxu1  ;;  %v7696_v48 = vor.u32 %v8112_v10, %v7693_v53  ;;  %v14618_v56 = vunpack.c.l.bf16 %v14617_v55  ;;  %v8163_v53 = vld [vmem:[#allocation10 + $0x22c] sm:$0xf0] }
 0x532   : > { %v3768_v52 = vadd.f32 %v3767_v30, %v11980_v57 }
 0x533   : > { %v4093_v45 = vadd.f32 %v4092_v23, %v3984_v4  ;;  %5451 = vmatpush.bf16.msra.mxu2 %v7696_v48 }
 0x534   : > { %v3877_v32 = vadd.f32 %v3876_v54, %v3768_v52  ;;  %v7888_v52 = vor.u32 %v8160_v41, %v7885_v47 }
 0x535   : > { %v4174_v17 = vmax.f32 %v4093_v45, 0.0 }
 0x536   : > { %5560 = vmatpush.bf16.msra.mxu3 %v7888_v52 }
 0x538   : > { %v3985_v16 = vpop.f32.mrf.mxu2  ;;  %v4094_v12 = vpop.f32.mrf.mxu3 }
 0x539   : > { %v3986_v33 = vadd.f32 %v3985_v16, %v3877_v32  ;;  %v4802_v34 = vpop.f32.mrf.mxu0  ;;  %v4911_v51 = vpop.f32.mrf.mxu1  ;;  %v14619_v32 = vunpack.c.h.bf16 %v14617_v55 }
 0x53a   : > { %v4912_v25 = vadd.f32 %v4911_v51, %v4802_v34  ;;  %v7691_v51 = vld [vmem:[#allocation10 + $0x98] sm:$0xf] }
 0x53b   : > { %v4095_v27 = vadd.f32 %v4094_v12, %v3986_v33 }
 0x53c   : > { %4841 = vmatmul.bf16.gmra.mxu0 %v14615_v40  ;;  %4950 = vmatmul.bf16.gmra.mxu1 %v12056_v24  ;;  %v6101_v23 = vsub.f32 %v4912_v25, %v14618_v56 }
 0x53d   : > { %v4176_v14 = vmax.f32 %v4095_v27, 0.0  ;;  %5059 = vmatmul.bf16.gmra.mxu2 %v14615_v40  ;;  %5168 = vmatmul.bf16.gmra.mxu3 %v12056_v24  ;;  %v8115_v27 = vld [vmem:[#allocation10 + $0xac] sm:$0xf0] }
 0x53e   : > { %v6341_v12 = vmul.f32 %v6101_v23, %v6101_v23  ;;  %v7692_v25 = vor.u32 %v8115_v27, %v7691_v51 }
 0x53f   : > { %v12143_v57 = vpack.c.bf16 %v4176_v14, %v4174_v17  ;;  %v7883_v17 = vld [vmem:[#allocation10 + $0x218] sm:$0xf] }
 0x540   : > { %v5020_v22 = vpop.f32.mrf.mxu2  ;;  %v5129_v36 = vpop.f32.mrf.mxu3  ;;  %v7884_v55 = vor.u32 %v8163_v53, %v7883_v17  ;;  %5233 = vmatpush.bf16.msra.mxu0 %v7692_v25 }
 0x541   : > { %14616 = vst [vmem:[#allocation46_spill] sm:$0xff] %v12143_v57  ;;  %v5130_v4 = vadd.f32 %v5129_v36, %v5020_v22  ;;  %v4804_v30 = vpop.f32.mrf.mxu0  ;;  %v4913_v54 = vpop.f32.mrf.mxu1  ;;  %v14620_v22 = vld [vmem:[#allocation29_spill] sm:$0xff] }
 0x542   : > { %v4914_v45 = vadd.f32 %v4913_v54, %v4804_v30  ;;  %v14621_v36 = vunpack.c.l.bf16 %v14620_v22  ;;  %v14622_v23 = vunpack.c.h.bf16 %v14620_v22  ;;  %5342 = vmatpush.bf16.msra.mxu1 %v7884_v55  ;;  %v14623_v54 = vld [vmem:[#allocation215_spill] sm:$0xff]  ;;  %v14627_v55 = vld [vmem:[#allocation32_spill] sm:$0xff] }
 0x543   : > { %v6102_v16 = vsub.f32 %v5130_v4, %v14619_v32 }
 0x544   : > { %v6107_v41 = vsub.f32 %v4914_v45, %v14621_v36 }
 0x545   : > { %v6342_v33 = vmul.f32 %v6102_v16, %v6102_v16 }
 0x546   : > { %v6347_v52 = vmul.f32 %v6107_v41, %v6107_v41 }
 0x547   : > { %v12149_v34 = vadd.f32 %v6342_v33, %v6341_v12  ;;  %v14624_v33 = vld [vmem:[#allocation35_spill] sm:$0xff] }
 0x548   : > { %v5022_v14 = vpop.f32.mrf.mxu2  ;;  %v5131_v10 = vpop.f32.mrf.mxu3  ;;  %v14625_v51 = vunpack.c.l.bf16 %v14624_v33  ;;  %v14626_v53 = vunpack.c.h.bf16 %v14624_v33 }
 0x549   : > { %v5132_v47 = vadd.f32 %v5131_v10, %v5022_v14  ;;  %v4807_v48 = vpop.f32.mrf.mxu0  ;;  %v4916_v56 = vpop.f32.mrf.mxu1 }
 0x54a   : > { %v4917_v4 = vadd.f32 %v4916_v56, %v4807_v48 }
 0x54b   : > { %v6108_v30 = vsub.f32 %v5132_v47, %v14622_v23  ;;  %v14628_v23 = vunpack.c.l.bf16 %v14627_v55 }
 0x54c   : > { %4846 = vmatmul.bf16.gmra.mxu0 %v14623_v54  ;;  %4955 = vmatmul.bf16.gmra.mxu1 %v12064_v2  ;;  %v6113_v27 = vsub.f32 %v4917_v4, %v14625_v51 }
 0x54d   : > { %v6348_v32 = vmul.f32 %v6108_v30, %v6108_v30  ;;  %5064 = vmatmul.bf16.gmra.mxu2 %v14623_v54  ;;  %5173 = vmatmul.bf16.gmra.mxu3 %v12064_v2 }
 0x54e   : > { %v6353_v36 = vmul.f32 %v6113_v27, %v6113_v27 }
 0x54f   : > { %v12159_v45 = vadd.f32 %v6348_v32, %v6347_v52 }
 0x550   : > { %v5025_v16 = vpop.f32.mrf.mxu2  ;;  %v5134_v12 = vpop.f32.mrf.mxu3 }
 0x551   : > { %v5135_v17 = vadd.f32 %v5134_v12, %v5025_v16  ;;  %v4809_v14 = vpop.f32.mrf.mxu0  ;;  %v4918_v10 = vpop.f32.mrf.mxu1  ;;  %v14629_v16 = vunpack.c.h.bf16 %v14627_v55 }
 0x552   : > { %v4919_v25 = vadd.f32 %v4918_v10, %v4809_v14  ;;  %v14630_v10 = vld [vmem:[#allocation33_spill] sm:$0xff] }
 0x553   : > { %v6114_v22 = vsub.f32 %v5135_v17, %v14626_v53 }
 0x554   : > { %v6119_v30 = vsub.f32 %v4919_v25, %v14628_v23  ;;  %v14631_v25 = vunpack.c.l.bf16 %v14630_v10 }
 0x555   : > { %v6354_v41 = vmul.f32 %v6114_v22, %v6114_v22 }
 0x556   : > { %v6359_v33 = vmul.f32 %v6119_v30, %v6119_v30 }
 0x557   : > { %v12165_v47 = vadd.f32 %v6354_v41, %v6353_v36 }
 0x558   : > { %v5027_v48 = vpop.f32.mrf.mxu2  ;;  %v5136_v56 = vpop.f32.mrf.mxu3 }
 0x559   : > { %v5137_v52 = vadd.f32 %v5136_v56, %v5027_v48  ;;  %v4812_v32 = vpop.f32.mrf.mxu0  ;;  %v4921_v2 = vpop.f32.mrf.mxu1  ;;  %v14632_v48 = vunpack.c.h.bf16 %v14630_v10 }
 0x55a   : > { %v4922_v4 = vadd.f32 %v4921_v2, %v4812_v32  ;;  %v7669_v32 = vld [vmem:[#allocation10 + $0x80] sm:$0xf0] }
 0x55b   : > { %v6120_v12 = vsub.f32 %v5137_v52, %v14629_v16  ;;  %v8106_v52 = vld [vmem:[#allocation10 + $0x6c] sm:$0xf] }
 0x55c   : > { %4851 = vmatmul.bf16.gmra.mxu0 %v11847_v18  ;;  %4960 = vmatmul.bf16.gmra.mxu1 %v12072_v39  ;;  %v6125_v2 = vsub.f32 %v4922_v4, %v14631_v25  ;;  %v8154_v16 = vld [vmem:[#allocation10 + $0x1ec] sm:$0xf] }
 0x55d   : > { %v6360_v51 = vmul.f32 %v6120_v12, %v6120_v12  ;;  %5069 = vmatmul.bf16.gmra.mxu2 %v11847_v18  ;;  %5178 = vmatmul.bf16.gmra.mxu3 %v12072_v39  ;;  %v7861_v39 = vld [vmem:[#allocation10 + $0x200] sm:$0xf0] }
 0x55e   : > { %v6365_v55 = vmul.f32 %v6125_v2, %v6125_v2  ;;  %v14633_v18 = vld [vmem:[#allocation42_spill] sm:$0xff] }
 0x55f   : > { %v12175_v27 = vadd.f32 %v6360_v51, %v6359_v33  ;;  %v7672_v51 = vor.u32 %v8106_v52, %v7669_v32  ;;  %v14634_v4 = vunpack.c.l.bf16 %v14633_v18  ;;  %v14635_v2 = vunpack.c.h.bf16 %v14633_v18 }
 0x560   : > { %v5030_v17 = vpop.f32.mrf.mxu2  ;;  %v5139_v14 = vpop.f32.mrf.mxu3 }
 0x561   : > { %v5140_v53 = vadd.f32 %v5139_v14, %v5030_v17  ;;  %v4814_v22 = vpop.f32.mrf.mxu0  ;;  %v4923_v36 = vpop.f32.mrf.mxu1  ;;  %5452 = vmatpush.bf16.msra.mxu2 %v7672_v51 }
 0x562   : > { %v4924_v41 = vadd.f32 %v4923_v36, %v4814_v22  ;;  %v7864_v36 = vor.u32 %v8154_v16, %v7861_v39  ;;  %v8109_v39 = vld [vmem:[#allocation10 + $0x7c] sm:$0xf0] }
 0x563   : > { %v6126_v56 = vsub.f32 %v5140_v53, %v14632_v48  ;;  %v8157_v16 = vld [vmem:[#allocation10 + $0x1fc] sm:$0xf0] }
 0x564   : > { %v6131_v17 = vsub.f32 %v4924_v41, %v14634_v4  ;;  %5561 = vmatpush.bf16.msra.mxu3 %v7864_v36 }
 0x565   : > { %v6366_v23 = vmul.f32 %v6126_v56, %v6126_v56 }
 0x566   : > { %v6371_v48 = vmul.f32 %v6131_v17, %v6131_v17 }
 0x567   : > { %v12181_v30 = vadd.f32 %v6366_v23, %v6365_v55  ;;  %v7667_v55 = vld [vmem:[#allocation10 + $0x68] sm:$0xf] }
 0x568   : > { %v5032_v12 = vpop.f32.mrf.mxu2  ;;  %v5141_v33 = vpop.f32.mrf.mxu3  ;;  %v7859_v23 = vld [vmem:[#allocation10 + $0x1e8] sm:$0xf]  ;;  %v7668_v18 = vor.u32 %v8109_v39, %v7667_v55 }
 0x569   : > { %v5142_v14 = vadd.f32 %v5141_v33, %v5032_v12  ;;  %v4817_v25 = vpop.f32.mrf.mxu0  ;;  %v4926_v22 = vpop.f32.mrf.mxu1  ;;  %v14637_v12 = vld [vmem:[#allocation53_spill] sm:$0xff]  ;;  %v14640_v39 = vld [vmem:[#allocation51_spill] sm:$0xff] }
 0x56a   : > { %v4927_v10 = vadd.f32 %v4926_v22, %v4817_v25  ;;  %v14638_v33 = vunpack.c.l.bf16 %v14637_v12  ;;  %v7860_v25 = vor.u32 %v8157_v16, %v7859_v23  ;;  %5234 = vmatpush.bf16.msra.mxu0 %v7668_v18  ;;  %v14639_v36 = vunpack.c.h.bf16 %v14637_v12 }
 0x56b   : > { %v6132_v53 = vsub.f32 %v5142_v14, %v14635_v2  ;;  %v14642_v23 = vunpack.c.h.bf16 %v14640_v39 }
 0x56c   : > { %4856 = vmatmul.bf16.gmra.mxu0 %v11865_v31  ;;  %4965 = vmatmul.bf16.gmra.mxu1 %v12080_v42  ;;  %v6137_v51 = vsub.f32 %v4927_v10, %v14638_v33 }
 0x56d   : > { %v6372_v56 = vmul.f32 %v6132_v53, %v6132_v53  ;;  %5074 = vmatmul.bf16.gmra.mxu2 %v11865_v31  ;;  %5183 = vmatmul.bf16.gmra.mxu3 %v12080_v42  ;;  %v14641_v31 = vunpack.c.l.bf16 %v14640_v39 }
 0x56e   : > { %5343 = vmatpush.bf16.msra.mxu1 %v7860_v25  ;;  %v6377_v53 = vmul.f32 %v6137_v51, %v6137_v51 }
 0x56f   : > { %v12191_v41 = vadd.f32 %v6372_v56, %v6371_v48 }
 0x570   : > { %v5035_v52 = vpop.f32.mrf.mxu2  ;;  %v5144_v32 = vpop.f32.mrf.mxu3 }
 0x571   : > { %14636 = vst [vmem:[#allocation49_spill] sm:$0xff] %v12191_v41  ;;  %v5145_v4 = vadd.f32 %v5144_v32, %v5035_v52  ;;  %v4819_v14 = vpop.f32.mrf.mxu0  ;;  %v4928_v17 = vpop.f32.mrf.mxu1 }
 0x572   : > { %v4929_v22 = vadd.f32 %v4928_v17, %v4819_v14 }
 0x573   : > { %v6138_v2 = vsub.f32 %v5145_v4, %v14639_v36  ;;  %v14643_v4 = vld [vmem:[#allocation55_spill] sm:$0xff] }
 0x574   : > { %v6143_v41 = vsub.f32 %v4929_v22, %v14641_v31  ;;  %v14644_v14 = vunpack.c.l.bf16 %v14643_v4 }
 0x575   : > { %v6378_v48 = vmul.f32 %v6138_v2, %v6138_v2 }
 0x576   : > { %v6383_v16 = vmul.f32 %v6143_v41, %v6143_v41 }
 0x577   : > { %v12197_v56 = vadd.f32 %v6378_v48, %v6377_v53  ;;  %v14645_v53 = vunpack.c.h.bf16 %v14643_v4 }
 0x578   : > { %v5037_v42 = vpop.f32.mrf.mxu2  ;;  %v5146_v55 = vpop.f32.mrf.mxu3 }
 0x579   : > { %v5147_v10 = vadd.f32 %v5146_v55, %v5037_v42  ;;  %v4822_v52 = vpop.f32.mrf.mxu0  ;;  %v4931_v32 = vpop.f32.mrf.mxu1 }
 0x57a   : > { %v4932_v33 = vadd.f32 %v4931_v32, %v4822_v52  ;;  %v14646_v32 = vld [vmem:[#allocation56_spill] sm:$0xff] }
 0x57b   : > { %v6144_v18 = vsub.f32 %v5147_v10, %v14642_v23  ;;  %v14647_v23 = vunpack.c.l.bf16 %v14646_v32 }
 0x57c   : > { %4861 = vmatmul.bf16.gmra.mxu0 %v11879_v50  ;;  %4970 = vmatmul.bf16.gmra.mxu1 %v12088_v5  ;;  %v6149_v17 = vsub.f32 %v4932_v33, %v14644_v14 }
 0x57d   : > { %v6384_v12 = vmul.f32 %v6144_v18, %v6144_v18  ;;  %5079 = vmatmul.bf16.gmra.mxu2 %v11879_v50  ;;  %5188 = vmatmul.bf16.gmra.mxu3 %v12088_v5 }
 0x57e   : > { %v6389_v41 = vmul.f32 %v6149_v17, %v6149_v17 }
 0x57f   : > { %v12207_v51 = vadd.f32 %v6384_v12, %v6383_v16 }
 0x580   : > { %v5040_v31 = vpop.f32.mrf.mxu2  ;;  %v5149_v42 = vpop.f32.mrf.mxu3 }
 0x581   : > { %v5150_v25 = vadd.f32 %v5149_v42, %v5040_v31  ;;  %v4824_v22 = vpop.f32.mrf.mxu0  ;;  %v4933_v36 = vpop.f32.mrf.mxu1  ;;  %v14648_v31 = vunpack.c.h.bf16 %v14646_v32 }
 0x582   : > { %v4934_v2 = vadd.f32 %v4933_v36, %v4824_v22  ;;  %v7645_v22 = vld [vmem:[#allocation10 + $0x50] sm:$0xf0]  ;;  %v8148_v36 = vld [vmem:[#allocation10 + $0x1bc] sm:$0xf] }
 0x583   : > { %v6150_v48 = vsub.f32 %v5150_v25, %v14645_v53  ;;  %v8100_v25 = vld [vmem:[#allocation10 + $0x3c] sm:$0xf] }
 0x584   : > { %v6155_v18 = vsub.f32 %v4934_v2, %v14647_v23  ;;  %v7648_v53 = vor.u32 %v8100_v25, %v7645_v22  ;;  %v8103_v25 = vld [vmem:[#allocation10 + $0x4c] sm:$0xf0]  ;;  %v7835_v22 = vld [vmem:[#allocation10 + $0x1b8] sm:$0xf] }
 0x585   : > { %v6390_v55 = vmul.f32 %v6150_v48, %v6150_v48  ;;  %v7837_v48 = vld [vmem:[#allocation10 + $0x1d0] sm:$0xf0] }
 0x586   : > { %v6395_v4 = vmul.f32 %v6155_v18, %v6155_v18  ;;  %v7840_v18 = vor.u32 %v8148_v36, %v7837_v48  ;;  %5453 = vmatpush.bf16.msra.mxu2 %v7648_v53 }
 0x587   : > { %v12213_v39 = vadd.f32 %v6390_v55, %v6389_v41  ;;  %v14650_v41 = vld [vmem:[#allocation69_spill] sm:$0xff] }
 0x588   : > { %v5042_v10 = vpop.f32.mrf.mxu2  ;;  %v5151_v52 = vpop.f32.mrf.mxu3  ;;  %v14651_v55 = vunpack.c.l.bf16 %v14650_v41  ;;  %5562 = vmatpush.bf16.msra.mxu3 %v7840_v18 }
 0x589   : > { %v5152_v16 = vadd.f32 %v5151_v52, %v5042_v10  ;;  %v4827_v12 = vpop.f32.mrf.mxu0  ;;  %v4936_v5 = vpop.f32.mrf.mxu1 }
 0x58a   : > { %v4937_v33 = vadd.f32 %v4936_v5, %v4827_v12  ;;  %v14652_v12 = vunpack.c.h.bf16 %v14650_v41 }
 0x58b   : > { %v6156_v42 = vsub.f32 %v5152_v16, %v14648_v31 }
 0x58c   : > { %4866 = vmatmul.bf16.gmra.mxu0 %v11893_v6  ;;  %4975 = vmatmul.bf16.gmra.mxu1 %v12096_v46  ;;  %v6161_v10 = vsub.f32 %v4937_v33, %v14651_v55 }
 0x58d   : > { %v6396_v14 = vmul.f32 %v6156_v42, %v6156_v42  ;;  %5084 = vmatmul.bf16.gmra.mxu2 %v11893_v6  ;;  %5193 = vmatmul.bf16.gmra.mxu3 %v12096_v46  ;;  %v7643_v46 = vld [vmem:[#allocation10 + $0x38] sm:$0xf] }
 0x58e   : > { %v6401_v42 = vmul.f32 %v6161_v10, %v6161_v10  ;;  %v7644_v33 = vor.u32 %v8103_v25, %v7643_v46 }
 0x58f   : > { %v12223_v17 = vadd.f32 %v6396_v14, %v6395_v4 }
 0x590   : > { %v5045_v2 = vpop.f32.mrf.mxu2  ;;  %v5154_v5 = vpop.f32.mrf.mxu3  ;;  %5235 = vmatpush.bf16.msra.mxu0 %v7644_v33 }
 0x591   : > { %14649 = vst [vmem:[#allocation50_spill] sm:$0xff] %v12223_v17  ;;  %v5155_v52 = vadd.f32 %v5154_v5, %v5045_v2  ;;  %v4829_v32 = vpop.f32.mrf.mxu0  ;;  %v4938_v23 = vpop.f32.mrf.mxu1  ;;  %v8151_v2 = vld [vmem:[#allocation10 + $0x1cc] sm:$0xf0]  ;;  %v14653_v5 = vld [vmem:[#allocation70_spill] sm:$0xff] }
 0x592   : > { %v4939_v16 = vadd.f32 %v4938_v23, %v4829_v32  ;;  %v14654_v55 = vunpack.c.l.bf16 %v14653_v5  ;;  %v7836_v41 = vor.u32 %v8151_v2, %v7835_v22  ;;  %v14655_v10 = vunpack.c.h.bf16 %v14653_v5 }
 0x593   : > { %v6162_v31 = vsub.f32 %v5155_v52, %v14652_v12  ;;  %v14656_v12 = vld [vmem:[#allocation78_spill] sm:$0xff] }
 0x594   : > { %v6167_v36 = vsub.f32 %v4939_v16, %v14654_v55  ;;  %5344 = vmatpush.bf16.msra.mxu1 %v7836_v41  ;;  %v14658_v2 = vunpack.c.h.bf16 %v14656_v12  ;;  %v14659_v41 = vld [vmem:[#allocation79_spill] sm:$0xff] }
 0x595   : > { %v6402_v4 = vmul.f32 %v6162_v31, %v6162_v31  ;;  %v14657_v31 = vunpack.c.l.bf16 %v14656_v12 }
 0x596   : > { %v6407_v18 = vmul.f32 %v6167_v36, %v6167_v36 }
 0x597   : > { %v12229_v14 = vadd.f32 %v6402_v4, %v6401_v42 }
 0x598   : > { %v5047_v6 = vpop.f32.mrf.mxu2  ;;  %v5156_v17 = vpop.f32.mrf.mxu3 }
 0x599   : > { %v5157_v48 = vadd.f32 %v5156_v17, %v5047_v6  ;;  %v4832_v53 = vpop.f32.mrf.mxu0  ;;  %v4941_v32 = vpop.f32.mrf.mxu1 }
 0x59a   : > { %v4942_v52 = vadd.f32 %v4941_v32, %v4832_v53 }
 0x59b   : > { %v6168_v23 = vsub.f32 %v5157_v48, %v14655_v10  ;;  %v14660_v10 = vunpack.c.l.bf16 %v14659_v41 }
 0x59c   : > { %4871 = vmatmul.bf16.gmra.mxu0 %v11907_v62  ;;  %4980 = vmatmul.bf16.gmra.mxu1 %v12104_v43  ;;  %v6173_v42 = vsub.f32 %v4942_v52, %v14657_v31 }
 0x59d   : > { %v6408_v46 = vmul.f32 %v6168_v23, %v6168_v23  ;;  %5089 = vmatmul.bf16.gmra.mxu2 %v11907_v62  ;;  %5198 = vmatmul.bf16.gmra.mxu3 %v12104_v43 }
 0x59e   : > { %v6413_v55 = vmul.f32 %v6173_v42, %v6173_v42 }
 0x59f   : > { %v12239_v6 = vadd.f32 %v6408_v46, %v6407_v18 }
 0x5a0   : > { %v5050_v17 = vpop.f32.mrf.mxu2  ;;  %v5159_v16 = vpop.f32.mrf.mxu3 }
 0x5a1   : > { %v5160_v4 = vadd.f32 %v5159_v16, %v5050_v17  ;;  %v4834_v25 = vpop.f32.mrf.mxu0  ;;  %v4943_v22 = vpop.f32.mrf.mxu1  ;;  %v14661_v17 = vunpack.c.h.bf16 %v14659_v41 }
 0x5a2   : > { %v4944_v33 = vadd.f32 %v4943_v22, %v4834_v25  ;;  %v14662_v22 = vld [vmem:[#allocation94_spill] sm:$0xff] }
 0x5a3   : > { %v6174_v5 = vsub.f32 %v5160_v4, %v14658_v2 }
 0x5a4   : > { %v6179_v23 = vsub.f32 %v4944_v33, %v14660_v10  ;;  %v14663_v33 = vunpack.c.l.bf16 %v14662_v22 }
 0x5a5   : > { %v6414_v36 = vmul.f32 %v6174_v5, %v6174_v5 }
 0x5a6   : > { %v6419_v12 = vmul.f32 %v6179_v23, %v6179_v23 }
 0x5a7   : > { %v12245_v48 = vadd.f32 %v6414_v36, %v6413_v55 }
 0x5a8   : > { %v5052_v53 = vpop.f32.mrf.mxu2  ;;  %v5161_v32 = vpop.f32.mrf.mxu3 }
 0x5a9   : > { %v5162_v18 = vadd.f32 %v5161_v32, %v5052_v53  ;;  %v4837_v46 = vpop.f32.mrf.mxu0  ;;  %v4946_v43 = vpop.f32.mrf.mxu1  ;;  %v14664_v53 = vunpack.c.h.bf16 %v14662_v22 }
 0x5aa   : > { %v4947_v52 = vadd.f32 %v4946_v43, %v4837_v46  ;;  %v7621_v46 = vld [vmem:[#allocation10 + $0x20] sm:$0xf0] }
 0x5ab   : > { %v6180_v16 = vsub.f32 %v5162_v18, %v14661_v17  ;;  %v8094_v18 = vld [vmem:[#allocation10 + $0xc] sm:$0xf] }
 0x5ac   : > { %4876 = vmatmul.bf16.gmra.mxu0 %v11921_v37  ;;  %4985 = vmatmul.bf16.gmra.mxu1 %v12112_v13  ;;  %v6185_v43 = vsub.f32 %v4947_v52, %v14663_v33  ;;  %v8142_v17 = vld [vmem:[#allocation10 + $0x18c] sm:$0xf] }
 0x5ad   : > { %v6420_v31 = vmul.f32 %v6180_v16, %v6180_v16  ;;  %5094 = vmatmul.bf16.gmra.mxu2 %v11921_v37  ;;  %5203 = vmatmul.bf16.gmra.mxu3 %v12112_v13  ;;  %v7813_v13 = vld [vmem:[#allocation10 + $0x1a0] sm:$0xf0]  ;;  %v14665_v37 = vld [vmem:[#allocation97_spill] sm:$0xff] }
 0x5ae   : > { %v6425_v41 = vmul.f32 %v6185_v43, %v6185_v43  ;;  %v14666_v52 = vunpack.c.l.bf16 %v14665_v37  ;;  %v14667_v43 = vunpack.c.h.bf16 %v14665_v37 }
 0x5af   : > { %v12255_v42 = vadd.f32 %v6420_v31, %v6419_v12  ;;  %v7624_v31 = vor.u32 %v8094_v18, %v7621_v46 }
 0x5b0   : > { %v5055_v4 = vpop.f32.mrf.mxu2  ;;  %v5164_v25 = vpop.f32.mrf.mxu3 }
 0x5b1   : > { %v5165_v2 = vadd.f32 %v5164_v25, %v5055_v4  ;;  %v4839_v5 = vpop.f32.mrf.mxu0  ;;  %v4948_v55 = vpop.f32.mrf.mxu1  ;;  %5454 = vmatpush.bf16.msra.mxu2 %v7624_v31 }
 0x5b2   : > { %v4949_v36 = vadd.f32 %v4948_v55, %v4839_v5  ;;  %v7816_v55 = vor.u32 %v8142_v17, %v7813_v13  ;;  %v8097_v13 = vld [vmem:[#allocation10 + $0x1c] sm:$0xf0] }
 0x5b3   : > { %v6186_v32 = vsub.f32 %v5165_v2, %v14664_v53  ;;  %v8145_v17 = vld [vmem:[#allocation10 + $0x19c] sm:$0xf0] }
 0x5b4   : > { %v6191_v4 = vsub.f32 %v4949_v36, %v14666_v52  ;;  %5563 = vmatpush.bf16.msra.mxu3 %v7816_v55 }
 0x5b5   : > { %v6426_v10 = vmul.f32 %v6186_v32, %v6186_v32 }
 0x5b6   : > { %v6431_v53 = vmul.f32 %v6191_v4, %v6191_v4 }
 0x5b7   : > { %v12261_v23 = vadd.f32 %v6426_v10, %v6425_v41  ;;  %v7619_v41 = vld [vmem:[#allocation10 + $0x8] sm:$0xf] }
 0x5b8   : > { %v5057_v16 = vpop.f32.mrf.mxu2  ;;  %v5166_v12 = vpop.f32.mrf.mxu3  ;;  %v7811_v10 = vld [vmem:[#allocation10 + $0x188] sm:$0xf]  ;;  %v7620_v37 = vor.u32 %v8097_v13, %v7619_v41 }
 0x5b9   : > { %v5167_v25 = vadd.f32 %v5166_v12, %v5057_v16  ;;  %v4842_v33 = vpop.f32.mrf.mxu0  ;;  %v4951_v5 = vpop.f32.mrf.mxu1  ;;  %v14669_v16 = vld [vmem:[#allocation101_spill] sm:$0xff]  ;;  %v14672_v13 = vld [vmem:[#allocation102_spill] sm:$0xff] }
 0x5ba   : > { %v4952_v22 = vadd.f32 %v4951_v5, %v4842_v33  ;;  %v14670_v12 = vunpack.c.l.bf16 %v14669_v16  ;;  %v7812_v33 = vor.u32 %v8145_v17, %v7811_v10  ;;  %5236 = vmatpush.bf16.msra.mxu0 %v7620_v37  ;;  %v14671_v55 = vunpack.c.h.bf16 %v14669_v16 }
 0x5bb   : > { %v6192_v2 = vsub.f32 %v5167_v25, %v14667_v43  ;;  %v14674_v10 = vunpack.c.h.bf16 %v14672_v13 }
 0x5bc   : > { %4881 = vmatmul.bf16.gmra.mxu0 %v11935_v26  ;;  %4990 = vmatmul.bf16.gmra.mxu1 %v12120_v1  ;;  %v6197_v31 = vsub.f32 %v4952_v22, %v14670_v12 }
 0x5bd   : > { %v6432_v32 = vmul.f32 %v6192_v2, %v6192_v2  ;;  %5099 = vmatmul.bf16.gmra.mxu2 %v11935_v26  ;;  %5208 = vmatmul.bf16.gmra.mxu3 %v12120_v1  ;;  %v14673_v26 = vunpack.c.l.bf16 %v14672_v13 }
 0x5be   : > { %5345 = vmatpush.bf16.msra.mxu1 %v7812_v33  ;;  %v6437_v2 = vmul.f32 %v6197_v31, %v6197_v31 }
 0x5bf   : > { %v12271_v36 = vadd.f32 %v6432_v32, %v6431_v53 }
 0x5c0   : > { %v5060_v18 = vpop.f32.mrf.mxu2  ;;  %v5169_v46 = vpop.f32.mrf.mxu3 }
 0x5c1   : > { %14668 = vst [vmem:[#allocation62_spill] sm:$0xff] %v12271_v36  ;;  %v5170_v52 = vadd.f32 %v5169_v46, %v5060_v18  ;;  %v4844_v25 = vpop.f32.mrf.mxu0  ;;  %v4953_v4 = vpop.f32.mrf.mxu1 }
 0x5c2   : > { %v4954_v5 = vadd.f32 %v4953_v4, %v4844_v25 }
 0x5c3   : > { %v6198_v43 = vsub.f32 %v5170_v52, %v14671_v55  ;;  %v14675_v52 = vld [vmem:[#allocation117_spill] sm:$0xff] }
 0x5c4   : > { %v6203_v36 = vsub.f32 %v4954_v5, %v14673_v26  ;;  %v14676_v25 = vunpack.c.l.bf16 %v14675_v52 }
 0x5c5   : > { %v6438_v53 = vmul.f32 %v6198_v43, %v6198_v43 }
 0x5c6   : > { %v6443_v17 = vmul.f32 %v6203_v36, %v6203_v36 }
 0x5c7   : > { %v12277_v32 = vadd.f32 %v6438_v53, %v6437_v2  ;;  %v14677_v2 = vunpack.c.h.bf16 %v14675_v52 }
 0x5c8   : > { %v5062_v1 = vpop.f32.mrf.mxu2  ;;  %v5171_v41 = vpop.f32.mrf.mxu3 }
 0x5c9   : > { %v5172_v22 = vadd.f32 %v5171_v41, %v5062_v1  ;;  %v4847_v18 = vpop.f32.mrf.mxu0  ;;  %v4956_v46 = vpop.f32.mrf.mxu1 }
 0x5ca   : > { %v4957_v12 = vadd.f32 %v4956_v46, %v4847_v18  ;;  %v14678_v46 = vld [vmem:[#allocation118_spill] sm:$0xff] }
 0x5cb   : > { %v6204_v37 = vsub.f32 %v5172_v22, %v14674_v10  ;;  %v14679_v10 = vunpack.c.l.bf16 %v14678_v46 }
 0x5cc   : > { %4886 = vmatmul.bf16.gmra.mxu0 %v11949_v61  ;;  %4995 = vmatmul.bf16.gmra.mxu1 %v12128_v58  ;;  %v6209_v4 = vsub.f32 %v4957_v12, %v14676_v25 }
 0x5cd   : > { %v6444_v16 = vmul.f32 %v6204_v37, %v6204_v37  ;;  %5104 = vmatmul.bf16.gmra.mxu2 %v11949_v61  ;;  %5213 = vmatmul.bf16.gmra.mxu3 %v12128_v58 }
 0x5ce   : > { %v6449_v36 = vmul.f32 %v6209_v4, %v6209_v4 }
 0x5cf   : > { %v12287_v31 = vadd.f32 %v6444_v16, %v6443_v17 }
 0x5d0   : > { %v5065_v26 = vpop.f32.mrf.mxu2  ;;  %v5174_v1 = vpop.f32.mrf.mxu3 }
 0x5d1   : > { %v5175_v33 = vadd.f32 %v5174_v1, %v5065_v26  ;;  %v4849_v5 = vpop.f32.mrf.mxu0  ;;  %v4958_v55 = vpop.f32.mrf.mxu1  ;;  %v14680_v26 = vunpack.c.h.bf16 %v14678_v46 }
 0x5d2   : > { %v4959_v43 = vadd.f32 %v4958_v55, %v4849_v5  ;;  %v7797_v5 = vld [vmem:[#allocation10 + $0x178] sm:$0xf0]  ;;  %v8185_v55 = vld [vmem:[#allocation10 + $0x2e4] sm:$0xf] }
 0x5d3   : > { %v6210_v53 = vsub.f32 %v5175_v33, %v14677_v2  ;;  %v8137_v33 = vld [vmem:[#allocation10 + $0x164] sm:$0xf] }
 0x5d4   : > { %v6215_v37 = vsub.f32 %v4959_v43, %v14679_v10  ;;  %v7800_v2 = vor.u32 %v8137_v33, %v7797_v5  ;;  %v8140_v33 = vld [vmem:[#allocation10 + $0x174] sm:$0xf0]  ;;  %v7987_v5 = vld [vmem:[#allocation10 + $0x2e0] sm:$0xf] }
 0x5d5   : > { %v6450_v41 = vmul.f32 %v6210_v53, %v6210_v53  ;;  %v7989_v53 = vld [vmem:[#allocation10 + $0x2f8] sm:$0xf0] }
 0x5d6   : > { %v6455_v52 = vmul.f32 %v6215_v37, %v6215_v37  ;;  %v7992_v37 = vor.u32 %v8185_v55, %v7989_v53  ;;  %5883 = vmatpush.bf16.msrb.mxu2 %v7800_v2 }
 0x5d7   : > { %v12293_v13 = vadd.f32 %v6450_v41, %v6449_v36  ;;  %v14682_v36 = vld [vmem:[#allocation125_spill] sm:$0xff] }
 0x5d8   : > { %v5067_v22 = vpop.f32.mrf.mxu2  ;;  %v5176_v18 = vpop.f32.mrf.mxu3  ;;  %v14683_v41 = vunpack.c.l.bf16 %v14682_v36  ;;  %5992 = vmatpush.bf16.msrb.mxu3 %v7992_v37 }
 0x5d9   : > { %v5177_v17 = vadd.f32 %v5176_v18, %v5067_v22  ;;  %v4852_v16 = vpop.f32.mrf.mxu0  ;;  %v4961_v58 = vpop.f32.mrf.mxu1 }
 0x5da   : > { %v4962_v12 = vadd.f32 %v4961_v58, %v4852_v16  ;;  %v14684_v16 = vunpack.c.h.bf16 %v14682_v36 }
 0x5db   : > { %v6216_v1 = vsub.f32 %v5177_v17, %v14680_v26 }
 0x5dc   : > { %4891 = vmatmul.bf16.gmra.mxu0 %v11963_v19  ;;  %5000 = vmatmul.bf16.gmra.mxu1 %v12136_v8  ;;  %v6221_v22 = vsub.f32 %v4962_v12, %v14683_v41 }
 0x5dd   : > { %v6456_v25 = vmul.f32 %v6216_v1, %v6216_v1  ;;  %5109 = vmatmul.bf16.gmra.mxu2 %v11963_v19  ;;  %5218 = vmatmul.bf16.gmra.mxu3 %v12136_v8  ;;  %v7795_v8 = vld [vmem:[#allocation10 + $0x160] sm:$0xf] }
 0x5de   : > { %v6461_v1 = vmul.f32 %v6221_v22, %v6221_v22  ;;  %v7796_v12 = vor.u32 %v8140_v33, %v7795_v8 }
 0x5df   : > { %v12303_v4 = vadd.f32 %v6456_v25, %v6455_v52 }
 0x5e0   : > { %v5070_v43 = vpop.f32.mrf.mxu2  ;;  %v5179_v58 = vpop.f32.mrf.mxu3  ;;  %5665 = vmatpush.bf16.msrb.mxu0 %v7796_v12 }
 0x5e1   : > { %14681 = vst [vmem:[#allocation63_spill] sm:$0xff] %v12303_v4  ;;  %v5180_v18 = vadd.f32 %v5179_v58, %v5070_v43  ;;  %v4854_v46 = vpop.f32.mrf.mxu0  ;;  %v4963_v10 = vpop.f32.mrf.mxu1  ;;  %v8188_v43 = vld [vmem:[#allocation10 + $0x2f4] sm:$0xf0]  ;;  %v14685_v58 = vld [vmem:[#allocation127_spill] sm:$0xff] }
 0x5e2   : > { %v4964_v17 = vadd.f32 %v4963_v10, %v4854_v46  ;;  %v14686_v41 = vunpack.c.l.bf16 %v14685_v58  ;;  %v7988_v36 = vor.u32 %v8188_v43, %v7987_v5  ;;  %v14687_v22 = vunpack.c.h.bf16 %v14685_v58 }
 0x5e3   : > { %v6222_v26 = vsub.f32 %v5180_v18, %v14684_v16  ;;  %v14688_v16 = vld [vmem:[#allocation143_spill] sm:$0xff] }
 0x5e4   : > { %v6227_v55 = vsub.f32 %v4964_v17, %v14686_v41  ;;  %5774 = vmatpush.bf16.msrb.mxu1 %v7988_v36  ;;  %v14690_v43 = vunpack.c.h.bf16 %v14688_v16  ;;  %v14691_v36 = vld [vmem:[#allocation152_spill] sm:$0xff] }
 0x5e5   : > { %v6462_v52 = vmul.f32 %v6222_v26, %v6222_v26  ;;  %v14689_v26 = vunpack.c.l.bf16 %v14688_v16 }
 0x5e6   : > { %v6467_v37 = vmul.f32 %v6227_v55, %v6227_v55 }
 0x5e7   : > { %v12309_v25 = vadd.f32 %v6462_v52, %v6461_v1 }
 0x5e8   : > { %v5072_v19 = vpop.f32.mrf.mxu2  ;;  %v5181_v4 = vpop.f32.mrf.mxu3 }
 0x5e9   : > { %v5182_v53 = vadd.f32 %v5181_v4, %v5072_v19  ;;  %v4857_v2 = vpop.f32.mrf.mxu0  ;;  %v4966_v46 = vpop.f32.mrf.mxu1 }
 0x5ea   : > { %v4967_v18 = vadd.f32 %v4966_v46, %v4857_v2 }
 0x5eb   : > { %v6228_v10 = vsub.f32 %v5182_v53, %v14687_v22  ;;  %v14692_v22 = vunpack.c.l.bf16 %v14691_v36 }
 0x5ec   : > { %4896 = vmatmul.bf16.gmra.mxu0 %v11977_v59  ;;  %5005 = vmatmul.bf16.gmra.mxu1 %v12143_v57  ;;  %v6233_v1 = vsub.f32 %v4967_v18, %v14689_v26 }
 0x5ed   : > { %v6468_v8 = vmul.f32 %v6228_v10, %v6228_v10  ;;  %5114 = vmatmul.bf16.gmra.mxu2 %v11977_v59  ;;  %5223 = vmatmul.bf16.gmra.mxu3 %v12143_v57 }
 0x5ee   : > { %v6473_v41 = vmul.f32 %v6233_v1, %v6233_v1 }
 0x5ef   : > { %v12319_v19 = vadd.f32 %v6468_v8, %v6467_v37 }
 0x5f0   : > { %v5075_v4 = vpop.f32.mrf.mxu2  ;;  %v5184_v17 = vpop.f32.mrf.mxu3 }
 0x5f1   : > { %v5185_v52 = vadd.f32 %v5184_v17, %v5075_v4  ;;  %v4859_v33 = vpop.f32.mrf.mxu0  ;;  %v4968_v5 = vpop.f32.mrf.mxu1  ;;  %v14693_v4 = vunpack.c.h.bf16 %v14691_v36 }
 0x5f2   : > { %v4969_v12 = vadd.f32 %v4968_v5, %v4859_v33  ;;  %v14694_v5 = vld [vmem:[#allocation158_spill] sm:$0xff] }
 0x5f3   : > { %v6234_v58 = vsub.f32 %v5185_v52, %v14690_v43 }
 0x5f4   : > { %v6239_v10 = vsub.f32 %v4969_v12, %v14692_v22  ;;  %v14695_v12 = vunpack.c.l.bf16 %v14694_v5 }
 0x5f5   : > { %v6474_v55 = vmul.f32 %v6234_v58, %v6234_v58 }
 0x5f6   : > { %v6479_v16 = vmul.f32 %v6239_v10, %v6239_v10 }
 0x5f7   : > { %v12325_v53 = vadd.f32 %v6474_v55, %v6473_v41 }
 0x5f8   : > { %v5077_v2 = vpop.f32.mrf.mxu2  ;;  %v5186_v46 = vpop.f32.mrf.mxu3 }
 0x5f9   : > { %v5187_v37 = vadd.f32 %v5186_v46, %v5077_v2  ;;  %v4862_v8 = vpop.f32.mrf.mxu0  ;;  %v4971_v57 = vpop.f32.mrf.mxu1  ;;  %v14696_v2 = vunpack.c.h.bf16 %v14694_v5 }
 0x5fa   : > { %v4972_v18 = vadd.f32 %v4971_v57, %v4862_v8  ;;  %v7773_v8 = vld [vmem:[#allocation10 + $0x148] sm:$0xf0] }
 0x5fb   : > { %v6240_v17 = vsub.f32 %v5187_v37, %v14693_v4  ;;  %v8131_v37 = vld [vmem:[#allocation10 + $0x134] sm:$0xf] }
 0x5fc   : > { %5237 = vmatmul.bf16.vlgmr.msra.gmra.mxu0 %v14599_v63  ;;  %5346 = vmatmul.bf16.vlgmr.msra.gmra.mxu1 %v11992_v29  ;;  %v6245_v57 = vsub.f32 %v4972_v18, %v14695_v12  ;;  %v8179_v4 = vld [vmem:[#allocation10 + $0x2b4] sm:$0xf] }
 0x5fd   : > { %v6480_v26 = vmul.f32 %v6240_v17, %v6240_v17  ;;  %5455 = vmatmul.bf16.vlgmr.msra.gmra.mxu2 %v14599_v63  ;;  %5564 = vmatmul.bf16.vlgmr.msra.gmra.mxu3 %v11992_v29  ;;  %v7965_v29 = vld [vmem:[#allocation10 + $0x2c8] sm:$0xf0]  ;;  %v14697_v63 = vld [vmem:[#allocation157_spill] sm:$0xff] }
 0x5fe   : > { %v6485_v36 = vmul.f32 %v6245_v57, %v6245_v57  ;;  %v14698_v18 = vunpack.c.l.bf16 %v14697_v63  ;;  %v14699_v57 = vunpack.c.h.bf16 %v14697_v63 }
 0x5ff   : > { %v12335_v1 = vadd.f32 %v6480_v26, %v6479_v16  ;;  %v7776_v26 = vor.u32 %v8131_v37, %v7773_v8 }
 0x600   : > { %v5080_v52 = vpop.f32.mrf.mxu2  ;;  %v5189_v33 = vpop.f32.mrf.mxu3 }
 0x601   : > { %v5190_v43 = vadd.f32 %v5189_v33, %v5080_v52  ;;  %v4864_v58 = vpop.f32.mrf.mxu0  ;;  %v4973_v41 = vpop.f32.mrf.mxu1  ;;  %5884 = vmatpush.bf16.msrb.mxu2 %v7776_v26 }
 0x602   : > { %v4974_v55 = vadd.f32 %v4973_v41, %v4864_v58  ;;  %v7968_v41 = vor.u32 %v8179_v4, %v7965_v29  ;;  %v8134_v29 = vld [vmem:[#allocation10 + $0x144] sm:$0xf0] }
 0x603   : > { %v6246_v46 = vsub.f32 %v5190_v43, %v14696_v2  ;;  %v8182_v4 = vld [vmem:[#allocation10 + $0x2c4] sm:$0xf0] }
 0x604   : > { %v6251_v52 = vsub.f32 %v4974_v55, %v14698_v18  ;;  %5993 = vmatpush.bf16.msrb.mxu3 %v7968_v41 }
 0x605   : > { %v6486_v22 = vmul.f32 %v6246_v46, %v6246_v46 }
 0x606   : > { %v6491_v2 = vmul.f32 %v6251_v52, %v6251_v52 }
 0x607   : > { %v12341_v10 = vadd.f32 %v6486_v22, %v6485_v36  ;;  %v7771_v36 = vld [vmem:[#allocation10 + $0x130] sm:$0xf] }
 0x608   : > { %v5082_v17 = vpop.f32.mrf.mxu2  ;;  %v5191_v16 = vpop.f32.mrf.mxu3  ;;  %v7963_v22 = vld [vmem:[#allocation10 + $0x2b0] sm:$0xf]  ;;  %v7772_v63 = vor.u32 %v8134_v29, %v7771_v36 }
 0x609   : > { %v5192_v33 = vadd.f32 %v5191_v16, %v5082_v17  ;;  %v4867_v12 = vpop.f32.mrf.mxu0  ;;  %v4976_v58 = vpop.f32.mrf.mxu1  ;;  %v14701_v17 = vld [vmem:[#allocation170_spill] sm:$0xff]  ;;  %v14704_v29 = vld [vmem:[#allocation171_spill] sm:$0xff] }
 0x60a   : > { %v4977_v5 = vadd.f32 %v4976_v58, %v4867_v12  ;;  %v14702_v16 = vunpack.c.l.bf16 %v14701_v17  ;;  %v7964_v12 = vor.u32 %v8182_v4, %v7963_v22  ;;  %5666 = vmatpush.bf16.msrb.mxu0 %v7772_v63  ;;  %v14703_v41 = vunpack.c.h.bf16 %v14701_v17 }
 0x60b   : > { %v6252_v43 = vsub.f32 %v5192_v33, %v14699_v57  ;;  %v14706_v22 = vunpack.c.h.bf16 %v14704_v29 }
 0x60c   : > { %5242 = vmatmul.bf16.gmra.mxu0 %v14601_v49  ;;  %5351 = vmatmul.bf16.gmra.mxu1 %v12000_v20  ;;  %v6257_v26 = vsub.f32 %v4977_v5, %v14702_v16 }
 0x60d   : > { %v6492_v46 = vmul.f32 %v6252_v43, %v6252_v43  ;;  %5460 = vmatmul.bf16.gmra.mxu2 %v14601_v49  ;;  %5569 = vmatmul.bf16.gmra.mxu3 %v12000_v20  ;;  %v14705_v49 = vunpack.c.l.bf16 %v14704_v29 }
 0x60e   : > { %5775 = vmatpush.bf16.msrb.mxu1 %v7964_v12  ;;  %v6497_v43 = vmul.f32 %v6257_v26, %v6257_v26 }
 0x60f   : > { %v12351_v55 = vadd.f32 %v6492_v46, %v6491_v2 }
 0x610   : > { %v5085_v37 = vpop.f32.mrf.mxu2  ;;  %v5194_v8 = vpop.f32.mrf.mxu3 }
 0x611   : > { %14700 = vst [vmem:[#allocation72_spill] sm:$0xff] %v12351_v55  ;;  %v5195_v18 = vadd.f32 %v5194_v8, %v5085_v37  ;;  %v4869_v33 = vpop.f32.mrf.mxu0  ;;  %v4978_v52 = vpop.f32.mrf.mxu1 }
 0x612   : > { %v4979_v58 = vadd.f32 %v4978_v52, %v4869_v33 }
 0x613   : > { %v6258_v57 = vsub.f32 %v5195_v18, %v14703_v41  ;;  %v14707_v18 = vld [vmem:[#allocation184_spill] sm:$0xff] }
 0x614   : > { %v6263_v55 = vsub.f32 %v4979_v58, %v14705_v49  ;;  %v14708_v33 = vunpack.c.l.bf16 %v14707_v18 }
 0x615   : > { %v6498_v2 = vmul.f32 %v6258_v57, %v6258_v57 }
 0x616   : > { %v6503_v4 = vmul.f32 %v6263_v55, %v6263_v55 }
 0x617   : > { %v12357_v46 = vadd.f32 %v6498_v2, %v6497_v43  ;;  %v14709_v43 = vunpack.c.h.bf16 %v14707_v18 }
 0x618   : > { %v5087_v20 = vpop.f32.mrf.mxu2  ;;  %v5196_v36 = vpop.f32.mrf.mxu3 }
 0x619   : > { %v5197_v5 = vadd.f32 %v5196_v36, %v5087_v20  ;;  %v4872_v37 = vpop.f32.mrf.mxu0  ;;  %v4981_v8 = vpop.f32.mrf.mxu1 }
 0x61a   : > { %v4982_v16 = vadd.f32 %v4981_v8, %v4872_v37  ;;  %v14710_v8 = vld [vmem:[#allocation185_spill] sm:$0xff] }
 0x61b   : > { %v6264_v63 = vsub.f32 %v5197_v5, %v14706_v22  ;;  %v14711_v22 = vunpack.c.l.bf16 %v14710_v8 }
 0x61c   : > { %5247 = vmatmul.bf16.gmra.mxu0 %v14603_v60  ;;  %5356 = vmatmul.bf16.gmra.mxu1 %v12008_v38  ;;  %v6269_v52 = vsub.f32 %v4982_v16, %v14708_v33 }
 0x61d   : > { %v6504_v17 = vmul.f32 %v6264_v63, %v6264_v63  ;;  %5465 = vmatmul.bf16.gmra.mxu2 %v14603_v60  ;;  %5574 = vmatmul.bf16.gmra.mxu3 %v12008_v38 }
 0x61e   : > { %v6509_v55 = vmul.f32 %v6269_v52, %v6269_v52 }
 0x61f   : > { %v12367_v26 = vadd.f32 %v6504_v17, %v6503_v4 }
 0x620   : > { %v5090_v49 = vpop.f32.mrf.mxu2  ;;  %v5199_v20 = vpop.f32.mrf.mxu3 }
 0x621   : > { %v5200_v12 = vadd.f32 %v5199_v20, %v5090_v49  ;;  %v4874_v58 = vpop.f32.mrf.mxu0  ;;  %v4983_v41 = vpop.f32.mrf.mxu1  ;;  %v14712_v49 = vunpack.c.h.bf16 %v14710_v8 }
 0x622   : > { %v4984_v57 = vadd.f32 %v4983_v41, %v4874_v58  ;;  %v7749_v58 = vld [vmem:[#allocation10 + $0x118] sm:$0xf0]  ;;  %v8173_v41 = vld [vmem:[#allocation10 + $0x284] sm:$0xf] }
 0x623   : > { %v6270_v2 = vsub.f32 %v5200_v12, %v14709_v43  ;;  %v8125_v12 = vld [vmem:[#allocation10 + $0x104] sm:$0xf] }
 0x624   : > { %v6275_v63 = vsub.f32 %v4984_v57, %v14711_v22  ;;  %v7752_v43 = vor.u32 %v8125_v12, %v7749_v58  ;;  %v8128_v12 = vld [vmem:[#allocation10 + $0x114] sm:$0xf0]  ;;  %v7939_v58 = vld [vmem:[#allocation10 + $0x280] sm:$0xf] }
 0x625   : > { %v6510_v36 = vmul.f32 %v6270_v2, %v6270_v2  ;;  %v7941_v2 = vld [vmem:[#allocation10 + $0x298] sm:$0xf0] }
 0x626   : > { %v6515_v18 = vmul.f32 %v6275_v63, %v6275_v63  ;;  %v7944_v63 = vor.u32 %v8173_v41, %v7941_v2  ;;  %5885 = vmatpush.bf16.msrb.mxu2 %v7752_v43 }
 0x627   : > { %v12373_v29 = vadd.f32 %v6510_v36, %v6509_v55  ;;  %v14714_v55 = vld [vmem:[#allocation197_spill] sm:$0xff] }
 0x628   : > { %v5092_v5 = vpop.f32.mrf.mxu2  ;;  %v5201_v37 = vpop.f32.mrf.mxu3  ;;  %v14715_v36 = vunpack.c.l.bf16 %v14714_v55  ;;  %5994 = vmatpush.bf16.msrb.mxu3 %v7944_v63 }
 0x629   : > { %v5202_v4 = vadd.f32 %v5201_v37, %v5092_v5  ;;  %v4877_v17 = vpop.f32.mrf.mxu0  ;;  %v4986_v38 = vpop.f32.mrf.mxu1 }
 0x62a   : > { %v4987_v16 = vadd.f32 %v4986_v38, %v4877_v17  ;;  %v14716_v17 = vunpack.c.h.bf16 %v14714_v55 }
 0x62b   : > { %v6276_v20 = vsub.f32 %v5202_v4, %v14712_v49 }
 0x62c   : > { %5252 = vmatmul.bf16.gmra.mxu0 %v14605_v44  ;;  %5361 = vmatmul.bf16.gmra.mxu1 %v12016_v3  ;;  %v6281_v5 = vsub.f32 %v4987_v16, %v14715_v36 }
 0x62d   : > { %v6516_v33 = vmul.f32 %v6276_v20, %v6276_v20  ;;  %5470 = vmatmul.bf16.gmra.mxu2 %v14605_v44  ;;  %5579 = vmatmul.bf16.gmra.mxu3 %v12016_v3  ;;  %v7747_v3 = vld [vmem:[#allocation10 + $0x100] sm:$0xf] }
 0x62e   : > { %v6521_v20 = vmul.f32 %v6281_v5, %v6281_v5  ;;  %v7748_v16 = vor.u32 %v8128_v12, %v7747_v3 }
 0x62f   : > { %v12383_v52 = vadd.f32 %v6516_v33, %v6515_v18 }
 0x630   : > { %v5095_v57 = vpop.f32.mrf.mxu2  ;;  %v5204_v38 = vpop.f32.mrf.mxu3  ;;  %5667 = vmatpush.bf16.msrb.mxu0 %v7748_v16 }
 0x631   : > { %14713 = vst [vmem:[#allocation73_spill] sm:$0xff] %v12383_v52  ;;  %v5205_v37 = vadd.f32 %v5204_v38, %v5095_v57  ;;  %v4879_v8 = vpop.f32.mrf.mxu0  ;;  %v4988_v22 = vpop.f32.mrf.mxu1  ;;  %v8176_v57 = vld [vmem:[#allocation10 + $0x294] sm:$0xf0]  ;;  %v14717_v38 = vld [vmem:[#allocation198_spill] sm:$0xff] }
 0x632   : > { %v4989_v4 = vadd.f32 %v4988_v22, %v4879_v8  ;;  %v14718_v36 = vunpack.c.l.bf16 %v14717_v38  ;;  %v7940_v55 = vor.u32 %v8176_v57, %v7939_v58  ;;  %v14719_v5 = vunpack.c.h.bf16 %v14717_v38 }
 0x633   : > { %v6282_v49 = vsub.f32 %v5205_v37, %v14716_v17  ;;  %v14720_v17 = vld [vmem:[#allocation211_spill] sm:$0xff] }
 0x634   : > { %v6287_v41 = vsub.f32 %v4989_v4, %v14718_v36  ;;  %5776 = vmatpush.bf16.msrb.mxu1 %v7940_v55  ;;  %v14722_v57 = vunpack.c.h.bf16 %v14720_v17  ;;  %v14723_v55 = vld [vmem:[#allocation212_spill] sm:$0xff] }
 0x635   : > { %v6522_v18 = vmul.f32 %v6282_v49, %v6282_v49  ;;  %v14721_v49 = vunpack.c.l.bf16 %v14720_v17 }
 0x636   : > { %v6527_v63 = vmul.f32 %v6287_v41, %v6287_v41 }
 0x637   : > { %v12389_v33 = vadd.f32 %v6522_v18, %v6521_v20 }
 0x638   : > { %v5097_v44 = vpop.f32.mrf.mxu2  ;;  %v5206_v52 = vpop.f32.mrf.mxu3 }
 0x639   : > { %v5207_v2 = vadd.f32 %v5206_v52, %v5097_v44  ;;  %v4882_v43 = vpop.f32.mrf.mxu0  ;;  %v4991_v8 = vpop.f32.mrf.mxu1 }
 0x63a   : > { %v4992_v37 = vadd.f32 %v4991_v8, %v4882_v43 }
 0x63b   : > { %v6288_v22 = vsub.f32 %v5207_v2, %v14719_v5  ;;  %v14724_v5 = vunpack.c.l.bf16 %v14723_v55 }
 0x63c   : > { %5257 = vmatmul.bf16.gmra.mxu0 %v14607_v0  ;;  %5366 = vmatmul.bf16.gmra.mxu1 %v12024_v28  ;;  %v6293_v20 = vsub.f32 %v4992_v37, %v14721_v49 }
 0x63d   : > { %v6528_v3 = vmul.f32 %v6288_v22, %v6288_v22  ;;  %5475 = vmatmul.bf16.gmra.mxu2 %v14607_v0  ;;  %5584 = vmatmul.bf16.gmra.mxu3 %v12024_v28 }
 0x63e   : > { %v6533_v36 = vmul.f32 %v6293_v20, %v6293_v20 }
 0x63f   : > { %v12399_v44 = vadd.f32 %v6528_v3, %v6527_v63 }
 0x640   : > { %v5100_v52 = vpop.f32.mrf.mxu2  ;;  %v5209_v4 = vpop.f32.mrf.mxu3 }
 0x641   : > { %v5210_v18 = vadd.f32 %v5209_v4, %v5100_v52  ;;  %v4884_v12 = vpop.f32.mrf.mxu0  ;;  %v4993_v58 = vpop.f32.mrf.mxu1  ;;  %v14725_v52 = vunpack.c.h.bf16 %v14723_v55 }
 0x642   : > { %v4994_v16 = vadd.f32 %v4993_v58, %v4884_v12  ;;  %v14726_v58 = vld [vmem:[#allocation224_spill] sm:$0xff] }
 0x643   : > { %v6294_v38 = vsub.f32 %v5210_v18, %v14722_v57 }
 0x644   : > { %v6299_v22 = vsub.f32 %v4994_v16, %v14724_v5  ;;  %v14727_v16 = vunpack.c.l.bf16 %v14726_v58 }
 0x645   : > { %v6534_v41 = vmul.f32 %v6294_v38, %v6294_v38 }
 0x646   : > { %v6539_v17 = vmul.f32 %v6299_v22, %v6299_v22 }
 0x647   : > { %v12405_v2 = vadd.f32 %v6534_v41, %v6533_v36 }
 0x648   : > { %v5102_v43 = vpop.f32.mrf.mxu2  ;;  %v5211_v8 = vpop.f32.mrf.mxu3 }
 0x649   : > { %v5212_v63 = vadd.f32 %v5211_v8, %v5102_v43  ;;  %v4887_v3 = vpop.f32.mrf.mxu0  ;;  %v4996_v28 = vpop.f32.mrf.mxu1  ;;  %v14728_v43 = vunpack.c.h.bf16 %v14726_v58 }
 0x64a   : > { %v4997_v37 = vadd.f32 %v4996_v28, %v4887_v3  ;;  %v7725_v3 = vld [vmem:[#allocation10 + $0xe8] sm:$0xf0] }
 0x64b   : > { %v6300_v4 = vsub.f32 %v5212_v63, %v14725_v52  ;;  %v8119_v63 = vld [vmem:[#allocation10 + $0xd4] sm:$0xf] }
 0x64c   : > { %5262 = vmatmul.bf16.gmra.mxu0 %v14609_v11  ;;  %5371 = vmatmul.bf16.gmra.mxu1 %v12032_v15  ;;  %v6305_v28 = vsub.f32 %v4997_v37, %v14727_v16  ;;  %v8167_v52 = vld [vmem:[#allocation10 + $0x254] sm:$0xf] }
 0x64d   : > { %v6540_v49 = vmul.f32 %v6300_v4, %v6300_v4  ;;  %5480 = vmatmul.bf16.gmra.mxu2 %v14609_v11  ;;  %5589 = vmatmul.bf16.gmra.mxu3 %v12032_v15  ;;  %v7917_v15 = vld [vmem:[#allocation10 + $0x268] sm:$0xf0]  ;;  %v14729_v11 = vld [vmem:[#allocation225_spill] sm:$0xff] }
 0x64e   : > { %v6545_v55 = vmul.f32 %v6305_v28, %v6305_v28  ;;  %v14730_v37 = vunpack.c.l.bf16 %v14729_v11  ;;  %v14731_v28 = vunpack.c.h.bf16 %v14729_v11 }
 0x64f   : > { %v12415_v20 = vadd.f32 %v6540_v49, %v6539_v17  ;;  %v7728_v49 = vor.u32 %v8119_v63, %v7725_v3 }
 0x650   : > { %v5105_v18 = vpop.f32.mrf.mxu2  ;;  %v5214_v12 = vpop.f32.mrf.mxu3 }
 0x651   : > { %v5215_v57 = vadd.f32 %v5214_v12, %v5105_v18  ;;  %v4889_v38 = vpop.f32.mrf.mxu0  ;;  %v4998_v36 = vpop.f32.mrf.mxu1  ;;  %5886 = vmatpush.bf16.msrb.mxu2 %v7728_v49 }
 0x652   : > { %v4999_v41 = vadd.f32 %v4998_v36, %v4889_v38  ;;  %v7920_v36 = vor.u32 %v8167_v52, %v7917_v15  ;;  %v8122_v15 = vld [vmem:[#allocation10 + $0xe4] sm:$0xf0] }
 0x653   : > { %v6306_v8 = vsub.f32 %v5215_v57, %v14728_v43  ;;  %v8170_v52 = vld [vmem:[#allocation10 + $0x264] sm:$0xf0] }
 0x654   : > { %v6311_v18 = vsub.f32 %v4999_v41, %v14730_v37  ;;  %5995 = vmatpush.bf16.msrb.mxu3 %v7920_v36 }
 0x655   : > { %v6546_v5 = vmul.f32 %v6306_v8, %v6306_v8 }
 0x656   : > { %v6551_v43 = vmul.f32 %v6311_v18, %v6311_v18 }
 0x657   : > { %v12421_v22 = vadd.f32 %v6546_v5, %v6545_v55  ;;  %v7723_v55 = vld [vmem:[#allocation10 + $0xd0] sm:$0xf] }
 0x658   : > { %v5107_v4 = vpop.f32.mrf.mxu2  ;;  %v5216_v17 = vpop.f32.mrf.mxu3  ;;  %v7915_v5 = vld [vmem:[#allocation10 + $0x250] sm:$0xf]  ;;  %v7724_v11 = vor.u32 %v8122_v15, %v7723_v55 }
 0x659   : > { %v5217_v12 = vadd.f32 %v5216_v17, %v5107_v4  ;;  %v4892_v16 = vpop.f32.mrf.mxu0  ;;  %v5001_v38 = vpop.f32.mrf.mxu1  ;;  %v14733_v4 = vld [vmem:[#allocation239_spill] sm:$0xff]  ;;  %v14736_v15 = vld [vmem:[#allocation240_spill] sm:$0xff] }
 0x65a   : > { %v5002_v58 = vadd.f32 %v5001_v38, %v4892_v16  ;;  %v14734_v17 = vunpack.c.l.bf16 %v14733_v4  ;;  %v7916_v16 = vor.u32 %v8170_v52, %v7915_v5  ;;  %5668 = vmatpush.bf16.msrb.mxu0 %v7724_v11  ;;  %v14735_v36 = vunpack.c.h.bf16 %v14733_v4 }
 0x65b   : > { %v6312_v57 = vsub.f32 %v5217_v12, %v14731_v28  ;;  %v14738_v5 = vunpack.c.h.bf16 %v14736_v15 }
 0x65c   : > { %5267 = vmatmul.bf16.gmra.mxu0 %v14611_v9  ;;  %5376 = vmatmul.bf16.gmra.mxu1 %v12040_v35  ;;  %v6317_v49 = vsub.f32 %v5002_v58, %v14734_v17 }
 0x65d   : > { %v6552_v8 = vmul.f32 %v6312_v57, %v6312_v57  ;;  %5485 = vmatmul.bf16.gmra.mxu2 %v14611_v9  ;;  %5594 = vmatmul.bf16.gmra.mxu3 %v12040_v35  ;;  %v14737_v9 = vunpack.c.l.bf16 %v14736_v15 }
 0x65e   : > { %5777 = vmatpush.bf16.msrb.mxu1 %v7916_v16  ;;  %v6557_v57 = vmul.f32 %v6317_v49, %v6317_v49 }
 0x65f   : > { %v12431_v41 = vadd.f32 %v6552_v8, %v6551_v43 }
 0x660   : > { %v5110_v63 = vpop.f32.mrf.mxu2  ;;  %v5219_v3 = vpop.f32.mrf.mxu3 }
 0x661   : > { %14732 = vst [vmem:[#allocation75_spill] sm:$0xff] %v12431_v41  ;;  %v5220_v37 = vadd.f32 %v5219_v3, %v5110_v63  ;;  %v4894_v12 = vpop.f32.mrf.mxu0  ;;  %v5003_v18 = vpop.f32.mrf.mxu1 }
 0x662   : > { %v5004_v38 = vadd.f32 %v5003_v18, %v4894_v12 }
 0x663   : > { %v6318_v28 = vsub.f32 %v5220_v37, %v14735_v36  ;;  %v14739_v37 = vld [vmem:[#allocation250_spill] sm:$0xff] }
 0x664   : > { %v6323_v41 = vsub.f32 %v5004_v38, %v14737_v9  ;;  %v14740_v12 = vunpack.c.l.bf16 %v14739_v37 }
 0x665   : > { %v6558_v43 = vmul.f32 %v6318_v28, %v6318_v28 }
 0x666   : > { %v6563_v52 = vmul.f32 %v6323_v41, %v6323_v41 }
 0x667   : > { %v12437_v8 = vadd.f32 %v6558_v43, %v6557_v57  ;;  %v14741_v57 = vunpack.c.h.bf16 %v14739_v37 }
 0x668   : > { %v5112_v35 = vpop.f32.mrf.mxu2  ;;  %v5221_v55 = vpop.f32.mrf.mxu3 }
 0x669   : > { %v5222_v58 = vadd.f32 %v5221_v55, %v5112_v35  ;;  %v4897_v63 = vpop.f32.mrf.mxu0  ;;  %v5006_v3 = vpop.f32.mrf.mxu1 }
 0x66a   : > { %v5007_v17 = vadd.f32 %v5006_v3, %v4897_v63  ;;  %v14742_v3 = vld [vmem:[#allocation251_spill] sm:$0xff] }
 0x66b   : > { %v6324_v11 = vsub.f32 %v5222_v58, %v14738_v5  ;;  %v14743_v5 = vunpack.c.l.bf16 %v14742_v3 }
 0x66c   : > { %5272 = vmatmul.bf16.gmra.mxu0 %v14613_v21  ;;  %5381 = vmatmul.bf16.gmra.mxu1 %v12048_v7  ;;  %v6329_v18 = vsub.f32 %v5007_v17, %v14740_v12  ;;  %v14745_v12 = vld [vmem:[#allocation28_spill] sm:$0xff] }
 0x66d   : > { %v6564_v4 = vmul.f32 %v6324_v11, %v6324_v11  ;;  %5490 = vmatmul.bf16.gmra.mxu2 %v14613_v21  ;;  %5599 = vmatmul.bf16.gmra.mxu3 %v12048_v7 }
 0x66e   : > { %v6569_v41 = vmul.f32 %v6329_v18, %v6329_v18 }
 0x66f   : > { %v12447_v49 = vadd.f32 %v6564_v4, %v6563_v52 }
 0x670   : > { %v5115_v9 = vpop.f32.mrf.mxu2  ;;  %v5224_v35 = vpop.f32.mrf.mxu3 }
 0x671   : > { %v5225_v16 = vadd.f32 %v5224_v35, %v5115_v9  ;;  %v4899_v38 = vpop.f32.mrf.mxu0  ;;  %v5008_v36 = vpop.f32.mrf.mxu1  ;;  %v14744_v9 = vunpack.c.h.bf16 %v14742_v3 }
 0x672   : > { %v5009_v28 = vadd.f32 %v5008_v36, %v4899_v38  ;;  %v14746_v38 = vunpack.c.l.bf16 %v14745_v12 }
 0x673   : > { %v6330_v43 = vsub.f32 %v5225_v16, %v14741_v57 }
 0x674   : > { %v6335_v11 = vsub.f32 %v5009_v28, %v14743_v5 }
 0x675   : > { %v6570_v55 = vmul.f32 %v6330_v43, %v6330_v43 }
 0x676   : > { %v6575_v18 = vmul.f32 %v6335_v11, %v6335_v11  ;;  %v7893_v11 = vld [vmem:[#allocation10 + $0x238] sm:$0xf0] }
 0x677   : > { %v12453_v15 = vadd.f32 %v6570_v55, %v6569_v41  ;;  %v8113_v41 = vld [vmem:[#allocation10 + $0xa4] sm:$0xf]  ;;  %v7701_v55 = vld [vmem:[#allocation10 + $0xb8] sm:$0xf0] }
 0x678   : > { %v5117_v58 = vpop.f32.mrf.mxu2  ;;  %v5226_v63 = vpop.f32.mrf.mxu3 }
 0x679   : > { %v5227_v52 = vadd.f32 %v5226_v63, %v5117_v58  ;;  %v5238_v4 = vpop.f32.mrf.mxu0  ;;  %v5347_v7 = vpop.f32.mrf.mxu1  ;;  %v8161_v58 = vld [vmem:[#allocation10 + $0x224] sm:$0xf] }
 0x67a   : > { %v5348_v17 = vadd.f32 %v5347_v7, %v5238_v4 }
 0x67b   : > { %v6336_v35 = vsub.f32 %v5227_v52, %v14744_v9  ;;  %v7704_v52 = vor.u32 %v8113_v41, %v7701_v55  ;;  %v14747_v9 = vunpack.c.h.bf16 %v14745_v12  ;;  %v8164_v12 = vld [vmem:[#allocation10 + $0x234] sm:$0xf0] }
 0x67c   : > { %v6103_v37 = vsub.f32 %v5348_v17, %v14746_v38  ;;  %5277 = vmatmul.bf16.gmra.mxu0 %v14615_v40  ;;  %5386 = vmatmul.bf16.gmra.mxu1 %v12056_v24  ;;  %v7896_v17 = vor.u32 %v8161_v58, %v7893_v11  ;;  %v14748_v38 = vld [vmem:[#allocation30_spill] sm:$0xff] }
 0x67d   : > { %v6576_v16 = vmul.f32 %v6336_v35, %v6336_v35  ;;  %5495 = vmatmul.bf16.gmra.mxu2 %v14615_v40  ;;  %5604 = vmatmul.bf16.gmra.mxu3 %v12056_v24  ;;  %v7699_v24 = vld [vmem:[#allocation10 + $0xa0] sm:$0xf] }
 0x67e   : > { %v6343_v36 = vmul.f32 %v6103_v37, %v6103_v37  ;;  %5887 = vmatpush.bf16.msrb.mxu2 %v7704_v52  ;;  %v14749_v37 = vunpack.c.l.bf16 %v14748_v38  ;;  %5996 = vmatpush.bf16.msrb.mxu3 %v7896_v17 }
 0x67f   : > { %v12465_v28 = vadd.f32 %v6576_v16, %v6575_v18 }
 0x680   : > { %v6582_v7 = vadd.f32 %v12149_v34, %v6343_v36  ;;  %v5456_v57 = vpop.f32.mrf.mxu2  ;;  %v5565_v43 = vpop.f32.mrf.mxu3 }
 0x681   : > { %v5566_v63 = vadd.f32 %v5565_v43, %v5456_v57  ;;  %v5240_v3 = vpop.f32.mrf.mxu0  ;;  %v5349_v5 = vpop.f32.mrf.mxu1  ;;  %v8116_v57 = vld [vmem:[#allocation10 + $0xb4] sm:$0xf0]  ;;  %v7891_v43 = vld [vmem:[#allocation10 + $0x220] sm:$0xf] }
 0x682   : > { %v5350_v4 = vadd.f32 %v5349_v5, %v5240_v3  ;;  %v7700_v3 = vor.u32 %v8116_v57, %v7699_v24  ;;  %v7892_v11 = vor.u32 %v8164_v12, %v7891_v43 }
 0x683   : > { %v6104_v35 = vsub.f32 %v5566_v63, %v14747_v9 }
 0x684   : > { %v6109_v18 = vsub.f32 %v5350_v4, %v14749_v37  ;;  %5669 = vmatpush.bf16.msrb.mxu0 %v7700_v3  ;;  %5778 = vmatpush.bf16.msrb.mxu1 %v7892_v11  ;;  %v14755_v3 = vld [vmem:[#allocation38_spill] sm:$0xff] }
 0x685   : > { %v6344_v34 = vmul.f32 %v6104_v35, %v6104_v35  ;;  %v14753_v35 = vld [vmem:[#allocation262_spill] sm:$0xff]  ;;  %v14756_v12 = vunpack.c.l.bf16 %v14755_v3 }
 0x686   : > { %v6349_v16 = vmul.f32 %v6109_v18, %v6109_v18 }
 0x687   : > { %v12472_v36 = vadd.f32 %v6582_v7, %v6344_v34  ;;  %v14751_v7 = vld [vmem:[#allocation39_spill] sm:$0xff] }
 0x688   : > { %v12475_v41 = vadd.f32 %v12159_v45, %v6349_v16  ;;  %v5458_v55 = vpop.f32.mrf.mxu2  ;;  %v5567_v58 = vpop.f32.mrf.mxu3  ;;  %v14752_v17 = vunpack.c.l.bf16 %v14751_v7 }
 0x689   : > { %14750 = vst [vmem:[#allocation86_spill] sm:$0xff] %v12472_v36  ;;  %v12477_v63 = vadd.f32 %v5567_v58, %v5458_v55  ;;  %v5243_v5 = vpop.f32.mrf.mxu0  ;;  %v5352_v52 = vpop.f32.mrf.mxu1  ;;  %v14754_v55 = vunpack.c.h.bf16 %v14751_v7 }
 0x68a   : > { %v5353_v4 = vadd.f32 %v5352_v52, %v5243_v5 }
 0x68c   : > { %v6115_v9 = vsub.f32 %v5353_v4, %v14752_v17  ;;  %5282 = vmatmul.bf16.gmra.mxu0 %v14623_v54  ;;  %5391 = vmatmul.bf16.gmra.mxu1 %v14753_v35 }
 0x68d   : > { %5500 = vmatmul.bf16.gmra.mxu2 %v14623_v54  ;;  %5609 = vmatmul.bf16.gmra.mxu3 %v14753_v35  ;;  %v8107_v54 = vld [vmem:[#allocation10 + $0x74] sm:$0xf] }
 0x68e   : > { %v6355_v24 = vmul.f32 %v6115_v9, %v6115_v9 }
 0x690   : > { %v6596_v45 = vadd.f32 %v12165_v47, %v6355_v24  ;;  %v5461_v37 = vpop.f32.mrf.mxu2  ;;  %v5570_v18 = vpop.f32.mrf.mxu3 }
 0x691   : > { %v5571_v34 = vadd.f32 %v5570_v18, %v5461_v37  ;;  %v5245_v16 = vpop.f32.mrf.mxu0  ;;  %v5354_v57 = vpop.f32.mrf.mxu1 }
 0x692   : > { %v5355_v43 = vadd.f32 %v5354_v57, %v5245_v16  ;;  %v14758_v57 = vld [vmem:[#allocation43_spill] sm:$0xff] }
 0x693   : > { %v6116_v58 = vsub.f32 %v5571_v34, %v14754_v55  ;;  %v14759_v7 = vunpack.c.l.bf16 %v14758_v57  ;;  %v14760_v55 = vld [vmem:[#allocation221_spill] sm:$0xff] }
 0x694   : > { %v6121_v5 = vsub.f32 %v5355_v43, %v14756_v12  ;;  %v14761_v43 = vld [vmem:[#allocation253_spill] sm:$0xff] }
 0x695   : > { %v6356_v52 = vmul.f32 %v6116_v58, %v6116_v58 }
 0x696   : > { %v6361_v11 = vmul.f32 %v6121_v5, %v6121_v5 }
 0x697   : > { %v12490_v4 = vadd.f32 %v6596_v45, %v6356_v52 }
 0x698   : > { %v12493_v17 = vadd.f32 %v12175_v27, %v6361_v11  ;;  %v5463_v47 = vpop.f32.mrf.mxu2  ;;  %v5572_v9 = vpop.f32.mrf.mxu3 }
 0x699   : > { %14757 = vst [vmem:[#allocation87_spill] sm:$0xff] %v12490_v4  ;;  %v12495_v24 = vadd.f32 %v5572_v9, %v5463_v47  ;;  %v5248_v37 = vpop.f32.mrf.mxu0  ;;  %v5357_v18 = vpop.f32.mrf.mxu1  ;;  %v14762_v9 = vunpack.c.h.bf16 %v14758_v57 }
 0x69a   : > { %v5358_v16 = vadd.f32 %v5357_v18, %v5248_v37  ;;  %v14763_v18 = vld [vmem:[#allocation44_spill] sm:$0xff] }
 0x69c   : > { %v6127_v34 = vsub.f32 %v5358_v16, %v14759_v7  ;;  %5287 = vmatmul.bf16.gmra.mxu0 %v14760_v55  ;;  %5396 = vmatmul.bf16.gmra.mxu1 %v14761_v43  ;;  %v14764_v16 = vunpack.c.l.bf16 %v14763_v18 }
 0x69d   : > { %5505 = vmatmul.bf16.gmra.mxu2 %v14760_v55  ;;  %5614 = vmatmul.bf16.gmra.mxu3 %v14761_v43  ;;  %v14766_v43 = vld [vmem:[#allocation49_spill] sm:$0xff] }
 0x69e   : > { %v6367_v27 = vmul.f32 %v6127_v34, %v6127_v34 }
 0x6a0   : > { %v6610_v45 = vadd.f32 %v12181_v30, %v6367_v27  ;;  %v5466_v58 = vpop.f32.mrf.mxu2  ;;  %v5575_v12 = vpop.f32.mrf.mxu3 }
 0x6a1   : > { %v5576_v5 = vadd.f32 %v5575_v12, %v5466_v58  ;;  %v5250_v52 = vpop.f32.mrf.mxu0  ;;  %v5359_v11 = vpop.f32.mrf.mxu1  ;;  %v7677_v58 = vld [vmem:[#allocation10 + $0x88] sm:$0xf0]  ;;  %v8155_v12 = vld [vmem:[#allocation10 + $0x1f4] sm:$0xf] }
 0x6a2   : > { %v5360_v47 = vadd.f32 %v5359_v11, %v5250_v52  ;;  %v7869_v11 = vld [vmem:[#allocation10 + $0x208] sm:$0xf0] }
 0x6a3   : > { %v6128_v37 = vsub.f32 %v5576_v5, %v14762_v9  ;;  %v7680_v5 = vor.u32 %v8107_v54, %v7677_v58  ;;  %v7675_v54 = vld [vmem:[#allocation10 + $0x70] sm:$0xf] }
 0x6a4   : > { %v6133_v7 = vsub.f32 %v5360_v47, %v14764_v16  ;;  %v7872_v47 = vor.u32 %v8155_v12, %v7869_v11  ;;  %v14770_v16 = vld [vmem:[#allocation231_spill] sm:$0xff] }
 0x6a5   : > { %v6368_v4 = vmul.f32 %v6128_v37, %v6128_v37  ;;  %v14767_v37 = vunpack.c.h.bf16 %v14748_v38  ;;  %5888 = vmatpush.bf16.msrb.mxu2 %v7680_v5  ;;  %v8158_v12 = vld [vmem:[#allocation10 + $0x204] sm:$0xf0] }
 0x6a6   : > { %v6373_v35 = vmul.f32 %v6133_v7, %v6133_v7  ;;  %v14771_v7 = vld [vmem:[#allocation254_spill] sm:$0xff]  ;;  %5997 = vmatpush.bf16.msrb.mxu3 %v7872_v47  ;;  %v14773_v47 = vld [vmem:[#allocation52_spill] sm:$0xff] }
 0x6a7   : > { %v12508_v55 = vadd.f32 %v6610_v45, %v6368_v4  ;;  %v6110_v4 = vsub.f32 %v12477_v63, %v14767_v37 }
 0x6a8   : > { %v12511_v34 = vadd.f32 %v14766_v43, %v6373_v35  ;;  %v5468_v30 = vpop.f32.mrf.mxu2  ;;  %v5577_v27 = vpop.f32.mrf.mxu3  ;;  %v14768_v35 = vld [vmem:[#allocation54_spill] sm:$0xff] }
 0x6a9   : > { %14765 = vst [vmem:[#allocation90_spill] sm:$0xff] %v12508_v55  ;;  %v12513_v36 = vadd.f32 %v5577_v27, %v5468_v30  ;;  %v5253_v52 = vpop.f32.mrf.mxu0  ;;  %v5362_v57 = vpop.f32.mrf.mxu1  ;;  %v14769_v43 = vunpack.c.l.bf16 %v14768_v35  ;;  %v8110_v30 = vld [vmem:[#allocation10 + $0x84] sm:$0xf0]  ;;  %v7867_v27 = vld [vmem:[#allocation10 + $0x1f0] sm:$0xf]  ;;  %v6350_v63 = vmul.f32 %v6110_v4, %v6110_v4 }
 0x6aa   : > { %v5363_v9 = vadd.f32 %v5362_v57, %v5253_v52  ;;  %v7676_v38 = vor.u32 %v8110_v30, %v7675_v54  ;;  %v7868_v52 = vor.u32 %v8158_v12, %v7867_v27  ;;  %v14774_v54 = vunpack.c.l.bf16 %v14773_v47 }
 0x6ac   : > { %v6139_v45 = vsub.f32 %v5363_v9, %v14769_v43  ;;  %5292 = vmatmul.bf16.gmra.mxu0 %v14770_v16  ;;  %5401 = vmatmul.bf16.gmra.mxu1 %v14771_v7 }
 0x6ad   : > { %5510 = vmatmul.bf16.gmra.mxu2 %v14770_v16  ;;  %5619 = vmatmul.bf16.gmra.mxu3 %v14771_v7  ;;  %v14772_v7 = vunpack.c.h.bf16 %v14768_v35 }
 0x6ae   : > { %v6379_v58 = vmul.f32 %v6139_v45, %v6139_v45  ;;  %5670 = vmatpush.bf16.msrb.mxu0 %v7676_v38  ;;  %5779 = vmatpush.bf16.msrb.mxu1 %v7868_v52  ;;  %v12528_v45 = vadd.f32 %v12475_v41, %v6350_v63  ;;  %v14775_v41 = vunpack.c.h.bf16 %v14755_v3 }
 0x6b0   : > { %v6624_v57 = vadd.f32 %v12197_v56, %v6379_v58  ;;  %v5471_v5 = vpop.f32.mrf.mxu2  ;;  %v5580_v11 = vpop.f32.mrf.mxu3  ;;  %v6122_v63 = vsub.f32 %v12495_v24, %v14775_v41 }
 0x6b1   : > { %v5581_v9 = vadd.f32 %v5580_v11, %v5471_v5  ;;  %v5255_v37 = vpop.f32.mrf.mxu0  ;;  %v5364_v43 = vpop.f32.mrf.mxu1  ;;  %v14776_v11 = vld [vmem:[#allocation57_spill] sm:$0xff] }
 0x6b2   : > { %v5365_v16 = vadd.f32 %v5364_v43, %v5255_v37 }
 0x6b3   : > { %v6140_v55 = vsub.f32 %v5581_v9, %v14772_v7  ;;  %v6362_v9 = vmul.f32 %v6122_v63, %v6122_v63 }
 0x6b4   : > { %v6145_v4 = vsub.f32 %v5365_v16, %v14774_v54  ;;  %v14777_v16 = vunpack.c.l.bf16 %v14776_v11 }
 0x6b5   : > { %v6380_v30 = vmul.f32 %v6140_v55, %v6140_v55 }
 0x6b6   : > { %v6385_v27 = vmul.f32 %v6145_v4, %v6145_v4 }
 0x6b7   : > { %v12532_v56 = vadd.f32 %v6624_v57, %v6380_v30  ;;  %v14778_v57 = vld [vmem:[#allocation248_spill] sm:$0xff] }
 0x6b8   : > { %v12535_v58 = vadd.f32 %v12207_v51, %v6385_v27  ;;  %v5473_v38 = vpop.f32.mrf.mxu2  ;;  %v5582_v12 = vpop.f32.mrf.mxu3  ;;  %v14779_v27 = vunpack.c.h.bf16 %v14776_v11 }
 0x6b9   : > { %v12537_v52 = vadd.f32 %v5582_v12, %v5473_v38  ;;  %v5258_v5 = vpop.f32.mrf.mxu0  ;;  %v5367_v35 = vpop.f32.mrf.mxu1  ;;  %v12552_v12 = vadd.f32 %v12493_v17, %v6362_v9  ;;  %v14784_v17 = vunpack.c.h.bf16 %v14763_v18  ;;  %v8101_v18 = vld [vmem:[#allocation10 + $0x44] sm:$0xf] }
 0x6ba   : > { %v5368_v7 = vadd.f32 %v5367_v35, %v5258_v5  ;;  %v14780_v5 = vld [vmem:[#allocation58_spill] sm:$0xff] }
 0x6bb   : > { %v14781_v35 = vunpack.c.l.bf16 %v14780_v5  ;;  %v6134_v9 = vsub.f32 %v12513_v36, %v14784_v17  ;;  %v8149_v36 = vld [vmem:[#allocation10 + $0x1c4] sm:$0xf]  ;;  %v7845_v17 = vld [vmem:[#allocation10 + $0x1d8] sm:$0xf0] }
 0x6bc   : > { %v6151_v55 = vsub.f32 %v5368_v7, %v14777_v16  ;;  %5297 = vmatmul.bf16.gmra.mxu0 %v11879_v50  ;;  %5406 = vmatmul.bf16.gmra.mxu1 %v14778_v57 }
 0x6bd   : > { %5515 = vmatmul.bf16.gmra.mxu2 %v11879_v50  ;;  %5624 = vmatmul.bf16.gmra.mxu3 %v14778_v57 }
 0x6be   : > { %v6391_v51 = vmul.f32 %v6151_v55, %v6151_v55 }
 0x6c0   : > { %v6638_v37 = vadd.f32 %v12213_v39, %v6391_v51  ;;  %v5476_v43 = vpop.f32.mrf.mxu2  ;;  %v5585_v54 = vpop.f32.mrf.mxu3  ;;  %v14783_v39 = vld [vmem:[#allocation50_spill] sm:$0xff] }
 0x6c1   : > { %v5586_v3 = vadd.f32 %v5585_v54, %v5476_v43  ;;  %v5260_v4 = vpop.f32.mrf.mxu0  ;;  %v5369_v24 = vpop.f32.mrf.mxu1 }
 0x6c2   : > { %v5370_v30 = vadd.f32 %v5369_v24, %v5260_v4  ;;  %v14785_v24 = vld [vmem:[#allocation71_spill] sm:$0xff] }
 0x6c3   : > { %v6152_v38 = vsub.f32 %v5586_v3, %v14779_v27 }
 0x6c4   : > { %v6157_v7 = vsub.f32 %v5370_v30, %v14781_v35  ;;  %v14786_v30 = vunpack.c.l.bf16 %v14785_v24 }
 0x6c5   : > { %v6392_v41 = vmul.f32 %v6152_v38, %v6152_v38  ;;  %v14787_v38 = vld [vmem:[#allocation227_spill] sm:$0xff] }
 0x6c6   : > { %v6397_v16 = vmul.f32 %v6157_v7, %v6157_v7  ;;  %v6374_v7 = vmul.f32 %v6134_v9, %v6134_v9 }
 0x6c7   : > { %v12556_v63 = vadd.f32 %v6638_v37, %v6392_v41  ;;  %v14788_v37 = vld [vmem:[#allocation252_spill] sm:$0xff] }
 0x6c8   : > { %v12559_v55 = vadd.f32 %v14783_v39, %v6397_v16  ;;  %v5478_v51 = vpop.f32.mrf.mxu2  ;;  %v5587_v43 = vpop.f32.mrf.mxu3  ;;  %v12576_v9 = vadd.f32 %v12511_v34, %v6374_v7 }
 0x6c9   : > { %14782 = vst [vmem:[#allocation91_spill] sm:$0xff] %v12556_v63  ;;  %v12561_v54 = vadd.f32 %v5587_v43, %v5478_v51  ;;  %v5263_v4 = vpop.f32.mrf.mxu0  ;;  %v5372_v11 = vpop.f32.mrf.mxu1  ;;  %v7653_v51 = vld [vmem:[#allocation10 + $0x58] sm:$0xf0]  ;;  %v7848_v63 = vor.u32 %v8149_v36, %v7845_v17 }
 0x6ca   : > { %v5373_v3 = vadd.f32 %v5372_v11, %v5263_v4 }
 0x6cb   : > { %5998 = vmatpush.bf16.msrb.mxu3 %v7848_v63 }
 0x6cc   : > { %v6163_v27 = vsub.f32 %v5373_v3, %v14786_v30  ;;  %5302 = vmatmul.bf16.gmra.mxu0 %v14787_v38  ;;  %5411 = vmatmul.bf16.gmra.mxu1 %v14788_v37  ;;  %v7656_v3 = vor.u32 %v8101_v18, %v7653_v51  ;;  %v8104_v18 = vld [vmem:[#allocation10 + $0x54] sm:$0xf0]  ;;  %v7843_v51 = vld [vmem:[#allocation10 + $0x1c0] sm:$0xf] }
 0x6cd   : > { %5520 = vmatmul.bf16.gmra.mxu2 %v14787_v38  ;;  %5629 = vmatmul.bf16.gmra.mxu3 %v14788_v37  ;;  %v14789_v38 = vunpack.c.h.bf16 %v14785_v24 }
 0x6ce   : > { %v6403_v35 = vmul.f32 %v6163_v27, %v6163_v27  ;;  %5889 = vmatpush.bf16.msrb.mxu2 %v7656_v3 }
 0x6d0   : > { %v6652_v41 = vadd.f32 %v12229_v14, %v6403_v35  ;;  %v5481_v16 = vpop.f32.mrf.mxu2  ;;  %v5590_v39 = vpop.f32.mrf.mxu3  ;;  %v14790_v14 = vld [vmem:[#allocation74_spill] sm:$0xff] }
 0x6d1   : > { %v5591_v43 = vadd.f32 %v5590_v39, %v5481_v16  ;;  %v5265_v4 = vpop.f32.mrf.mxu0  ;;  %v5374_v11 = vpop.f32.mrf.mxu1  ;;  %v14791_v27 = vunpack.c.l.bf16 %v14790_v14  ;;  %v7651_v39 = vld [vmem:[#allocation10 + $0x40] sm:$0xf] }
 0x6d2   : > { %v5375_v30 = vadd.f32 %v5374_v11, %v5265_v4  ;;  %v8152_v4 = vld [vmem:[#allocation10 + $0x1d4] sm:$0xf0] }
 0x6d3   : > { %v6164_v57 = vsub.f32 %v5591_v43, %v14789_v38  ;;  %v7652_v43 = vor.u32 %v8104_v18, %v7651_v39  ;;  %v7844_v3 = vor.u32 %v8152_v4, %v7843_v51 }
 0x6d4   : > { %v6169_v35 = vsub.f32 %v5375_v30, %v14791_v27 }
 0x6d5   : > { %v6404_v37 = vmul.f32 %v6164_v57, %v6164_v57  ;;  %5671 = vmatpush.bf16.msrb.mxu0 %v7652_v43  ;;  %v14792_v57 = vunpack.c.h.bf16 %v14773_v47  ;;  %5780 = vmatpush.bf16.msrb.mxu1 %v7844_v3 }
 0x6d6   : > { %v6409_v50 = vmul.f32 %v6169_v35, %v6169_v35 }
 0x6d7   : > { %v12580_v16 = vadd.f32 %v6652_v41, %v6404_v37  ;;  %v6146_v37 = vsub.f32 %v12537_v52, %v14792_v57  ;;  %v14793_v41 = vld [vmem:[#allocation80_spill] sm:$0xff] }
 0x6d8   : > { %v12583_v36 = vadd.f32 %v12239_v6, %v6409_v50  ;;  %v5483_v24 = vpop.f32.mrf.mxu2  ;;  %v5592_v38 = vpop.f32.mrf.mxu3  ;;  %v14794_v17 = vunpack.c.l.bf16 %v14793_v41  ;;  %v14795_v6 = vld [vmem:[#allocation260_spill] sm:$0xff] }
 0x6d9   : > { %v12585_v34 = vadd.f32 %v5592_v38, %v5483_v24  ;;  %v5268_v7 = vpop.f32.mrf.mxu0  ;;  %v5377_v11 = vpop.f32.mrf.mxu1  ;;  %v6386_v27 = vmul.f32 %v6146_v37, %v6146_v37  ;;  %v14796_v38 = vunpack.c.h.bf16 %v14793_v41 }
 0x6da   : > { %v5378_v63 = vadd.f32 %v5377_v11, %v5268_v7  ;;  %v14797_v7 = vld [vmem:[#allocation81_spill] sm:$0xff] }
 0x6db   : > { %v12600_v4 = vadd.f32 %v12535_v58, %v6386_v27  ;;  %v14798_v11 = vunpack.c.l.bf16 %v14797_v7  ;;  %v14799_v58 = vunpack.c.h.bf16 %v14780_v5 }
 0x6dc   : > { %v6175_v50 = vsub.f32 %v5378_v63, %v14794_v17  ;;  %5307 = vmatmul.bf16.gmra.mxu0 %v11907_v62  ;;  %5416 = vmatmul.bf16.gmra.mxu1 %v14795_v6 }
 0x6dd   : > { %5525 = vmatmul.bf16.gmra.mxu2 %v11907_v62  ;;  %5634 = vmatmul.bf16.gmra.mxu3 %v14795_v6  ;;  %v6158_v27 = vsub.f32 %v12561_v54, %v14799_v58 }
 0x6de   : > { %v6415_v30 = vmul.f32 %v6175_v50, %v6175_v50 }
 0x6e0   : > { %v6666_v35 = vadd.f32 %v12245_v48, %v6415_v30  ;;  %v5486_v39 = vpop.f32.mrf.mxu2  ;;  %v5595_v47 = vpop.f32.mrf.mxu3 }
 0x6e1   : > { %v5596_v18 = vadd.f32 %v5595_v47, %v5486_v39  ;;  %v5270_v52 = vpop.f32.mrf.mxu0  ;;  %v5379_v51 = vpop.f32.mrf.mxu1 }
 0x6e2   : > { %v5380_v24 = vadd.f32 %v5379_v51, %v5270_v52 }
 0x6e3   : > { %v6176_v43 = vsub.f32 %v5596_v18, %v14796_v38  ;;  %v14800_v18 = vld [vmem:[#allocation100_spill] sm:$0xff]  ;;  %v6398_v38 = vmul.f32 %v6158_v27, %v6158_v27 }
 0x6e4   : > { %v6181_v3 = vsub.f32 %v5380_v24, %v14798_v11  ;;  %v14801_v52 = vunpack.c.l.bf16 %v14800_v18  ;;  %v14802_v24 = vld [vmem:[#allocation228_spill] sm:$0xff] }
 0x6e5   : > { %v6416_v63 = vmul.f32 %v6176_v43, %v6176_v43 }
 0x6e6   : > { %v6421_v57 = vmul.f32 %v6181_v3, %v6181_v3 }
 0x6e7   : > { %v12604_v37 = vadd.f32 %v6666_v35, %v6416_v63  ;;  %v14803_v35 = vld [vmem:[#allocation261_spill] sm:$0xff] }
 0x6e8   : > { %v12607_v48 = vadd.f32 %v12255_v42, %v6421_v57  ;;  %v5488_v17 = vpop.f32.mrf.mxu2  ;;  %v5597_v50 = vpop.f32.mrf.mxu3 }
 0x6e9   : > { %v12609_v30 = vadd.f32 %v5597_v50, %v5488_v17  ;;  %v5273_v39 = vpop.f32.mrf.mxu0  ;;  %v5382_v41 = vpop.f32.mrf.mxu1  ;;  %v14804_v17 = vunpack.c.h.bf16 %v14800_v18 }
 0x6ea   : > { %v5383_v47 = vadd.f32 %v5382_v41, %v5273_v39  ;;  %v12624_v39 = vadd.f32 %v12559_v55, %v6398_v38  ;;  %v14805_v41 = vld [vmem:[#allocation99_spill] sm:$0xff] }
 0x6ec   : > { %v6187_v51 = vsub.f32 %v5383_v47, %v14801_v52  ;;  %5312 = vmatmul.bf16.gmra.mxu0 %v14802_v24  ;;  %5421 = vmatmul.bf16.gmra.mxu1 %v14803_v35  ;;  %v14806_v47 = vunpack.c.l.bf16 %v14805_v41 }
 0x6ed   : > { %5530 = vmatmul.bf16.gmra.mxu2 %v14802_v24  ;;  %5639 = vmatmul.bf16.gmra.mxu3 %v14803_v35  ;;  %v8095_v35 = vld [vmem:[#allocation10 + $0x14] sm:$0xf] }
 0x6ee   : > { %v6427_v42 = vmul.f32 %v6187_v51, %v6187_v51 }
 0x6f0   : > { %v6680_v43 = vadd.f32 %v12261_v23, %v6427_v42  ;;  %v5491_v11 = vpop.f32.mrf.mxu2  ;;  %v5600_v3 = vpop.f32.mrf.mxu3  ;;  %v14808_v23 = vld [vmem:[#allocation62_spill] sm:$0xff] }
 0x6f1   : > { %v5601_v5 = vadd.f32 %v5600_v3, %v5491_v11  ;;  %v5275_v63 = vpop.f32.mrf.mxu0  ;;  %v5384_v54 = vpop.f32.mrf.mxu1 }
 0x6f2   : > { %v5385_v57 = vadd.f32 %v5384_v54, %v5275_v63  ;;  %v7629_v63 = vld [vmem:[#allocation10 + $0x28] sm:$0xf0]  ;;  %v8143_v54 = vld [vmem:[#allocation10 + $0x194] sm:$0xf] }
 0x6f3   : > { %v6188_v50 = vsub.f32 %v5601_v5, %v14804_v17  ;;  %v7632_v38 = vor.u32 %v8095_v35, %v7629_v63  ;;  %v7821_v17 = vld [vmem:[#allocation10 + $0x1a8] sm:$0xf0]  ;;  %v7627_v35 = vld [vmem:[#allocation10 + $0x10] sm:$0xf] }
 0x6f4   : > { %v6193_v58 = vsub.f32 %v5385_v57, %v14806_v47  ;;  %v7824_v57 = vor.u32 %v8143_v54, %v7821_v17  ;;  %v14810_v47 = vld [vmem:[#allocation107_spill] sm:$0xff] }
 0x6f5   : > { %v6428_v52 = vmul.f32 %v6188_v50, %v6188_v50  ;;  %v14809_v50 = vunpack.c.h.bf16 %v14790_v14  ;;  %5890 = vmatpush.bf16.msrb.mxu2 %v7632_v38  ;;  %v8146_v54 = vld [vmem:[#allocation10 + $0x1a4] sm:$0xf0] }
 0x6f6   : > { %v6433_v51 = vmul.f32 %v6193_v58, %v6193_v58  ;;  %v14811_v58 = vunpack.c.l.bf16 %v14810_v47  ;;  %5999 = vmatpush.bf16.msrb.mxu3 %v7824_v57  ;;  %v14815_v57 = vld [vmem:[#allocation104_spill] sm:$0xff] }
 0x6f7   : > { %v12628_v27 = vadd.f32 %v6680_v43, %v6428_v52  ;;  %v6170_v43 = vsub.f32 %v12585_v34, %v14809_v50 }
 0x6f8   : > { %v12631_v42 = vadd.f32 %v14808_v23, %v6433_v51  ;;  %v5493_v11 = vpop.f32.mrf.mxu2  ;;  %v5602_v3 = vpop.f32.mrf.mxu3  ;;  %v14812_v51 = vld [vmem:[#allocation222_spill] sm:$0xff]  ;;  %v14813_v23 = vld [vmem:[#allocation36_spill] sm:$0xff] }
 0x6f9   : > { %14807 = vst [vmem:[#allocation59_spill] sm:$0xff] %v12628_v27  ;;  %v12633_v18 = vadd.f32 %v5602_v3, %v5493_v11  ;;  %v5278_v5 = vpop.f32.mrf.mxu0  ;;  %v5387_v55 = vpop.f32.mrf.mxu1  ;;  %v8098_v11 = vld [vmem:[#allocation10 + $0x24] sm:$0xf0]  ;;  %v7819_v3 = vld [vmem:[#allocation10 + $0x190] sm:$0xf]  ;;  %v6410_v34 = vmul.f32 %v6170_v43, %v6170_v43 }
 0x6fa   : > { %v5388_v24 = vadd.f32 %v5387_v55, %v5278_v5  ;;  %v7628_v14 = vor.u32 %v8098_v11, %v7627_v35  ;;  %v7820_v5 = vor.u32 %v8146_v54, %v7819_v3  ;;  %v14816_v35 = vunpack.c.l.bf16 %v14815_v57 }
 0x6fc   : > { %v6199_v52 = vsub.f32 %v5388_v24, %v14811_v58  ;;  %5317 = vmatmul.bf16.gmra.mxu0 %v14812_v51  ;;  %5426 = vmatmul.bf16.gmra.mxu1 %v14813_v23 }
 0x6fd   : > { %5535 = vmatmul.bf16.gmra.mxu2 %v14812_v51  ;;  %5644 = vmatmul.bf16.gmra.mxu3 %v14813_v23  ;;  %v14814_v23 = vunpack.c.h.bf16 %v14810_v47 }
 0x6fe   : > { %v6439_v63 = vmul.f32 %v6199_v52, %v6199_v52  ;;  %5672 = vmatpush.bf16.msrb.mxu0 %v7628_v14  ;;  %5781 = vmatpush.bf16.msrb.mxu1 %v7820_v5  ;;  %v12648_v52 = vadd.f32 %v12583_v36, %v6410_v34  ;;  %v14818_v34 = vld [vmem:[#allocation121_spill] sm:$0xff] }
 0x700   : > { %v6694_v55 = vadd.f32 %v12277_v32, %v6439_v63  ;;  %v5496_v24 = vpop.f32.mrf.mxu2  ;;  %v5605_v38 = vpop.f32.mrf.mxu3 }
 0x701   : > { %v5606_v17 = vadd.f32 %v5605_v38, %v5496_v24  ;;  %v5280_v50 = vpop.f32.mrf.mxu0  ;;  %v5389_v58 = vpop.f32.mrf.mxu1 }
 0x702   : > { %v5390_v51 = vadd.f32 %v5389_v58, %v5280_v50 }
 0x703   : > { %v6200_v27 = vsub.f32 %v5606_v17, %v14814_v23  ;;  %v14817_v23 = vunpack.c.h.bf16 %v14797_v7  ;;  %v14819_v17 = vunpack.c.l.bf16 %v14818_v34 }
 0x704   : > { %v6205_v43 = vsub.f32 %v5390_v51, %v14816_v35 }
 0x705   : > { %v6440_v11 = vmul.f32 %v6200_v27, %v6200_v27  ;;  %v6182_v36 = vsub.f32 %v12609_v30, %v14817_v23  ;;  %v14820_v27 = vld [vmem:[#allocation37_spill] sm:$0xff] }
 0x706   : > { %v6445_v3 = vmul.f32 %v6205_v43, %v6205_v43 }
 0x707   : > { %v12652_v32 = vadd.f32 %v6694_v55, %v6440_v11  ;;  %v6422_v55 = vmul.f32 %v6182_v36, %v6182_v36 }
 0x708   : > { %v12655_v63 = vadd.f32 %v12287_v31, %v6445_v3  ;;  %v5498_v14 = vpop.f32.mrf.mxu2  ;;  %v5607_v54 = vpop.f32.mrf.mxu3  ;;  %v14821_v3 = vunpack.c.h.bf16 %v14818_v34 }
 0x709   : > { %v5608_v5 = vadd.f32 %v5607_v54, %v5498_v14  ;;  %v5283_v24 = vpop.f32.mrf.mxu0  ;;  %v5392_v38 = vpop.f32.mrf.mxu1  ;;  %v12670_v54 = vadd.f32 %v12607_v48, %v6422_v55  ;;  %v14827_v55 = vld [vmem:[#allocation129_spill] sm:$0xff] }
 0x70a   : > { %v5393_v47 = vadd.f32 %v5392_v38, %v5283_v24  ;;  %v14822_v24 = vld [vmem:[#allocation123_spill] sm:$0xff] }
 0x70b   : > { %v14823_v38 = vunpack.c.l.bf16 %v14822_v24 }
 0x70c   : > { %v6211_v51 = vsub.f32 %v5393_v47, %v14819_v17  ;;  %5322 = vmatmul.bf16.gmra.mxu0 %v11949_v61  ;;  %5431 = vmatmul.bf16.gmra.mxu1 %v14820_v27 }
 0x70d   : > { %5540 = vmatmul.bf16.gmra.mxu2 %v11949_v61  ;;  %5649 = vmatmul.bf16.gmra.mxu3 %v14820_v27 }
 0x70e   : > { %v6451_v31 = vmul.f32 %v6211_v51, %v6211_v51 }
 0x710   : > { %v6708_v50 = vadd.f32 %v12293_v13, %v6451_v31  ;;  %v5501_v58 = vpop.f32.mrf.mxu2  ;;  %v5610_v35 = vpop.f32.mrf.mxu3  ;;  %v14825_v13 = vld [vmem:[#allocation63_spill] sm:$0xff] }
 0x711   : > { %v5611_v7 = vadd.f32 %v5610_v35, %v5501_v58  ;;  %v5285_v43 = vpop.f32.mrf.mxu0  ;;  %v5394_v30 = vpop.f32.mrf.mxu1 }
 0x712   : > { %v5395_v11 = vadd.f32 %v5394_v30, %v5285_v43 }
 0x713   : > { %v6212_v14 = vsub.f32 %v5611_v7, %v14821_v3  ;;  %v14826_v7 = vunpack.c.h.bf16 %v14805_v41  ;;  %v14828_v3 = vunpack.c.l.bf16 %v14827_v55 }
 0x714   : > { %v6217_v47 = vsub.f32 %v5395_v11, %v14823_v38 }
 0x715   : > { %v6452_v23 = vmul.f32 %v6212_v14, %v6212_v14  ;;  %v6194_v48 = vsub.f32 %v12633_v18, %v14826_v7  ;;  %v14829_v14 = vld [vmem:[#allocation226_spill] sm:$0xff] }
 0x716   : > { %v6457_v17 = vmul.f32 %v6217_v47, %v6217_v47  ;;  %v14832_v7 = vld [vmem:[#allocation130_spill] sm:$0xff] }
 0x717   : > { %v12674_v36 = vadd.f32 %v6708_v50, %v6452_v23  ;;  %v14830_v50 = vld [vmem:[#allocation45_spill] sm:$0xff]  ;;  %v6434_v47 = vmul.f32 %v6194_v48, %v6194_v48 }
 0x718   : > { %v12677_v51 = vadd.f32 %v14825_v13, %v6457_v17  ;;  %v5503_v31 = vpop.f32.mrf.mxu2  ;;  %v5612_v58 = vpop.f32.mrf.mxu3 }
 0x719   : > { %14824 = vst [vmem:[#allocation60_spill] sm:$0xff] %v12674_v36  ;;  %v5613_v35 = vadd.f32 %v5612_v58, %v5503_v31  ;;  %v5288_v43 = vpop.f32.mrf.mxu0  ;;  %v5397_v30 = vpop.f32.mrf.mxu1 }
 0x71a   : > { %v5398_v34 = vadd.f32 %v5397_v30, %v5288_v43  ;;  %v14831_v43 = vunpack.c.h.bf16 %v14827_v55 }
 0x71c   : > { %v6223_v11 = vsub.f32 %v5398_v34, %v14828_v3  ;;  %5327 = vmatmul.bf16.gmra.mxu0 %v14829_v14  ;;  %5436 = vmatmul.bf16.gmra.mxu1 %v14830_v50  ;;  %v12692_v34 = vadd.f32 %v12631_v42, %v6434_v47  ;;  %v14833_v3 = vunpack.c.l.bf16 %v14832_v7  ;;  %v14835_v47 = vld [vmem:[#allocation145_spill] sm:$0xff] }
 0x71d   : > { %5545 = vmatmul.bf16.gmra.mxu2 %v14829_v14  ;;  %5654 = vmatmul.bf16.gmra.mxu3 %v14830_v50 }
 0x71e   : > { %v6463_v38 = vmul.f32 %v6223_v11, %v6223_v11 }
 0x720   : > { %v6722_v23 = vadd.f32 %v12309_v25, %v6463_v38  ;;  %v5506_v17 = vpop.f32.mrf.mxu2  ;;  %v5615_v13 = vpop.f32.mrf.mxu3 }
 0x721   : > { %v5616_v41 = vadd.f32 %v5615_v13, %v5506_v17  ;;  %v5290_v31 = vpop.f32.mrf.mxu0  ;;  %v5399_v18 = vpop.f32.mrf.mxu1 }
 0x722   : > { %v5400_v58 = vadd.f32 %v5399_v18, %v5290_v31 }
 0x723   : > { %v6224_v30 = vsub.f32 %v5616_v41, %v14831_v43  ;;  %v14834_v41 = vunpack.c.h.bf16 %v14815_v57  ;;  %v14836_v43 = vunpack.c.l.bf16 %v14835_v47 }
 0x724   : > { %v6229_v14 = vsub.f32 %v5400_v58, %v14833_v3 }
 0x725   : > { %v6464_v50 = vmul.f32 %v6224_v30, %v6224_v30  ;;  %v6206_v42 = vsub.f32 %v5608_v5, %v14834_v41 }
 0x726   : > { %v6469_v11 = vmul.f32 %v6229_v14, %v6229_v14  ;;  %v14837_v14 = vld [vmem:[#allocation46_spill] sm:$0xff] }
 0x727   : > { %v12696_v48 = vadd.f32 %v6722_v23, %v6464_v50  ;;  %v6446_v50 = vmul.f32 %v6206_v42, %v6206_v42 }
 0x728   : > { %v12699_v25 = vadd.f32 %v12319_v19, %v6469_v11  ;;  %v5508_v38 = vpop.f32.mrf.mxu2  ;;  %v5617_v17 = vpop.f32.mrf.mxu3 }
 0x729   : > { %v5618_v13 = vadd.f32 %v5617_v17, %v5508_v38  ;;  %v5293_v31 = vpop.f32.mrf.mxu0  ;;  %v5402_v18 = vpop.f32.mrf.mxu1  ;;  %v14838_v38 = vunpack.c.h.bf16 %v14835_v47 }
 0x72a   : > { %v5403_v55 = vadd.f32 %v5402_v18, %v5293_v31  ;;  %v12713_v31 = vadd.f32 %v12655_v63, %v6446_v50  ;;  %v14839_v18 = vld [vmem:[#allocation154_spill] sm:$0xff]  ;;  %v14843_v50 = vld [vmem:[#allocation161_spill] sm:$0xff] }
 0x72c   : > { %v6235_v36 = vsub.f32 %v5403_v55, %v14836_v43  ;;  %5332 = vmatmul.bf16.gmra.mxu0 %v11977_v59  ;;  %5441 = vmatmul.bf16.gmra.mxu1 %v14837_v14  ;;  %v14840_v55 = vunpack.c.l.bf16 %v14839_v18 }
 0x72d   : > { %5550 = vmatmul.bf16.gmra.mxu2 %v11977_v59  ;;  %5659 = vmatmul.bf16.gmra.mxu3 %v14837_v14 }
 0x72e   : > { %v6475_v19 = vmul.f32 %v6235_v36, %v6235_v36 }
 0x730   : > { %v6736_v23 = vadd.f32 %v12325_v53, %v6475_v19  ;;  %v5511_v58 = vpop.f32.mrf.mxu2  ;;  %v5620_v30 = vpop.f32.mrf.mxu3 }
 0x731   : > { %v5621_v3 = vadd.f32 %v5620_v30, %v5511_v58  ;;  %v5295_v57 = vpop.f32.mrf.mxu0  ;;  %v5404_v5 = vpop.f32.mrf.mxu1 }
 0x732   : > { %v5405_v11 = vadd.f32 %v5404_v5, %v5295_v57 }
 0x733   : > { %v6236_v17 = vsub.f32 %v5621_v3, %v14838_v38  ;;  %v14842_v3 = vunpack.c.h.bf16 %v14822_v24  ;;  %v14844_v38 = vunpack.c.l.bf16 %v14843_v50 }
 0x734   : > { %v6241_v41 = vsub.f32 %v5405_v11, %v14840_v55  ;;  %v14845_v11 = vld [vmem:[#allocation84_spill] sm:$0xff] }
 0x735   : > { %v6476_v43 = vmul.f32 %v6236_v17, %v6236_v17  ;;  %v6218_v63 = vsub.f32 %v5613_v35, %v14842_v3  ;;  %v14846_v17 = vld [vmem:[#allocation235_spill] sm:$0xff] }
 0x736   : > { %v6481_v36 = vmul.f32 %v6241_v41, %v6241_v41 }
 0x737   : > { %v12717_v42 = vadd.f32 %v6736_v23, %v6476_v43  ;;  %v6458_v23 = vmul.f32 %v6218_v63, %v6218_v63 }
 0x738   : > { %v12720_v53 = vadd.f32 %v12335_v1, %v6481_v36  ;;  %v5513_v19 = vpop.f32.mrf.mxu2  ;;  %v5622_v58 = vpop.f32.mrf.mxu3 }
 0x739   : > { %14841 = vst [vmem:[#allocation95_spill] sm:$0xff] %v12717_v42  ;;  %v5623_v30 = vadd.f32 %v5622_v58, %v5513_v19  ;;  %v5298_v57 = vpop.f32.mrf.mxu0  ;;  %v5407_v5 = vpop.f32.mrf.mxu1  ;;  %v14847_v58 = vunpack.c.h.bf16 %v14843_v50 }
 0x73a   : > { %v5408_v47 = vadd.f32 %v5407_v5, %v5298_v57  ;;  %v12734_v5 = vadd.f32 %v12677_v51, %v6458_v23  ;;  %v14852_v23 = vld [vmem:[#allocation175_spill] sm:$0xff] }
 0x73c   : > { %v6247_v14 = vsub.f32 %v5408_v47, %v14844_v38  ;;  %5673 = vmatmul.bf16.vlgmr.msrb.gmra.mxu0 %v14845_v11  ;;  %5782 = vmatmul.bf16.vlgmr.msrb.gmra.mxu1 %v14846_v17  ;;  %v14848_v47 = vld [vmem:[#allocation162_spill] sm:$0xff] }
 0x73d   : > { %5891 = vmatmul.bf16.vlgmr.msrb.gmra.mxu2 %v14845_v11  ;;  %6000 = vmatmul.bf16.vlgmr.msrb.gmra.mxu3 %v14846_v17  ;;  %v14849_v3 = vunpack.c.l.bf16 %v14848_v47 }
 0x73e   : > { %v6487_v1 = vmul.f32 %v6247_v14, %v6247_v14 }
 0x740   : > { %v6750_v55 = vadd.f32 %v12341_v10, %v6487_v1  ;;  %v5516_v41 = vpop.f32.mrf.mxu2  ;;  %v5625_v43 = vpop.f32.mrf.mxu3  ;;  %v14850_v10 = vld [vmem:[#allocation72_spill] sm:$0xff] }
 0x741   : > { %v5626_v36 = vadd.f32 %v5625_v43, %v5516_v41  ;;  %v5300_v24 = vpop.f32.mrf.mxu0  ;;  %v5409_v35 = vpop.f32.mrf.mxu1 }
 0x742   : > { %v5410_v19 = vadd.f32 %v5409_v35, %v5300_v24 }
 0x743   : > { %v6248_v57 = vsub.f32 %v5626_v36, %v14847_v58  ;;  %v14851_v36 = vunpack.c.h.bf16 %v14832_v7  ;;  %v14853_v58 = vunpack.c.l.bf16 %v14852_v23 }
 0x744   : > { %v6253_v38 = vsub.f32 %v5410_v19, %v14849_v3  ;;  %v14854_v19 = vld [vmem:[#allocation93_spill] sm:$0xff] }
 0x745   : > { %v6488_v11 = vmul.f32 %v6248_v57, %v6248_v57  ;;  %v6230_v51 = vsub.f32 %v5618_v13, %v14851_v36  ;;  %v14855_v57 = vld [vmem:[#allocation234_spill] sm:$0xff] }
 0x746   : > { %v6493_v14 = vmul.f32 %v6253_v38, %v6253_v38 }
 0x747   : > { %v12738_v63 = vadd.f32 %v6750_v55, %v6488_v11  ;;  %v6470_v3 = vmul.f32 %v6230_v51, %v6230_v51 }
 0x748   : > { %v12741_v17 = vadd.f32 %v14850_v10, %v6493_v14  ;;  %v5518_v1 = vpop.f32.mrf.mxu2  ;;  %v5627_v41 = vpop.f32.mrf.mxu3 }
 0x749   : > { %v5628_v43 = vadd.f32 %v5627_v41, %v5518_v1  ;;  %v5303_v24 = vpop.f32.mrf.mxu0  ;;  %v5412_v35 = vpop.f32.mrf.mxu1  ;;  %v14856_v41 = vunpack.c.h.bf16 %v14852_v23 }
 0x74a   : > { %v5413_v50 = vadd.f32 %v5412_v35, %v5303_v24  ;;  %v12755_v35 = vadd.f32 %v12699_v25, %v6470_v3  ;;  %v14860_v3 = vld [vmem:[#allocation191_spill] sm:$0xff] }
 0x74c   : > { %v6259_v42 = vsub.f32 %v5413_v50, %v14853_v58  ;;  %5678 = vmatmul.bf16.gmra.mxu0 %v14854_v19  ;;  %5787 = vmatmul.bf16.gmra.mxu1 %v14855_v57  ;;  %v14857_v50 = vld [vmem:[#allocation176_spill] sm:$0xff] }
 0x74d   : > { %5896 = vmatmul.bf16.gmra.mxu2 %v14854_v19  ;;  %6005 = vmatmul.bf16.gmra.mxu3 %v14855_v57  ;;  %v14858_v36 = vunpack.c.l.bf16 %v14857_v50 }
 0x74e   : > { %v6499_v55 = vmul.f32 %v6259_v42, %v6259_v42 }
 0x750   : > { %v6764_v38 = vadd.f32 %v12357_v46, %v6499_v55  ;;  %v5521_v11 = vpop.f32.mrf.mxu2  ;;  %v5630_v14 = vpop.f32.mrf.mxu3 }
 0x751   : > { %v5631_v10 = vadd.f32 %v5630_v14, %v5521_v11  ;;  %v5305_v7 = vpop.f32.mrf.mxu0  ;;  %v5414_v13 = vpop.f32.mrf.mxu1 }
 0x752   : > { %v5415_v1 = vadd.f32 %v5414_v13, %v5305_v7  ;;  %v14861_v13 = vunpack.c.l.bf16 %v14860_v3 }
 0x753   : > { %v6260_v24 = vsub.f32 %v5631_v10, %v14856_v41  ;;  %v14859_v10 = vunpack.c.h.bf16 %v14839_v18 }
 0x754   : > { %v6265_v58 = vsub.f32 %v5415_v1, %v14858_v36  ;;  %v14862_v1 = vld [vmem:[#allocation243_spill] sm:$0xff] }
 0x755   : > { %v6500_v19 = vmul.f32 %v6260_v24, %v6260_v24  ;;  %v6242_v25 = vsub.f32 %v5623_v30, %v14859_v10 }
 0x756   : > { %v6505_v42 = vmul.f32 %v6265_v58, %v6265_v58 }
 0x757   : > { %v12759_v51 = vadd.f32 %v6764_v38, %v6500_v19  ;;  %v6482_v38 = vmul.f32 %v6242_v25, %v6242_v25 }
 0x758   : > { %v12762_v46 = vadd.f32 %v12367_v26, %v6505_v42  ;;  %v5523_v57 = vpop.f32.mrf.mxu2  ;;  %v5632_v55 = vpop.f32.mrf.mxu3 }
 0x759   : > { %v5633_v11 = vadd.f32 %v5632_v55, %v5523_v57  ;;  %v5308_v14 = vpop.f32.mrf.mxu0  ;;  %v5417_v7 = vpop.f32.mrf.mxu1  ;;  %v14863_v57 = vunpack.c.h.bf16 %v14860_v3 }
 0x75a   : > { %v5418_v23 = vadd.f32 %v5417_v7, %v5308_v14  ;;  %v12776_v14 = vadd.f32 %v12720_v53, %v6482_v38  ;;  %v14864_v7 = vld [vmem:[#allocation192_spill] sm:$0xff]  ;;  %v14868_v38 = vld [vmem:[#allocation205_spill] sm:$0xff] }
 0x75c   : > { %v6271_v41 = vsub.f32 %v5418_v23, %v14861_v13  ;;  %5683 = vmatmul.bf16.gmra.mxu0 %v14603_v60  ;;  %5792 = vmatmul.bf16.gmra.mxu1 %v14862_v1 }
 0x75d   : > { %5901 = vmatmul.bf16.gmra.mxu2 %v14603_v60  ;;  %6010 = vmatmul.bf16.gmra.mxu3 %v14862_v1  ;;  %v14865_v60 = vunpack.c.l.bf16 %v14864_v7 }
 0x75e   : > { %v6511_v26 = vmul.f32 %v6271_v41, %v6271_v41 }
 0x760   : > { %v6778_v24 = vadd.f32 %v12373_v29, %v6511_v26  ;;  %v5526_v36 = vpop.f32.mrf.mxu2  ;;  %v5635_v58 = vpop.f32.mrf.mxu3  ;;  %v14866_v29 = vld [vmem:[#allocation73_spill] sm:$0xff] }
 0x761   : > { %v5636_v19 = vadd.f32 %v5635_v58, %v5526_v36  ;;  %v5310_v18 = vpop.f32.mrf.mxu0  ;;  %v5419_v30 = vpop.f32.mrf.mxu1 }
 0x762   : > { %v5420_v42 = vadd.f32 %v5419_v30, %v5310_v18  ;;  %v14869_v30 = vunpack.c.l.bf16 %v14868_v38 }
 0x763   : > { %v6272_v55 = vsub.f32 %v5636_v19, %v14863_v57  ;;  %v14867_v19 = vunpack.c.h.bf16 %v14848_v47 }
 0x764   : > { %v6277_v23 = vsub.f32 %v5420_v42, %v14865_v60  ;;  %v14870_v42 = vld [vmem:[#allocation132_spill] sm:$0xff] }
 0x765   : > { %v6512_v10 = vmul.f32 %v6272_v55, %v6272_v55  ;;  %v6254_v53 = vsub.f32 %v5628_v43, %v14867_v19  ;;  %v14871_v55 = vld [vmem:[#allocation249_spill] sm:$0xff] }
 0x766   : > { %v6517_v13 = vmul.f32 %v6277_v23, %v6277_v23 }
 0x767   : > { %v12780_v25 = vadd.f32 %v6778_v24, %v6512_v10  ;;  %v6494_v60 = vmul.f32 %v6254_v53, %v6254_v53 }
 0x768   : > { %v12783_v41 = vadd.f32 %v14866_v29, %v6517_v13  ;;  %v5528_v1 = vpop.f32.mrf.mxu2  ;;  %v5637_v26 = vpop.f32.mrf.mxu3 }
 0x769   : > { %v5638_v36 = vadd.f32 %v5637_v26, %v5528_v1  ;;  %v5313_v58 = vpop.f32.mrf.mxu0  ;;  %v5422_v18 = vpop.f32.mrf.mxu1  ;;  %v14872_v26 = vunpack.c.h.bf16 %v14868_v38 }
 0x76a   : > { %v5423_v3 = vadd.f32 %v5422_v18, %v5313_v58  ;;  %v12797_v18 = vadd.f32 %v12741_v17, %v6494_v60  ;;  %v14876_v60 = vld [vmem:[#allocation218_spill] sm:$0xff] }
 0x76c   : > { %v6283_v57 = vsub.f32 %v5423_v3, %v14869_v30  ;;  %5688 = vmatmul.bf16.gmra.mxu0 %v14870_v42  ;;  %5797 = vmatmul.bf16.gmra.mxu1 %v14871_v55  ;;  %v14873_v3 = vld [vmem:[#allocation206_spill] sm:$0xff] }
 0x76d   : > { %5906 = vmatmul.bf16.gmra.mxu2 %v14870_v42  ;;  %6015 = vmatmul.bf16.gmra.mxu3 %v14871_v55  ;;  %v14874_v19 = vunpack.c.l.bf16 %v14873_v3 }
 0x76e   : > { %v6523_v24 = vmul.f32 %v6283_v57, %v6283_v57 }
 0x770   : > { %v6792_v23 = vadd.f32 %v12389_v33, %v6523_v24  ;;  %v5531_v10 = vpop.f32.mrf.mxu2  ;;  %v5640_v13 = vpop.f32.mrf.mxu3 }
 0x771   : > { %v5641_v29 = vadd.f32 %v5640_v13, %v5531_v10  ;;  %v5315_v47 = vpop.f32.mrf.mxu0  ;;  %v5424_v43 = vpop.f32.mrf.mxu1 }
 0x772   : > { %v5425_v1 = vadd.f32 %v5424_v43, %v5315_v47  ;;  %v14877_v43 = vunpack.c.l.bf16 %v14876_v60 }
 0x773   : > { %v6284_v58 = vsub.f32 %v5641_v29, %v14872_v26  ;;  %v14875_v29 = vunpack.c.h.bf16 %v14857_v50 }
 0x774   : > { %v6289_v30 = vsub.f32 %v5425_v1, %v14874_v19  ;;  %v14878_v1 = vld [vmem:[#allocation241_spill] sm:$0xff] }
 0x775   : > { %v6524_v42 = vmul.f32 %v6284_v58, %v6284_v58  ;;  %v6266_v17 = vsub.f32 %v5633_v11, %v14875_v29 }
 0x776   : > { %v6529_v57 = vmul.f32 %v6289_v30, %v6289_v30 }
 0x777   : > { %v12801_v53 = vadd.f32 %v6792_v23, %v6524_v42  ;;  %v6506_v23 = vmul.f32 %v6266_v17, %v6266_v17 }
 0x778   : > { %v12804_v33 = vadd.f32 %v12399_v44, %v6529_v57  ;;  %v5533_v55 = vpop.f32.mrf.mxu2  ;;  %v5642_v24 = vpop.f32.mrf.mxu3 }
 0x779   : > { %v5643_v10 = vadd.f32 %v5642_v24, %v5533_v55  ;;  %v5318_v13 = vpop.f32.mrf.mxu0  ;;  %v5427_v47 = vpop.f32.mrf.mxu1  ;;  %v14879_v55 = vunpack.c.h.bf16 %v14876_v60 }
 0x77a   : > { %v5428_v38 = vadd.f32 %v5427_v47, %v5318_v13  ;;  %v12818_v13 = vadd.f32 %v12762_v46, %v6506_v23  ;;  %v14880_v47 = vld [vmem:[#allocation219_spill] sm:$0xff]  ;;  %v14883_v23 = vld [vmem:[#allocation229_spill] sm:$0xff] }
 0x77c   : > { %v6295_v26 = vsub.f32 %v5428_v38, %v14877_v43  ;;  %5693 = vmatmul.bf16.gmra.mxu0 %v14607_v0  ;;  %5802 = vmatmul.bf16.gmra.mxu1 %v14878_v1 }
 0x77d   : > { %5911 = vmatmul.bf16.gmra.mxu2 %v14607_v0  ;;  %6020 = vmatmul.bf16.gmra.mxu3 %v14878_v1  ;;  %v14881_v0 = vunpack.c.l.bf16 %v14880_v47 }
 0x77e   : > { %v6535_v44 = vmul.f32 %v6295_v26, %v6295_v26 }
 0x780   : > { %v6806_v58 = vadd.f32 %v12405_v2, %v6535_v44  ;;  %v5536_v19 = vpop.f32.mrf.mxu2  ;;  %v5645_v30 = vpop.f32.mrf.mxu3 }
 0x781   : > { %v5646_v42 = vadd.f32 %v5645_v30, %v5536_v19  ;;  %v5320_v50 = vpop.f32.mrf.mxu0  ;;  %v5429_v11 = vpop.f32.mrf.mxu1 }
 0x782   : > { %v5430_v57 = vadd.f32 %v5429_v11, %v5320_v50  ;;  %v14884_v50 = vunpack.c.l.bf16 %v14883_v23 }
 0x783   : > { %v6296_v24 = vsub.f32 %v5646_v42, %v14879_v55  ;;  %v14882_v42 = vunpack.c.h.bf16 %v14864_v7  ;;  %v14886_v55 = vld [vmem:[#allocation242_spill] sm:$0xff] }
 0x784   : > { %v6301_v38 = vsub.f32 %v5430_v57, %v14881_v0  ;;  %v14885_v57 = vld [vmem:[#allocation155_spill] sm:$0xff] }
 0x785   : > { %v6536_v29 = vmul.f32 %v6296_v24, %v6296_v24  ;;  %v6278_v46 = vsub.f32 %v5638_v36, %v14882_v42 }
 0x786   : > { %v6541_v43 = vmul.f32 %v6301_v38, %v6301_v38 }
 0x787   : > { %v12822_v17 = vadd.f32 %v6806_v58, %v6536_v29  ;;  %v6518_v58 = vmul.f32 %v6278_v46, %v6278_v46 }
 0x788   : > { %v12825_v2 = vadd.f32 %v12415_v20, %v6541_v43  ;;  %v5538_v26 = vpop.f32.mrf.mxu2  ;;  %v5647_v1 = vpop.f32.mrf.mxu3 }
 0x789   : > { %v5648_v44 = vadd.f32 %v5647_v1, %v5538_v26  ;;  %v5323_v19 = vpop.f32.mrf.mxu0  ;;  %v5432_v30 = vpop.f32.mrf.mxu1  ;;  %v14887_v26 = vunpack.c.h.bf16 %v14883_v23 }
 0x78a   : > { %v5433_v60 = vadd.f32 %v5432_v30, %v5323_v19  ;;  %v12839_v19 = vadd.f32 %v12783_v41, %v6518_v58  ;;  %v14888_v30 = vld [vmem:[#allocation230_spill] sm:$0xff] }
 0x78b   : > { %v14892_v58 = vld [vmem:[#allocation246_spill] sm:$0xff] }
 0x78c   : > { %v6307_v11 = vsub.f32 %v5433_v60, %v14884_v50  ;;  %5698 = vmatmul.bf16.gmra.mxu0 %v14885_v57  ;;  %5807 = vmatmul.bf16.gmra.mxu1 %v14886_v55  ;;  %v14889_v60 = vunpack.c.l.bf16 %v14888_v30 }
 0x78d   : > { %5916 = vmatmul.bf16.gmra.mxu2 %v14885_v57  ;;  %6025 = vmatmul.bf16.gmra.mxu3 %v14886_v55 }
 0x78e   : > { %v6547_v20 = vmul.f32 %v6307_v11, %v6307_v11 }
 0x790   : > { %v6820_v24 = vadd.f32 %v12421_v22, %v6547_v20  ;;  %v5541_v0 = vpop.f32.mrf.mxu2  ;;  %v5650_v38 = vpop.f32.mrf.mxu3  ;;  %v14890_v22 = vld [vmem:[#allocation75_spill] sm:$0xff] }
 0x791   : > { %v5651_v29 = vadd.f32 %v5650_v38, %v5541_v0  ;;  %v5325_v7 = vpop.f32.mrf.mxu0  ;;  %v5434_v36 = vpop.f32.mrf.mxu1 }
 0x792   : > { %v5435_v43 = vadd.f32 %v5434_v36, %v5325_v7  ;;  %v14893_v36 = vunpack.c.l.bf16 %v14892_v58 }
 0x793   : > { %v6308_v1 = vsub.f32 %v5651_v29, %v14887_v26  ;;  %v14891_v29 = vunpack.c.h.bf16 %v14873_v3 }
 0x794   : > { %v6313_v42 = vsub.f32 %v5435_v43, %v14889_v60  ;;  %v14894_v43 = vld [vmem:[#allocation180_spill] sm:$0xff] }
 0x795   : > { %v6548_v50 = vmul.f32 %v6308_v1, %v6308_v1  ;;  %v6290_v41 = vsub.f32 %v5643_v10, %v14891_v29  ;;  %v14895_v1 = vld [vmem:[#allocation237_spill] sm:$0xff] }
 0x796   : > { %v6553_v11 = vmul.f32 %v6313_v42, %v6313_v42 }
 0x797   : > { %v12843_v46 = vadd.f32 %v6820_v24, %v6548_v50  ;;  %v6530_v60 = vmul.f32 %v6290_v41, %v6290_v41 }
 0x798   : > { %v12846_v57 = vadd.f32 %v14890_v22, %v6553_v11  ;;  %v5543_v55 = vpop.f32.mrf.mxu2  ;;  %v5652_v20 = vpop.f32.mrf.mxu3 }
 0x799   : > { %v5653_v0 = vadd.f32 %v5652_v20, %v5543_v55  ;;  %v5328_v38 = vpop.f32.mrf.mxu0  ;;  %v5437_v7 = vpop.f32.mrf.mxu1  ;;  %v14896_v20 = vunpack.c.h.bf16 %v14892_v58 }
 0x79a   : > { %v5438_v23 = vadd.f32 %v5437_v7, %v5328_v38  ;;  %v12860_v7 = vadd.f32 %v12804_v33, %v6530_v60  ;;  %v14900_v60 = vld [vmem:[#allocation258_spill] sm:$0xff] }
 0x79c   : > { %v6319_v26 = vsub.f32 %v5438_v23, %v14893_v36  ;;  %5703 = vmatmul.bf16.gmra.mxu0 %v14894_v43  ;;  %5812 = vmatmul.bf16.gmra.mxu1 %v14895_v1  ;;  %v14897_v23 = vld [vmem:[#allocation247_spill] sm:$0xff] }
 0x79d   : > { %5921 = vmatmul.bf16.gmra.mxu2 %v14894_v43  ;;  %6030 = vmatmul.bf16.gmra.mxu3 %v14895_v1  ;;  %v14898_v29 = vunpack.c.l.bf16 %v14897_v23 }
 0x79e   : > { %v6559_v24 = vmul.f32 %v6319_v26, %v6319_v26 }
 0x7a0   : > { %v6834_v42 = vadd.f32 %v12437_v8, %v6559_v24  ;;  %v5546_v50 = vpop.f32.mrf.mxu2  ;;  %v5655_v11 = vpop.f32.mrf.mxu3 }
 0x7a1   : > { %v5656_v22 = vadd.f32 %v5655_v11, %v5546_v50  ;;  %v5330_v3 = vpop.f32.mrf.mxu0  ;;  %v5439_v10 = vpop.f32.mrf.mxu1 }
 0x7a2   : > { %v5440_v55 = vadd.f32 %v5439_v10, %v5330_v3  ;;  %v14901_v10 = vunpack.c.l.bf16 %v14900_v60 }
 0x7a3   : > { %v6320_v38 = vsub.f32 %v5656_v22, %v14896_v20  ;;  %v14899_v22 = vunpack.c.h.bf16 %v14880_v47 }
 0x7a4   : > { %v6325_v36 = vsub.f32 %v5440_v55, %v14898_v29  ;;  %v14902_v55 = vld [vmem:[#allocation238_spill] sm:$0xff] }
 0x7a5   : > { %v6560_v43 = vmul.f32 %v6320_v38, %v6320_v38  ;;  %v6302_v33 = vsub.f32 %v5648_v44, %v14899_v22 }
 0x7a6   : > { %v6565_v26 = vmul.f32 %v6325_v36, %v6325_v36 }
 0x7a7   : > { %v12864_v41 = vadd.f32 %v6834_v42, %v6560_v43  ;;  %v6542_v42 = vmul.f32 %v6302_v33, %v6302_v33 }
 0x7a8   : > { %v12867_v8 = vadd.f32 %v12447_v49, %v6565_v26  ;;  %v5548_v1 = vpop.f32.mrf.mxu2  ;;  %v5657_v24 = vpop.f32.mrf.mxu3 }
 0x7a9   : > { %v5658_v50 = vadd.f32 %v5657_v24, %v5548_v1  ;;  %v5333_v11 = vpop.f32.mrf.mxu0  ;;  %v5442_v3 = vpop.f32.mrf.mxu1  ;;  %v14903_v1 = vunpack.c.h.bf16 %v14900_v60 }
 0x7aa   : > { %v5443_v58 = vadd.f32 %v5442_v3, %v5333_v11  ;;  %v12881_v11 = vadd.f32 %v12825_v2, %v6542_v42  ;;  %v14904_v3 = vld [vmem:[#allocation259_spill] sm:$0xff]  ;;  %v14906_v2 = vunpack.c.h.bf16 %v14888_v30 }
 0x7ac   : > { %v6331_v20 = vsub.f32 %v5443_v58, %v14901_v10  ;;  %5708 = vmatmul.bf16.gmra.mxu0 %v14613_v21  ;;  %5817 = vmatmul.bf16.gmra.mxu1 %v14902_v55  ;;  %v6314_v42 = vsub.f32 %v5653_v0, %v14906_v2 }
 0x7ad   : > { %5926 = vmatmul.bf16.gmra.mxu2 %v14613_v21  ;;  %6035 = vmatmul.bf16.gmra.mxu3 %v14902_v55  ;;  %v14905_v21 = vunpack.c.l.bf16 %v14904_v3 }
 0x7ae   : > { %v6571_v49 = vmul.f32 %v6331_v20, %v6331_v20 }
 0x7b0   : > { %v6848_v38 = vadd.f32 %v12453_v15, %v6571_v49  ;;  %v5551_v29 = vpop.f32.mrf.mxu2  ;;  %v5660_v36 = vpop.f32.mrf.mxu3 }
 0x7b1   : > { %v5661_v43 = vadd.f32 %v5660_v36, %v5551_v29  ;;  %v5335_v47 = vpop.f32.mrf.mxu0  ;;  %v5444_v44 = vpop.f32.mrf.mxu1 }
 0x7b2   : > { %v5445_v26 = vadd.f32 %v5444_v44, %v5335_v47  ;;  %v14908_v47 = vld [vmem:[#allocation27_spill] sm:$0xff] }
 0x7b3   : > { %v6332_v24 = vsub.f32 %v5661_v43, %v14903_v1  ;;  %v14907_v43 = vld [vmem:[#allocation255_spill] sm:$0xff]  ;;  %v14910_v0 = vunpack.c.h.bf16 %v14908_v47 }
 0x7b4   : > { %v6337_v58 = vsub.f32 %v5445_v26, %v14905_v21 }
 0x7b5   : > { %v6572_v22 = vmul.f32 %v6332_v24, %v6332_v24 }
 0x7b6   : > { %v6577_v10 = vmul.f32 %v6337_v58, %v6337_v58 }
 0x7b7   : > { %v12885_v33 = vadd.f32 %v6848_v38, %v6572_v22  ;;  %v14909_v38 = vunpack.c.l.bf16 %v14908_v47  ;;  %v14914_v47 = vunpack.c.h.bf16 %v14897_v23 }
 0x7b8   : > { %v12888_v15 = vadd.f32 %v12465_v28, %v6577_v10  ;;  %v5553_v20 = vpop.f32.mrf.mxu2  ;;  %v5662_v55 = vpop.f32.mrf.mxu3  ;;  %v6554_v28 = vmul.f32 %v6314_v42, %v6314_v42 }
 0x7b9   : > { %v12890_v49 = vadd.f32 %v5662_v55, %v5553_v20  ;;  %v5674_v29 = vpop.f32.mrf.mxu0  ;;  %v5783_v60 = vpop.f32.mrf.mxu1 }
 0x7ba   : > { %v5784_v36 = vadd.f32 %v5783_v60, %v5674_v29  ;;  %v12903_v20 = vadd.f32 %v12846_v57, %v6554_v28  ;;  %v14911_v29 = vld [vmem:[#allocation34_spill] sm:$0xff] }
 0x7bb   : > { %v14912_v60 = vunpack.c.l.bf16 %v14911_v29  ;;  %v14915_v57 = vunpack.c.h.bf16 %v14911_v29 }
 0x7bc   : > { %5713 = vmatmul.bf16.gmra.mxu0 %v14615_v40  ;;  %5822 = vmatmul.bf16.gmra.mxu1 %v14907_v43  ;;  %v6105_v44 = vsub.f32 %v5784_v36, %v14909_v38  ;;  %v14913_v36 = vld [vmem:[#allocation86_spill] sm:$0xff] }
 0x7bd   : > { %5931 = vmatmul.bf16.gmra.mxu2 %v14615_v40  ;;  %6040 = vmatmul.bf16.gmra.mxu3 %v14907_v43 }
 0x7be   : > { %v6345_v24 = vmul.f32 %v6105_v44, %v6105_v44 }
 0x7c0   : > { %v5892_v26 = vpop.f32.mrf.mxu2  ;;  %v6001_v1 = vpop.f32.mrf.mxu3  ;;  %v6584_v2 = vadd.f32 %v14913_v36, %v6345_v24  ;;  %v14918_v24 = vld [vmem:[#allocation40_spill] sm:$0xff] }
 0x7c1   : > { %v6002_v21 = vadd.f32 %v6001_v1, %v5892_v26  ;;  %v5676_v58 = vpop.f32.mrf.mxu0  ;;  %v5785_v22 = vpop.f32.mrf.mxu1 }
 0x7c2   : > { %v5786_v30 = vadd.f32 %v5785_v22, %v5676_v58 }
 0x7c3   : > { %v6106_v10 = vsub.f32 %v6002_v21, %v14910_v0  ;;  %v6326_v21 = vsub.f32 %v5658_v50, %v14914_v47  ;;  %v14916_v0 = vld [vmem:[#allocation215_spill] sm:$0xff] }
 0x7c4   : > { %v6111_v40 = vsub.f32 %v5786_v30, %v14912_v60  ;;  %v14917_v30 = vld [vmem:[#allocation262_spill] sm:$0xff] }
 0x7c5   : > { %v6346_v55 = vmul.f32 %v6106_v10, %v6106_v10  ;;  %v14919_v10 = vunpack.c.l.bf16 %v14918_v24  ;;  %v6566_v36 = vmul.f32 %v6326_v21, %v6326_v21 }
 0x7c6   : > { %v6351_v44 = vmul.f32 %v6111_v40, %v6111_v40 }
 0x7c7   : > { %v6585_v42 = vadd.f32 %v6584_v2, %v6346_v55 }
 0x7c8   : > { %v5894_v43 = vpop.f32.mrf.mxu2  ;;  %v6003_v38 = vpop.f32.mrf.mxu3  ;;  %v6591_v40 = vadd.f32 %v12528_v45, %v6351_v44  ;;  %v14923_v44 = vld [vmem:[#allocation87_spill] sm:$0xff] }
 0x7c9   : > { %v6004_v26 = vadd.f32 %v6003_v38, %v5894_v43  ;;  %6586 = vadd.xlane.f32.xlu2 %v6585_v42  ;;  %v5679_v1 = vpop.f32.mrf.mxu0  ;;  %v5788_v58 = vpop.f32.mrf.mxu1 }
 0x7ca   : > { %v5789_v22 = vadd.f32 %v5788_v58, %v5679_v1  ;;  %v14920_v1 = vunpack.c.h.bf16 %v14918_v24  ;;  %v14924_v24 = vunpack.c.h.bf16 %v14904_v3 }
 0x7cb   : > { %v6112_v28 = vsub.f32 %v6004_v26, %v14915_v57  ;;  %v14921_v57 = vld [vmem:[#allocation41_spill] sm:$0xff] }
 0x7cc   : > { %5718 = vmatmul.bf16.gmra.mxu0 %v14916_v0  ;;  %5827 = vmatmul.bf16.gmra.mxu1 %v14917_v30  ;;  %v6117_v55 = vsub.f32 %v5789_v22, %v14919_v10  ;;  %v12922_v22 = vadd.f32 %v12867_v8, %v6566_v36  ;;  %v6338_v8 = vsub.f32 %v12890_v49, %v14924_v24  ;;  %v14925_v36 = vunpack.c.h.bf16 %v14921_v57 }
 0x7cd   : > { %5936 = vmatmul.bf16.gmra.mxu2 %v14916_v0  ;;  %6045 = vmatmul.bf16.gmra.mxu3 %v14917_v30  ;;  %v6352_v60 = vmul.f32 %v6112_v28, %v6112_v28  ;;  %v14922_v28 = vunpack.c.l.bf16 %v14921_v57 }
 0x7ce   : > { %v6357_v29 = vmul.f32 %v6117_v55, %v6117_v55  ;;  %v6578_v3 = vmul.f32 %v6338_v8, %v6338_v8 }
 0x7cf   : > { %v6592_v23 = vadd.f32 %v6591_v40, %v6352_v60 }
 0x7d0   : > { %v5897_v50 = vpop.f32.mrf.mxu2  ;;  %v6006_v2 = vpop.f32.mrf.mxu3  ;;  %v6598_v21 = vadd.f32 %v14923_v44, %v6357_v29  ;;  %v14928_v29 = vld [vmem:[#allocation47_spill] sm:$0xff] }
 0x7d1   : > { %v6007_v42 = vadd.f32 %v6006_v2, %v5897_v50  ;;  %6593 = vadd.xlane.f32.xlu0 %v6592_v23  ;;  %v5681_v43 = vpop.f32.mrf.mxu0  ;;  %v5790_v38 = vpop.f32.mrf.mxu1 }
 0x7d2   : > { %v5791_v26 = vadd.f32 %v5790_v38, %v5681_v43  ;;  %v14927_v43 = vld [vmem:[#allocation253_spill] sm:$0xff]  ;;  %v14929_v38 = vunpack.c.l.bf16 %v14928_v29 }
 0x7d3   : > { %v6118_v58 = vsub.f32 %v6007_v42, %v14920_v1  ;;  %v14926_v42 = vld [vmem:[#allocation221_spill] sm:$0xff] }
 0x7d4   : > { %v6123_v45 = vsub.f32 %v5791_v26, %v14922_v28 }
 0x7d5   : > { %v6358_v47 = vmul.f32 %v6118_v58, %v6118_v58 }
 0x7d6   : > { %v6363_v55 = vmul.f32 %v6123_v45, %v6123_v45 }
 0x7d7   : > { %v6599_v0 = vadd.f32 %v6598_v21, %v6358_v47 }
 0x7d8   : > { %v5899_v30 = vpop.f32.mrf.mxu2  ;;  %v6008_v10 = vpop.f32.mrf.mxu3  ;;  %v6605_v58 = vadd.f32 %v12552_v12, %v6363_v55  ;;  %v14933_v55 = vld [vmem:[#allocation90_spill] sm:$0xff] }
 0x7d9   : > { %v6009_v60 = vadd.f32 %v6008_v10, %v5899_v30  ;;  %6600 = vadd.xlane.f32.xlu1 %v6599_v0  ;;  %v5684_v40 = vpop.f32.mrf.mxu0  ;;  %v5793_v23 = vpop.f32.mrf.mxu1  ;;  %v14930_v30 = vunpack.c.h.bf16 %v14928_v29 }
 0x7da   : > { %v5794_v50 = vadd.f32 %v5793_v23, %v5684_v40  ;;  %v14931_v23 = vld [vmem:[#allocation48_spill] sm:$0xff] }
 0x7db   : > { %v6124_v2 = vsub.f32 %v6009_v60, %v14925_v36  ;;  %v12942_v60 = vadd.f32 %v12888_v15, %v6578_v3  ;;  %v14934_v29 = vunpack.c.h.bf16 %v14931_v23  ;;  %v14935_v15 = vld [vmem:[#allocation231_spill] sm:$0xff]  ;;  %v14936_v3 = vld [vmem:[#allocation254_spill] sm:$0xff] }
 0x7dc   : > { %5723 = vmatmul.bf16.gmra.mxu0 %v14926_v42  ;;  %5832 = vmatmul.bf16.gmra.mxu1 %v14927_v43  ;;  %v6129_v26 = vsub.f32 %v5794_v50, %v14929_v38  ;;  %v14932_v50 = vunpack.c.l.bf16 %v14931_v23 }
 0x7dd   : > { %5941 = vmatmul.bf16.gmra.mxu2 %v14926_v42  ;;  %6050 = vmatmul.bf16.gmra.mxu3 %v14927_v43  ;;  %v6364_v1 = vmul.f32 %v6124_v2, %v6124_v2 }
 0x7de   : > { %v6369_v57 = vmul.f32 %v6129_v26, %v6129_v26 }
 0x7df   : > { %v6606_v47 = vadd.f32 %v6605_v58, %v6364_v1 }
 0x7e0   : > { %v5902_v49 = vpop.f32.mrf.mxu2  ;;  %v6011_v28 = vpop.f32.mrf.mxu3  ;;  %v6612_v24 = vadd.f32 %v14933_v55, %v6369_v57 }
 0x7e1   : > { %v6012_v45 = vadd.f32 %v6011_v28, %v5902_v49  ;;  %6607 = vadd.xlane.f32.xlu2 %v6606_v47  ;;  %v5686_v44 = vpop.f32.mrf.mxu0  ;;  %v5795_v21 = vpop.f32.mrf.mxu1  ;;  %v14937_v47 = vld [vmem:[#allocation61_spill] sm:$0xff] }
 0x7e2   : > { %v5796_v0 = vadd.f32 %v5795_v21, %v5686_v44  ;;  %v14938_v49 = vunpack.c.l.bf16 %v14937_v47 }
 0x7e3   : > { %v6130_v10 = vsub.f32 %v6012_v45, %v14930_v30 }
 0x7e4   : > { %v6135_v12 = vsub.f32 %v5796_v0, %v14932_v50 }
 0x7e5   : > { %v6370_v40 = vmul.f32 %v6130_v10, %v6130_v10 }
 0x7e6   : > { %v6375_v42 = vmul.f32 %v6135_v12, %v6135_v12  ;;  %v14939_v12 = vunpack.c.h.bf16 %v14937_v47  ;;  %v14943_v47 = vld [vmem:[#allocation236_spill] sm:$0xff] }
 0x7e7   : > { %v6613_v8 = vadd.f32 %v6612_v24, %v6370_v40 }
 0x7e8   : > { %v5904_v36 = vpop.f32.mrf.mxu2  ;;  %v6013_v2 = vpop.f32.mrf.mxu3  ;;  %v6619_v45 = vadd.f32 %v12576_v9, %v6375_v42 }
 0x7e9   : > { %v6014_v43 = vadd.f32 %v6013_v2, %v5904_v36  ;;  %6614 = vadd.xlane.f32.xlu2 %v6613_v8  ;;  %v5689_v38 = vpop.f32.mrf.mxu0  ;;  %v5798_v26 = vpop.f32.mrf.mxu1  ;;  %v14940_v8 = vld [vmem:[#allocation64_spill] sm:$0xff] }
 0x7ea   : > { %v5799_v1 = vadd.f32 %v5798_v26, %v5689_v38  ;;  %v14941_v36 = vunpack.c.l.bf16 %v14940_v8 }
 0x7eb   : > { %v6136_v58 = vsub.f32 %v6014_v43, %v14934_v29 }
 0x7ec   : > { %5728 = vmatmul.bf16.gmra.mxu0 %v14935_v15  ;;  %5837 = vmatmul.bf16.gmra.mxu1 %v14936_v3  ;;  %v6141_v28 = vsub.f32 %v5799_v1, %v14938_v49 }
 0x7ed   : > { %5946 = vmatmul.bf16.gmra.mxu2 %v14935_v15  ;;  %6055 = vmatmul.bf16.gmra.mxu3 %v14936_v3  ;;  %v6376_v57 = vmul.f32 %v6136_v58, %v6136_v58  ;;  %v14942_v3 = vunpack.c.h.bf16 %v14940_v8 }
 0x7ee   : > { %v6381_v30 = vmul.f32 %v6141_v28, %v6141_v28  ;;  %v14944_v28 = vld [vmem:[#allocation248_spill] sm:$0xff] }
 0x7ef   : > { %v6620_v44 = vadd.f32 %v6619_v45, %v6376_v57  ;;  %v14945_v57 = vld [vmem:[#allocation65_spill] sm:$0xff] }
 0x7f0   : > { %v5907_v21 = vpop.f32.mrf.mxu2  ;;  %v6016_v0 = vpop.f32.mrf.mxu3  ;;  %v6626_v43 = vadd.f32 %v12532_v56, %v6381_v30  ;;  %v14946_v45 = vunpack.c.l.bf16 %v14945_v57 }
 0x7f1   : > { %v6017_v10 = vadd.f32 %v6016_v0, %v5907_v21  ;;  %6621 = vadd.xlane.f32.xlu0 %v6620_v44  ;;  %v5691_v40 = vpop.f32.mrf.mxu0  ;;  %v5800_v23 = vpop.f32.mrf.mxu1 }
 0x7f2   : > { %v5801_v50 = vadd.f32 %v5800_v23, %v5691_v40 }
 0x7f3   : > { %v6142_v55 = vsub.f32 %v6017_v10, %v14939_v12 }
 0x7f4   : > { %v6147_v2 = vsub.f32 %v5801_v50, %v14941_v36 }
 0x7f5   : > { %v6382_v24 = vmul.f32 %v6142_v55, %v6142_v55 }
 0x7f6   : > { %v6387_v26 = vmul.f32 %v6147_v2, %v6147_v2  ;;  %v14948_v2 = vld [vmem:[#allocation66_spill] sm:$0xff] }
 0x7f7   : > { %v6627_v38 = vadd.f32 %v6626_v43, %v6382_v24  ;;  %v14947_v24 = vunpack.c.h.bf16 %v14945_v57  ;;  %v14949_v43 = vunpack.c.l.bf16 %v14948_v2  ;;  %v14952_v57 = vld [vmem:[#allocation227_spill] sm:$0xff] }
 0x7f8   : > { %v5909_v9 = vpop.f32.mrf.mxu2  ;;  %v6018_v42 = vpop.f32.mrf.mxu3  ;;  %v6633_v21 = vadd.f32 %v12600_v4, %v6387_v26 }
 0x7f9   : > { %v6019_v1 = vadd.f32 %v6018_v42, %v5909_v9  ;;  %6628 = vadd.xlane.f32.xlu1 %v6627_v38  ;;  %v5694_v29 = vpop.f32.mrf.mxu0  ;;  %v5803_v58 = vpop.f32.mrf.mxu1  ;;  %v14950_v9 = vld [vmem:[#allocation91_spill] sm:$0xff] }
 0x7fa   : > { %v5804_v15 = vadd.f32 %v5803_v58, %v5694_v29 }
 0x7fb   : > { %v6148_v49 = vsub.f32 %v6019_v1, %v14942_v3 }
 0x7fc   : > { %5733 = vmatmul.bf16.gmra.mxu0 %v14943_v47  ;;  %5842 = vmatmul.bf16.gmra.mxu1 %v14944_v28  ;;  %v6153_v44 = vsub.f32 %v5804_v15, %v14946_v45  ;;  %v14953_v45 = vld [vmem:[#allocation252_spill] sm:$0xff] }
 0x7fd   : > { %5951 = vmatmul.bf16.gmra.mxu2 %v14943_v47  ;;  %6060 = vmatmul.bf16.gmra.mxu3 %v14944_v28  ;;  %v6388_v56 = vmul.f32 %v6148_v49, %v6148_v49  ;;  %v14951_v47 = vunpack.c.h.bf16 %v14948_v2 }
 0x7fe   : > { %v6393_v40 = vmul.f32 %v6153_v44, %v6153_v44  ;;  %v14954_v44 = vld [vmem:[#allocation82_spill] sm:$0xff] }
 0x7ff   : > { %v6634_v0 = vadd.f32 %v6633_v21, %v6388_v56  ;;  %v14955_v56 = vunpack.c.l.bf16 %v14954_v44 }
 0x800   : > { %v5912_v30 = vpop.f32.mrf.mxu2  ;;  %v6021_v10 = vpop.f32.mrf.mxu3  ;;  %v6640_v42 = vadd.f32 %v14950_v9, %v6393_v40 }
 0x801   : > { %v6022_v23 = vadd.f32 %v6021_v10, %v5912_v30  ;;  %6635 = vadd.xlane.f32.xlu2 %v6634_v0  ;;  %v5696_v50 = vpop.f32.mrf.mxu0  ;;  %v5805_v12 = vpop.f32.mrf.mxu1 }
 0x802   : > { %v5806_v55 = vadd.f32 %v5805_v12, %v5696_v50 }
 0x803   : > { %v6154_v8 = vsub.f32 %v6022_v23, %v14947_v24 }
 0x804   : > { %v6159_v38 = vsub.f32 %v5806_v55, %v14949_v43 }
 0x805   : > { %v6394_v36 = vmul.f32 %v6154_v8, %v6154_v8 }
 0x806   : > { %v6399_v29 = vmul.f32 %v6159_v38, %v6159_v38  ;;  %v14957_v38 = vld [vmem:[#allocation83_spill] sm:$0xff] }
 0x807   : > { %v6641_v1 = vadd.f32 %v6640_v42, %v6394_v36  ;;  %v14956_v36 = vunpack.c.h.bf16 %v14954_v44  ;;  %v14958_v9 = vunpack.c.l.bf16 %v14957_v38 }
 0x808   : > { %v5914_v4 = vpop.f32.mrf.mxu2  ;;  %v6023_v26 = vpop.f32.mrf.mxu3  ;;  %v6647_v30 = vadd.f32 %v12624_v39, %v6399_v29 }
 0x809   : > { %v6024_v58 = vadd.f32 %v6023_v26, %v5914_v4  ;;  %6642 = vadd.xlane.f32.xlu0 %v6641_v1  ;;  %v5699_v15 = vpop.f32.mrf.mxu0  ;;  %v5808_v3 = vpop.f32.mrf.mxu1 }
 0x80a   : > { %v5809_v49 = vadd.f32 %v5808_v3, %v5699_v15 }
 0x80b   : > { %v6160_v28 = vsub.f32 %v6024_v58, %v14951_v47  ;;  %v14959_v47 = vunpack.c.h.bf16 %v14957_v38 }
 0x80c   : > { %5738 = vmatmul.bf16.gmra.mxu0 %v14952_v57  ;;  %5847 = vmatmul.bf16.gmra.mxu1 %v14953_v45  ;;  %v6165_v21 = vsub.f32 %v5809_v49, %v14955_v56 }
 0x80d   : > { %5956 = vmatmul.bf16.gmra.mxu2 %v14952_v57  ;;  %6065 = vmatmul.bf16.gmra.mxu3 %v14953_v45  ;;  %v6400_v0 = vmul.f32 %v6160_v28, %v6160_v28  ;;  %v14960_v57 = vld [vmem:[#allocation88_spill] sm:$0xff] }
 0x80e   : > { %v6405_v50 = vmul.f32 %v6165_v21, %v6165_v21  ;;  %v14961_v45 = vunpack.c.l.bf16 %v14960_v57 }
 0x80f   : > { %v6648_v10 = vadd.f32 %v6647_v30, %v6400_v0 }
 0x810   : > { %v5917_v40 = vpop.f32.mrf.mxu2  ;;  %v6026_v23 = vpop.f32.mrf.mxu3  ;;  %v6654_v1 = vadd.f32 %v12580_v16, %v6405_v50 }
 0x811   : > { %v6027_v12 = vadd.f32 %v6026_v23, %v5917_v40  ;;  %6649 = vadd.xlane.f32.xlu1 %v6648_v10  ;;  %v5701_v55 = vpop.f32.mrf.mxu0  ;;  %v5810_v24 = vpop.f32.mrf.mxu1 }
 0x812   : > { %v5811_v8 = vadd.f32 %v5810_v24, %v5701_v55  ;;  %v14962_v55 = vunpack.c.h.bf16 %v14960_v57 }
 0x813   : > { %v6166_v2 = vsub.f32 %v6027_v12, %v14956_v36  ;;  %v14963_v36 = vld [vmem:[#allocation89_spill] sm:$0xff] }
 0x814   : > { %v6171_v42 = vsub.f32 %v5811_v8, %v14958_v9 }
 0x815   : > { %v6406_v43 = vmul.f32 %v6166_v2, %v6166_v2 }
 0x816   : > { %v6411_v29 = vmul.f32 %v6171_v42, %v6171_v42 }
 0x817   : > { %v6655_v4 = vadd.f32 %v6654_v1, %v6406_v43 }
 0x818   : > { %v5919_v39 = vpop.f32.mrf.mxu2  ;;  %v6028_v26 = vpop.f32.mrf.mxu3  ;;  %v6661_v56 = vadd.f32 %v12648_v52, %v6411_v29 }
 0x819   : > { %v6029_v58 = vadd.f32 %v6028_v26, %v5919_v39  ;;  %6656 = vadd.xlane.f32.xlu2 %v6655_v4  ;;  %v5704_v15 = vpop.f32.mrf.mxu0  ;;  %v5813_v3 = vpop.f32.mrf.mxu1  ;;  %v14965_v26 = vunpack.c.h.bf16 %v14963_v36 }
 0x81a   : > { %v5814_v49 = vadd.f32 %v5813_v3, %v5704_v15  ;;  %v14967_v15 = vld [vmem:[#allocation261_spill] sm:$0xff] }
 0x81b   : > { %v6172_v28 = vsub.f32 %v6029_v58, %v14959_v47  ;;  %v14966_v58 = vld [vmem:[#allocation228_spill] sm:$0xff]  ;;  %v14968_v3 = vld [vmem:[#allocation105_spill] sm:$0xff] }
 0x81c   : > { %5743 = vmatmul.bf16.gmra.mxu0 %v11907_v62  ;;  %5852 = vmatmul.bf16.gmra.mxu1 %v14795_v6  ;;  %v6177_v44 = vsub.f32 %v5814_v49, %v14961_v45  ;;  %v14969_v49 = vunpack.c.l.bf16 %v14968_v3 }
 0x81d   : > { %5961 = vmatmul.bf16.gmra.mxu2 %v11907_v62  ;;  %6070 = vmatmul.bf16.gmra.mxu3 %v14795_v6  ;;  %v6412_v16 = vmul.f32 %v6172_v28, %v6172_v28  ;;  %v14964_v62 = vunpack.c.l.bf16 %v14963_v36 }
 0x81e   : > { %v6417_v10 = vmul.f32 %v6177_v44, %v6177_v44 }
 0x81f   : > { %v6662_v21 = vadd.f32 %v6661_v56, %v6412_v16 }
 0x820   : > { %v5922_v0 = vpop.f32.mrf.mxu2  ;;  %v6031_v30 = vpop.f32.mrf.mxu3  ;;  %v6668_v6 = vadd.f32 %v12604_v37, %v6417_v10  ;;  %v14970_v10 = vunpack.c.h.bf16 %v14968_v3 }
 0x821   : > { %v6032_v40 = vadd.f32 %v6031_v30, %v5922_v0  ;;  %6663 = vadd.xlane.f32.xlu0 %v6662_v21  ;;  %v5706_v23 = vpop.f32.mrf.mxu0  ;;  %v5815_v50 = vpop.f32.mrf.mxu1 }
 0x822   : > { %v5816_v12 = vadd.f32 %v5815_v50, %v5706_v23  ;;  %v14971_v50 = vld [vmem:[#allocation106_spill] sm:$0xff] }
 0x823   : > { %v6178_v24 = vsub.f32 %v6032_v40, %v14962_v55 }
 0x824   : > { %v6183_v2 = vsub.f32 %v5816_v12, %v14964_v62  ;;  %v14972_v12 = vunpack.c.l.bf16 %v14971_v50 }
 0x825   : > { %v6418_v8 = vmul.f32 %v6178_v24, %v6178_v24  ;;  %v14973_v24 = vld [vmem:[#allocation59_spill] sm:$0xff] }
 0x826   : > { %v6423_v9 = vmul.f32 %v6183_v2, %v6183_v2 }
 0x827   : > { %v6669_v43 = vadd.f32 %v6668_v6, %v6418_v8 }
 0x828   : > { %v5924_v52 = vpop.f32.mrf.mxu2  ;;  %v6033_v38 = vpop.f32.mrf.mxu3  ;;  %v6675_v28 = vadd.f32 %v12670_v54, %v6423_v9  ;;  %v14974_v9 = vunpack.c.h.bf16 %v14971_v50 }
 0x829   : > { %v6034_v42 = vadd.f32 %v6033_v38, %v5924_v52  ;;  %6670 = vadd.xlane.f32.xlu1 %v6669_v43  ;;  %v5709_v1 = vpop.f32.mrf.mxu0  ;;  %v5818_v4 = vpop.f32.mrf.mxu1 }
 0x82a   : > { %v5819_v39 = vadd.f32 %v5818_v4, %v5709_v1  ;;  %v14975_v1 = vld [vmem:[#allocation222_spill] sm:$0xff]  ;;  %v14976_v4 = vld [vmem:[#allocation36_spill] sm:$0xff] }
 0x82b   : > { %v6184_v29 = vsub.f32 %v6034_v42, %v14965_v26 }
 0x82c   : > { %5748 = vmatmul.bf16.gmra.mxu0 %v14966_v58  ;;  %5857 = vmatmul.bf16.gmra.mxu1 %v14967_v15  ;;  %v6189_v47 = vsub.f32 %v5819_v39, %v14969_v49  ;;  %v14977_v39 = vld [vmem:[#allocation112_spill] sm:$0xff] }
 0x82d   : > { %5966 = vmatmul.bf16.gmra.mxu2 %v14966_v58  ;;  %6075 = vmatmul.bf16.gmra.mxu3 %v14967_v15  ;;  %v6424_v37 = vmul.f32 %v6184_v29, %v6184_v29  ;;  %v14978_v26 = vunpack.c.l.bf16 %v14977_v39 }
 0x82e   : > { %v6429_v16 = vmul.f32 %v6189_v47, %v6189_v47 }
 0x82f   : > { %v6676_v57 = vadd.f32 %v6675_v28, %v6424_v37 }
 0x830   : > { %v5927_v45 = vpop.f32.mrf.mxu2  ;;  %v6036_v44 = vpop.f32.mrf.mxu3  ;;  %v6682_v8 = vadd.f32 %v14973_v24, %v6429_v16  ;;  %v14979_v16 = vunpack.c.h.bf16 %v14977_v39 }
 0x831   : > { %v6037_v56 = vadd.f32 %v6036_v44, %v5927_v45  ;;  %6677 = vadd.xlane.f32.xlu2 %v6676_v57  ;;  %v5711_v21 = vpop.f32.mrf.mxu0  ;;  %v5820_v0 = vpop.f32.mrf.mxu1 }
 0x832   : > { %v5821_v30 = vadd.f32 %v5820_v0, %v5711_v21  ;;  %v14980_v0 = vld [vmem:[#allocation113_spill] sm:$0xff] }
 0x833   : > { %v6190_v40 = vsub.f32 %v6037_v56, %v14970_v10 }
 0x834   : > { %v6195_v55 = vsub.f32 %v5821_v30, %v14972_v12  ;;  %v14981_v30 = vunpack.c.l.bf16 %v14980_v0 }
 0x835   : > { %v6430_v23 = vmul.f32 %v6190_v40, %v6190_v40 }
 0x836   : > { %v6435_v2 = vmul.f32 %v6195_v55, %v6195_v55 }
 0x837   : > { %v6683_v36 = vadd.f32 %v6682_v8, %v6430_v23 }
 0x838   : > { %v5929_v54 = vpop.f32.mrf.mxu2  ;;  %v6038_v62 = vpop.f32.mrf.mxu3  ;;  %v6689_v15 = vadd.f32 %v12692_v34, %v6435_v2 }
 0x839   : > { %v6039_v6 = vadd.f32 %v6038_v62, %v5929_v54  ;;  %6684 = vadd.xlane.f32.xlu0 %v6683_v36  ;;  %v5714_v43 = vpop.f32.mrf.mxu0  ;;  %v5823_v52 = vpop.f32.mrf.mxu1  ;;  %v14982_v54 = vunpack.c.h.bf16 %v14980_v0 }
 0x83a   : > { %v5824_v38 = vadd.f32 %v5823_v52, %v5714_v43 }
 0x83b   : > { %v6196_v42 = vsub.f32 %v6039_v6, %v14974_v9  ;;  %v14983_v6 = vld [vmem:[#allocation136_spill] sm:$0xff] }
 0x83c   : > { %5753 = vmatmul.bf16.gmra.mxu0 %v14975_v1  ;;  %5862 = vmatmul.bf16.gmra.mxu1 %v14976_v4  ;;  %v6201_v29 = vsub.f32 %v5824_v38, %v14978_v26  ;;  %v14984_v43 = vunpack.c.l.bf16 %v14983_v6 }
 0x83d   : > { %5971 = vmatmul.bf16.gmra.mxu2 %v14975_v1  ;;  %6080 = vmatmul.bf16.gmra.mxu3 %v14976_v4  ;;  %v6436_v58 = vmul.f32 %v6196_v42, %v6196_v42 }
 0x83e   : > { %v6441_v37 = vmul.f32 %v6201_v29, %v6201_v29 }
 0x83f   : > { %v6690_v3 = vadd.f32 %v6689_v15, %v6436_v58  ;;  %v14985_v58 = vunpack.c.h.bf16 %v14983_v6 }
 0x840   : > { %v5932_v49 = vpop.f32.mrf.mxu2  ;;  %v6041_v47 = vpop.f32.mrf.mxu3  ;;  %v6696_v40 = vadd.f32 %v12652_v32, %v6441_v37  ;;  %v14988_v37 = vld [vmem:[#allocation60_spill] sm:$0xff] }
 0x841   : > { %v6042_v28 = vadd.f32 %v6041_v47, %v5932_v49  ;;  %6691 = vadd.xlane.f32.xlu1 %v6690_v3  ;;  %v5716_v57 = vpop.f32.mrf.mxu0  ;;  %v5825_v45 = vpop.f32.mrf.mxu1  ;;  %v14986_v49 = vld [vmem:[#allocation137_spill] sm:$0xff] }
 0x842   : > { %v5826_v44 = vadd.f32 %v5825_v45, %v5716_v57  ;;  %v14987_v47 = vunpack.c.l.bf16 %v14986_v49  ;;  %v14989_v0 = vunpack.c.h.bf16 %v14986_v49 }
 0x843   : > { %v6202_v56 = vsub.f32 %v6042_v28, %v14979_v16 }
 0x844   : > { %v6207_v10 = vsub.f32 %v5826_v44, %v14981_v30 }
 0x845   : > { %v6442_v21 = vmul.f32 %v6202_v56, %v6202_v56 }
 0x846   : > { %v6447_v12 = vmul.f32 %v6207_v10, %v6207_v10  ;;  %v14990_v10 = vld [vmem:[#allocation226_spill] sm:$0xff] }
 0x847   : > { %v6697_v23 = vadd.f32 %v6696_v40, %v6442_v21  ;;  %v14991_v40 = vld [vmem:[#allocation45_spill] sm:$0xff] }
 0x848   : > { %v5934_v34 = vpop.f32.mrf.mxu2  ;;  %v6043_v50 = vpop.f32.mrf.mxu3  ;;  %v6703_v52 = vadd.f32 %v12713_v31, %v6447_v12 }
 0x849   : > { %v6044_v55 = vadd.f32 %v6043_v50, %v5934_v34  ;;  %6698 = vadd.xlane.f32.xlu2 %v6697_v23  ;;  %v5719_v24 = vpop.f32.mrf.mxu0  ;;  %v5828_v8 = vpop.f32.mrf.mxu1  ;;  %v14992_v34 = vld [vmem:[#allocation138_spill] sm:$0xff] }
 0x84a   : > { %v5829_v36 = vadd.f32 %v5828_v8, %v5719_v24  ;;  %v14993_v50 = vunpack.c.l.bf16 %v14992_v34 }
 0x84b   : > { %v6208_v62 = vsub.f32 %v6044_v55, %v14982_v54 }
 0x84c   : > { %5758 = vmatmul.bf16.gmra.mxu0 %v11949_v61  ;;  %5867 = vmatmul.bf16.gmra.mxu1 %v14820_v27  ;;  %v6213_v32 = vsub.f32 %v5829_v36, %v14984_v43 }
 0x84d   : > { %v6448_v2 = vmul.f32 %v6208_v62, %v6208_v62  ;;  %5976 = vmatmul.bf16.gmra.mxu2 %v11949_v61  ;;  %6085 = vmatmul.bf16.gmra.mxu3 %v14820_v27 }
 0x84e   : > { %v6453_v1 = vmul.f32 %v6213_v32, %v6213_v32  ;;  %v14994_v32 = vunpack.c.h.bf16 %v14992_v34 }
 0x84f   : > { %v6704_v38 = vadd.f32 %v6703_v52, %v6448_v2 }
 0x850   : > { %v5937_v9 = vpop.f32.mrf.mxu2  ;;  %v6046_v42 = vpop.f32.mrf.mxu3  ;;  %v6710_v27 = vadd.f32 %v14988_v37, %v6453_v1  ;;  %v14998_v37 = vld [vmem:[#allocation46_spill] sm:$0xff] }
 0x851   : > { %v6047_v4 = vadd.f32 %v6046_v42, %v5937_v9  ;;  %6705 = vadd.xlane.f32.xlu0 %v6704_v38  ;;  %v5721_v39 = vpop.f32.mrf.mxu0  ;;  %v5830_v26 = vpop.f32.mrf.mxu1  ;;  %v14995_v9 = vld [vmem:[#allocation140_spill] sm:$0xff] }
 0x852   : > { %v5831_v29 = vadd.f32 %v5830_v26, %v5721_v39  ;;  %v14996_v42 = vunpack.c.l.bf16 %v14995_v9 }
 0x853   : > { %v6214_v15 = vsub.f32 %v6047_v4, %v14985_v58 }
 0x854   : > { %v6219_v61 = vsub.f32 %v5831_v29, %v14987_v47  ;;  %v14997_v47 = vunpack.c.h.bf16 %v14995_v9  ;;  %v15006_v9 = vld [vmem:[#allocation139_spill] sm:$0xff] }
 0x855   : > { %v6454_v3 = vmul.f32 %v6214_v15, %v6214_v15 }
 0x856   : > { %v6459_v45 = vmul.f32 %v6219_v61, %v6219_v61 }
 0x857   : > { %v6711_v28 = vadd.f32 %v6710_v27, %v6454_v3 }
 0x858   : > { %v5939_v31 = vpop.f32.mrf.mxu2  ;;  %v6048_v57 = vpop.f32.mrf.mxu3  ;;  %v6717_v55 = vadd.f32 %v12734_v5, %v6459_v45 }
 0x859   : > { %v6049_v44 = vadd.f32 %v6048_v57, %v5939_v31  ;;  %6712 = vadd.xlane.f32.xlu1 %v6711_v28  ;;  %v5724_v16 = vpop.f32.mrf.mxu0  ;;  %v5833_v56 = vpop.f32.mrf.mxu1  ;;  %v14999_v28 = vld [vmem:[#allocation108_spill] sm:$0xff] }
 0x85a   : > { %v5834_v21 = vadd.f32 %v5833_v56, %v5724_v16  ;;  %v15000_v31 = vunpack.c.l.bf16 %v14999_v28 }
 0x85b   : > { %v6220_v30 = vsub.f32 %v6049_v44, %v14989_v0 }
 0x85c   : > { %5763 = vmatmul.bf16.gmra.mxu0 %v14990_v10  ;;  %5872 = vmatmul.bf16.gmra.mxu1 %v14991_v40  ;;  %v6225_v12 = vsub.f32 %v5834_v21, %v14993_v50  ;;  %v15002_v50 = vld [vmem:[#allocation109_spill] sm:$0xff] }
 0x85d   : > { %v6460_v23 = vmul.f32 %v6220_v30, %v6220_v30  ;;  %5981 = vmatmul.bf16.gmra.mxu2 %v14990_v10  ;;  %6090 = vmatmul.bf16.gmra.mxu3 %v14991_v40  ;;  %v15001_v40 = vunpack.c.h.bf16 %v14999_v28 }
 0x85e   : > { %v6465_v54 = vmul.f32 %v6225_v12, %v6225_v12  ;;  %v15003_v12 = vunpack.c.l.bf16 %v15002_v50 }
 0x85f   : > { %v6718_v24 = vadd.f32 %v6717_v55, %v6460_v23  ;;  %v15004_v55 = vld [vmem:[#allocation95_spill] sm:$0xff] }
 0x860   : > { %v5942_v8 = vpop.f32.mrf.mxu2  ;;  %v6051_v36 = vpop.f32.mrf.mxu3  ;;  %v6724_v4 = vadd.f32 %v12696_v48, %v6465_v54 }
 0x861   : > { %v6052_v62 = vadd.f32 %v6051_v36, %v5942_v8  ;;  %6719 = vadd.xlane.f32.xlu2 %v6718_v24  ;;  %v5726_v2 = vpop.f32.mrf.mxu0  ;;  %v5835_v6 = vpop.f32.mrf.mxu1 }
 0x862   : > { %v5836_v43 = vadd.f32 %v5835_v6, %v5726_v2 }
 0x863   : > { %v6226_v52 = vsub.f32 %v6052_v62, %v14994_v32  ;;  %v15005_v32 = vunpack.c.h.bf16 %v15002_v50 }
 0x864   : > { %v6231_v1 = vsub.f32 %v5836_v43, %v14996_v42  ;;  %v15007_v42 = vunpack.c.l.bf16 %v15006_v9 }
 0x865   : > { %v6466_v38 = vmul.f32 %v6226_v52, %v6226_v52 }
 0x866   : > { %v6471_v29 = vmul.f32 %v6231_v1, %v6231_v1 }
 0x867   : > { %v6725_v39 = vadd.f32 %v6724_v4, %v6466_v38 }
 0x868   : > { %v5944_v5 = vpop.f32.mrf.mxu2  ;;  %v6053_v26 = vpop.f32.mrf.mxu3  ;;  %v6731_v57 = vadd.f32 %v12755_v35, %v6471_v29 }
 0x869   : > { %v6054_v58 = vadd.f32 %v6053_v26, %v5944_v5  ;;  %6726 = vadd.xlane.f32.xlu0 %v6725_v39  ;;  %v5729_v15 = vpop.f32.mrf.mxu0  ;;  %v5838_v3 = vpop.f32.mrf.mxu1 }
 0x86a   : > { %v5839_v49 = vadd.f32 %v5838_v3, %v5729_v15 }
 0x86b   : > { %v6232_v61 = vsub.f32 %v6054_v58, %v14997_v47  ;;  %v15008_v47 = vunpack.c.h.bf16 %v15006_v9 }
 0x86c   : > { %5768 = vmatmul.bf16.gmra.mxu0 %v11977_v59  ;;  %5877 = vmatmul.bf16.gmra.mxu1 %v14998_v37  ;;  %v6237_v48 = vsub.f32 %v5839_v49, %v15000_v31 }
 0x86d   : > { %v6472_v27 = vmul.f32 %v6232_v61, %v6232_v61  ;;  %5986 = vmatmul.bf16.gmra.mxu2 %v11977_v59  ;;  %6095 = vmatmul.bf16.gmra.mxu3 %v14998_v37 }
 0x86e   : > { %v6477_v56 = vmul.f32 %v6237_v48, %v6237_v48 }
 0x86f   : > { %v6732_v45 = vadd.f32 %v6731_v57, %v6472_v27  ;;  %v15009_v27 = vld [vmem:[#allocation131_spill] sm:$0xff] }
 0x870   : > { %v5947_v44 = vpop.f32.mrf.mxu2  ;;  %v6056_v16 = vpop.f32.mrf.mxu3  ;;  %v6738_v24 = vadd.f32 %v15004_v55, %v6477_v56  ;;  %v15010_v28 = vunpack.c.l.bf16 %v15009_v27 }
 0x871   : > { %v6057_v21 = vadd.f32 %v6056_v16, %v5947_v44  ;;  %6733 = vadd.xlane.f32.xlu1 %v6732_v45  ;;  %v5731_v0 = vpop.f32.mrf.mxu0  ;;  %v5840_v30 = vpop.f32.mrf.mxu1 }
 0x872   : > { %v5841_v10 = vadd.f32 %v5840_v30, %v5731_v0  ;;  %v15011_v30 = vunpack.c.h.bf16 %v15009_v27 }
 0x873   : > { %v6238_v23 = vsub.f32 %v6057_v21, %v15001_v40 }
 0x874   : > { %v6243_v59 = vsub.f32 %v5841_v10, %v15003_v12 }
 0x875   : > { %v6478_v34 = vmul.f32 %v6238_v23, %v6238_v23  ;;  %v15012_v23 = vld [vmem:[#allocation144_spill] sm:$0xff] }
 0x876   : > { %v6483_v54 = vmul.f32 %v6243_v59, %v6243_v59 }
 0x877   : > { %v6739_v8 = vadd.f32 %v6738_v24, %v6478_v34  ;;  %v15013_v34 = vunpack.c.l.bf16 %v15012_v23 }
 0x878   : > { %v5949_v35 = vpop.f32.mrf.mxu2  ;;  %v6058_v36 = vpop.f32.mrf.mxu3  ;;  %v6745_v4 = vadd.f32 %v12776_v14, %v6483_v54 }
 0x879   : > { %v6059_v62 = vadd.f32 %v6058_v36, %v5949_v35  ;;  %6740 = vadd.xlane.f32.xlu2 %v6739_v8  ;;  %v5734_v2 = vpop.f32.mrf.mxu0  ;;  %v5843_v6 = vpop.f32.mrf.mxu1 }
 0x87a   : > { %v5844_v43 = vadd.f32 %v5843_v6, %v5734_v2 }
 0x87b   : > { %v6244_v52 = vsub.f32 %v6059_v62, %v15005_v32  ;;  %v15014_v62 = vunpack.c.h.bf16 %v15012_v23 }
 0x87c   : > { %v6249_v1 = vsub.f32 %v5844_v43, %v15007_v42  ;;  %v15015_v43 = vld [vmem:[#allocation147_spill] sm:$0xff] }
 0x87d   : > { %v6484_v38 = vmul.f32 %v6244_v52, %v6244_v52  ;;  %v15016_v32 = vunpack.c.l.bf16 %v15015_v43 }
 0x87e   : > { %v6489_v29 = vmul.f32 %v6249_v1, %v6249_v1 }
 0x87f   : > { %v6746_v39 = vadd.f32 %v6745_v4, %v6484_v38 }
 0x880   : > { %v5952_v5 = vpop.f32.mrf.mxu2  ;;  %v6061_v26 = vpop.f32.mrf.mxu3  ;;  %v6752_v48 = vadd.f32 %v12738_v63, %v6489_v29  ;;  %v15017_v29 = vunpack.c.h.bf16 %v15015_v43 }
 0x881   : > { %v6062_v58 = vadd.f32 %v6061_v26, %v5952_v5  ;;  %6747 = vadd.xlane.f32.xlu0 %v6746_v39  ;;  %v5736_v15 = vpop.f32.mrf.mxu0  ;;  %v5845_v3 = vpop.f32.mrf.mxu1 }
 0x882   : > { %v5846_v49 = vadd.f32 %v5845_v3, %v5736_v15  ;;  %v15018_v3 = vld [vmem:[#allocation169_spill] sm:$0xff] }
 0x883   : > { %v6250_v61 = vsub.f32 %v6062_v58, %v15008_v47 }
 0x884   : > { %v6255_v31 = vsub.f32 %v5846_v49, %v15010_v28  ;;  %v15019_v49 = vunpack.c.l.bf16 %v15018_v3 }
 0x885   : > { %v6490_v37 = vmul.f32 %v6250_v61, %v6250_v61 }
 0x886   : > { %v6495_v44 = vmul.f32 %v6255_v31, %v6255_v31 }
 0x887   : > { %v6753_v57 = vadd.f32 %v6752_v48, %v6490_v37 }
 0x888   : > { %v5954_v14 = vpop.f32.mrf.mxu2  ;;  %v6063_v45 = vpop.f32.mrf.mxu3  ;;  %v6759_v12 = vadd.f32 %v12797_v18, %v6495_v44 }
 0x889   : > { %v6064_v16 = vadd.f32 %v6063_v45, %v5954_v14  ;;  %6754 = vadd.xlane.f32.xlu1 %v6753_v57  ;;  %v5739_v56 = vpop.f32.mrf.mxu0  ;;  %v5848_v21 = vpop.f32.mrf.mxu1  ;;  %v15020_v45 = vunpack.c.h.bf16 %v15018_v3 }
 0x88a   : > { %v5849_v0 = vadd.f32 %v5848_v21, %v5739_v56  ;;  %v15021_v56 = vld [vmem:[#allocation159_spill] sm:$0xff] }
 0x88b   : > { %v6256_v10 = vsub.f32 %v6064_v16, %v15011_v30  ;;  %v15022_v21 = vunpack.c.l.bf16 %v15021_v56 }
 0x88c   : > { %v6261_v50 = vsub.f32 %v5849_v0, %v15013_v34 }
 0x88d   : > { %v6496_v40 = vmul.f32 %v6256_v10, %v6256_v10 }
 0x88e   : > { %v6501_v24 = vmul.f32 %v6261_v50, %v6261_v50 }
 0x88f   : > { %v6760_v59 = vadd.f32 %v6759_v12, %v6496_v40 }
 0x890   : > { %v5957_v63 = vpop.f32.mrf.mxu2  ;;  %v6066_v55 = vpop.f32.mrf.mxu3  ;;  %v6766_v38 = vadd.f32 %v12759_v51, %v6501_v24 }
 0x891   : > { %v6067_v8 = vadd.f32 %v6066_v55, %v5957_v63  ;;  %6761 = vadd.xlane.f32.xlu2 %v6760_v59  ;;  %v5741_v35 = vpop.f32.mrf.mxu0  ;;  %v5850_v36 = vpop.f32.mrf.mxu1  ;;  %v15023_v63 = vunpack.c.h.bf16 %v15021_v56 }
 0x892   : > { %v5851_v54 = vadd.f32 %v5850_v36, %v5741_v35 }
 0x893   : > { %v6262_v2 = vsub.f32 %v6067_v8, %v15014_v62  ;;  %v15024_v8 = vld [vmem:[#allocation172_spill] sm:$0xff] }
 0x894   : > { %v6267_v52 = vsub.f32 %v5851_v54, %v15016_v32  ;;  %v15025_v35 = vunpack.c.l.bf16 %v15024_v8 }
 0x895   : > { %v6502_v6 = vmul.f32 %v6262_v2, %v6262_v2 }
 0x896   : > { %v6507_v1 = vmul.f32 %v6267_v52, %v6267_v52 }
 0x897   : > { %v6767_v9 = vadd.f32 %v6766_v38, %v6502_v6 }
 0x898   : > { %v5959_v18 = vpop.f32.mrf.mxu2  ;;  %v6068_v42 = vpop.f32.mrf.mxu3  ;;  %v6773_v61 = vadd.f32 %v12818_v13, %v6507_v1  ;;  %v15027_v1 = vld [vmem:[#allocation168_spill] sm:$0xff] }
 0x899   : > { %v6069_v4 = vadd.f32 %v6068_v42, %v5959_v18  ;;  %6768 = vadd.xlane.f32.xlu0 %v6767_v9  ;;  %v5744_v39 = vpop.f32.mrf.mxu0  ;;  %v5853_v5 = vpop.f32.mrf.mxu1  ;;  %v15026_v9 = vunpack.c.h.bf16 %v15024_v8 }
 0x89a   : > { %v5854_v26 = vadd.f32 %v5853_v5, %v5744_v39 }
 0x89b   : > { %v6268_v58 = vsub.f32 %v6069_v4, %v15017_v29  ;;  %v15028_v4 = vunpack.c.l.bf16 %v15027_v1 }
 0x89c   : > { %v6273_v47 = vsub.f32 %v5854_v26, %v15019_v49 }
 0x89d   : > { %v6508_v15 = vmul.f32 %v6268_v58, %v6268_v58 }
 0x89e   : > { %v6513_v28 = vmul.f32 %v6273_v47, %v6273_v47 }
 0x89f   : > { %v6774_v37 = vadd.f32 %v6773_v61, %v6508_v15  ;;  %v15029_v61 = vunpack.c.h.bf16 %v15027_v1 }
 0x8a0   : > { %v5962_v51 = vpop.f32.mrf.mxu2  ;;  %v6071_v27 = vpop.f32.mrf.mxu3  ;;  %v6780_v30 = vadd.f32 %v12780_v25, %v6513_v28 }
 0x8a1   : > { %v6072_v31 = vadd.f32 %v6071_v27, %v5962_v51  ;;  %6775 = vadd.xlane.f32.xlu1 %v6774_v37  ;;  %v5746_v48 = vpop.f32.mrf.mxu0  ;;  %v5855_v57 = vpop.f32.mrf.mxu1  ;;  %v15030_v27 = vld [vmem:[#allocation196_spill] sm:$0xff] }
 0x8a2   : > { %v5856_v14 = vadd.f32 %v5855_v57, %v5746_v48  ;;  %v15031_v28 = vunpack.c.l.bf16 %v15030_v27 }
 0x8a3   : > { %v6274_v44 = vsub.f32 %v6072_v31, %v15020_v45 }
 0x8a4   : > { %v6279_v0 = vsub.f32 %v5856_v14, %v15022_v21 }
 0x8a5   : > { %v6514_v16 = vmul.f32 %v6274_v44, %v6274_v44 }
 0x8a6   : > { %v6519_v23 = vmul.f32 %v6279_v0, %v6279_v0  ;;  %v15032_v0 = vunpack.c.h.bf16 %v15030_v27 }
 0x8a7   : > { %v6781_v10 = vadd.f32 %v6780_v30, %v6514_v16 }
 0x8a8   : > { %v5964_v13 = vpop.f32.mrf.mxu2  ;;  %v6073_v40 = vpop.f32.mrf.mxu3  ;;  %v6787_v54 = vadd.f32 %v12839_v19, %v6519_v23 }
 0x8a9   : > { %v6074_v34 = vadd.f32 %v6073_v40, %v5964_v13  ;;  %6782 = vadd.xlane.f32.xlu2 %v6781_v10  ;;  %v5749_v50 = vpop.f32.mrf.mxu0  ;;  %v5858_v12 = vpop.f32.mrf.mxu1  ;;  %v15033_v13 = vld [vmem:[#allocation186_spill] sm:$0xff] }
 0x8aa   : > { %v5859_v59 = vadd.f32 %v5858_v12, %v5749_v50  ;;  %v15034_v40 = vunpack.c.l.bf16 %v15033_v13 }
 0x8ab   : > { %v6280_v55 = vsub.f32 %v6074_v34, %v15023_v63 }
 0x8ac   : > { %v6285_v36 = vsub.f32 %v5859_v59, %v15025_v35  ;;  %v15035_v35 = vunpack.c.h.bf16 %v15033_v13 }
 0x8ad   : > { %v6520_v24 = vmul.f32 %v6280_v55, %v6280_v55 }
 0x8ae   : > { %v6525_v6 = vmul.f32 %v6285_v36, %v6285_v36 }
 0x8af   : > { %v6788_v62 = vadd.f32 %v6787_v54, %v6520_v24 }
 0x8b0   : > { %v5967_v25 = vpop.f32.mrf.mxu2  ;;  %v6076_v2 = vpop.f32.mrf.mxu3  ;;  %v6794_v5 = vadd.f32 %v12801_v53, %v6525_v6 }
 0x8b1   : > { %v6077_v43 = vadd.f32 %v6076_v2, %v5967_v25  ;;  %6789 = vadd.xlane.f32.xlu0 %v6788_v62  ;;  %v5751_v32 = vpop.f32.mrf.mxu0  ;;  %v5860_v52 = vpop.f32.mrf.mxu1  ;;  %v15036_v62 = vld [vmem:[#allocation194_spill] sm:$0xff] }
 0x8b2   : > { %v5861_v38 = vadd.f32 %v5860_v52, %v5751_v32  ;;  %v15037_v25 = vunpack.c.l.bf16 %v15036_v62  ;;  %v15038_v1 = vunpack.c.h.bf16 %v15036_v62  ;;  %v15048_v62 = vld [vmem:[#allocation214_spill] sm:$0xff] }
 0x8b3   : > { %v6286_v18 = vsub.f32 %v6077_v43, %v15026_v9 }
 0x8b4   : > { %v6291_v39 = vsub.f32 %v5861_v38, %v15028_v4 }
 0x8b5   : > { %v6526_v42 = vmul.f32 %v6286_v18, %v6286_v18 }
 0x8b6   : > { %v6531_v58 = vmul.f32 %v6291_v39, %v6291_v39 }
 0x8b7   : > { %v6795_v26 = vadd.f32 %v6794_v5, %v6526_v42  ;;  %v15039_v5 = vld [vmem:[#allocation202_spill] sm:$0xff] }
 0x8b8   : > { %v5969_v19 = vpop.f32.mrf.mxu2  ;;  %v6078_v29 = vpop.f32.mrf.mxu3  ;;  %v6801_v48 = vadd.f32 %v12860_v7, %v6531_v58 }
 0x8b9   : > { %v6079_v15 = vadd.f32 %v6078_v29, %v5969_v19  ;;  %6796 = vadd.xlane.f32.xlu1 %v6795_v26  ;;  %v5754_v3 = vpop.f32.mrf.mxu0  ;;  %v5863_v49 = vpop.f32.mrf.mxu1  ;;  %v15040_v26 = vunpack.c.l.bf16 %v15039_v5 }
 0x8ba   : > { %v5864_v47 = vadd.f32 %v5863_v49, %v5754_v3 }
 0x8bb   : > { %v6292_v37 = vsub.f32 %v6079_v15, %v15029_v61 }
 0x8bc   : > { %v6297_v31 = vsub.f32 %v5864_v47, %v15031_v28 }
 0x8bd   : > { %v6532_v51 = vmul.f32 %v6292_v37, %v6292_v37 }
 0x8be   : > { %v6537_v45 = vmul.f32 %v6297_v31, %v6297_v31  ;;  %v15042_v31 = vld [vmem:[#allocation201_spill] sm:$0xff] }
 0x8bf   : > { %v6802_v57 = vadd.f32 %v6801_v48, %v6532_v51  ;;  %v15041_v51 = vunpack.c.h.bf16 %v15039_v5  ;;  %v15043_v48 = vunpack.c.l.bf16 %v15042_v31 }
 0x8c0   : > { %v5972_v53 = vpop.f32.mrf.mxu2  ;;  %v6081_v14 = vpop.f32.mrf.mxu3  ;;  %v6808_v34 = vadd.f32 %v12822_v17, %v6537_v45 }
 0x8c1   : > { %v6082_v44 = vadd.f32 %v6081_v14, %v5972_v53  ;;  %6803 = vadd.xlane.f32.xlu2 %v6802_v57  ;;  %v5756_v16 = vpop.f32.mrf.mxu0  ;;  %v5865_v56 = vpop.f32.mrf.mxu1 }
 0x8c2   : > { %v5866_v21 = vadd.f32 %v5865_v56, %v5756_v16 }
 0x8c3   : > { %v6298_v30 = vsub.f32 %v6082_v44, %v15032_v0 }
 0x8c4   : > { %v6303_v23 = vsub.f32 %v5866_v21, %v15034_v40  ;;  %v15045_v40 = vld [vmem:[#allocation207_spill] sm:$0xff] }
 0x8c5   : > { %v6538_v10 = vmul.f32 %v6298_v30, %v6298_v30  ;;  %v15044_v30 = vunpack.c.h.bf16 %v15042_v31 }
 0x8c6   : > { %v6543_v59 = vmul.f32 %v6303_v23, %v6303_v23  ;;  %v15046_v23 = vunpack.c.l.bf16 %v15045_v40 }
 0x8c7   : > { %v6809_v50 = vadd.f32 %v6808_v34, %v6538_v10 }
 0x8c8   : > { %v5974_v7 = vpop.f32.mrf.mxu2  ;;  %v6083_v12 = vpop.f32.mrf.mxu3  ;;  %v6815_v6 = vadd.f32 %v12881_v11, %v6543_v59 }
 0x8c9   : > { %v6084_v63 = vadd.f32 %v6083_v12, %v5974_v7  ;;  %6810 = vadd.xlane.f32.xlu0 %v6809_v50  ;;  %v5759_v55 = vpop.f32.mrf.mxu0  ;;  %v5868_v24 = vpop.f32.mrf.mxu1 }
 0x8ca   : > { %v5869_v8 = vadd.f32 %v5868_v24, %v5759_v55 }
 0x8cb   : > { %v6304_v36 = vsub.f32 %v6084_v63, %v15035_v35  ;;  %v15047_v35 = vunpack.c.h.bf16 %v15045_v40 }
 0x8cc   : > { %v6309_v2 = vsub.f32 %v5869_v8, %v15037_v25  ;;  %v15049_v25 = vunpack.c.l.bf16 %v15048_v62 }
 0x8cd   : > { %v6544_v54 = vmul.f32 %v6304_v36, %v6304_v36 }
 0x8ce   : > { %v6549_v52 = vmul.f32 %v6309_v2, %v6309_v2 }
 0x8cf   : > { %v6816_v43 = vadd.f32 %v6815_v6, %v6544_v54 }
 0x8d0   : > { %v5977_v17 = vpop.f32.mrf.mxu2  ;;  %v6086_v32 = vpop.f32.mrf.mxu3  ;;  %v6822_v29 = vadd.f32 %v12843_v46, %v6549_v52 }
 0x8d1   : > { %v6087_v38 = vadd.f32 %v6086_v32, %v5977_v17  ;;  %6817 = vadd.xlane.f32.xlu1 %v6816_v43  ;;  %v5761_v9 = vpop.f32.mrf.mxu0  ;;  %v5870_v18 = vpop.f32.mrf.mxu1 }
 0x8d2   : > { %v5871_v42 = vadd.f32 %v5870_v18, %v5761_v9 }
 0x8d3   : > { %v6310_v4 = vsub.f32 %v6087_v38, %v15038_v1 }
 0x8d4   : > { %v6315_v19 = vsub.f32 %v5871_v42, %v15040_v26  ;;  %v15050_v42 = vunpack.c.h.bf16 %v15048_v62 }
 0x8d5   : > { %v6550_v39 = vmul.f32 %v6310_v4, %v6310_v4 }
 0x8d6   : > { %v6555_v3 = vmul.f32 %v6315_v19, %v6315_v19 }
 0x8d7   : > { %v6823_v58 = vadd.f32 %v6822_v29, %v6550_v39  ;;  %v15051_v39 = vld [vmem:[#allocation209_spill] sm:$0xff] }
 0x8d8   : > { %v5979_v11 = vpop.f32.mrf.mxu2  ;;  %v6088_v15 = vpop.f32.mrf.mxu3  ;;  %v6829_v53 = vadd.f32 %v12903_v20, %v6555_v3  ;;  %v15052_v5 = vunpack.c.l.bf16 %v15051_v39  ;;  %v15053_v3 = vunpack.c.h.bf16 %v15051_v39 }
 0x8d9   : > { %v6089_v49 = vadd.f32 %v6088_v15, %v5979_v11  ;;  %6824 = vadd.xlane.f32.xlu2 %v6823_v58  ;;  %v5764_v47 = vpop.f32.mrf.mxu0  ;;  %v5873_v61 = vpop.f32.mrf.mxu1 }
 0x8da   : > { %v5874_v37 = vadd.f32 %v5873_v61, %v5764_v47 }
 0x8db   : > { %v6316_v27 = vsub.f32 %v6089_v49, %v15041_v51  ;;  %v6587_v51 = vpop.xlane.xlu2 %6586 }
 0x8dc   : > { %v6321_v57 = vsub.f32 %v5874_v37, %v15043_v48 }
 0x8dd   : > { %v6556_v28 = vmul.f32 %v6316_v27, %v6316_v27  ;;  %v6594_v27 = vpop.xlane.xlu0 %6593 }
 0x8de   : > { %v6561_v44 = vmul.f32 %v6321_v57, %v6321_v57 }
 0x8df   : > { %v6830_v14 = vadd.f32 %v6829_v53, %v6556_v28  ;;  %v6601_v28 = vpop.xlane.xlu1 %6600 }
 0x8e0   : > { %v5982_v46 = vpop.f32.mrf.mxu2  ;;  %v6091_v45 = vpop.f32.mrf.mxu3  ;;  %v6836_v50 = vadd.f32 %v12864_v41, %v6561_v44 }
 0x8e1   : > { %v6092_v16 = vadd.f32 %v6091_v45, %v5982_v46  ;;  %6831 = vadd.xlane.f32.xlu0 %v6830_v14  ;;  %v5766_v56 = vpop.f32.mrf.mxu0  ;;  %v5875_v21 = vpop.f32.mrf.mxu1  ;;  %v6862_v45 = vld [vmem:[%s9070_s17 + $0x8] sm:$0xff] }
 0x8e2   : > { %v5876_v0 = vadd.f32 %v5875_v21, %v5766_v56  ;;  %v6902_v21 = vmul.f32 %v6862_v45, %v6594_v27 }
 0x8e3   : > { %v6322_v10 = vsub.f32 %v6092_v16, %v15044_v30  ;;  %v6861_v16 = vld [vmem:[%s9070_s17] sm:$0xff] }
 0x8e4   : > { %v6327_v34 = vsub.f32 %v5876_v0, %v15046_v23  ;;  %v6864_v0 = vld [vmem:[%s9070_s17 + $0x18] sm:$0xff]  ;;  %v6901_v30 = vmul.f32 %v6861_v16, %v6587_v51  ;;  %v6943_v23 = vsel %vm6941_vm1, %v6902_v21, 0.0  ;;  %v6877_v16 = vld [vmem:[%s9070_s17 + $0x80] sm:$0xff] }
 0x8e5   : > { %v6562_v13 = vmul.f32 %v6322_v10, %v6322_v10  ;;  %v6622_v48 = vpop.xlane.xlu0 %6621 }
 0x8e6   : > { %v6567_v59 = vmul.f32 %v6327_v34, %v6327_v34 }
 0x8e7   : > { %v6837_v7 = vadd.f32 %v6836_v50, %v6562_v13  ;;  %v6629_v57 = vpop.xlane.xlu1 %6628  ;;  %v6865_v13 = vld [vmem:[%s9070_s17 + $0x20] sm:$0xff]  ;;  %v6866_v50 = vld [vmem:[%s9070_s17 + $0x28] sm:$0xff] }
 0x8e8   : > { %v5984_v20 = vpop.f32.mrf.mxu2  ;;  %v6093_v12 = vpop.f32.mrf.mxu3  ;;  %v6843_v6 = vadd.f32 %v12922_v22, %v6567_v59 }
 0x8e9   : > { %v6094_v63 = vadd.f32 %v6093_v12, %v5984_v20  ;;  %6838 = vadd.xlane.f32.xlu1 %v6837_v7  ;;  %v5769_v55 = vpop.f32.mrf.mxu0  ;;  %v5878_v24 = vpop.f32.mrf.mxu1  ;;  %v6942_v20 = vsel %vm6941_vm1, %v6901_v30, 0.0  ;;  %v6878_v30 = vld [vmem:[%s9070_s17 + $0x88] sm:$0xff] }
 0x8ea   : > { %v5879_v8 = vadd.f32 %v5878_v24, %v5769_v55  ;;  %v6867_v55 = vld [vmem:[%s9070_s17 + $0x30] sm:$0xff] }
 0x8eb   : > { %v6328_v36 = vsub.f32 %v6094_v63, %v15047_v35  ;;  %v6944_v63 = vadd.f32 %v6943_v23, %v6942_v20  ;;  %v6906_v35 = vmul.f32 %v6866_v50, %v6622_v48 }
 0x8ec   : > { %v6333_v2 = vsub.f32 %v5879_v8, %v15049_v25  ;;  %v6907_v25 = vmul.f32 %v6867_v55, %v6629_v57 }
 0x8ed   : > { %v6568_v54 = vmul.f32 %v6328_v36, %v6328_v36  ;;  %v6643_v14 = vpop.xlane.xlu0 %6642 }
 0x8ee   : > { %v6573_v32 = vmul.f32 %v6333_v2, %v6333_v2 }
 0x8ef   : > { %v6844_v43 = vadd.f32 %v6843_v6, %v6568_v54  ;;  %v6650_v46 = vpop.xlane.xlu1 %6649  ;;  %v6868_v54 = vld [vmem:[%s9070_s17 + $0x38] sm:$0xff]  ;;  %v6869_v6 = vld [vmem:[%s9070_s17 + $0x40] sm:$0xff] }
 0x8f0   : > { %v5987_v41 = vpop.f32.mrf.mxu2  ;;  %v6096_v17 = vpop.f32.mrf.mxu3  ;;  %v6850_v19 = vadd.f32 %v12885_v33, %v6573_v32 }
 0x8f1   : > { %v6097_v52 = vadd.f32 %v6096_v17, %v5987_v41  ;;  %6845 = vadd.xlane.f32.xlu2 %v6844_v43  ;;  %v5771_v38 = vpop.f32.mrf.mxu0  ;;  %v5880_v9 = vpop.f32.mrf.mxu1  ;;  %v6951_v41 = vsel %vm6941_vm1, %v6906_v35, 0.0 }
 0x8f2   : > { %v5881_v18 = vadd.f32 %v5880_v9, %v5771_v38  ;;  %v6608_v33 = vpop.xlane.xlu2 %6607  ;;  %v6953_v9 = vsel %vm6941_vm1, %v6907_v25, 0.0  ;;  %v6882_v25 = vld [vmem:[%s9070_s17 + $0xa8] sm:$0xff] }
 0x8f3   : > { %v6334_v1 = vsub.f32 %v6097_v52, %v15050_v42  ;;  %v6904_v34 = vmul.f32 %v6864_v0, %v6608_v33  ;;  %v6870_v52 = vld [vmem:[%s9070_s17 + $0x48] sm:$0xff] }
 0x8f4   : > { %v6339_v26 = vsub.f32 %v5881_v18, %v15052_v5  ;;  %v6909_v18 = vmul.f32 %v6869_v6, %v6643_v14  ;;  %v6910_v5 = vmul.f32 %v6870_v52, %v6650_v46  ;;  %v6876_v14 = vld [vmem:[%s9070_s17 + $0x78] sm:$0xff] }
 0x8f5   : > { %v6574_v4 = vmul.f32 %v6334_v1, %v6334_v1  ;;  %v6664_v56 = vpop.xlane.xlu0 %6663  ;;  %v6947_v8 = vsel %vm6941_vm1, %v6904_v34, 0.0  ;;  %v6871_v1 = vld [vmem:[%s9070_s17 + $0x50] sm:$0xff] }
 0x8f6   : > { %v6579_v11 = vmul.f32 %v6339_v26, %v6339_v26  ;;  %v6879_v34 = vld [vmem:[%s9070_s17 + $0x90] sm:$0xff] }
 0x8f7   : > { %v6851_v29 = vadd.f32 %v6850_v19, %v6574_v4  ;;  %v6671_v40 = vpop.xlane.xlu1 %6670  ;;  %v6872_v19 = vld [vmem:[%s9070_s17 + $0x58] sm:$0xff] }
 0x8f8   : > { %v5989_v22 = vpop.f32.mrf.mxu2  ;;  %v6098_v58 = vpop.f32.mrf.mxu3  ;;  %v6857_v61 = vadd.f32 %v12942_v60, %v6579_v11  ;;  %v6863_v60 = vld [vmem:[%s9070_s17 + $0x10] sm:$0xff]  ;;  %v6873_v11 = vld [vmem:[%s9070_s17 + $0x60] sm:$0xff] }
 0x8f9   : > { %v6099_v15 = vadd.f32 %v6098_v58, %v5989_v22  ;;  %6852 = vadd.xlane.f32.xlu0 %v6851_v29  ;;  %v6903_v10 = vmul.f32 %v6863_v60, %v6601_v28  ;;  %v6957_v29 = vsel %vm6941_vm1, %v6909_v18, 0.0  ;;  %v6913_v33 = vmul.f32 %v6873_v11, %v6671_v40  ;;  %v6875_v28 = vld [vmem:[%s9070_s17 + $0x70] sm:$0xff]  ;;  %v6884_v18 = vld [vmem:[%s9070_s17 + $0xb8] sm:$0xff] }
 0x8fa   : > { %v6615_v31 = vpop.xlane.xlu2 %6614 }
 0x8fb   : > { %v6340_v49 = vsub.f32 %v6099_v15, %v15053_v3  ;;  %v6945_v12 = vsel %vm6941_vm1, %v6903_v10, 0.0  ;;  %v6905_v59 = vmul.f32 %v6865_v13, %v6615_v31  ;;  %v6959_v3 = vsel %vm6941_vm1, %v6910_v5, 0.0 }
 0x8fc   : > { %v6946_v36 = vadd.f32 %v6945_v12, %v6944_v63  ;;  %v6965_v46 = vsel %vm6941_vm1, %v6913_v33, 0.0  ;;  %v6888_v33 = vld [vmem:[%s9070_s17 + $0xd8] sm:$0xff] }
 0x8fd   : > { %v6580_v47 = vmul.f32 %v6340_v49, %v6340_v49  ;;  %v6685_v24 = vpop.xlane.xlu0 %6684  ;;  %v6949_v62 = vsel %vm6941_vm1, %v6905_v59, 0.0  ;;  %v6912_v49 = vmul.f32 %v6872_v19, %v6664_v56  ;;  %v6880_v59 = vld [vmem:[%s9070_s17 + $0x98] sm:$0xff] }
 0x8fe   : > { %v6948_v2 = vadd.f32 %v6947_v8, %v6946_v36  ;;  %v6915_v45 = vmul.f32 %v6875_v28, %v6685_v24  ;;  %v6881_v8 = vld [vmem:[%s9070_s17 + $0xa0] sm:$0xff] }
 0x8ff   : > { %v6858_v37 = vadd.f32 %v6857_v61, %v6580_v47  ;;  %v6692_v43 = vpop.xlane.xlu1 %6691  ;;  %v6874_v61 = vld [vmem:[%s9070_s17 + $0x68] sm:$0xff]  ;;  %v6963_v48 = vsel %vm6941_vm1, %v6912_v49, 0.0  ;;  %v6887_v49 = vld [vmem:[%s9070_s17 + $0xd0] sm:$0xff] }
 0x900   : > { %v6950_v32 = vadd.f32 %v6949_v62, %v6948_v2  ;;  %v6916_v21 = vmul.f32 %v6876_v14, %v6692_v43  ;;  %v6969_v13 = vsel %vm6941_vm1, %v6915_v45, 0.0  ;;  %v6890_v45 = vld [vmem:[%s9070_s17 + $0xe8] sm:$0xff] }
 0x901   : > { %6859 = vadd.xlane.f32.xlu1 %v6858_v37 }
 0x902   : > { %v6636_v53 = vpop.xlane.xlu2 %6635  ;;  %v6952_v42 = vadd.f32 %v6951_v41, %v6950_v32 }
 0x903   : > { %v6908_v17 = vmul.f32 %v6868_v54, %v6636_v53 }
 0x904   : > { %v6954_v26 = vadd.f32 %v6953_v9, %v6952_v42 }
 0x905   : > { %v6706_v4 = vpop.xlane.xlu0 %6705  ;;  %v6955_v39 = vsel %vm6941_vm1, %v6908_v17, 0.0  ;;  %v6883_v17 = vld [vmem:[%s9070_s17 + $0xb0] sm:$0xff] }
 0x906   : > { %v6956_v58 = vadd.f32 %v6955_v39, %v6954_v26  ;;  %v6918_v20 = vmul.f32 %v6878_v30, %v6706_v4  ;;  %v6885_v39 = vld [vmem:[%s9070_s17 + $0xc0] sm:$0xff] }
 0x907   : > { %v6713_v15 = vpop.xlane.xlu1 %6712 }
 0x908   : > { %v6958_v47 = vadd.f32 %v6957_v29, %v6956_v58  ;;  %v6919_v55 = vmul.f32 %v6879_v34, %v6713_v15  ;;  %v6975_v36 = vsel %vm6941_vm1, %v6918_v20, 0.0 }
 0x90a   : > { %v6657_v44 = vpop.xlane.xlu2 %6656  ;;  %v6960_v27 = vadd.f32 %v6959_v3, %v6958_v47  ;;  %v6977_v6 = vsel %vm6941_vm1, %v6919_v55, 0.0  ;;  %v6894_v55 = vld [vmem:[%s9070_s17 + $0x108] sm:$0xff] }
 0x90b   : > { %v6911_v22 = vmul.f32 %v6871_v1, %v6657_v44 }
 0x90d   : > { %v6961_v51 = vsel %vm6941_vm1, %v6911_v22, 0.0  ;;  %v6727_v31 = vpop.xlane.xlu0 %6726  ;;  %v6886_v22 = vld [vmem:[%s9070_s17 + $0xc8] sm:$0xff] }
 0x90e   : > { %v6962_v53 = vadd.f32 %v6961_v51, %v6960_v27  ;;  %v6921_v43 = vmul.f32 %v6881_v8, %v6727_v31 }
 0x90f   : > { %v6734_v60 = vpop.xlane.xlu1 %6733 }
 0x910   : > { %v6964_v44 = vadd.f32 %v6963_v48, %v6962_v53  ;;  %v6981_v42 = vsel %vm6941_vm1, %v6921_v43, 0.0  ;;  %v6889_v48 = vld [vmem:[%s9070_s17 + $0xe0] sm:$0xff]  ;;  %v6896_v43 = vld [vmem:[%s9070_s17 + $0x118] sm:$0xff] }
 0x912   : > { %v6678_v7 = vpop.xlane.xlu2 %6677  ;;  %v6966_v0 = vadd.f32 %v6965_v46, %v6964_v44 }
 0x913   : > { %v6914_v57 = vmul.f32 %v6874_v61, %v6678_v7  ;;  %v6971_v7 = vsel %vm6941_vm1, %v6916_v21, 0.0  ;;  %v6891_v21 = vld [vmem:[%s9070_s17 + $0xf0] sm:$0xff] }
 0x915   : > { %v6967_v56 = vsel %vm6941_vm1, %v6914_v57, 0.0  ;;  %v6748_v50 = vpop.xlane.xlu0 %6747 }
 0x916   : > { %v6968_v23 = vadd.f32 %v6967_v56, %v6966_v0  ;;  %v6924_v19 = vmul.f32 %v6884_v18, %v6748_v50 }
 0x917   : > { %v6755_v35 = vpop.xlane.xlu1 %6754 }
 0x918   : > { %v6970_v12 = vadd.f32 %v6969_v13, %v6968_v23  ;;  %v6925_v15 = vmul.f32 %v6885_v39, %v6755_v35  ;;  %v6987_v61 = vsel %vm6941_vm1, %v6924_v19, 0.0  ;;  %v6899_v19 = vld [vmem:[%s9070_s17 + $0x130] sm:$0xff] }
 0x91a   : > { %v6699_v38 = vpop.xlane.xlu2 %6698  ;;  %v6972_v24 = vadd.f32 %v6971_v7, %v6970_v12  ;;  %v6989_v27 = vsel %vm6941_vm1, %v6925_v15, 0.0  ;;  %v6893_v7 = vld [vmem:[%s9070_s17 + $0x100] sm:$0xff] }
 0x91b   : > { %v6917_v40 = vmul.f32 %v6877_v16, %v6699_v38  ;;  %v6922_v38 = vmul.f32 %v6882_v25, %v6734_v60 }
 0x91d   : > { %v6973_v63 = vsel %vm6941_vm1, %v6917_v40, 0.0  ;;  %v6769_v32 = vpop.xlane.xlu0 %6768  ;;  %v6983_v26 = vsel %vm6941_vm1, %v6922_v38, 0.0  ;;  %v6892_v40 = vld [vmem:[%s9070_s17 + $0xf8] sm:$0xff] }
 0x91e   : > { %v6974_v62 = vadd.f32 %v6973_v63, %v6972_v24  ;;  %v6927_v28 = vmul.f32 %v6887_v49, %v6769_v32 }
 0x91f   : > { %v6776_v5 = vpop.xlane.xlu1 %6775 }
 0x920   : > { %v6976_v41 = vadd.f32 %v6975_v36, %v6974_v62  ;;  %v6928_v14 = vmul.f32 %v6888_v33, %v6776_v5  ;;  %v6993_v16 = vsel %vm6941_vm1, %v6927_v28, 0.0 }
 0x922   : > { %v6720_v37 = vpop.xlane.xlu2 %6719  ;;  %v6978_v9 = vadd.f32 %v6977_v6, %v6976_v41  ;;  %v6995_v30 = vsel %vm6941_vm1, %v6928_v14, 0.0 }
 0x923   : > { %v6920_v54 = vmul.f32 %v6880_v59, %v6720_v37 }
 0x925   : > { %v6979_v52 = vsel %vm6941_vm1, %v6920_v54, 0.0  ;;  %v6790_v47 = vpop.xlane.xlu0 %6789  ;;  %v6895_v54 = vld [vmem:[%s9070_s17 + $0x110] sm:$0xff] }
 0x926   : > { %v6980_v4 = vadd.f32 %v6979_v52, %v6978_v9  ;;  %v6897_v52 = vld [vmem:[%s9070_s17 + $0x120] sm:$0xff] }
 0x928   : > { %v6982_v29 = vadd.f32 %v6981_v42, %v6980_v4 }
 0x92a   : > { %v6741_v10 = vpop.xlane.xlu2 %6740  ;;  %v6984_v3 = vadd.f32 %v6983_v26, %v6982_v29 }
 0x92b   : > { %v6923_v1 = vmul.f32 %v6883_v17, %v6741_v10  ;;  %v6930_v10 = vmul.f32 %v6890_v45, %v6790_v47 }
 0x92c   : > { %v6797_v57 = vpop.xlane.xlu1 %6796 }
 0x92d   : > { %v6985_v11 = vsel %vm6941_vm1, %v6923_v1, 0.0  ;;  %v6931_v34 = vmul.f32 %v6891_v21, %v6797_v57  ;;  %v6999_v12 = vsel %vm6941_vm1, %v6930_v10, 0.0  ;;  %v6898_v1 = vld [vmem:[%s9070_s17 + $0x128] sm:$0xff] }
 0x92e   : > { %v6986_v51 = vadd.f32 %v6985_v11, %v6984_v3 }
 0x92f   : > { %v7001_v8 = vsel %vm6941_vm1, %v6931_v34, 0.0 }
 0x930   : > { %v6988_v31 = vadd.f32 %v6987_v61, %v6986_v51 }
 0x932   : > { %v6762_v2 = vpop.xlane.xlu2 %6761  ;;  %v6990_v46 = vadd.f32 %v6989_v27, %v6988_v31 }
 0x933   : > { %v6926_v37 = vmul.f32 %v6886_v22, %v6762_v2 }
 0x935   : > { %v6991_v53 = vsel %vm6941_vm1, %v6926_v37, 0.0  ;;  %v6900_v37 = vld [vmem:[%s9070_s17 + $0x138] sm:$0xff] }
 0x936   : > { %v6992_v56 = vadd.f32 %v6991_v53, %v6990_v46 }
 0x938   : > { %v6994_v13 = vadd.f32 %v6993_v16, %v6992_v56  ;;  %v7027_v16 = vld [vmem:[%s9073_s0] sm:$0x1] }
 0x93a   : > { %v6783_v58 = vpop.xlane.xlu2 %6782  ;;  %v6996_v50 = vadd.f32 %v6995_v30, %v6994_v13 }
 0x93b   : > { %v6929_v60 = vmul.f32 %v6889_v48, %v6783_v58 }
 0x93c   : > { %v6811_v0 = vpop.xlane.xlu0 %6810 }
 0x93d   : > { %v6997_v23 = vsel %vm6941_vm1, %v6929_v60, 0.0  ;;  %v6933_v35 = vmul.f32 %v6893_v7, %v6811_v0 }
 0x93e   : > { %v6998_v63 = vadd.f32 %v6997_v23, %v6996_v50 }
 0x93f   : > { %v7005_v41 = vsel %vm6941_vm1, %v6933_v35, 0.0 }
 0x940   : > { %v7000_v36 = vadd.f32 %v6999_v12, %v6998_v63 }
 0x942   : > { %v6804_v44 = vpop.xlane.xlu2 %6803  ;;  %v7002_v6 = vadd.f32 %v7001_v8, %v7000_v36 }
 0x943   : > { %v6932_v59 = vmul.f32 %v6892_v40, %v6804_v44 }
 0x944   : > { %v6818_v20 = vpop.xlane.xlu1 %6817 }
 0x945   : > { %v7003_v25 = vsel %vm6941_vm1, %v6932_v59, 0.0  ;;  %v6934_v2 = vmul.f32 %v6894_v55, %v6818_v20 }
 0x946   : > { %v7004_v32 = vadd.f32 %v7003_v25, %v7002_v6 }
 0x947   : > { %v7007_v9 = vsel %vm6941_vm1, %v6934_v2, 0.0 }
 0x948   : > { %v7006_v42 = vadd.f32 %v7005_v41, %v7004_v32 }
 0x94a   : > { %v7008_v26 = vadd.f32 %v7007_v9, %v7006_v42 }
 0x94c   : > { %v6825_v24 = vpop.xlane.xlu2 %6824 }
 0x94d   : > { %v6935_v17 = vmul.f32 %v6895_v54, %v6825_v24 }
 0x94f   : > { %v7009_v39 = vsel %vm6941_vm1, %v6935_v17, 0.0 }
 0x950   : > { %v7010_v11 = vadd.f32 %v7009_v39, %v7008_v26 }
 0x954   : > { %v6832_v62 = vpop.xlane.xlu0 %6831 }
 0x955   : > { %v6936_v18 = vmul.f32 %v6896_v43, %v6832_v62 }
 0x957   : > { %v7011_v22 = vsel %vm6941_vm1, %v6936_v18, 0.0 }
 0x958   : > { %v7012_v49 = vadd.f32 %v7011_v22, %v7010_v11 }
 0x95c   : > { %v6839_v38 = vpop.xlane.xlu1 %6838 }
 0x95d   : > { %v6937_v5 = vmul.f32 %v6897_v52, %v6839_v38 }
 0x95f   : > { %v7013_v15 = vsel %vm6941_vm1, %v6937_v5, 0.0 }
 0x960   : > { %v7014_v61 = vadd.f32 %v7013_v15, %v7012_v49 }
 0x964   : > { %v6846_v4 = vpop.xlane.xlu2 %6845 }
 0x965   : > { %v6938_v58 = vmul.f32 %v6898_v1, %v6846_v4 }
 0x967   : > { %v7015_v47 = vsel %vm6941_vm1, %v6938_v58, 0.0 }
 0x968   : > { %v7016_v33 = vadd.f32 %v7015_v47, %v7014_v61 }
 0x96c   : > { %v6853_v29 = vpop.xlane.xlu0 %6852 }
 0x96d   : > { %v6939_v3 = vmul.f32 %v6899_v19, %v6853_v29 }
 0x96f   : > { %v7017_v51 = vsel %vm6941_vm1, %v6939_v3, 0.0 }
 0x970   : > { %v7018_v31 = vadd.f32 %v7017_v51, %v7016_v33 }
 0x974   : > { %v6860_v27 = vpop.xlane.xlu1 %6859 }
 0x975   : > { %v6940_v28 = vmul.f32 %v6900_v37, %v6860_v27 }
 0x977   : > { %v7019_v48 = vsel %vm6941_vm1, %v6940_v28, 0.0 }
 0x978   : > { %v7020_v57 = vadd.f32 %v7019_v48, %v7018_v31 }
 0x97a   : > { %v7021_v53 = vrot.slane %v7020_v57, 4 }
 0x97c   : > { %v7022_v14 = vadd.f32 %v7021_v53, %v7020_v57 }
 0x97e   : > { %v7023_v46 = vrot.slane %v7022_v14, 2 }
 0x980   : > { %v7024_v45 = vadd.f32 %v7023_v46, %v7022_v14 }
 0x982   : > { %v7025_v44 = vrot.slane %v7024_v45, 1 }
 0x984   : > { %v7026_v60 = vadd.f32 %v7025_v44, %v7024_v45 }
 0x986   : > { %v7028_v56 = vadd.f32 %v7027_v16, %v7026_v60 }
 0x988   : > { %7030 = vst.msk [vmem:[%s9073_s0] sm:$0x1] %vm7029_vm2, %v7028_v56 }
 0x989   : > { %8629 = shalt.err (!%p8626_p4)
}
 0x98a   : > { %8213 = dma.vmem_to_hbm [thread:$0]  (%p8987_p5), %s7043_s11, 16, %s7045_s28, %s7032_s23  }
 0x98b PF: > { %p8242_p1 = scmp.ge.s32.totalorder %s8760_s14, 2  ;;  %s7056_s0 = sand.u32 1, %s8732_s30  }
 0x98c   : > { %s7057_s22 = scalar_lea.sflag [#allocation4], %s7056_s0 }
 0x98d   : > { %p8233_p3 = pnand %p8242_p1, %p8991_p6 }
 0x98f   : > { %p8234_p7 = pneg %p8233_p3 }
 0x991   : > { %8703 = dma.done.wait (%p8234_p7), %s7057_s22, 16  }
 0x992   : > { %8705 = vsyncadd (%p8234_p7), %s7057_s22, 4294967280  ;;  %s27_s14 = sadd.s32 1, %s8760_s14   ;;  %s15057_s18 = sld [smem:[#allocation17_spill]] }
 0x993   : > { %p13259_p12 = scmp.ge.s32.totalorder %s27_s14, 6   ;;  %s15058_s28 = sld [smem:[#allocation18_spill]] }
 0x994   : > { %s15059_s29 = sld [smem:[#allocation25_spill]]  ;;  %s15060_s21 = smov %s8974_s27 }
 0x995   : > { %s15061_s4 = sld [smem:[#allocation22_spill]]  ;;  %s15063_s24 = smov %s8712_s25 }
 0x996   : > { %s15062_s2 = sld [smem:[#allocation23_spill]]  ;;  %s15064_s25 = smov %s8716_s26 }
 0x997   : > { %s15065_s26 = smov %s9006_s1  ;;  %s15067_s30 = smov %s8736_s8 }
 0x998   : > { %s15066_s27 = smov %s15057_s18  ;;  %s15068_s8 = smov %s8740_s9 }
 0x999   : > { %s15069_s9 = smov %s15060_s21  ;;  %s15070_s10 = smov %s8752_s12 }
 0x99a   : > { %s15071_s11 = smov %s8756_s13  ;;  %26 = sbr.rel (!%p13259_p12) target bundleno = 20 (0x14), region = 135 }
 0x99b   : > { %s15072_s12 = smov %s15061_s4 }
 0x99c   : > { %s15073_s13 = smov %s15062_s2 }
 0x99f   :  { %7062 = vsyncpa [#allocation3], 1 }
 0x9a0   :  { %7064 = vsyncpa [#allocation3 + $0x1], 1 }
 0x9a1   :  { %7065 = vsyncpa [#allocation6], 1 }
 0x9a2   :  { %7067 = vsyncpa [#allocation6 + $0x1], 1 }
 0x9a3   :  { %7068 = vsyncpa [#allocation9], 1 }
 0x9a4   :  { %7069 = vsyncpa [#allocation4], 1 }
 0x9a5   :  { %7071 = vsyncpa [#allocation4 + $0x1], 1 }

</bundles_post_ra>
